<compile_context>
chip_gen: v7x
topology: tpu7x:2x2x1
jax: 0.10.0
libtpu: 0.0.40
codegen_flags: <defaults>
</compile_context>

<pallas_src>
import functools
import math

import jax
import jax.numpy as jnp
import numpy as np
from jax.experimental import pallas as pl
from jax.experimental.pallas import tpu as pltpu


def distance_embedding_kernel(dist_ref, mu_ref, w_rbf_ref, out_ref, *, beta, cutoff):
    d = dist_ref[...]                                        # (TILE_E, 1) f32
    mu = mu_ref[...]                                         # (1, R)      f32

    # ExpNormal radial basis: exp(-beta * (exp(-d) - mu)^2)  -> (TILE_E, R)
    rbf = jnp.exp(-beta * (jnp.exp(-d) - mu) ** 2)

    # Cosine envelope: 0.5*(cos(pi*d/cutoff)+1), zero past cutoff -> (TILE_E, 1)
    env = 0.5 * (jnp.cos((jnp.pi / cutoff) * d) + 1.0)
    env = jnp.where(d < cutoff, env, 0.0)

    # Dense (n_rbf -> feat_dim, bias=False) on the MXU       -> (TILE_E, F)
    feats = jnp.dot(rbf, w_rbf_ref[...], preferred_element_type=jnp.float32)

    out_ref[...] = (feats * env).astype(out_ref.dtype)


def distance_embedding_forward(dist, params, *, tile_e=512):
    """dist: (E,) float distances -> (E, feat_dim) edge features."""
    mu2d = jnp.asarray(params["mu"], jnp.float32).reshape(1, -1)   # (1, R)
    w_rbf = jnp.asarray(params["w_rbf"], jnp.float32)              # (R, F)
    beta = float(params["beta"])
    cutoff = float(params["cutoff"])
    n_rbf, feat_dim = w_rbf.shape

    e = dist.shape[0]
    # Keep the sublane dim a multiple of 8; don't tile wider than the problem.
    tile_e = max(8, min(tile_e, -(-e // 8) * 8))
    num_tiles = pl.cdiv(e, tile_e)
    e_pad = num_tiles * tile_e
    # Pad with d > cutoff so the envelope of padded rows is exactly zero
    # (padded rows are sliced off anyway).
    d2 = jnp.pad(dist.astype(jnp.float32), (0, e_pad - e),
                 constant_values=cutoff + 1.0).reshape(e_pad, 1)

    kernel = functools.partial(distance_embedding_kernel, beta=beta, cutoff=cutoff)

    # Advisory cost hint: one (E,R)x(R,F) matmul + elementwise RBF/envelope.
    cost = pl.CostEstimate(
        flops=2 * e_pad * n_rbf * feat_dim + 8 * e_pad * n_rbf + 2 * e_pad * feat_dim,
        transcendentals=e_pad * (n_rbf + 2),
        bytes_accessed=4 * (e_pad + e_pad * feat_dim + n_rbf + n_rbf * feat_dim),
    )

    out = pl.pallas_call(
        kernel,
        out_shape=jax.ShapeDtypeStruct((e_pad, feat_dim), jnp.float32),
        grid_spec=pltpu.PrefetchScalarGridSpec(
            num_scalar_prefetch=0,
            grid=(num_tiles,),
            in_specs=[
                # streamed, double-buffered per edge tile
                pl.BlockSpec((tile_e, 1), lambda i: (i, 0)),
                # small params, resident across all tiles
                pl.BlockSpec((1, n_rbf), lambda i: (0, 0)),
                pl.BlockSpec((n_rbf, feat_dim), lambda i: (0, 0)),
            ],
            out_specs=pl.BlockSpec((tile_e, feat_dim), lambda i: (i, 0)),
        ),
        compiler_params=pltpu.CompilerParams(
            dimension_semantics=("parallel",),      # edge tiles are independent
            vmem_limit_bytes=32 * 1024 * 1024,      # safe on v5e/v6e/v7x
        ),
        cost_estimate=cost,
    )(d2, mu2d, w_rbf)
    return out[:e]


def distance_embedding_reference(dist, params):
    """Pure-JAX reference matching the PyTorch module semantics."""
    d = dist.astype(jnp.float32)[:, None]                    # (E, 1)
    mu = jnp.asarray(params["mu"], jnp.float32)[None, :]     # (1, R)
    rbf = jnp.exp(-params["beta"] * (jnp.exp(-d) - mu) ** 2)
    feats = rbf @ jnp.asarray(params["w_rbf"], jnp.float32)
    env = 0.5 * (jnp.cos(jnp.pi * d / params["cutoff"]) + 1.0)
    env = jnp.where(d < params["cutoff"], env, 0.0)
    return feats * env


def make_params(key, feat_dim, n_rbf, cutoff):
    # ExpNormalBasis init (nff): mu = linspace(exp(-cutoff), 1), fixed beta.
    mu = jnp.linspace(math.exp(-cutoff), 1.0, n_rbf, dtype=jnp.float32)
    beta = (2.0 / n_rbf * (1.0 - math.exp(-cutoff))) ** -2
    w_rbf = jax.random.normal(key, (n_rbf, feat_dim), jnp.float32) * math.sqrt(
        2.0 / (n_rbf + feat_dim))
    return {
        "mu": mu,
        "beta": float(beta),
        "cutoff": float(cutoff),
        "w_rbf": w_rbf,     # Dense weight, bias=False (module default)
    }


if __name__ == "__main__":
    feat_dim = 128          # lane-dense output (multiple of 128)
    n_rbf = 32
    cutoff = 5.0
    num_edges = 1000        # not a tile multiple on purpose (exercises padding)

    key = jax.random.PRNGKey(0)
    kp, kd = jax.random.split(key)

    params = make_params(kp, feat_dim, n_rbf, cutoff)
    dist = jax.random.uniform(kd, (num_edges,), jnp.float32, 0.1, 6.0)

    out = jax.block_until_ready(distance_embedding_forward(dist, params))

    ref = distance_embedding_reference(dist, params)
    np.testing.assert_allclose(np.asarray(out), np.asarray(ref),
                               rtol=2e-5, atol=2e-5)
    print("KERNEL_OK")
</pallas_src>

<mosaic_0001>
module attributes {stable_mosaic.version = 11 : i64} {
  func.func @distance_embedding_kernel(%arg0: i32, %arg1: memref<512x1xf32, #tpu.memory_space<vmem>>, %arg2: memref<1x32xf32, #tpu.memory_space<vmem>>, %arg3: memref<32x128xf32, #tpu.memory_space<vmem>>, %arg4: memref<512x128xf32, #tpu.memory_space<vmem>>) attributes {dimension_semantics = [#tpu.dimension_semantics<parallel>], iteration_bounds = array<i64: 2>, scalar_prefetch = 0 : i64, scratch_operands = 0 : i64, tpu.core_type = #tpu.core_type<tc>, window_params = [{transform_indices = @transform_0, window_bounds = array<i64: 512, 1>}, {pipeline_mode = #tpu.pipeline_mode<synchronous>, transform_indices = @transform_1, window_bounds = array<i64: 1, 32>}, {pipeline_mode = #tpu.pipeline_mode<synchronous>, transform_indices = @transform_2, window_bounds = array<i64: 32, 128>}, {transform_indices = @transform_3, window_bounds = array<i64: 512, 128>}]} {
    %c0 = arith.constant 0 : index
    %c0_0 = arith.constant 0 : index
    %0 = vector.load %arg1[%c0, %c0_0] : memref<512x1xf32, #tpu.memory_space<vmem>>, vector<512x1xf32>
    %c0_1 = arith.constant 0 : index
    %c0_2 = arith.constant 0 : index
    %1 = vector.load %arg2[%c0_1, %c0_2] : memref<1x32xf32, #tpu.memory_space<vmem>>, vector<1x32xf32>
    %cst = arith.constant 0.000000e+00 : f32
    %2 = vector.broadcast %cst : f32 to vector<512x1xf32>
    %3 = arith.subf %2, %0 : vector<512x1xf32>
    %4 = math.exp %3 : vector<512x1xf32>
    %5 = vector.broadcast %4 : vector<512x1xf32> to vector<512x32xf32>
    %6 = vector.broadcast %1 : vector<1x32xf32> to vector<512x32xf32>
    %7 = arith.subf %5, %6 : vector<512x32xf32>
    %8 = arith.mulf %7, %7 : vector<512x32xf32>
    %cst_3 = arith.constant -259.485016 : f32
    %9 = vector.broadcast %cst_3 : f32 to vector<512x32xf32>
    %10 = arith.mulf %9, %8 : vector<512x32xf32>
    %11 = math.exp %10 : vector<512x32xf32>
    %cst_4 = arith.constant 0.628318548 : f32
    %12 = vector.broadcast %cst_4 : f32 to vector<512x1xf32>
    %13 = arith.mulf %12, %0 : vector<512x1xf32>
    %14 = math.cos %13 : vector<512x1xf32>
    %cst_5 = arith.constant 1.000000e+00 : f32
    %15 = vector.broadcast %cst_5 : f32 to vector<512x1xf32>
    %16 = arith.addf %14, %15 : vector<512x1xf32>
    %cst_6 = arith.constant 5.000000e-01 : f32
    %17 = vector.broadcast %cst_6 : f32 to vector<512x1xf32>
    %18 = arith.mulf %17, %16 : vector<512x1xf32>
    %cst_7 = arith.constant 5.000000e+00 : f32
    %19 = vector.broadcast %cst_7 : f32 to vector<512x1xf32>
    %20 = arith.cmpf olt, %0, %19 : vector<512x1xf32>
    %cst_8 = arith.constant 0.000000e+00 : f32
    %21 = vector.broadcast %cst_8 : f32 to vector<512x1xf32>
    %22 = arith.select %20, %18, %21 : vector<512x1xi1>, vector<512x1xf32>
    %c0_9 = arith.constant 0 : index
    %c0_10 = arith.constant 0 : index
    %23 = vector.load %arg3[%c0_9, %c0_10] : memref<32x128xf32, #tpu.memory_space<vmem>>, vector<32x128xf32>
    %cst_11 = arith.constant dense<0.000000e+00> : vector<512x128xf32>
    %24 = tpu.matmul %11, %23, %cst_11 {dimension_numbers = #tpu.dot_dimension_numbers<[1], [0], [0], [1], [0, 0, 1, 1], [], []>} : vector<512x32xf32>, vector<32x128xf32>, vector<512x128xf32> -> vector<512x128xf32>
    %25 = vector.broadcast %22 : vector<512x1xf32> to vector<512x128xf32>
    %26 = arith.mulf %24, %25 : vector<512x128xf32>
    %c0_12 = arith.constant 0 : index
    %c0_13 = arith.constant 0 : index
    %27 = vector.load %arg4[%c0_12, %c0_13] : memref<512x128xf32, #tpu.memory_space<vmem>>, vector<512x128xf32>
    tpu.vector_store %arg4[%c0_12, %c0_13], %26 {strides = array<i32>} : memref<512x128xf32, #tpu.memory_space<vmem>>, vector<512x128xf32>,
    return
  }
  func.func @transform_0(%arg0: i32) -> (i32, i32) {
    %c0_i32 = arith.constant 0 : i32
    %c0_i32_0 = arith.constant 0 : i32
    return %arg0, %c0_i32 : i32, i32
  }
  func.func @transform_1(%arg0: i32) -> (i32, i32) {
    %c0_i32 = arith.constant 0 : i32
    %c0_i32_0 = arith.constant 0 : i32
    %c0_i32_1 = arith.constant 0 : i32
    return %c0_i32, %c0_i32_0 : i32, i32
  }
  func.func @transform_2(%arg0: i32) -> (i32, i32) {
    %c0_i32 = arith.constant 0 : i32
    %c0_i32_0 = arith.constant 0 : i32
    %c0_i32_1 = arith.constant 0 : i32
    return %c0_i32, %c0_i32_0 : i32, i32
  }
  func.func @transform_3(%arg0: i32) -> (i32, i32) {
    %c0_i32 = arith.constant 0 : i32
    %c0_i32_0 = arith.constant 0 : i32
    return %arg0, %c0_i32 : i32, i32
  }
}

</mosaic_0001>

<bundles_post_ra>
// kernel: tpu_custom_call.1
= control target key start
LH: loop header
LB: loop body
LE: loop exit
PB: predicated region body
PF: predicated region fallthrough
CT: control target
= control target key end

     0   :  { %8 = vsyncpa [#allocation3], 0  ;;  %s17403_s0 = inlined_call_operand.vmem [shape: f32[1024,1], index: 0, kind: input, shape index: {}]   ;;  %s17404_s1 = inlined_call_operand.vmem [shape: f32[1,32], index: 1, kind: input, shape index: {}]   ;;  %s17405_s2 = inlined_call_operand.vmem [shape: f32[32,128], index: 2, kind: input, shape index: {}]   ;;  %s17406_s3 = inlined_call_operand.hbm [shape: f32[1024,128], index: 3, kind: output, shape index: {}]  }
   0x1   :  { %10 = vsyncpa [#allocation3 + $0x1], 0  ;;  %s10597_s12 = smov 0   ;;  %s10599_s13 = smov 0  }
   0x2   :  { %s10601_s14 = smov 0   ;;  %s10603_s15 = smov 0  }
   0x3 LB: > { %s10618_s16 = sadd.s32 4294967295, %s10565_s15   ;;  %s9093_s17 = sadd.s32 4294967294, %s10565_s15   ;;  %s10565_s15 = sphi %s10603_s15, %s17603_s15   ;;  %s10561_s14 = sphi %s10601_s14, %s17602_s14   ;;  %s10557_s13 = sphi %s10599_s13, %s17601_s13   ;;  %s10553_s12 = sphi %s10597_s12, %s17600_s12  }
   0x4   : > { %s10622_s18 = sadd.s32 1, %s10565_s15   ;;  %s91_s19 = sadd.s32 1, %s10561_s14 }
   0x5   : > { %s88_s20 = ssub.s32 %s10565_s15, %s10622_s18  ;;  %p101_p0 = scmp.ne.s32.totalorder %s10561_s14, %s10557_s13 }
   0x6   : > { %p89_p1 = scmp.eq.s32.totalorder %s88_s20, 0  ;;  %p102_p2 = scmp.eq.s32.totalorder %s10618_s16, 1 }
   0x7   : > { %p107_p3 = scmp.ne.s32.totalorder %s10557_s13, %s10553_s12  ;;  %p108_p4 = scmp.eq.s32.totalorder %s9093_s17, 1 }
   0x8   : > { %s10633_s21 = scalar_select %p89_p1, %s10561_s14, %s91_s19  }
   0x9   : > { %p10635_p5 = por %p102_p2, %p101_p0  ;;  %p10639_p6 = por %p108_p4, %p107_p3 }
   0xa   : > { %p9096_p7 = scmp.ge.s32.totalorder %s10565_s15, 1  ;;  %p141_p8 = scmp.lt.s32.totalorder %s10565_s15, 3 }
   0xc   : > { %p142_p9 = pnand %p9096_p7, %p141_p8 }
   0xe   : > { %145 = sbr.rel (%p142_p9) target bundleno = 1979 (0x7bb), region = 32 }
  0x15   : > { %s9098_s24 = sshll.u32 %s10618_s16, 6  ;;  %v10567_v0 = vmov 0  }
  0x16   : > { %9916 = vset.pattern.permute.xlu1 %v10567_v0  ;;  %9915 = vset.pattern.permute.xlu0 %v10567_v0  ;;  %p166_p10 = scmp.lt.s32.totalorder %s9098_s24, 127 }
  0x18   : > { %s17605_s24 = smov (!%p166_p10, %s9098_s24), 127 }
  0x19   : > { %s9099_s25 = sshll.u32 %s17605_s24, 3  ;;  %s162_s24 = sand.u32 1, %s10557_s13  }
  0x1a   : > { %s10649_s28 = scalar_lea.vmem %s17403_s0, %s9099_s25  ;;  %s9097_s25 = sshll.u32 %s162_s24, 9 }
  0x1b   : > { %v174_v1 = vld [vmem:[%s10649_s28 + $0x10] sm:$0xff]  ;;  %v172_v2 = vld [vmem:[%s10649_s28] sm:$0xff]  ;;  %v10654_v3 = vld [vmem:[%s10649_s28 + $0x18] sm:$0xff]  ;;  %s16967_s26 = scalar_lea.vmem [#allocation2], %s9097_s25  ;;  %s17362_s5 = scalar_lea.sflag [#allocation3], %s162_s24 }
  0x1c   : > { %v239_v4 = vsub.f32 0.0, %v174_v1  ;;  %v237_v5 = vsub.f32 0.0, %v172_v2  ;;  %v240_v6 = vsub.f32 0.0, %v10654_v3  ;;  %v10658_v7 = vld [vmem:[%s10649_s28 + $0x8] sm:$0xff]  ;;  %v176_v9 = vld [vmem:[%s10649_s28 + $0x20] sm:$0xff]  ;;  %v179_v16 = vld [vmem:[%s10649_s28 + $0x38] sm:$0xff] }
  0x1d   : > { %v177_v8 = vld [vmem:[%s10649_s28 + $0x28] sm:$0xff]  ;;  %v238_v13 = vsub.f32 0.0, %v10658_v7  ;;  %v241_v15 = vsub.f32 0.0, %v176_v9  ;;  %v178_v17 = vld [vmem:[%s10649_s28 + $0x30] sm:$0xff]  ;;  %v10665_v18 = vmul.f32 0.62831855, %v174_v1 }
  0x1e   : > { %v305_v10 = vmul.f32 1.442695, %v239_v4  ;;  %v301_v11 = vmul.f32 1.442695, %v237_v5  ;;  %v307_v12 = vmul.f32 1.442695, %v240_v6 }
  0x1f   : > { %v242_v14 = vsub.f32 0.0, %v177_v8  ;;  %v303_v19 = vmul.f32 1.442695, %v238_v13  ;;  %v181_v20 = vld [vmem:[%s10649_s28 + $0x48] sm:$0xff]  ;;  %v10668_v21 = vmul.f32 0.62831855, %v172_v2 }
  0x20   : > { %9917 = vpow2.f32 %v305_v10  ;;  %v244_v23 = vsub.f32 0.0, %v179_v16  ;;  %v180_v24 = vld [vmem:[%s10649_s28 + $0x40] sm:$0xff]  ;;  %v309_v25 = vmul.f32 1.442695, %v241_v15  ;;  %v243_v26 = vsub.f32 0.0, %v178_v17  ;;  %v183_v27 = vld [vmem:[%s10649_s28 + $0x58] sm:$0xff] }
  0x21   : > { %9919 = vpow2.f32 %v301_v11  ;;  %17432 = vst [vmem:[#allocation5_spill] sm:$0xff] %v10668_v21  ;;  %v311_v22 = vmul.f32 1.442695, %v242_v14  ;;  %v246_v28 = vsub.f32 0.0, %v181_v20  ;;  %v182_v29 = vld [vmem:[%s10649_s28 + $0x50] sm:$0xff]  ;;  %v1348_v30 = vand.u32 2139095040, %v10665_v18 }
  0x22   : > { %9921 = vpow2.f32 %v307_v12  ;;  %v245_v31 = vsub.f32 0.0, %v180_v24  ;;  %v1142_v32 = vand.u32 2139095040, %v10668_v21  ;;  %v315_v33 = vmul.f32 1.442695, %v244_v23  ;;  %v185_v35 = vld [vmem:[%s10649_s28 + $0x68] sm:$0xff]  ;;  %v184_v36 = vld [vmem:[%s10649_s28 + $0x60] sm:$0xff] }
  0x23   : > { %9923 = vpow2.f32 %v303_v19  ;;  %v248_v34 = vsub.f32 0.0, %v183_v27  ;;  %v313_v37 = vmul.f32 1.442695, %v243_v26  ;;  %v247_v38 = vsub.f32 0.0, %v182_v29  ;;  %v187_v39 = vld [vmem:[%s10649_s28 + $0x78] sm:$0xff]  ;;  %v186_v41 = vld [vmem:[%s10649_s28 + $0x70] sm:$0xff] }
  0x24   : > { %9925 = vpow2.f32 %v311_v22  ;;  %v319_v40 = vmul.f32 1.442695, %v246_v28  ;;  %v1349_v42 = vshrl.u32 %v1348_v30, 23  ;;  %v317_v43 = vmul.f32 1.442695, %v245_v31  ;;  %v189_v46 = vld [vmem:[%s10649_s28 + $0x88] sm:$0xff] }
  0x25   : > { %9927 = vpow2.f32 %v309_v25  ;;  %v250_v44 = vsub.f32 0.0, %v185_v35  ;;  %v249_v45 = vsub.f32 0.0, %v184_v36  ;;  %v1143_v48 = vshrl.u32 %v1142_v32, 23  ;;  %v188_v51 = vld [vmem:[%s10649_s28 + $0x80] sm:$0xff]  ;;  %v191_v55 = vld [vmem:[%s10649_s28 + $0x98] sm:$0xff]  ;;  %v190_v59 = vld [vmem:[%s10649_s28 + $0x90] sm:$0xff] }
  0x26   : > { %9929 = vpow2.f32 %v315_v33  ;;  %v323_v49 = vmul.f32 1.442695, %v248_v34  ;;  %v252_v50 = vsub.f32 0.0, %v187_v39  ;;  %v321_v53 = vmul.f32 1.442695, %v247_v38  ;;  %v193_v0 = vld [vmem:[%s10649_s28 + $0xa8] sm:$0xff] }
  0x27   : > { %9931 = vpow2.f32 %v313_v37  ;;  %v251_v54 = vsub.f32 0.0, %v186_v41  ;;  %v327_v57 = vmul.f32 1.442695, %v250_v44  ;;  %v254_v58 = vsub.f32 0.0, %v189_v46  ;;  %v192_v5 = vld [vmem:[%s10649_s28 + $0xa0] sm:$0xff]  ;;  %v195_v9 = vld [vmem:[%s10649_s28 + $0xb8] sm:$0xff] }
  0x28   : > { %9933 = vpow2.f32 %v319_v40  ;;  %v9109_v61 = vadd.s32 4294967169, %v1349_v42  ;;  %v325_v62 = vmul.f32 1.442695, %v249_v45  ;;  %v253_v63 = vsub.f32 0.0, %v188_v51  ;;  %v194_v13 = vld [vmem:[%s10649_s28 + $0xb0] sm:$0xff]  ;;  %v197_v19 = vld [vmem:[%s10649_s28 + $0xc8] sm:$0xff] }
  0x29   : > { %9935 = vpow2.f32 %v317_v43  ;;  %v9101_v1 = vadd.s32 4294967169, %v1143_v48  ;;  %v331_v2 = vmul.f32 1.442695, %v252_v50  ;;  %v256_v4 = vsub.f32 0.0, %v191_v55  ;;  %v196_v24 = vld [vmem:[%s10649_s28 + $0xc0] sm:$0xff]  ;;  %v199_v27 = vld [vmem:[%s10649_s28 + $0xd8] sm:$0xff] }
  0x2a   : > { %v9918_v47 = vpop.eup %9917  ;;  %9937 = vpow2.f32 %v323_v49  ;;  %v329_v6 = vmul.f32 1.442695, %v251_v54  ;;  %v255_v8 = vsub.f32 0.0, %v190_v59  ;;  %v335_v11 = vmul.f32 1.442695, %v254_v58  ;;  %v198_v31 = vld [vmem:[%s10649_s28 + $0xd0] sm:$0xff] }
  0x2b   : > { %v9920_v52 = vpop.eup %9919  ;;  %441 = vperm.xlu1 %9916, %v9918_v47   ;;  %9939 = vpow2.f32 %v321_v53  ;;  %v258_v12 = vsub.f32 0.0, %v193_v0  ;;  %v1355_v15 = vadd.s32 1, %v9109_v61  ;;  %v333_v16 = vmul.f32 1.442695, %v253_v63  ;;  %v201_v36 = vld [vmem:[%s10649_s28 + $0xe8] sm:$0xff]  ;;  %v200_v40 = vld [vmem:[%s10649_s28 + $0xe0] sm:$0xff] }
  0x2c   : > { %v9922_v56 = vpop.eup %9921  ;;  %431 = vperm.xlu0 %9915, %v9920_v52   ;;  %9941 = vpow2.f32 %v327_v57  ;;  %v257_v17 = vsub.f32 0.0, %v192_v5  ;;  %v1149_v20 = vadd.s32 1, %v9101_v1  ;;  %v339_v22 = vmul.f32 1.442695, %v256_v4  ;;  %v203_v43 = vld [vmem:[%s10649_s28 + $0xf8] sm:$0xff]  ;;  %v202_v44 = vld [vmem:[%s10649_s28 + $0xf0] sm:$0xff] }
  0x2d   : > { %v9924_v60 = vpop.eup %9923  ;;  %9943 = vpow2.f32 %v325_v62  ;;  %v260_v23 = vsub.f32 0.0, %v195_v9  ;;  %v337_v25 = vmul.f32 1.442695, %v255_v8  ;;  %v259_v26 = vsub.f32 0.0, %v194_v13  ;;  %v205_v53 = vld [vmem:[%s10649_s28 + $0x108] sm:$0xff]  ;;  %v204_v58 = vld [vmem:[%s10649_s28 + $0x100] sm:$0xff] }
  0x2e   : > { %v9926_v10 = vpop.eup %9925  ;;  %9945 = vpow2.f32 %v331_v2  ;;  %v343_v29 = vmul.f32 1.442695, %v258_v12  ;;  %v262_v30 = vsub.f32 0.0, %v197_v19  ;;  %v10692_v32 = vmul.f32 0.62831855, %v10654_v3  ;;  %v207_v63 = vld [vmem:[%s10649_s28 + $0x118] sm:$0xff] }
  0x2f   : > { %446 = vperm.xlu1 %9916, %v9922_v56   ;;  %v9928_v14 = vpop.eup %9927  ;;  %9947 = vpow2.f32 %v329_v6  ;;  %vm1356_vm0 = vcmp.gt.s32.totalorder %v1355_v15, 0  ;;  %v341_v34 = vmul.f32 1.442695, %v257_v17  ;;  %v261_v35 = vsub.f32 0.0, %v196_v24  ;;  %v206_v4 = vld [vmem:[%s10649_s28 + $0x110] sm:$0xff]  ;;  %v209_v5 = vld [vmem:[%s10649_s28 + $0x128] sm:$0xff] }
  0x30   : > { %436 = vperm.xlu0 %9915, %v9924_v60   ;;  %v9930_v28 = vpop.eup %9929  ;;  %9949 = vpow2.f32 %v335_v11  ;;  %vm1150_vm1 = vcmp.gt.s32.totalorder %v1149_v20, 0  ;;  %v347_v38 = vmul.f32 1.442695, %v260_v23  ;;  %v264_v39 = vsub.f32 0.0, %v199_v27  ;;  %v208_v6 = vld [vmem:[%s10649_s28 + $0x120] sm:$0xff]  ;;  %v211_v12 = vld [vmem:[%s10649_s28 + $0x138] sm:$0xff] }
  0x31   : > { %v9932_v33 = vpop.eup %9931  ;;  %9951 = vpow2.f32 %v333_v16  ;;  %v345_v3 = vmul.f32 1.442695, %v259_v26  ;;  %v263_v42 = vsub.f32 0.0, %v198_v31  ;;  %v1357_v46 = vsel %vm1356_vm0, %v1355_v15, 0  ;;  %v210_v17 = vld [vmem:[%s10649_s28 + $0x130] sm:$0xff]  ;;  %v213_v24 = vld [vmem:[%s10649_s28 + $0x148] sm:$0xff] }
  0x32   : > { %v9934_v37 = vpop.eup %9933  ;;  %9953 = vpow2.f32 %v339_v22  ;;  %v351_v47 = vmul.f32 1.442695, %v262_v30  ;;  %v266_v48 = vsub.f32 0.0, %v201_v36  ;;  %v1151_v50 = vsel %vm1150_vm1, %v1149_v20, 0  ;;  %v215_v30 = vld [vmem:[%s10649_s28 + $0x158] sm:$0xff]  ;;  %v217_v36 = vld [vmem:[%s10649_s28 + $0x168] sm:$0xff] }
  0x33   : > { %456 = vperm.xlu1 %9916, %v9926_v10   ;;  %v9936_v41 = vpop.eup %9935  ;;  %9955 = vpow2.f32 %v337_v25  ;;  %v349_v51 = vmul.f32 1.442695, %v261_v35  ;;  %v265_v52 = vsub.f32 0.0, %v200_v40  ;;  %v355_v55 = vmul.f32 1.442695, %v264_v39  ;;  %v212_v25 = vld [vmem:[%s10649_s28 + $0x140] sm:$0xff] }
  0x34   : > { %451 = vperm.xlu0 %9915, %v9928_v14   ;;  %v9938_v45 = vpop.eup %9937  ;;  %9957 = vpow2.f32 %v343_v29  ;;  %v268_v56 = vsub.f32 0.0, %v203_v43  ;;  %v267_v57 = vsub.f32 0.0, %v202_v44  ;;  %v10702_v60 = vshrl.u32 %v1357_v46, 5  ;;  %v214_v35 = vld [vmem:[%s10649_s28 + $0x150] sm:$0xff]  ;;  %s9031_s27 = sshll.u32 %s16967_s26, 4  ;;  %s17357_s27 = int_to_ptr.vmem [resolvable:$true] %s9031_s27 }
  0x35   : > { %v9940_v49 = vpop.eup %9939  ;;  %9959 = vpow2.f32 %v341_v34  ;;  %v10704_v61 = vand.u32 31, %v1357_v46  ;;  %v353_v62 = vmul.f32 1.442695, %v263_v42  ;;  %v359_v1 = vmul.f32 1.442695, %v266_v48  ;;  %v218_v42 = vld [vmem:[%s10649_s28 + $0x170] sm:$0xff] }
  0x36   : > { %v9942_v54 = vpop.eup %9941  ;;  %9961 = vpow2.f32 %v347_v38  ;;  %17433 = vst [vmem:[#allocation6_spill] sm:$0xff] %v10702_v60  ;;  %v270_v2 = vsub.f32 0.0, %v205_v53  ;;  %v10714_v9 = vshrl.u32 %v1151_v50, 5  ;;  %v357_v10 = vmul.f32 1.442695, %v265_v52  ;;  %v220_v52 = vld [vmem:[%s10649_s28 + $0x180] sm:$0xff] }
  0x37   : > { %466 = vperm.xlu1 %9916, %v9930_v28   ;;  %v9944_v59 = vpop.eup %9943  ;;  %9963 = vpow2.f32 %v345_v3  ;;  %v269_v11 = vsub.f32 0.0, %v204_v58  ;;  %v363_v14 = vmul.f32 1.442695, %v268_v56  ;;  %v361_v15 = vmul.f32 1.442695, %v267_v57  ;;  %v219_v3 = vld [vmem:[%s10649_s28 + $0x178] sm:$0xff] }
  0x38   : > { %461 = vperm.xlu0 %9915, %v9932_v33   ;;  %v10707_v0 = vpop.eup %9945  ;;  %9965 = vpow2.f32 %v351_v47  ;;  %v272_v16 = vsub.f32 0.0, %v207_v63  ;;  %v271_v20 = vsub.f32 0.0, %v206_v4  ;;  %v274_v22 = vsub.f32 0.0, %v209_v5  ;;  %v223_v57 = vld [vmem:[%s10649_s28 + $0x198] sm:$0xff]  ;;  %s10503_s6 = scalar_lea.vmem %s17357_s27, 8192 }
  0x39   : > { %v10712_v8 = vpop.eup %9947  ;;  %9967 = vpow2.f32 %v349_v51  ;;  %v273_v23 = vsub.f32 0.0, %v208_v6  ;;  %v10726_v27 = vand.u32 31, %v1151_v50  ;;  %v367_v28 = vmul.f32 1.442695, %v270_v2  ;;  %v221_v51 = vld [vmem:[%s10649_s28 + $0x188] sm:$0xff]  ;;  %p10504_p11 = scmp.ne.s32.totalorder %s17357_s27, %s10503_s6 }
  0x3a   : > { %v10717_v13 = vpop.eup %9949  ;;  %9969 = vpow2.f32 %v355_v55  ;;  %v276_v29 = vsub.f32 0.0, %v211_v12  ;;  %v365_v33 = vmul.f32 1.442695, %v269_v11  ;;  %v275_v34 = vsub.f32 0.0, %v210_v17  ;;  %v224_v11 = vld [vmem:[%s10649_s28 + $0x1a0] sm:$0xff]  ;;  %v227_v17 = vld [vmem:[%s10649_s28 + $0x1b8] sm:$0xff] }
  0x3b   : > { %476 = vperm.xlu1 %9916, %v9934_v37   ;;  %v10720_v19 = vpop.eup %9951  ;;  %9971 = vpow2.f32 %v353_v62  ;;  %v216_v37 = vld [vmem:[%s10649_s28 + $0x160] sm:$0xff]  ;;  %v371_v39 = vmul.f32 1.442695, %v272_v16  ;;  %v278_v40 = vsub.f32 0.0, %v213_v24  ;;  %v369_v44 = vmul.f32 1.442695, %v271_v20  ;;  %p10505_p12 = pnand %p10504_p11, %p10635_p5 }
  0x3c   : > { %471 = vperm.xlu0 %9915, %v9936_v41   ;;  %v10724_v26 = vpop.eup %9953  ;;  %9973 = vpow2.f32 %v359_v1  ;;  %v277_v41 = vsub.f32 0.0, %v212_v25  ;;  %v373_v46 = vmul.f32 1.442695, %v273_v23  ;;  %v379_v48 = vmul.f32 1.442695, %v276_v29  ;;  %v222_v1 = vld [vmem:[%s10649_s28 + $0x190] sm:$0xff] }
  0x3d   : > { %v10729_v31 = vpop.eup %9955  ;;  %9975 = vpow2.f32 %v357_v10  ;;  %v279_v50 = vsub.f32 0.0, %v214_v35  ;;  %v377_v55 = vmul.f32 1.442695, %v275_v34  ;;  %v281_v56 = vsub.f32 0.0, %v216_v37  ;;  %v225_v10 = vld [vmem:[%s10649_s28 + $0x1a8] sm:$0xff]  ;;  %v226_v24 = vld [vmem:[%s10649_s28 + $0x1b0] sm:$0xff]  ;;  %p10506_p13 = pneg %p10505_p12 }
  0x3e   : > { %v10734_v38 = vpop.eup %9957  ;;  %9977 = vpow2.f32 %v363_v14  ;;  %v381_v62 = vmul.f32 1.442695, %v277_v41  ;;  %v284_v63 = vsub.f32 0.0, %v219_v3  ;;  %v283_v4 = vsub.f32 0.0, %v218_v42  ;;  %v228_v42 = vld [vmem:[%s10649_s28 + $0x1c0] sm:$0xff] }
  0x3f   : > { %486 = vperm.xlu1 %9916, %v9938_v45   ;;  %v10738_v43 = vpop.eup %9959  ;;  %9979 = vpow2.f32 %v361_v15  ;;  %v375_v45 = vmul.f32 1.442695, %v274_v22  ;;  %v286_v5 = vsub.f32 0.0, %v221_v51  ;;  %v285_v6 = vsub.f32 0.0, %v220_v52  ;;  %v230_v51 = vld [vmem:[%s10649_s28 + $0x1d0] sm:$0xff] }
  0x40   : > { %481 = vperm.xlu0 %9915, %v9940_v49   ;;  %v10740_v47 = vpop.eup %9961  ;;  %9981 = vpow2.f32 %v367_v28  ;;  %v280_v49 = vsub.f32 0.0, %v215_v30  ;;  %v385_v15 = vmul.f32 1.442695, %v279_v50  ;;  %v288_v16 = vsub.f32 0.0, %v223_v57  ;;  %v229_v30 = vld [vmem:[%s10649_s28 + $0x1c8] sm:$0xff] }
  0x41   : > { %v10744_v53 = vpop.eup %9963  ;;  %9983 = vpow2.f32 %v365_v33  ;;  %v389_v22 = vmul.f32 1.442695, %v281_v56  ;;  %v287_v23 = vsub.f32 0.0, %v222_v1  ;;  %v395_v28 = vmul.f32 1.442695, %v284_v63 }
  0x42   : > { %v10747_v58 = vpop.eup %9965  ;;  %9985 = vpow2.f32 %v371_v39  ;;  %v387_v14 = vmul.f32 1.442695, %v280_v49  ;;  %v290_v29 = vsub.f32 0.0, %v225_v10  ;;  %v393_v34 = vmul.f32 1.442695, %v283_v4  ;;  %v231_v49 = vld [vmem:[%s10649_s28 + $0x1d8] sm:$0xff] }
  0x43   : > { %496 = vperm.xlu1 %9916, %v9942_v54   ;;  %v282_v54 = vsub.f32 0.0, %v217_v36  ;;  %v10750_v2 = vpop.eup %9967  ;;  %9987 = vpow2.f32 %v369_v44  ;;  %v399_v35 = vmul.f32 1.442695, %v286_v5  ;;  %v397_v36 = vmul.f32 1.442695, %v285_v6 }
  0x44   : > { %491 = vperm.xlu0 %9915, %v9944_v59   ;;  %v383_v59 = vmul.f32 1.442695, %v278_v40  ;;  %v10755_v12 = vpop.eup %9969  ;;  %9989 = vpow2.f32 %v375_v45  ;;  %v10774_v39 = vmul.f32 1.442695, %v288_v16  ;;  %v289_v40 = vsub.f32 0.0, %v224_v11 }
  0x45   : > { %v10759_v20 = vpop.eup %9971  ;;  %9991 = vpow2.f32 %v373_v46  ;;  %v292_v3 = vsub.f32 0.0, %v227_v17  ;;  %v291_v46 = vsub.f32 0.0, %v226_v24  ;;  %v296_v1 = vsub.f32 0.0, %v231_v49 }
  0x46   : > { %v10762_v25 = vpop.eup %9973  ;;  %9993 = vpow2.f32 %v379_v48  ;;  %v294_v48 = vsub.f32 0.0, %v229_v30  ;;  %v10798_v57 = vmul.f32 1.442695, %v289_v40  ;;  %v295_v10 = vsub.f32 0.0, %v230_v51 }
  0x47   : > { %506 = vperm.xlu1 %9916, %v10707_v0   ;;  %v391_v0 = vmul.f32 1.442695, %v282_v54  ;;  %v10768_v33 = vpop.eup %9975  ;;  %9995 = vpow2.f32 %v377_v55  ;;  %v17407_v54 = vand.u32 2147483647, %v10668_v21  ;;  %v10805_v63 = vmul.f32 1.442695, %v292_v3 }
  0x48   : > { %501 = vperm.xlu0 %9915, %v10712_v8   ;;  %v10766_v8 = vmul.f32 0.62831855, %v10658_v7  ;;  %v10771_v37 = vpop.eup %9977  ;;  %9997 = vpow2.f32 %v383_v59  ;;  %v293_v59 = vsub.f32 0.0, %v228_v42  ;;  %v10809_v6 = vmul.f32 1.442695, %v291_v46 }
  0x49   : > { %v10777_v41 = vpop.eup %9979  ;;  %9999 = vpow2.f32 %v381_v62  ;;  %v10801_v62 = vsub.s32 32, %v10726_v27  ;;  %v10818_v16 = vand.u32 8388607, %v17407_v54  ;;  %v10839_v3 = vmul.f32 1.442695, %v295_v10 }
  0x4a   : > { %v17408_v7 = vand.u32 2147483647, %v10766_v8  ;;  %v1245_v44 = vand.u32 2139095040, %v10766_v8  ;;  %v10783_v45 = vpop.eup %9981  ;;  %10001 = vpow2.f32 %v387_v14  ;;  %v17418_v51 = vmov 2102212464  }
  0x4b   : > { %516 = vperm.xlu1 %9916, %v10717_v13   ;;  %v10779_v13 = vmul.f32 1.442695, %v287_v23  ;;  %v10788_v50 = vpop.eup %9983  ;;  %10003 = vpow2.f32 %v385_v15  ;;  %v17414_v23 = vmov 2475754826   ;;  %vm1171_vm6 = vcmp.lt.s32.totalorder %v10714_v9, 1 }
  0x4c   : > { %511 = vperm.xlu0 %9915, %v10720_v19   ;;  %v10785_v19 = vmul.f32 1.442695, %v290_v29  ;;  %v1246_v52 = vshrl.u32 %v1245_v44, 23  ;;  %v1249_v55 = vand.u32 8388607, %v17408_v7  ;;  %v10795_v56 = vpop.eup %9985  ;;  %10005 = vpow2.f32 %v391_v0 }
  0x4d   : > { %10007 = vpow2.f32 %v389_v22  ;;  %v17409_v0 = vmov 683565275   ;;  %v1157_v24 = vshrl.u32 %v17414_v23, %v10801_v62  ;;  %v17428_v7 = vmov 920167782  }
  0x4e   : > { %v9105_v4 = vadd.s32 4294967169, %v1246_v52  ;;  %10009 = vpow2.f32 %v395_v28  ;;  %v1250_v14 = vor.u32 8388608, %v1249_v55  ;;  %v1156_v22 = vshll.u32 %v17409_v0, %v10726_v27 }
  0x4f   : > { %526 = vperm.xlu1 %9916, %v10724_v26   ;;  %v10803_v26 = vpop.eup %9987  ;;  %10011 = vpow2.f32 %v393_v34  ;;  %v17416_v28 = vmov 2131351028   ;;  %v10833_v34 = vmul.f32 1.442695, %v293_v59  ;;  %v10843_v44 = vshrl.u32 %v17409_v0, %v10801_v62 }
  0x50   : > { %521 = vperm.xlu0 %9915, %v10729_v31   ;;  %v10807_v5 = vpop.eup %9989  ;;  %v10811_v31 = vmul.f32 1.442695, %v294_v48  ;;  %v1252_v15 = vadd.s32 1, %v9105_v4  ;;  %v1160_v29 = vshrl.u32 %v17416_v28, %v10801_v62  ;;  %10013 = vpow2.f32 %v399_v35 }
  0x51   : > { %v10813_v11 = vpop.eup %9991  ;;  %10015 = vpow2.f32 %v397_v36  ;;  %v10848_v48 = vshll.u32 %v1250_v14, 8  ;;  %v1162_v49 = vshll.u32 %v17416_v28, %v10726_v27  ;;  %v1163_v36 = vshrl.u32 %v17418_v51, %v10801_v62 }
  0x52   : > { %v10820_v17 = vpop.eup %9993  ;;  %vm1253_vm2 = vcmp.gt.s32.totalorder %v1252_v15, 0  ;;  %10017 = vpow2.f32 %v10774_v39  ;;  %v10859_v59 = vor.u32 %v1157_v24, %v1156_v22  ;;  %v1165_v24 = vshll.u32 %v17418_v51, %v10726_v27 }
  0x53   : > { %536 = vperm.xlu1 %9916, %v10734_v38   ;;  %v1159_v38 = vshll.u32 %v17414_v23, %v10726_v27  ;;  %v10831_v30 = vpop.eup %9995  ;;  %v1254_v42 = vsel %vm1253_vm2, %v1252_v15, 0  ;;  %v1164_v55 = vor.u32 %v1163_v36, %v1162_v49  ;;  %v1168_v36 = vshll.u32 %v17428_v7, %v10726_v27 }
  0x54   : > { %531 = vperm.xlu0 %9915, %v10738_v43   ;;  %v10835_v43 = vmul.f32 1.442695, %v296_v1  ;;  %v10837_v40 = vpop.eup %9997  ;;  %v1256_v35 = vand.u32 31, %v1254_v42  ;;  %v1255_v4 = vshrl.u32 %v1254_v42, 5  ;;  %vm1172_vm8 = vcmp.lt.s32.totalorder %v10714_v9, 2 }
  0x55   : > { %v10845_v46 = vpop.eup %9999  ;;  %vm1173_vm9 = vcmp.lt.s32.totalorder %v10714_v9, 3  ;;  %vm1174_vm10 = vcmp.lt.s32.totalorder %v10714_v9, 4  ;;  %10019 = vpow2.f32 %v10779_v13  ;;  %v1451_v9 = vand.u32 2139095040, %v10692_v32 }
  0x56   : > { %17434 = vst [vmem:[#allocation7_spill] sm:$0xff] %v10845_v46  ;;  %v10854_v52 = vpop.eup %10001  ;;  %v1257_v10 = vsub.s32 32, %v1256_v35  ;;  %v1259_v14 = vshll.u32 %v17409_v0, %v1256_v35  ;;  %v1262_v15 = vshll.u32 %v17414_v23, %v1256_v35  ;;  %v1268_v39 = vshll.u32 %v17418_v51, %v1256_v35 }
  0x57   : > { %546 = vperm.xlu1 %9916, %v10740_v47   ;;  %17435 = vst [vmem:[#allocation8_spill] sm:$0xff] %v10854_v52  ;;  %v10861_v47 = vor.u32 %v1160_v29, %v1159_v38  ;;  %v10863_v1 = vpop.eup %10003  ;;  %v1271_v22 = vshll.u32 %v17428_v7, %v1256_v35  ;;  %v1166_v0 = vshrl.u32 %v17428_v7, %v10801_v62  ;;  %vm1274_vm3 = vcmp.lt.s32.totalorder %v1255_v4, 1 }
  0x58   : > { %541 = vperm.xlu0 %9915, %v10744_v53   ;;  %17436 = vst [vmem:[#allocation9_spill] sm:$0xff] %v10863_v1  ;;  %v10867_v54 = vpop.eup %10005  ;;  %v1265_v53 = vshll.u32 %v17416_v28, %v1256_v35  ;;  %v1260_v29 = vshrl.u32 %v17414_v23, %v1257_v10  ;;  %v1263_v42 = vshrl.u32 %v17416_v28, %v1257_v10  ;;  %v17440_v35 = vmov 683565275  }
  0x59   : > { %17437 = vst [vmem:[#allocation10_spill] sm:$0xff] %v10867_v54  ;;  %v10874_v38 = vpop.eup %10007  ;;  %v1258_v21 = vshrl.u32 %v17440_v35, %v1257_v10  ;;  %v1266_v54 = vshrl.u32 %v17418_v51, %v1257_v10  ;;  %v17422_v1 = vmov 1326507024   ;;  %vm1276_vm4 = vcmp.lt.s32.totalorder %v1255_v4, 3 }
  0x5a   : > { %17438 = vst [vmem:[#allocation11_spill] sm:$0xff] %v10874_v38  ;;  %v10881_v60 = vpop.eup %10009  ;;  %v1269_v38 = vshrl.u32 %v17428_v7, %v1257_v10  ;;  %v1261_v28 = vor.u32 %v1260_v29, %v1259_v14  ;;  %v1264_v49 = vor.u32 %v1263_v42, %v1262_v15  ;;  %v1169_v46 = vshrl.u32 %v17422_v1, %v10801_v62 }
  0x5b   : > { %556 = vperm.xlu1 %9916, %v10747_v58   ;;  %17439 = vst [vmem:[#allocation12_spill] sm:$0xff] %v10881_v60  ;;  %v1272_v58 = vshrl.u32 %v17422_v1, %v1257_v10  ;;  %v10888_v23 = vpop.eup %10011  ;;  %v1267_v60 = vor.u32 %v1266_v54, %v1265_v53  ;;  %vm1277_vm5 = vcmp.lt.s32.totalorder %v1255_v4, 4  ;;  %v1167_v10 = vor.u32 %v1166_v0, %v1165_v24 }
  0x5c   : > { %551 = vperm.xlu0 %9915, %v10750_v2   ;;  %v1270_v52 = vor.u32 %v1269_v38, %v1268_v39  ;;  %v10894_v51 = vpop.eup %10013  ;;  %vm1275_vm7 = vcmp.lt.s32.totalorder %v1255_v4, 2  ;;  %v1278_v27 = vsel %vm1274_vm3, %v1258_v21, %v1261_v28  ;;  %v1282_v15 = vsel %vm1274_vm3, %v1261_v28, %v1264_v49 }
  0x5d   : > { %v1273_v2 = vor.u32 %v1272_v58, %v1271_v22  ;;  %v10898_v14 = vpop.eup %10015  ;;  %v1279_v54 = vsel %vm1277_vm5, %v1267_v60, 2102212464  ;;  %v1170_v38 = vor.u32 %v1169_v46, %v1168_v36  ;;  %v233_v46 = vld [vmem:[%s10649_s28 + $0x1e8] sm:$0xff]  ;;  %v1176_v4 = vsel %vm1174_vm10, %v1164_v55, 2102212464 }
  0x5e   : > { %v1280_v62 = vsel %vm1276_vm4, %v1264_v49, %v1279_v54  ;;  %v1283_v53 = vsel %vm1277_vm5, %v1270_v52, 920167782  ;;  %v10905_v39 = vpop.eup %10017  ;;  %v1183_v36 = vsel %vm1171_vm6, %v10861_v47, %v1164_v55  ;;  %10021 = vpow2.f32 %v10785_v19 }
  0x5f   : > { %566 = vperm.xlu1 %9916, %v10755_v12   ;;  %v1286_v12 = vsel %vm1274_vm3, %v1264_v49, %v1267_v60  ;;  %v1287_v0 = vsel %vm1277_vm5, %v1273_v2, 1326507024  ;;  %v1281_v22 = vsel %vm1275_vm7, %v1278_v27, %v1280_v62  ;;  %v1284_v24 = vsel %vm1276_vm4, %v1267_v60, %v1283_v53 }
  0x60   : > { %561 = vperm.xlu0 %9915, %v10759_v20   ;;  %v1288_v20 = vsel %vm1276_vm4, %v1270_v52, %v1287_v0  ;;  %v1285_v21 = vsel %vm1275_vm7, %v1282_v15, %v1284_v24  ;;  %v1297_v29 = vmul.u32 %v10848_v48, %v1281_v22  ;;  %v232_v52 = vld [vmem:[%s10649_s28 + $0x1e0] sm:$0xff]  ;;  %v1184_v2 = vsel %vm1174_vm10, %v1170_v38, 1326507024 }
  0x61   : > { %v1289_v28 = vsel %vm1275_vm7, %v1286_v12, %v1288_v20  ;;  %v10918_v49 = vmul.u32.u64.low %v10848_v48, %v1285_v21  ;;  %v10919_v60 = vmul.u32.u64.high %v10848_v48, %v1285_v21, %v10918_v49  ;;  %v1177_v27 = vsel %vm1173_vm9, %v10861_v47, %v1176_v4  ;;  %v235_v12 = vld [vmem:[%s10649_s28 + $0x1f8] sm:$0xff] }
  0x62   : > { %v10914_v42 = vmul.u32.u64.low %v10848_v48, %v1289_v28  ;;  %v10915_v58 = vmul.u32.u64.high %v10848_v48, %v1289_v28, %v10914_v42  ;;  %v1180_v48 = vsel %vm1174_vm10, %v1167_v10, 920167782  ;;  %v17441_v15 = vor.u32 8388608, %v10818_v16 }
  0x63   : > { %576 = vperm.xlu1 %9916, %v10762_v25   ;;  %v1175_v25 = vsel %vm1171_vm6, %v10843_v44, %v10859_v59  ;;  %v1181_v54 = vsel %vm1173_vm9, %v1164_v55, %v1180_v48  ;;  %v1185_v44 = vsel %vm1173_vm9, %v1167_v10, %v1184_v2  ;;  %v1300_v53 = vadd.s32 1, %v10919_v60  ;;  %v10991_v48 = vpop.eup %10019 }
  0x64   : > { %571 = vperm.xlu0 %9915, %v10768_v33   ;;  %v1179_v33 = vsel %vm1171_vm6, %v10859_v59, %v10861_v47  ;;  %v1187_v62 = vshll.u32 %v17441_v15, 8  ;;  %v298_v59 = vsub.f32 0.0, %v233_v46  ;;  %vm1299_vm11 = vc.u32 %v10915_v58, %v10918_v49  ;;  %v10949_v47 = vld [vmem:[%s10649_s28 + $0x1f0] sm:$0xff] }
  0x65   : > { %v1182_v16 = vsel %vm1172_vm8, %v1179_v33, %v1181_v54  ;;  %v1301_v13 = vsel %vm1299_vm11, %v1300_v53, %v10919_v60  ;;  %v1178_v55 = vsel %vm1172_vm8, %v1175_v25, %v1177_v27  ;;  %v17421_v20 = vand.u32 2147483647, %v10692_v32 }
  0x66   : > { %v1302_v19 = vadd.s32 %v1301_v13, %v1297_v29  ;;  %v10962_v22 = vmul.u32.u64.low %v1187_v62, %v1182_v16  ;;  %v10963_v24 = vmul.u32.u64.high %v1187_v62, %v1182_v16, %v10962_v22  ;;  %10023 = vpow2.f32 %v10798_v57  ;;  %v17449_v16 = vld [vmem:[#allocation8_spill] sm:$0xff] }
  0x67   : > { %586 = vperm.xlu1 %9916, %v10771_v37   ;;  %v297_v37 = vsub.f32 0.0, %v232_v52  ;;  %v300_v38 = vsub.f32 0.0, %v235_v12  ;;  %10025 = vpow2.f32 %v10805_v63  ;;  %v423_v28 = vmul.f32 1.442695, %v298_v59 }
  0x68   : > { %581 = vperm.xlu0 %9915, %v10777_v41   ;;  %v1186_v41 = vsel %vm1172_vm8, %v1183_v36, %v1185_v44  ;;  %10027 = vpow2.f32 %v10809_v6  ;;  %v1194_v29 = vmul.u32 %v1187_v62, %v1178_v55  ;;  %v1452_v60 = vshrl.u32 %v1451_v9, 23  ;;  %v10994_v2 = vpop.eup %10021 }
  0x69   : > { %v10958_v10 = vmul.u32.u64.low %v1187_v62, %v1186_v41  ;;  %v10959_v0 = vmul.u32.u64.high %v1187_v62, %v1186_v41, %v10958_v10  ;;  %v421_v42 = vmul.f32 1.442695, %v297_v37  ;;  %v1197_v57 = vadd.s32 1, %v10963_v24 }
  0x6a   : > { %v1455_v46 = vand.u32 8388607, %v17421_v20  ;;  %v17420_v52 = vand.u32 2147483647, %v10665_v18  ;;  %10029 = vpow2.f32 %v10811_v31  ;;  %v10980_v63 = vmul.f32 1.442695, %v300_v38 }
  0x6b   : > { %596 = vperm.xlu1 %9916, %v10783_v45   ;;  %v1303_v45 = vadd.s32 536870912, %v1302_v19  ;;  %vm1196_vm12 = vc.u32 %v10959_v0, %v10962_v22  ;;  %vm1244_vm13 = vcmp.lt.s32.totalorder %v10766_v8, 0  ;;  %v9113_v6 = vadd.s32 4294967169, %v1452_v60 }
  0x6c   : > { %591 = vperm.xlu0 %9915, %v10788_v50   ;;  %10031 = vpow2.f32 %v10833_v34  ;;  %v1198_v4 = vsel %vm1196_vm12, %v1197_v57, %v10963_v24  ;;  %v1456_v27 = vor.u32 8388608, %v1455_v46  ;;  %v11002_v54 = vand.u32 8388607, %v17420_v52 }
  0x6d   : > { %v1304_v50 = vshrl.u32 %v1303_v45, 30  ;;  %10033 = vpow2.f32 %v10835_v43  ;;  %v1199_v31 = vadd.s32 %v1198_v4, %v1194_v29  ;;  %v1458_v36 = vadd.s32 1, %v9113_v6 }
  0x6e   : > { %10035 = vpow2.f32 %v10839_v3  ;;  %v11006_v44 = vsub.s32 32, %v10704_v61  ;;  %v1362_v41 = vshll.u32 %v17440_v35, %v10704_v61  ;;  %v17446_v29 = vmov 2131351028  }
  0x6f   : > { %606 = vperm.xlu1 %9916, %v10795_v56   ;;  %v17442_v56 = vand.u32 2147483647, %v10766_v8  ;;  %v1305_v33 = vshll.u32 %v1304_v50, 30  ;;  %10037 = vpow2.f32 %v423_v28  ;;  %v1200_v43 = vadd.s32 536870912, %v1199_v31 }
  0x70   : > { %601 = vperm.xlu0 %9915, %v10803_v26   ;;  %v1328_v26 = vsub.s32 4, %v1304_v50  ;;  %vm1459_vm15 = vcmp.gt.s32.totalorder %v1458_v36, 0  ;;  %10039 = vpow2.f32 %v421_v42  ;;  %v11011_v62 = vpop.eup %10023  ;;  %v11057_v60 = vshrl.u32 %v17446_v29, %v11006_v44 }
  0x71   : > { %vm10986_vm14 = vcmp.le.f32.partialorder %v17442_v56, 0.7853982  ;;  %v10998_v34 = vsub.s32 %v1302_v19, %v1305_v33  ;;  %v1460_v15 = vsel %vm1459_vm15, %v1458_v36, 0  ;;  %v11020_v53 = vshrl.u32 %v1200_v43, 30  ;;  %v11022_v12 = vpop.eup %10025 }
  0x72   : > { %v11015_v59 = vsel %vm1244_vm13, %v1328_v26, %v1304_v50  ;;  %v1462_v37 = vand.u32 31, %v1460_v15  ;;  %v11031_v13 = vpop.eup %10027  ;;  %v17447_v56 = vmov 2102212464   ;;  %v17448_v26 = vld [vmem:[#allocation7_spill] sm:$0xff]  ;;  %v11069_v36 = vshrl.u32 %v1460_v15, 5 }
  0x73   : > { %616 = vperm.xlu1 %9916, %v10807_v5   ;;  %v1298_v5 = vadd.s32 %v10918_v49, %v10915_v58  ;;  %v1308_v3 = vsub.s32 0, %v10998_v34  ;;  %v11026_v49 = vshll.u32 %v1456_v27, 8  ;;  %v1202_v55 = vshll.u32 %v11020_v53, 30 }
  0x74   : > { %611 = vperm.xlu0 %9915, %v10813_v11   ;;  %v11018_v11 = vadd.s32 %v10962_v22, %v10959_v0  ;;  %v1463_v10 = vsub.s32 32, %v1462_v37  ;;  %v11037_v0 = vshrl.u32 %v17440_v35, %v11006_v44  ;;  %v1465_v38 = vshll.u32 %v17440_v35, %v1462_v37  ;;  %v11049_v9 = vpop.eup %10029 }
  0x75   : > { %v9106_v58 = vmin.u32 %v1308_v3, %v10998_v34  ;;  %v11051_v28 = vsub.s32 %v1199_v31, %v1202_v55  ;;  %v1471_v6 = vshll.u32 %v17446_v29, %v1462_v37  ;;  %v1474_v27 = vshll.u32 %v17447_v56, %v1462_v37 }
  0x76   : > { %v11059_v50 = vpop.eup %10031  ;;  %v1469_v46 = vshrl.u32 %v17446_v29, %v1463_v10  ;;  %v1472_v33 = vshrl.u32 %v17447_v56, %v1463_v10  ;;  %v1475_v43 = vshrl.u32 %v17428_v7, %v1463_v10  ;;  %v1464_v3 = vshrl.u32 %v17440_v35, %v1463_v10 }
  0x77   : > { %626 = vperm.xlu1 %9916, %v10820_v17   ;;  %v17445_v17 = vmov 2475754826   ;;  %v1310_v22 = vclz %v9106_v58  ;;  %v11065_v4 = vpop.eup %10033  ;;  %v1205_v31 = vsub.s32 0, %v11051_v28  ;;  %v1477_v15 = vshll.u32 %v17428_v7, %v1462_v37 }
  0x78   : > { %621 = vperm.xlu0 %9915, %v10831_v30   ;;  %v1363_v19 = vshrl.u32 %v17445_v17, %v11006_v44  ;;  %v11047_v30 = vshll.u32 %v17445_v17, %v10704_v61  ;;  %v1466_v42 = vshrl.u32 %v17445_v17, %v1463_v10  ;;  %v1468_v45 = vshll.u32 %v17445_v17, %v1462_v37 }
  0x79   : > { %v9107_v57 = vadd.s32 4294967294, %v1310_v22  ;;  %v1473_v35 = vor.u32 %v1472_v33, %v1471_v6  ;;  %vm1480_vm1 = vcmp.lt.s32.totalorder %v11069_v36, 1  ;;  %vm1481_vm2 = vcmp.lt.s32.totalorder %v11069_v36, 2 }
  0x7a   : > { %v1467_v58 = vor.u32 %v1466_v42, %v1465_v38  ;;  %v11076_v55 = vor.u32 %v1363_v19, %v1362_v41  ;;  %v1470_v20 = vor.u32 %v1469_v46, %v1468_v45  ;;  %v17450_v38 = vld [vmem:[#allocation9_spill] sm:$0xff]  ;;  %v1476_v19 = vor.u32 %v1475_v43, %v1474_v27 }
  0x7b   : > { %636 = vperm.xlu1 %9916, %v10837_v40   ;;  %v11073_v40 = vpop.eup %10035  ;;  %vm9108_vm0 = vcmp.lt.s32.totalorder %v9107_v57, 0  ;;  %v17451_v42 = vmov 1326507024   ;;  %vm1482_vm3 = vcmp.lt.s32.totalorder %v11069_v36, 3  ;;  %vm1483_vm4 = vcmp.lt.s32.totalorder %v11069_v36, 4 }
  0x7c   : > { %631 = vperm.xlu0 %9915, %v17448_v26   ;;  %v11078_v22 = vpop.eup %10037  ;;  %v1313_v52 = vsel %vm9108_vm0, 0, %v9107_v57  ;;  %v9102_v26 = vmin.u32 %v1205_v31, %v11051_v28  ;;  %v1478_v57 = vshrl.u32 %v17451_v42, %v1463_v10  ;;  %v1485_v10 = vsel %vm1483_vm4, %v1473_v35, 2102212464 }
  0x7d   : > { %v11082_v21 = vpop.eup %10039  ;;  %v1314_v24 = vsub.s32 32, %v1313_v52  ;;  %v1315_v1 = vshll.u32 %v10998_v34, %v1313_v52  ;;  %v1318_v17 = vsub.s32 4294967266, %v1313_v52  ;;  %v1484_v52 = vsel %vm1480_vm1, %v1464_v3, %v1467_v58  ;;  %v17452_v34 = vld [vmem:[#allocation10_spill] sm:$0xff] }
  0x7e   : > { %v1207_v41 = vclz %v9102_v26  ;;  %v1489_v31 = vsel %vm1483_vm4, %v1476_v19, 920167782  ;;  %v1492_v27 = vsel %vm1480_vm1, %v1470_v20, %v1473_v35 }
  0x7f   : > { %646 = vperm.xlu1 %9916, %v17449_v16   ;;  %v1316_v45 = vshrl.u32 %v1298_v5, %v1314_v24  ;;  %v1319_v46 = vadd.s32 127, %v1318_v17  ;;  %v1479_v16 = vor.u32 %v1478_v57, %v1477_v15  ;;  %v1488_v5 = vsel %vm1480_vm1, %v1467_v58, %v1470_v20  ;;  %v17453_v17 = vld [vmem:[#allocation11_spill] sm:$0xff]  ;;  %v17454_v57 = vld [vmem:[#allocation12_spill] sm:$0xff] }
  0x80   : > { %641 = vperm.xlu0 %9915, %v17450_v38   ;;  %v9103_v37 = vadd.s32 4294967294, %v1207_v41  ;;  %v1486_v24 = vsel %vm1482_vm3, %v1470_v20, %v1485_v10  ;;  %v1490_v41 = vsel %vm1482_vm3, %v1473_v35, %v1489_v31  ;;  %v1368_v35 = vshll.u32 %v17446_v29, %v10704_v61 }
  0x81   : > { %v1317_v6 = vor.u32 %v1316_v45, %v1315_v1  ;;  %v1320_v33 = vshll.u32 %v1319_v46, 23  ;;  %v1487_v26 = vsel %vm1481_vm2, %v1484_v52, %v1486_v24  ;;  %v1491_v46 = vsel %vm1481_vm2, %v1488_v5, %v1490_v41 }
  0x82   : > { %vm9104_vm5 = vcmp.lt.s32.totalorder %v9103_v37, 0  ;;  %v1493_v20 = vsel %vm1483_vm4, %v1479_v16, 1326507024  ;;  %v11127_v16 = vmul.u32.u64.low %v11026_v49, %v1491_v46  ;;  %v11128_v5 = vmul.u32.u64.high %v11026_v49, %v1491_v46, %v11127_v16  ;;  %v17459_v46 = vld [vmem:[#allocation6_spill] sm:$0xff] }
  0x83   : > { %656 = vperm.xlu1 %9916, %v17452_v34   ;;  %v1321_v1 = vor.u32 4788187, %v1320_v33  ;;  %v1324_v43 = vcvt.s32.f32 %v1317_v6  ;;  %v1210_v3 = vsel %vm9104_vm5, 0, %v9103_v37  ;;  %v1503_v37 = vmul.u32 %v11026_v49, %v1487_v26  ;;  %v17455_v33 = vld [vmem:[#allocation5_spill] sm:$0xff] }
  0x84   : > { %651 = vperm.xlu0 %9915, %v17453_v17   ;;  %v1211_v15 = vsub.s32 32, %v1210_v3  ;;  %v1212_v58 = vshll.u32 %v11051_v28, %v1210_v3  ;;  %v1215_v38 = vsub.s32 4294967266, %v1210_v3  ;;  %v1494_v34 = vsel %vm1482_vm3, %v1476_v19, %v1493_v20 }
  0x85   : > { %v1322_v45 = vand.u32 2147483647, %v1321_v1  ;;  %vm1141_vm6 = vcmp.lt.s32.totalorder %v17455_v33, 0  ;;  %v1495_v10 = vsel %vm1481_vm2, %v1492_v27, %v1494_v34  ;;  %v1369_v27 = vshrl.u32 %v17447_v56, %v11006_v44 }
  0x86   : > { %v1213_v52 = vshrl.u32 %v11018_v11, %v1211_v15  ;;  %v1216_v28 = vadd.s32 127, %v1215_v38  ;;  %v11138_v24 = vmul.u32.u64.low %v11026_v49, %v1495_v10  ;;  %v11139_v31 = vmul.u32.u64.high %v11026_v49, %v1495_v10, %v11138_v24 }
  0x87   : > { %666 = vperm.xlu1 %9916, %v17454_v57   ;;  %v1325_v6 = vmul.f32 %v1324_v43, %v1322_v45  ;;  %v1371_v1 = vshll.u32 %v17447_v56, %v10704_v61  ;;  %v1372_v43 = vshrl.u32 %v17428_v7, %v11006_v44  ;;  %v1374_v49 = vshll.u32 %v17428_v7, %v10704_v61 }
  0x88   : > { %661 = vperm.xlu0 %9915, %v10888_v23   ;;  %v17456_v23 = vand.u32 2147483647, %v17455_v33  ;;  %v1214_v19 = vor.u32 %v1213_v52, %v1212_v58  ;;  %v1217_v17 = vshll.u32 %v1216_v28, 23  ;;  %v1506_v58 = vadd.s32 1, %v11128_v5 }
  0x89   : > { %v1326_v36 = vxor.u32 2147483648, %v1325_v6  ;;  %v1367_v38 = vor.u32 %v11057_v60, %v11047_v30  ;;  %v1370_v41 = vor.u32 %v1369_v27, %v1368_v35  ;;  %vm1505_vm8 = vc.u32 %v11139_v31, %v11127_v16 }
  0x8a   : > { %vm11133_vm7 = vcmp.le.f32.partialorder %v17456_v23, 0.7853982  ;;  %v1218_v3 = vor.u32 4788187, %v1217_v17  ;;  %v1221_v26 = vcvt.s32.f32 %v1214_v19  ;;  %v1373_v61 = vor.u32 %v1372_v43, %v1371_v1 }
  0x8b   : > { %676 = vperm.xlu1 %9916, %v10894_v51   ;;  %v1375_v51 = vshrl.u32 %v17451_v42, %v11006_v44  ;;  %v1327_v15 = vsel %vm1244_vm13, %v1326_v36, %v1325_v6  ;;  %v1507_v44 = vsel %vm1505_vm8, %v1506_v58, %v11128_v5  ;;  %vm1377_vm9 = vcmp.lt.s32.totalorder %v17459_v46, 1  ;;  %v11230_v58 = vld [vmem:[%s10649_s28 + $0x28] sm:$0xff] }
  0x8c   : > { %671 = vperm.xlu0 %9915, %v10898_v14   ;;  %v1330_v14 = vsel %vm10986_vm14, %v10766_v8, %v1327_v15  ;;  %v1219_v57 = vand.u32 2147483647, %v1218_v3  ;;  %v1225_v60 = vsub.s32 4, %v11020_v53  ;;  %v1508_v20 = vadd.s32 %v1507_v44, %v1503_v37 }
  0x8d   : > { %10041 = vcosq.f32 %v1330_v14  ;;  %v1376_v45 = vor.u32 %v1375_v51, %v1374_v49  ;;  %v17460_v52 = vsel %vm10986_vm14, 0, %v11015_v59  ;;  %vm1378_vm10 = vcmp.lt.s32.totalorder %v17459_v46, 2 }
  0x8e   : > { %10043 = vsinq.f32 %v1330_v14  ;;  %v1222_v30 = vmul.f32 %v1221_v26, %v1219_v57  ;;  %v1335_v28 = vand.u32 3, %v17460_v52  ;;  %vm1379_vm11 = vcmp.lt.s32.totalorder %v17459_v46, 3 }
  0x8f   : > { %686 = vperm.xlu1 %9916, %v10905_v39   ;;  %vm1380_vm12 = vcmp.lt.s32.totalorder %v17459_v46, 4  ;;  %v1509_v34 = vadd.s32 536870912, %v1508_v20  ;;  %v1389_v59 = vsel %vm1377_vm9, %v1367_v38, %v1370_v41  ;;  %v1226_v5 = vsel %vm1141_vm6, %v1225_v60, %v11020_v53 }
  0x90   : > { %681 = vperm.xlu0 %9915, %v10991_v48   ;;  %v1223_v39 = vxor.u32 2147483648, %v1222_v30  ;;  %v1385_v48 = vsel %vm1377_vm9, %v11076_v55, %v1367_v38  ;;  %v1386_v35 = vsel %vm1380_vm12, %v1373_v61, 920167782  ;;  %v1382_v37 = vsel %vm1380_vm12, %v1370_v41, 2102212464 }
  0x91   : > { %v1387_v25 = vsel %vm1379_vm11, %v1370_v41, %v1386_v35  ;;  %v1390_v6 = vsel %vm1380_vm12, %v1376_v45, 1326507024  ;;  %v11189_v23 = vshrl.u32 %v1509_v34, 30  ;;  %v17461_v24 = vor.u32 8388608, %v11002_v54  ;;  %v10430_v35 = vld [vmem:[%s10649_s28 + $0x8] sm:$0xff] }
  0x92   : > { %v1224_v10 = vsel %vm1141_vm6, %v1223_v39, %v1222_v30  ;;  %v1391_v17 = vsel %vm1379_vm11, %v1373_v61, %v1390_v6  ;;  %v1383_v27 = vsel %vm1379_vm11, %v1367_v38, %v1382_v37  ;;  %v1228_v54 = vsel %vm11133_vm7, 0, %v1226_v5 }
  0x93   : > { %696 = vperm.xlu1 %9916, %v10994_v2   ;;  %v1381_v2 = vsel %vm1377_vm9, %v11037_v0, %v11076_v55  ;;  %v1227_v19 = vsel %vm11133_vm7, %v17455_v33, %v1224_v10  ;;  %v1393_v53 = vshll.u32 %v17461_v24, 8  ;;  %v1511_v36 = vshll.u32 %v11189_v23, 30 }
  0x94   : > { %691 = vperm.xlu0 %9915, %v11011_v62   ;;  %v1388_v62 = vsel %vm1378_vm10, %v1385_v48, %v1387_v25  ;;  %10045 = vcosq.f32 %v1227_v19  ;;  %v1392_v0 = vsel %vm1378_vm10, %v1389_v59, %v1391_v17  ;;  %v17462_v55 = vsub.f32 0.0, %v10949_v47 }
  0x95   : > { %10047 = vsinq.f32 %v1227_v19  ;;  %v11212_v43 = vmul.u32.u64.low %v1393_v53, %v1392_v0  ;;  %v11213_v3 = vmul.u32.u64.high %v1393_v53, %v1392_v0, %v11212_v43  ;;  %v11218_v26 = vsub.s32 %v1508_v20, %v1511_v36 }
  0x96   : > { %v425_v1 = vmul.f32 1.442695, %v17462_v55  ;;  %v11220_v49 = vmul.u32.u64.low %v1393_v53, %v1388_v62  ;;  %v11221_v51 = vmul.u32.u64.high %v1393_v53, %v1388_v62, %v11220_v49  ;;  %10049 = vpow2.f32 %v10980_v63  ;;  %v10431_v55 = vld [vmem:[%s10649_s28] sm:$0xff] }
  0x97   : > { %706 = vperm.xlu1 %9916, %v11022_v12   ;;  %v10042_v12 = vpop.eup %10041  ;;  %vm1334_vm13 = vweird.f32 %v10766_v8  ;;  %vm1340_vm14 = vcmp.eq.s32.totalorder %v1335_v28, 2  ;;  %v1384_v47 = vsel %vm1378_vm10, %v1381_v2, %v1383_v27  ;;  %vm1337_vm15 = vcmp.eq.s32.totalorder %v1335_v28, 0 }
  0x98   : > { %701 = vperm.xlu0 %9915, %v11031_v13   ;;  %v10044_v15 = vpop.eup %10043  ;;  %v1341_v13 = vxor.u32 2147483648, %v10042_v12  ;;  %v1514_v11 = vsub.s32 0, %v11218_v26  ;;  %v11233_v38 = vmul.f32 0.62831855, %v11230_v58  ;;  %10051 = vpow2.f32 %v425_v1 }
  0x99   : > { %vm1336_vm0 = vcmp.lt.s32.totalorder %v1335_v28, 2  ;;  %v1338_v63 = vxor.u32 2147483648, %v10044_v15  ;;  %v1232_v41 = vand.u32 3, %v1228_v54  ;;  %v1400_v61 = vmul.u32 %v1393_v53, %v1384_v47 }
  0x9a   : > { %v1342_v14 = vsel %vm1340_vm14, %v1341_v13, %v10044_v15  ;;  %v9114_v57 = vmin.u32 %v1514_v11, %v11218_v26  ;;  %vm1402_vm1 = vc.u32 %v11213_v3, %v11220_v49  ;;  %v1403_v45 = vadd.s32 1, %v11221_v51 }
  0x9b   : > { %716 = vperm.xlu1 %9916, %v11049_v9   ;;  %v1339_v44 = vsel %vm1337_vm15, %v10042_v12, %v1338_v63  ;;  %v1657_v30 = vand.u32 2139095040, %v11233_v38  ;;  %vm1237_vm2 = vcmp.eq.s32.totalorder %v1232_v41, 2  ;;  %vm7860_vm3 = vcmp.lt.f32.partialorder %v10430_v35, 5.0 }
  0x9c   : > { %711 = vperm.xlu0 %9915, %v11059_v50   ;;  %v1343_v9 = vsel %vm1336_vm0, %v1339_v44, %v1342_v14  ;;  %v1516_v46 = vclz %v9114_v57  ;;  %v1404_v60 = vsel %vm1402_vm1, %v1403_v45, %v11221_v51  ;;  %vm1233_vm4 = vcmp.lt.s32.totalorder %v1232_v41, 2  ;;  %v11267_v14 = vld [vmem:[%s10649_s28 + $0x20] sm:$0xff] }
  0x9d   : > { %v1344_v50 = vsel %vm1334_vm13, nan, %v1343_v9  ;;  %v1405_v39 = vadd.s32 %v1404_v60, %v1400_v61  ;;  %v1658_v34 = vshrl.u32 %v1657_v30, 23  ;;  %vm1234_vm5 = vcmp.eq.s32.totalorder %v1232_v41, 0 }
  0x9e   : > { %v10046_v20 = vpop.eup %10045  ;;  %v7732_v52 = vadd.f32 1.0, %v1344_v50  ;;  %v9115_v28 = vadd.s32 4294967294, %v1516_v46  ;;  %v1504_v8 = vadd.s32 %v11127_v16, %v11139_v31  ;;  %vm1231_vm7 = vweird.f32 %v17455_v33 }
  0x9f   : > { %726 = vperm.xlu1 %9916, %v11065_v4   ;;  %v10048_v48 = vpop.eup %10047  ;;  %v1238_v37 = vxor.u32 2147483648, %v10046_v20  ;;  %v1406_v25 = vadd.s32 536870912, %v1405_v39  ;;  %v9121_v10 = vadd.s32 4294967169, %v1658_v34  ;;  %vm7859_vm8 = vcmp.lt.f32.partialorder %v10431_v55, 5.0 }
  0xa0   : > { %721 = vperm.xlu0 %9915, %v11073_v40   ;;  %v1235_v4 = vxor.u32 2147483648, %v10048_v48  ;;  %vm9116_vm6 = vcmp.lt.s32.totalorder %v9115_v28, 0  ;;  %v10050_v59 = vpop.eup %10049  ;;  %v7796_v5 = vmul.f32 0.5, %v7732_v52  ;;  %v1534_v43 = vsub.s32 4, %v11189_v23 }
  0xa1   : > { %v1239_v40 = vsel %vm1237_vm2, %v1238_v37, %v10048_v48  ;;  %v1519_v6 = vsel %vm9116_vm6, 0, %v9115_v28  ;;  %v1407_v24 = vshrl.u32 %v1406_v25, 30  ;;  %vm1450_vm10 = vcmp.lt.s32.totalorder %v10692_v32, 0 }
  0xa2   : > { %v1236_v2 = vsel %vm1234_vm5, %v10046_v20, %v1235_v4  ;;  %v1520_v19 = vsub.s32 32, %v1519_v6  ;;  %v1521_v62 = vshll.u32 %v11218_v26, %v1519_v6  ;;  %v10052_v16 = vpop.eup %10051  ;;  %v1524_v17 = vsub.s32 4294967266, %v1519_v6 }
  0xa3   : > { %736 = vperm.xlu1 %9916, %v11078_v22   ;;  %v1240_v31 = vsel %vm1233_vm4, %v1236_v2, %v1239_v40  ;;  %v1664_v22 = vadd.s32 1, %v9121_v10  ;;  %v1408_v0 = vshll.u32 %v1407_v24, 30  ;;  %v1654_v12 = vand.u32 2147483647, %v11233_v38 }
  0xa4   : > { %731 = vperm.xlu0 %9915, %v11082_v21   ;;  %v1241_v53 = vsel %vm1231_vm7, nan, %v1240_v31  ;;  %v1522_v33 = vshrl.u32 %v1504_v8, %v1520_v19  ;;  %v1525_v27 = vadd.s32 127, %v1524_v17  ;;  %v7924_v21 = vsel %vm7860_vm3, %v7796_v5, 0.0 }
  0xa5   : > { %v7731_v36 = vadd.f32 1.0, %v1241_v53  ;;  %v1409_v51 = vsub.s32 %v1405_v39, %v1408_v0  ;;  %vm1665_vm9 = vcmp.gt.s32.totalorder %v1664_v22, 0  ;;  %v1535_v63 = vsel %vm1450_vm10, %v1534_v43, %v11189_v23 }
  0xa6   : > { %v1523_v1 = vor.u32 %v1522_v33, %v1521_v62  ;;  %v1526_v26 = vshll.u32 %v1525_v27, 23  ;;  %v1666_v41 = vsel %vm1665_vm9, %v1664_v22, 0  ;;  %v11270_v57 = vmul.f32 0.62831855, %v11267_v14 }
  0xa7   : > { %746 = vperm.xlu1 %9916, %v10050_v59   ;;  %v7795_v54 = vmul.f32 0.5, %v7731_v36  ;;  %v1411_v11 = vsub.s32 0, %v1409_v51  ;;  %v17463_v45 = vand.u32 2147483647, %v10692_v32  ;;  %v1661_v46 = vand.u32 8388607, %v1654_v12 }
  0xa8   : > { %741 = vperm.xlu0 %9915, %v10052_v16   ;;  %v1527_v15 = vor.u32 4788187, %v1526_v26  ;;  %v1530_v13 = vcvt.s32.f32 %v1523_v1  ;;  %v1668_v60 = vand.u32 31, %v1666_v41  ;;  %v1554_v20 = vand.u32 2139095040, %v11270_v57 }
  0xa9   : > { %v7923_v47 = vsel %vm7859_vm8, %v7795_v54, 0.0  ;;  %v9110_v44 = vmin.u32 %v1411_v11, %v1409_v51  ;;  %vm11274_vm11 = vcmp.le.f32.partialorder %v17463_v45, 0.7853982  ;;  %v1431_v39 = vsub.s32 4, %v1407_v24 }
  0xaa   : > { %v1528_v61 = vand.u32 2147483647, %v1527_v15  ;;  %v1537_v23 = vsel %vm11274_vm11, 0, %v1535_v63  ;;  %v1401_v48 = vadd.s32 %v11220_v49, %v11213_v3  ;;  %v1662_v35 = vor.u32 8388608, %v1661_v46  ;;  %v11299_v49 = vld [vmem:[%s17404_s1] ss:$0 sm:$0xff]  ;;  %v442_v5 = vpop.permute.xlu1 %441 }
  0xab   : > { %8576 = vperm.xlu1 %9916, %v7924_v21   ;;  %v1413_v50 = vclz %v9110_v44  ;;  %v11283_v34 = vand.u32 3, %v1537_v23  ;;  %v1669_v4 = vsub.s32 32, %v1668_v60  ;;  %v1551_v8 = vand.u32 2147483647, %v11270_v57  ;;  %v432_v36 = vpop.permute.xlu0 %431 }
  0xac   : > { %8571 = vperm.xlu0 %9915, %v7923_v47   ;;  %v1531_v30 = vmul.f32 %v1530_v13, %v1528_v61  ;;  %vm1347_vm13 = vcmp.lt.s32.totalorder %v10665_v18, 0  ;;  %v1555_v40 = vshrl.u32 %v1554_v20, 23  ;;  %v17466_v2 = vand.u32 2147483647, %v10665_v18 }
  0xad   : > { %v9111_v28 = vadd.s32 4294967294, %v1413_v50  ;;  %v1432_v3 = vsel %vm1347_vm13, %v1431_v39, %v1407_v24  ;;  %v11307_v16 = vshll.u32 %v1662_v35, 8  ;;  %vm1546_vm15 = vcmp.eq.s32.totalorder %v11283_v34, 2  ;;  %v10433_v35 = vld [vmem:[%s10649_s28 + $0x18] sm:$0xff] }
  0xae   : > { %v1532_v52 = vxor.u32 2147483648, %v1531_v30  ;;  %vm11303_vm14 = vcmp.le.f32.partialorder %v17466_v2, 0.7853982  ;;  %v17469_v17 = vmov 683565275   ;;  %vm1543_vm0 = vcmp.eq.s32.totalorder %v11283_v34, 0 }
  0xaf   : > { %vm9112_vm12 = vcmp.lt.s32.totalorder %v9111_v28, 0  ;;  %v1671_v24 = vshll.u32 %v17469_v17, %v1668_v60  ;;  %v17470_v22 = vmov 2475754826   ;;  %v11314_v33 = vand.u32 8388607, %v1551_v8 }
  0xb0   : > { %v1533_v37 = vsel %vm1450_vm10, %v1532_v52, %v1531_v30  ;;  %v1416_v59 = vsel %vm9112_vm12, 0, %v9111_v28  ;;  %v1672_v53 = vshrl.u32 %v17470_v22, %v1669_v4  ;;  %v1434_v0 = vsel %vm11303_vm14, 0, %v1432_v3 }
  0xb1   : > { %v1536_v25 = vsel %vm11274_vm11, %v10692_v32, %v1533_v37  ;;  %v1417_v6 = vsub.s32 32, %v1416_v59  ;;  %v1418_v10 = vshll.u32 %v1409_v51, %v1416_v59  ;;  %v1421_v62 = vsub.s32 4294967266, %v1416_v59 }
  0xb2   : > { %10053 = vcosq.f32 %v1536_v25  ;;  %v1674_v21 = vshll.u32 %v17470_v22, %v1668_v60  ;;  %v9117_v55 = vadd.s32 4294967169, %v1555_v40  ;;  %v757_v1 = vsub.f32 %v442_v5, %v11299_v49 }
  0xb3   : > { %10055 = vsinq.f32 %v1536_v25  ;;  %v1419_v31 = vshrl.u32 %v1401_v48, %v1417_v6  ;;  %v1422_v27 = vadd.s32 127, %v1421_v62  ;;  %vm1542_vm1 = vcmp.lt.s32.totalorder %v11283_v34, 2 }
  0xb4   : > { %v1667_v54 = vshrl.u32 %v1666_v41, 5  ;;  %v1675_v26 = vshrl.u32 %v17446_v29, %v1669_v4  ;;  %vm1540_vm2 = vweird.f32 %v10692_v32  ;;  %v1677_v47 = vshll.u32 %v17446_v29, %v1668_v60 }
  0xb5   : > { %v1420_v43 = vor.u32 %v1419_v31, %v1418_v10  ;;  %v1423_v51 = vshll.u32 %v1422_v27, 23  ;;  %v1678_v15 = vshrl.u32 %v17447_v56, %v1669_v4  ;;  %v1680_v13 = vshll.u32 %v17447_v56, %v1668_v60 }
  0xb6   : > { %v755_v11 = vsub.f32 %v432_v36, %v11299_v49  ;;  %v11328_v63 = vand.u32 3, %v1434_v0  ;;  %v1673_v61 = vor.u32 %v1672_v53, %v1671_v24  ;;  %v1681_v44 = vshrl.u32 %v17428_v7, %v1669_v4 }
  0xb7   : > { %v1424_v41 = vor.u32 4788187, %v1423_v51  ;;  %v1427_v45 = vcvt.s32.f32 %v1420_v43  ;;  %v1676_v9 = vor.u32 %v1675_v26, %v1674_v21  ;;  %v1683_v46 = vshll.u32 %v17428_v7, %v1668_v60  ;;  %v447_v60 = vpop.permute.xlu1 %446 }
  0xb8   : > { %v1670_v30 = vshrl.u32 %v17469_v17, %v1669_v4  ;;  %v1682_v23 = vor.u32 %v1681_v44, %v1680_v13  ;;  %v1684_v50 = vshrl.u32 %v17451_v42, %v1669_v4  ;;  %vm1686_vm3 = vcmp.lt.s32.totalorder %v1667_v54, 1 }
  0xb9   : > { %v821_v20 = vmul.f32 %v757_v1, %v757_v1  ;;  %v1425_v52 = vand.u32 2147483647, %v1424_v41  ;;  %v1679_v28 = vor.u32 %v1678_v15, %v1677_v47  ;;  %v1559_v39 = vor.u32 8388608, %v11314_v33  ;;  %v437_v47 = vpop.permute.xlu0 %436 }
  0xba   : > { %vm7862_vm4 = vcmp.lt.f32.partialorder %v10433_v35, 5.0  ;;  %v1685_v37 = vor.u32 %v1684_v50, %v1683_v46  ;;  %vm1687_vm5 = vcmp.lt.s32.totalorder %v1667_v54, 2  ;;  %vm1688_vm6 = vcmp.lt.s32.totalorder %v1667_v54, 3 }
  0xbb   : > { %vm1689_vm7 = vcmp.lt.s32.totalorder %v1667_v54, 4  ;;  %v1428_v40 = vmul.f32 %v1427_v45, %v1425_v52  ;;  %v1694_v4 = vsel %vm1686_vm3, %v1673_v61, %v1676_v9  ;;  %v1690_v3 = vsel %vm1686_vm3, %v1670_v30, %v1673_v61 }
  0xbc   : > { %v10054_v48 = vpop.eup %10053  ;;  %v1691_v6 = vsel %vm1689_vm7, %v1679_v28, 2102212464  ;;  %v1695_v2 = vsel %vm1689_vm7, %v1682_v23, 920167782  ;;  %v1698_v53 = vsel %vm1686_vm3, %v1676_v9, %v1679_v28  ;;  %v758_v36 = vsub.f32 %v447_v60, %v11299_v49 }
  0xbd   : > { %v10056_v25 = vpop.eup %10055  ;;  %v1547_v59 = vxor.u32 2147483648, %v10054_v48  ;;  %v1692_v5 = vsel %vm1688_vm6, %v1676_v9, %v1691_v6  ;;  %v1429_v31 = vxor.u32 2147483648, %v1428_v40  ;;  %v1696_v24 = vsel %vm1688_vm6, %v1679_v28, %v1695_v2 }
  0xbe   : > { %v1544_v10 = vxor.u32 2147483648, %v10056_v25  ;;  %v1697_v0 = vsel %vm1687_vm5, %v1694_v4, %v1696_v24  ;;  %v1699_v21 = vsel %vm1689_vm7, %v1685_v37, 1326507024  ;;  %v1561_v51 = vadd.s32 1, %v9117_v55 }
  0xbf   : > { %v1548_v62 = vsel %vm1546_vm15, %v1547_v59, %v10056_v25  ;;  %v1430_v43 = vsel %vm1347_vm13, %v1429_v31, %v1428_v40  ;;  %v1700_v26 = vsel %vm1688_vm6, %v1682_v23, %v1699_v21  ;;  %v1693_v61 = vsel %vm1687_vm5, %v1690_v3, %v1692_v5 }
  0xc0   : > { %v1545_v27 = vsel %vm1543_vm0, %v10054_v48, %v1544_v10  ;;  %v1433_v13 = vsel %vm11303_vm14, %v10665_v18, %v1430_v43  ;;  %v1701_v44 = vsel %vm1687_vm5, %v1698_v53, %v1700_v26  ;;  %vm1562_vm8 = vcmp.gt.s32.totalorder %v1561_v51, 0 }
  0xc1   : > { %v1549_v1 = vsel %vm1542_vm1, %v1545_v27, %v1548_v62  ;;  %10057 = vcosq.f32 %v1433_v13  ;;  %v11363_v41 = vmul.u32.u64.low %v11307_v16, %v1701_v44  ;;  %v11364_v45 = vmul.u32.u64.high %v11307_v16, %v1701_v44, %v11363_v41  ;;  %v10434_v27 = vld [vmem:[%s10649_s28 + $0x10] sm:$0xff] }
  0xc2   : > { %v1550_v15 = vsel %vm1540_vm2, nan, %v1549_v1  ;;  %10059 = vsinq.f32 %v1433_v13  ;;  %v11367_v55 = vmul.u32.u64.low %v11307_v16, %v1697_v0  ;;  %v11368_v9 = vmul.u32.u64.high %v11307_v16, %v1697_v0, %v11367_v55 }
  0xc3   : > { %v7734_v34 = vadd.f32 1.0, %v1550_v15  ;;  %v819_v32 = vmul.f32 %v755_v11, %v755_v11  ;;  %v756_v19 = vsub.f32 %v437_v47, %v11299_v49  ;;  %v1563_v30 = vsel %vm1562_vm8, %v1561_v51, 0 }
  0xc4   : > { %v11372_v54 = vmul.f32 -259.48502, %v821_v20  ;;  %v822_v23 = vmul.f32 %v758_v36, %v758_v36  ;;  %vm1440_vm9 = vcmp.eq.s32.totalorder %v11328_v63, 0  ;;  %vm1443_vm10 = vcmp.eq.s32.totalorder %v11328_v63, 2 }
  0xc5   : > { %v7798_v46 = vmul.f32 0.5, %v7734_v34  ;;  %v1565_v50 = vand.u32 31, %v1563_v30  ;;  %vm1439_vm11 = vcmp.lt.s32.totalorder %v11328_v63, 2  ;;  %v1709_v28 = vmul.u32 %v11307_v16, %v1693_v61 }
  0xc6   : > { %vm1711_vm12 = vc.u32 %v11364_v45, %v11367_v55  ;;  %v11381_v11 = vshrl.u32 %v1563_v30, 5  ;;  %vm1437_vm13 = vweird.f32 %v10665_v18  ;;  %v1712_v20 = vadd.s32 1, %v11368_v9 }
  0xc7   : > { %v7926_v52 = vsel %vm7862_vm4, %v7798_v46, 0.0  ;;  %v1566_v48 = vsub.s32 32, %v1565_v50  ;;  %v1568_v37 = vshll.u32 %v17469_v17, %v1565_v50  ;;  %v1571_v35 = vshll.u32 %v17470_v22, %v1565_v50 }
  0xc8   : > { %8586 = vperm.xlu1 %9916, %v7926_v52   ;;  %v883_v25 = vmul.f32 -259.48502, %v819_v32  ;;  %v820_v60 = vmul.f32 %v756_v19, %v756_v19  ;;  %v1574_v16 = vshll.u32 %v17446_v29, %v1565_v50  ;;  %v1577_v59 = vshll.u32 %v17447_v56, %v1565_v50 }
  0xc9   : > { %v1713_v40 = vsel %vm1711_vm12, %v1712_v20, %v11368_v9  ;;  %v1569_v6 = vshrl.u32 %v17470_v22, %v1566_v48  ;;  %v1572_v4 = vshrl.u32 %v17446_v29, %v1566_v48  ;;  %v1580_v10 = vshll.u32 %v17428_v7, %v1565_v50  ;;  %v457_v50 = vpop.permute.xlu1 %456 }
  0xca   : > { %v1714_v3 = vadd.s32 %v1713_v40, %v1709_v28  ;;  %v1575_v5 = vshrl.u32 %v17447_v56, %v1566_v48  ;;  %v1578_v2 = vshrl.u32 %v17428_v7, %v1566_v48  ;;  %v1581_v62 = vshrl.u32 %v17451_v42, %v1566_v48 }
  0xcb   : > { %v886_v31 = vmul.f32 -259.48502, %v822_v23  ;;  %v1570_v24 = vor.u32 %v1569_v6, %v1568_v37  ;;  %v1573_v53 = vor.u32 %v1572_v4, %v1571_v35  ;;  %vm1583_vm14 = vcmp.lt.s32.totalorder %v11381_v11, 1  ;;  %v10058_v36 = vpop.eup %10057 }
  0xcc   : > { %vm7861_vm15 = vcmp.lt.f32.partialorder %v10434_v27, 5.0  ;;  %v1715_v0 = vadd.s32 536870912, %v1714_v3  ;;  %v1576_v21 = vor.u32 %v1575_v5, %v1574_v16  ;;  %v1579_v1 = vor.u32 %v1578_v2, %v1577_v59  ;;  %v10060_v43 = vpop.eup %10059 }
  0xcd   : > { %vm1585_vm0 = vcmp.lt.s32.totalorder %v11381_v11, 3  ;;  %v1444_v26 = vxor.u32 2147483648, %v10058_v36  ;;  %v1567_v51 = vshrl.u32 %v17469_v17, %v1566_v48  ;;  %v1582_v47 = vor.u32 %v1581_v62, %v1580_v10  ;;  %v452_v62 = vpop.permute.xlu0 %451 }
  0xce   : > { %vm1586_vm1 = vcmp.lt.s32.totalorder %v11381_v11, 4  ;;  %v1441_v15 = vxor.u32 2147483648, %v10060_v43  ;;  %v11401_v13 = vshrl.u32 %v1715_v0, 30  ;;  %vm1584_vm2 = vcmp.lt.s32.totalorder %v11381_v11, 2 }
  0xcf   : > { %v1588_v61 = vsel %vm1586_vm1, %v1576_v21, 2102212464  ;;  %v1592_v44 = vsel %vm1586_vm1, %v1579_v1, 920167782  ;;  %v1445_v34 = vsel %vm1443_vm10, %v1444_v26, %v10060_v43  ;;  %v1591_v41 = vsel %vm1583_vm14, %v1570_v24, %v1573_v53 }
  0xd0   : > { %v1593_v9 = vsel %vm1585_vm0, %v1576_v21, %v1592_v44  ;;  %v1442_v32 = vsel %vm1440_vm9, %v10058_v36, %v1441_v15  ;;  %v1717_v19 = vshll.u32 %v11401_v13, 30  ;;  %v1595_v46 = vsel %vm1583_vm14, %v1573_v53, %v1576_v21 }
  0xd1   : > { %v1599_v30 = vshll.u32 %v1559_v39, 8  ;;  %v1446_v23 = vsel %vm1439_vm11, %v1442_v32, %v1445_v34  ;;  %v1587_v52 = vsel %vm1583_vm14, %v1567_v51, %v1570_v24  ;;  %v1589_v28 = vsel %vm1585_vm0, %v1573_v53, %v1588_v61  ;;  %v11453_v53 = vld [vmem:[%s10649_s28 + $0x38] sm:$0xff]  ;;  %v467_v51 = vpop.permute.xlu1 %466  ;;  %v11476_v34 = vld [vmem:[%s10649_s28 + $0x30] sm:$0xff] }
  0xd2   : > { %v1596_v20 = vsel %vm1586_vm1, %v1582_v47, 1326507024  ;;  %v1447_v48 = vsel %vm1437_vm13, nan, %v1446_v23  ;;  %v11431_v37 = vsub.s32 %v1714_v3, %v1717_v19  ;;  %v1594_v33 = vsel %vm1584_vm2, %v1591_v41, %v1593_v9 }
  0xd3   : > { %v1597_v63 = vsel %vm1585_vm0, %v1579_v1, %v1596_v20  ;;  %v951_v39 = vmul.f32 1.442695, %v11372_v54  ;;  %v947_v35 = vmul.f32 1.442695, %v883_v25  ;;  %v7733_v16 = vadd.f32 1.0, %v1447_v48 }
  0xd4   : > { %v1598_v59 = vsel %vm1584_vm2, %v1595_v46, %v1597_v63  ;;  %v760_v40 = vsub.f32 %v457_v50, %v11299_v49  ;;  %v1720_v18 = vsub.s32 0, %v11431_v37  ;;  %v1590_v3 = vsel %vm1584_vm2, %v1587_v52, %v1589_v28 }
  0xd5   : > { %v11442_v6 = vmul.u32.u64.low %v1599_v30, %v1598_v59  ;;  %v11443_v4 = vmul.u32.u64.high %v1599_v30, %v1598_v59, %v11442_v6  ;;  %v7797_v10 = vmul.f32 0.5, %v7733_v16  ;;  %v953_v54 = vmul.f32 1.442695, %v886_v31  ;;  %v7988_v16 = vld [vmem:[%s17405_s2 + $0x8] sm:$0xff] }
  0xd6   : > { %v11447_v5 = vmul.u32.u64.low %v1599_v30, %v1594_v33  ;;  %v11448_v2 = vmul.u32.u64.high %v1599_v30, %v1594_v33, %v11447_v5  ;;  %v884_v25 = vmul.f32 -259.48502, %v820_v60  ;;  %v9122_v24 = vmin.u32 %v1720_v18, %v11431_v37 }
  0xd7   : > { %v11456_v36 = vmul.f32 0.62831855, %v11453_v53  ;;  %v7925_v0 = vsel %vm7861_vm15, %v7797_v10, 0.0  ;;  %vm1656_vm3 = vcmp.lt.s32.totalorder %v11233_v38, 0  ;;  %10061 = vpow2.f32 %v951_v39 }
  0xd8   : > { %8581 = vperm.xlu0 %9915, %v7925_v0   ;;  %v1722_v11 = vclz %v9122_v24  ;;  %v1606_v21 = vmul.u32 %v1599_v30, %v1590_v3  ;;  %vm1608_vm4 = vc.u32 %v11443_v4, %v11447_v5  ;;  %10063 = vpow2.f32 %v947_v35 }
  0xd9   : > { %v824_v60 = vmul.f32 %v760_v40, %v760_v40  ;;  %v759_v31 = vsub.f32 %v452_v62, %v11299_v49  ;;  %v1609_v1 = vadd.s32 1, %v11448_v2  ;;  %10065 = vpow2.f32 %v953_v54 }
  0xda   : > { %v949_v43 = vmul.f32 1.442695, %v884_v25  ;;  %vm11466_vm5 = vcmp.le.f32.partialorder %v1654_v12, 0.7853982  ;;  %v9123_v26 = vadd.s32 4294967294, %v1722_v11  ;;  %v1863_v47 = vand.u32 2139095040, %v11456_v36  ;;  %v462_v25 = vpop.permute.xlu0 %461 }
  0xdb   : > { %v1710_v15 = vadd.s32 %v11367_v55, %v11364_v45  ;;  %v1740_v61 = vsub.s32 4, %v11401_v13  ;;  %v1610_v44 = vsel %vm1608_vm4, %v1609_v1, %v11448_v2  ;;  %v11479_v41 = vmul.f32 0.62831855, %v11476_v34 }
  0xdc   : > { %vm9124_vm6 = vcmp.lt.s32.totalorder %v9123_v26, 0  ;;  %v1611_v12 = vadd.s32 %v1610_v44, %v1606_v21  ;;  %v1860_v9 = vand.u32 2147483647, %v11456_v36  ;;  %v1864_v32 = vshrl.u32 %v1863_v47, 23 }
  0xdd   : > { %v888_v19 = vmul.f32 -259.48502, %v824_v60  ;;  %v823_v46 = vmul.f32 %v759_v31, %v759_v31  ;;  %v1725_v30 = vsel %vm9124_vm6, 0, %v9123_v26  ;;  %v762_v23 = vsub.f32 %v467_v51, %v11299_v49 }
  0xde   : > { %v1726_v45 = vsub.s32 32, %v1725_v30  ;;  %v1727_v55 = vshll.u32 %v11431_v37, %v1725_v30  ;;  %v1730_v50 = vsub.s32 4294967266, %v1725_v30  ;;  %v1612_v52 = vadd.s32 536870912, %v1611_v12  ;;  %v7987_v37 = vld [vmem:[%s17405_s2] sm:$0xff] }
  0xdf   : > { %10067 = vpow2.f32 %v949_v43  ;;  %v1741_v28 = vsel %vm1656_vm3, %v1740_v61, %v11401_v13  ;;  %v9129_v20 = vadd.s32 4294967169, %v1864_v32  ;;  %v1760_v48 = vand.u32 2139095040, %v11479_v41 }
  0xe0   : > { %v1728_v33 = vshrl.u32 %v1710_v15, %v1726_v45  ;;  %v1731_v63 = vadd.s32 127, %v1730_v50  ;;  %v11488_v39 = vshrl.u32 %v1612_v52, 30  ;;  %v1867_v35 = vand.u32 8388607, %v1860_v9 }
  0xe1   : > { %v957_v59 = vmul.f32 1.442695, %v888_v19  ;;  %v887_v13 = vmul.f32 -259.48502, %v823_v46  ;;  %v1870_v40 = vadd.s32 1, %v9129_v20  ;;  %v1761_v18 = vshrl.u32 %v1760_v48, 23  ;;  %v11498_v6 = vpop.eup %10061 }
  0xe2   : > { %v1729_v10 = vor.u32 %v1728_v33, %v1727_v55  ;;  %v1732_v3 = vshll.u32 %v1731_v63, 23  ;;  %v1614_v2 = vshll.u32 %v11488_v39, 30  ;;  %v826_v54 = vmul.f32 %v762_v23, %v762_v23  ;;  %v11501_v62 = vpop.eup %10063 }
  0xe3   : > { %v1743_v24 = vsel %vm11466_vm5, 0, %v1741_v28  ;;  %vm1871_vm7 = vcmp.gt.s32.totalorder %v1870_v40, 0  ;;  %v9125_v0 = vadd.s32 4294967169, %v1761_v18  ;;  %v9599_v11 = vpack.c.bf16 %v7988_v16, %v7987_v37  ;;  %v11505_v21 = vpop.eup %10065 }
  0xe4   : > { %v1733_v60 = vor.u32 4788187, %v1732_v3  ;;  %v1736_v31 = vcvt.s32.f32 %v1729_v10  ;;  %v11507_v1 = vsub.s32 %v1611_v12, %v1614_v2  ;;  %v1868_v43 = vor.u32 8388608, %v1867_v35 }
  0xe5   : > { %10069 = vpow2.f32 %v957_v59  ;;  %v11509_v26 = vmul.f32 1.442695, %v887_v13  ;;  %v11512_v51 = vsub.f32 %v462_v25, %v11299_v49  ;;  %v1872_v47 = vsel %vm1871_vm7, %v1870_v40, 0  ;;  %9600 = vmatprep.subr.bf16.mxu0 %v9599_v11  ;;  %9607 = vmatprep.subr.bf16.mxu1 %v9599_v11 }
  0xe6   : > { %v1734_v15 = vand.u32 2147483647, %v1733_v60  ;;  %v11514_v61 = vand.u32 3, %v1743_v24  ;;  %v1617_v44 = vsub.s32 0, %v11507_v1  ;;  %v11517_v32 = vmul.f32 -259.48502, %v826_v54  ;;  %9602 = vmatpush3.bf16.msra.mxu0 %v9599_v11  ;;  %9609 = vmatpush3.bf16.msra.mxu1 %v9599_v11 }
  0xe7   : > { %v1607_v12 = vadd.s32 %v11447_v5, %v11443_v4  ;;  %v1874_v19 = vand.u32 31, %v1872_v47  ;;  %v1757_v46 = vand.u32 2147483647, %v11479_v41  ;;  %v11522_v30 = vadd.s32 1, %v9125_v0 }
  0xe8   : > { %v1737_v23 = vmul.f32 %v1736_v31, %v1734_v15  ;;  %v9118_v45 = vmin.u32 %v1617_v44, %v11507_v1  ;;  %v1637_v55 = vsub.s32 4, %v11488_v39  ;;  %v11526_v50 = vshll.u32 %v1868_v43, 8 }
  0xe9   : > { %v11528_v52 = vpop.eup %10067  ;;  %v1873_v28 = vshrl.u32 %v1872_v47, 5  ;;  %v1875_v20 = vsub.s32 32, %v1874_v19  ;;  %v1877_v48 = vshll.u32 %v17469_v17, %v1874_v19  ;;  %v1880_v4 = vshll.u32 %v17470_v22, %v1874_v19 }
  0xea   : > { %v1738_v5 = vxor.u32 2147483648, %v1737_v23  ;;  %v1619_v33 = vclz %v9118_v45  ;;  %v1883_v63 = vshll.u32 %v17446_v29, %v1874_v19  ;;  %v1886_v35 = vshll.u32 %v17447_v56, %v1874_v19 }
  0xeb   : > { %v1876_v37 = vshrl.u32 %v17469_v17, %v1875_v20  ;;  %v1878_v16 = vshrl.u32 %v17470_v22, %v1875_v20  ;;  %v1881_v59 = vshrl.u32 %v17446_v29, %v1875_v20  ;;  %v1884_v13 = vshrl.u32 %v17447_v56, %v1875_v20 }
  0xec   : > { %vm1768_vm8 = vcmp.gt.s32.totalorder %v11522_v30, 0  ;;  %v1739_v40 = vsel %vm1656_vm3, %v1738_v5, %v1737_v23  ;;  %v9119_v18 = vadd.s32 4294967294, %v1619_v33  ;;  %v1887_v10 = vshrl.u32 %v17428_v7, %v1875_v20 }
  0xed   : > { %v1889_v3 = vshll.u32 %v17428_v7, %v1874_v19  ;;  %v1742_v2 = vsel %vm11466_vm5, %v11233_v38, %v1739_v40  ;;  %v1879_v54 = vor.u32 %v1878_v16, %v1877_v48  ;;  %v1882_v25 = vor.u32 %v1881_v59, %v1880_v4 }
  0xee   : > { %v1885_v24 = vor.u32 %v1884_v13, %v1883_v63  ;;  %10071 = vcosq.f32 %v1742_v2  ;;  %vm1553_vm9 = vcmp.lt.s32.totalorder %v11270_v57, 0  ;;  %vm9120_vm10 = vcmp.lt.s32.totalorder %v9119_v18, 0 }
  0xef   : > { %v1888_v0 = vor.u32 %v1887_v10, %v1886_v35  ;;  %v1890_v11 = vshrl.u32 %v17451_v42, %v1875_v20  ;;  %v11548_v60 = vpop.eup %10069  ;;  %10073 = vsinq.f32 %v1742_v2  ;;  %v1622_v31 = vsel %vm9120_vm10, 0, %v9119_v18 }
  0xf0   : > { %vm1892_vm11 = vcmp.lt.s32.totalorder %v1873_v28, 1  ;;  %vm1893_vm12 = vcmp.lt.s32.totalorder %v1873_v28, 2  ;;  %v1623_v43 = vsub.s32 32, %v1622_v31  ;;  %v1624_v27 = vshll.u32 %v11507_v1, %v1622_v31 }
  0xf1   : > { %v1627_v47 = vsub.s32 4294967266, %v1622_v31  ;;  %v1891_v15 = vor.u32 %v1890_v11, %v1889_v3  ;;  %vm11553_vm13 = vcmp.le.f32.partialorder %v1551_v8, 0.7853982  ;;  %vm1894_vm14 = vcmp.lt.s32.totalorder %v1873_v28, 3 }
  0xf2   : > { %vm1895_vm15 = vcmp.lt.s32.totalorder %v1873_v28, 4  ;;  %v1896_v19 = vsel %vm1892_vm11, %v1876_v37, %v1879_v54  ;;  %v1900_v23 = vsel %vm1892_vm11, %v1879_v54, %v1882_v25  ;;  %vm1748_vm0 = vcmp.lt.s32.totalorder %v11514_v61, 2 }
  0xf3   : > { %v1625_v45 = vshrl.u32 %v1607_v12, %v1623_v43  ;;  %v1628_v20 = vadd.s32 127, %v1627_v47  ;;  %v1897_v48 = vsel %vm1895_vm15, %v1885_v24, 2102212464  ;;  %v1901_v1 = vsel %vm1895_vm15, %v1888_v0, 920167782 }
  0xf4   : > { %vm1746_vm1 = vweird.f32 %v11233_v38  ;;  %v1898_v4 = vsel %vm1894_vm14, %v1882_v25, %v1897_v48  ;;  %v1902_v8 = vsel %vm1894_vm14, %v1885_v24, %v1901_v1  ;;  %v1904_v5 = vsel %vm1892_vm11, %v1882_v25, %v1885_v24 }
  0xf5   : > { %v1905_v33 = vsel %vm1895_vm15, %v1891_v15, 1326507024  ;;  %v1626_v63 = vor.u32 %v1625_v45, %v1624_v27  ;;  %v1629_v35 = vshll.u32 %v1628_v20, 23  ;;  %v1903_v37 = vsel %vm1893_vm12, %v1900_v23, %v1902_v8 }
  0xf6   : > { %v11567_v16 = vand.u32 8388607, %v1757_v46  ;;  %v1899_v12 = vsel %vm1893_vm12, %v1896_v19, %v1898_v4  ;;  %v1906_v59 = vsel %vm1894_vm14, %v1888_v0, %v1905_v33  ;;  %v1769_v2 = vsel %vm1768_vm8, %v11522_v30, 0 }
  0xf7   : > { %v11572_v13 = vmul.u32.u64.low %v11526_v50, %v1903_v37  ;;  %v11573_v40 = vmul.u32.u64.high %v11526_v50, %v1903_v37, %v11572_v13  ;;  %v1630_v18 = vor.u32 4788187, %v1629_v35  ;;  %v1633_v10 = vcvt.s32.f32 %v1626_v63 }
  0xf8   : > { %v1907_v3 = vsel %vm1893_vm12, %v1904_v5, %v1906_v59  ;;  %v1638_v54 = vsel %vm1553_vm9, %v1637_v55, %v11488_v39  ;;  %v1771_v0 = vand.u32 31, %v1769_v2  ;;  %v10072_v11 = vpop.eup %10071  ;;  %vm1749_vm2 = vcmp.eq.s32.totalorder %v11514_v61, 0 }
  0xf9   : > { %v11586_v25 = vmul.u32.u64.low %v11526_v50, %v1907_v3  ;;  %v11587_v24 = vmul.u32.u64.high %v11526_v50, %v1907_v3, %v11586_v25  ;;  %vm1752_vm3 = vcmp.eq.s32.totalorder %v11514_v61, 2  ;;  %vm7864_vm4 = vcmp.lt.f32.partialorder %v11230_v58, 5.0  ;;  %v10074_v31 = vpop.eup %10073 }
  0xfa   : > { %v1631_v28 = vand.u32 2147483647, %v1630_v18  ;;  %v1765_v30 = vor.u32 8388608, %v11567_v16  ;;  %v1753_v43 = vxor.u32 2147483648, %v10072_v11  ;;  %v1915_v27 = vmul.u32 %v11526_v50, %v1899_v12 }
  0xfb   : > { %v1918_v39 = vadd.s32 1, %v11573_v40  ;;  %v1772_v55 = vsub.s32 32, %v1771_v0  ;;  %v1750_v47 = vxor.u32 2147483648, %v10074_v31  ;;  %v1640_v19 = vsel %vm11553_vm13, 0, %v1638_v54 }
  0xfc   : > { %v1634_v15 = vmul.f32 %v1633_v10, %v1631_v28  ;;  %v11597_v23 = vshrl.u32 %v1769_v2, 5  ;;  %v1754_v45 = vsel %vm1752_vm3, %v1753_v43, %v10074_v31  ;;  %vm1917_vm5 = vc.u32 %v11587_v24, %v11572_v13 }
  0xfd   : > { %v1774_v20 = vshll.u32 %v17469_v17, %v1771_v0  ;;  %v1777_v48 = vshll.u32 %v17470_v22, %v1771_v0  ;;  %v1751_v50 = vsel %vm1749_vm2, %v10072_v11, %v1750_v47  ;;  %v1919_v4 = vsel %vm1917_vm5, %v1918_v39, %v11573_v40 }
  0xfe   : > { %v1635_v1 = vxor.u32 2147483648, %v1634_v15  ;;  %v1775_v8 = vshrl.u32 %v17470_v22, %v1772_v55  ;;  %v1755_v5 = vsel %vm1748_vm0, %v1751_v50, %v1754_v45  ;;  %v1920_v33 = vadd.s32 %v1919_v4, %v1915_v27 }
  0xff   : > { %v1778_v63 = vshrl.u32 %v17446_v29, %v1772_v55  ;;  %v1780_v35 = vshll.u32 %v17446_v29, %v1771_v0  ;;  %v1756_v37 = vsel %vm1746_vm1, nan, %v1755_v5  ;;  %v1781_v12 = vshrl.u32 %v17447_v56, %v1772_v55 }
 0x100   : > { %v1636_v16 = vsel %vm1553_vm9, %v1635_v1, %v1634_v15  ;;  %v1783_v59 = vshll.u32 %v17447_v56, %v1771_v0  ;;  %v7736_v40 = vadd.f32 1.0, %v1756_v37  ;;  %v1921_v18 = vadd.s32 536870912, %v1920_v33 }
 0x101   : > { %v1639_v61 = vsel %vm11553_vm13, %v11270_v57, %v1636_v16  ;;  %v1776_v10 = vor.u32 %v1775_v8, %v1774_v20  ;;  %v1779_v3 = vor.u32 %v1778_v63, %v1777_v48  ;;  %v1784_v2 = vshrl.u32 %v17428_v7, %v1772_v55 }
 0x102   : > { %10075 = vcosq.f32 %v1639_v61  ;;  %v1786_v38 = vshll.u32 %v17428_v7, %v1771_v0  ;;  %v7800_v54 = vmul.f32 0.5, %v7736_v40  ;;  %v11622_v25 = vshrl.u32 %v1921_v18, 30  ;;  %v11672_v40 = vld [vmem:[%s10649_s28 + $0x48] sm:$0xff] }
 0x103   : > { %10077 = vsinq.f32 %v1639_v61  ;;  %v1787_v11 = vshrl.u32 %v17451_v42, %v1772_v55  ;;  %v1773_v28 = vshrl.u32 %v17469_v17, %v1772_v55  ;;  %v1782_v31 = vor.u32 %v1781_v12, %v1780_v35  ;;  %v477_v12 = vpop.permute.xlu1 %476 }
 0x104   : > { %v1785_v43 = vor.u32 %v1784_v2, %v1783_v59  ;;  %vm1789_vm6 = vcmp.lt.s32.totalorder %v11597_v23, 1  ;;  %v7928_v44 = vsel %vm7864_vm4, %v7800_v54, 0.0  ;;  %v1923_v27 = vshll.u32 %v11622_v25, 30  ;;  %v472_v59 = vpop.permute.xlu0 %471 }
 0x105   : > { %v1788_v39 = vor.u32 %v1787_v11, %v1786_v38  ;;  %vm1791_vm7 = vcmp.lt.s32.totalorder %v11597_v23, 3  ;;  %8596 = vperm.xlu1 %9916, %v7928_v44   ;;  %vm1790_vm8 = vcmp.lt.s32.totalorder %v11597_v23, 2  ;;  %vm1792_vm9 = vcmp.lt.s32.totalorder %v11597_v23, 4 }
 0x106   : > { %v1797_v0 = vsel %vm1789_vm6, %v1776_v10, %v1779_v3  ;;  %v11635_v55 = vshll.u32 %v1765_v30, 8  ;;  %v1644_v47 = vand.u32 3, %v1640_v19  ;;  %v11637_v15 = vsub.s32 %v1920_v33, %v1923_v27 }
 0x107   : > { %v1794_v58 = vsel %vm1792_vm9, %v1782_v31, 2102212464  ;;  %v1798_v45 = vsel %vm1792_vm9, %v1785_v43, 920167782  ;;  %10079 = vpow2.f32 %v11509_v26  ;;  %v1793_v20 = vsel %vm1789_vm6, %v1773_v28, %v1776_v10 }
 0x108   : > { %v1799_v48 = vsel %vm1791_vm7, %v1782_v31, %v1798_v45  ;;  %v1802_v50 = vsel %vm1792_vm9, %v1788_v39, 1326507024  ;;  %v1926_v1 = vsub.s32 0, %v11637_v15  ;;  %v1795_v30 = vsel %vm1791_vm7, %v1779_v3, %v1794_v58 }
 0x109   : > { %v1800_v19 = vsel %vm1790_vm8, %v1797_v0, %v1799_v48  ;;  %v1801_v4 = vsel %vm1789_vm6, %v1779_v3, %v1782_v31  ;;  %v825_v26 = vmul.f32 %v11512_v51, %v11512_v51  ;;  %v1803_v8 = vsel %vm1791_vm7, %v1785_v43, %v1802_v50 }
 0x10a   : > { %v11656_v5 = vmul.u32.u64.low %v11635_v55, %v1800_v19  ;;  %v11657_v33 = vmul.u32.u64.high %v11635_v55, %v1800_v19, %v11656_v5  ;;  %vm1643_vm10 = vweird.f32 %v11270_v57  ;;  %vm1646_vm11 = vcmp.eq.s32.totalorder %v1644_v47, 0 }
 0x10b   : > { %v11662_v63 = vmul.f32 1.442695, %v11517_v32  ;;  %v9130_v35 = vmin.u32 %v1926_v1, %v11637_v15  ;;  %vm1649_vm12 = vcmp.eq.s32.totalorder %v1644_v47, 2  ;;  %vm7863_vm13 = vcmp.lt.f32.partialorder %v11267_v14, 5.0 }
 0x10c   : > { %v10076_v37 = vpop.eup %10075  ;;  %vm1862_vm14 = vcmp.lt.s32.totalorder %v11456_v36, 0  ;;  %v1796_v51 = vsel %vm1790_vm8, %v1793_v20, %v1795_v30  ;;  %v1804_v16 = vsel %vm1790_vm8, %v1801_v4, %v1803_v8  ;;  %v11675_v32 = vmul.f32 0.62831855, %v11672_v40 }
 0x10d   : > { %v10078_v61 = vpop.eup %10077  ;;  %v1650_v18 = vxor.u32 2147483648, %v10076_v37  ;;  %v1928_v10 = vclz %v9130_v35  ;;  %v11678_v3 = vmul.u32.u64.low %v11635_v55, %v1804_v16  ;;  %v11679_v2 = vmul.u32.u64.high %v11635_v55, %v1804_v16, %v11678_v3 }
 0x10e   : > { %vm1645_vm15 = vcmp.lt.s32.totalorder %v1644_v47, 2  ;;  %v1647_v38 = vxor.u32 2147483648, %v10078_v61  ;;  %v889_v54 = vmul.f32 -259.48502, %v825_v26  ;;  %v1815_v23 = vadd.s32 1, %v11657_v33 }
 0x10f   : > { %v1651_v11 = vsel %vm1649_vm12, %v1650_v18, %v10078_v61  ;;  %vm11685_vm0 = vcmp.le.f32.partialorder %v1860_v9, 0.7853982  ;;  %v9131_v31 = vadd.s32 4294967294, %v1928_v10  ;;  %v764_v43 = vsub.f32 %v477_v12, %v11299_v49  ;;  %v11712_v12 = vld [vmem:[%s10649_s28 + $0x40] sm:$0xff] }
 0x110   : > { %v763_v44 = vsub.f32 %v472_v59, %v11299_v49  ;;  %v1648_v27 = vsel %vm1646_vm11, %v10076_v37, %v1647_v38  ;;  %v1916_v39 = vadd.s32 %v11572_v13, %v11587_v24  ;;  %v1812_v0 = vmul.u32 %v11635_v55, %v1796_v51 }
 0x111   : > { %v2069_v58 = vand.u32 2139095040, %v11675_v32  ;;  %v1652_v45 = vsel %vm1645_vm15, %v1648_v27, %v1651_v11  ;;  %vm9132_vm1 = vcmp.lt.s32.totalorder %v9131_v31, 0  ;;  %v1946_v9 = vsub.s32 4, %v11622_v25  ;;  %v11699_v20 = vpop.eup %10079 }
 0x112   : > { %vm1814_vm2 = vc.u32 %v11679_v2, %v11656_v5  ;;  %v1653_v49 = vsel %vm1643_vm10, nan, %v1652_v45  ;;  %v1931_v47 = vsel %vm9132_vm1, 0, %v9131_v31  ;;  %v2066_v13 = vand.u32 2147483647, %v11675_v32 }
 0x113   : > { %v1816_v48 = vsel %vm1814_vm2, %v1815_v23, %v11657_v33  ;;  %v7735_v24 = vadd.f32 1.0, %v1653_v49  ;;  %v1932_v55 = vsub.s32 32, %v1931_v47  ;;  %v1933_v50 = vshll.u32 %v11637_v15, %v1931_v47 }
 0x114   : > { %v1936_v1 = vsub.s32 4294967266, %v1931_v47  ;;  %v1817_v30 = vadd.s32 %v1816_v48, %v1812_v0  ;;  %v828_v19 = vmul.f32 %v764_v43, %v764_v43  ;;  %v827_v4 = vmul.f32 %v763_v44, %v763_v44 }
 0x115   : > { %v2070_v26 = vshrl.u32 %v2069_v58, 23  ;;  %v7799_v8 = vmul.f32 0.5, %v7735_v24  ;;  %v1934_v35 = vshrl.u32 %v1916_v39, %v1932_v55  ;;  %v1947_v57 = vsel %vm1862_vm14, %v1946_v9, %v11622_v25 }
 0x116   : > { %v1937_v37 = vadd.s32 127, %v1936_v1  ;;  %v1818_v33 = vadd.s32 536870912, %v1817_v30  ;;  %v2073_v16 = vand.u32 8388607, %v2066_v13  ;;  %v11715_v15 = vmul.f32 0.62831855, %v11712_v12 }
 0x117   : > { %v9137_v51 = vadd.s32 4294967169, %v2070_v26  ;;  %v7927_v59 = vsel %vm7863_vm13, %v7799_v8, 0.0  ;;  %v959_v61 = vmul.f32 1.442695, %v889_v54  ;;  %v1935_v18 = vor.u32 %v1934_v35, %v1933_v50 }
 0x118   : > { %v1938_v10 = vshll.u32 %v1937_v37, 23  ;;  %8591 = vperm.xlu0 %9915, %v7927_v59   ;;  %v1949_v25 = vsel %vm11685_vm0, 0, %v1947_v57  ;;  %v11721_v3 = vshrl.u32 %v1818_v33, 30  ;;  %v892_v38 = vmul.f32 -259.48502, %v828_v19 }
 0x119   : > { %v2076_v23 = vadd.s32 1, %v9137_v51  ;;  %v1942_v31 = vcvt.s32.f32 %v1935_v18  ;;  %v891_v43 = vmul.f32 -259.48502, %v827_v4  ;;  %v1966_v44 = vand.u32 2139095040, %v11715_v15 }
 0x11a   : > { %v1939_v11 = vor.u32 4788187, %v1938_v10  ;;  %10081 = vpow2.f32 %v11662_v63  ;;  %v1820_v14 = vshll.u32 %v11721_v3, 30  ;;  %v2074_v54 = vor.u32 8388608, %v2073_v16 }
 0x11b   : > { %vm2077_vm3 = vcmp.gt.s32.totalorder %v2076_v23, 0  ;;  %10083 = vpow2.f32 %v959_v61  ;;  %v11726_v0 = vand.u32 3, %v1949_v25  ;;  %v1967_v9 = vshrl.u32 %v1966_v44, 23 }
 0x11c   : > { %v1940_v27 = vand.u32 2147483647, %v1939_v11  ;;  %v2078_v39 = vsel %vm2077_vm3, %v2076_v23, 0  ;;  %v11728_v58 = vsub.s32 %v1817_v30, %v1820_v14  ;;  %v1813_v47 = vadd.s32 %v11656_v5, %v11679_v2 }
 0x11d   : > { %v2080_v45 = vand.u32 31, %v2078_v39  ;;  %v11732_v48 = vmul.f32 1.442695, %v892_v38  ;;  %v11734_v63 = vmul.f32 1.442695, %v891_v43  ;;  %v1843_v55 = vsub.s32 4, %v11721_v3 }
 0x11e   : > { %v1943_v49 = vmul.f32 %v1942_v31, %v1940_v27  ;;  %v1823_v24 = vsub.s32 0, %v11728_v58  ;;  %v11738_v1 = vshll.u32 %v2074_v54, 8  ;;  %v2079_v30 = vshrl.u32 %v2078_v39, 5 }
 0x11f   : > { %v2081_v50 = vsub.s32 32, %v2080_v45  ;;  %v2083_v4 = vshll.u32 %v17469_v17, %v2080_v45  ;;  %v2086_v26 = vshll.u32 %v17470_v22, %v2080_v45  ;;  %v2089_v5 = vshll.u32 %v17446_v29, %v2080_v45 }
 0x120   : > { %v1944_v19 = vxor.u32 2147483648, %v1943_v49  ;;  %v9126_v8 = vmin.u32 %v1823_v24, %v11728_v58  ;;  %v2092_v2 = vshll.u32 %v17447_v56, %v2080_v45  ;;  %v9133_v35 = vadd.s32 4294967169, %v1967_v9 }
 0x121   : > { %v2082_v57 = vshrl.u32 %v17469_v17, %v2081_v50  ;;  %v2084_v33 = vshrl.u32 %v17470_v22, %v2081_v50  ;;  %v2087_v51 = vshrl.u32 %v17446_v29, %v2081_v50  ;;  %v2090_v61 = vshrl.u32 %v17447_v56, %v2081_v50 }
 0x122   : > { %v1945_v37 = vsel %vm1862_vm14, %v1944_v19, %v1943_v49  ;;  %v1825_v59 = vclz %v9126_v8  ;;  %v2093_v18 = vshrl.u32 %v17428_v7, %v2081_v50  ;;  %v2095_v38 = vshll.u32 %v17428_v7, %v2080_v45 }
 0x123   : > { %v1948_v16 = vsel %vm11685_vm0, %v11456_v36, %v1945_v37  ;;  %v2085_v10 = vor.u32 %v2084_v33, %v2083_v4  ;;  %v2088_v25 = vor.u32 %v2087_v51, %v2086_v26  ;;  %vm1759_vm4 = vcmp.lt.s32.totalorder %v11479_v41, 0  ;;  %v7990_v51 = vld [vmem:[%s17405_s2 + $0x18] sm:$0xff] }
 0x124   : > { %10085 = vcosq.f32 %v1948_v16  ;;  %v11756_v23 = vpop.eup %10081  ;;  %v9127_v11 = vadd.s32 4294967294, %v1825_v59  ;;  %v2091_v31 = vor.u32 %v2090_v61, %v2089_v5  ;;  %v2094_v43 = vor.u32 %v2093_v18, %v2092_v2 }
 0x125   : > { %10087 = vsinq.f32 %v1948_v16  ;;  %v11759_v28 = vpop.eup %10083  ;;  %vm1958_vm5 = vcmp.eq.s32.totalorder %v11726_v0, 2  ;;  %v2096_v44 = vshrl.u32 %v17451_v42, %v2081_v50  ;;  %vm2098_vm6 = vcmp.lt.s32.totalorder %v2079_v30, 1 }
 0x126   : > { %vm2099_vm7 = vcmp.lt.s32.totalorder %v2079_v30, 2  ;;  %vm2100_vm8 = vcmp.lt.s32.totalorder %v2079_v30, 3  ;;  %vm1955_vm9 = vcmp.eq.s32.totalorder %v11726_v0, 0  ;;  %vm9128_vm10 = vcmp.lt.s32.totalorder %v9127_v11, 0 }
 0x127   : > { %vm2101_vm11 = vcmp.lt.s32.totalorder %v2079_v30, 4  ;;  %v2102_v14 = vsel %vm2098_vm6, %v2082_v57, %v2085_v10  ;;  %v2106_v54 = vsel %vm2098_vm6, %v2085_v10, %v2088_v25  ;;  %vm1954_vm12 = vcmp.lt.s32.totalorder %v11726_v0, 2 }
 0x128   : > { %vm11769_vm13 = vcmp.le.f32.partialorder %v1757_v46, 0.7853982  ;;  %v1828_v39 = vsel %vm9128_vm10, 0, %v9127_v11  ;;  %v2097_v45 = vor.u32 %v2096_v44, %v2095_v38  ;;  %v2103_v9 = vsel %vm2101_vm11, %v2091_v31, 2102212464 }
 0x129   : > { %v2107_v49 = vsel %vm2101_vm11, %v2094_v43, 920167782  ;;  %vm1952_vm14 = vweird.f32 %v11456_v36  ;;  %v1829_v24 = vsub.s32 32, %v1828_v39  ;;  %v1830_v50 = vshll.u32 %v11728_v58, %v1828_v39  ;;  %v7989_v58 = vld [vmem:[%s17405_s2 + $0x10] sm:$0xff] }
 0x12a   : > { %v1833_v19 = vsub.s32 4294967266, %v1828_v39  ;;  %v2104_v4 = vsel %vm2100_vm8, %v2088_v25, %v2103_v9  ;;  %v2108_v46 = vsel %vm2100_vm8, %v2091_v31, %v2107_v49  ;;  %v2110_v8 = vsel %vm2098_vm6, %v2088_v25, %v2091_v31  ;;  %v487_v9 = vpop.permute.xlu1 %486 }
 0x12b   : > { %v2105_v26 = vsel %vm2099_vm7, %v2102_v14, %v2104_v4  ;;  %v2111_v5 = vsel %vm2101_vm11, %v2097_v45, 1326507024  ;;  %v1831_v2 = vshrl.u32 %v1813_v47, %v1829_v24  ;;  %v2109_v57 = vsel %vm2099_vm7, %v2106_v54, %v2108_v46 }
 0x12c   : > { %v1834_v37 = vadd.s32 127, %v1833_v19  ;;  %v2112_v33 = vsel %vm2100_vm8, %v2094_v43, %v2111_v5  ;;  %v11792_v59 = vmul.u32.u64.low %v11738_v1, %v2109_v57  ;;  %v11793_v61 = vmul.u32.u64.high %v11738_v1, %v2109_v57, %v11792_v59 }
 0x12d   : > { %v2113_v16 = vsel %vm2099_vm7, %v2110_v8, %v2112_v33  ;;  %v1963_v47 = vand.u32 2147483647, %v11715_v15  ;;  %v1832_v18 = vor.u32 %v1831_v2, %v1830_v50  ;;  %vm7866_vm15 = vcmp.lt.f32.partialorder %v11453_v53, 5.0 }
 0x12e   : > { %v1835_v10 = vshll.u32 %v1834_v37, 23  ;;  %v11798_v25 = vmul.u32.u64.low %v11738_v1, %v2113_v16  ;;  %v11799_v38 = vmul.u32.u64.high %v11738_v1, %v2113_v16, %v11798_v25  ;;  %v10086_v11 = vpop.eup %10085  ;;  %v1844_v30 = vsel %vm1759_vm4, %v1843_v55, %v11721_v3 }
 0x12f   : > { %v2121_v31 = vmul.u32 %v11738_v1, %v2105_v26  ;;  %v1973_v43 = vadd.s32 1, %v9133_v35  ;;  %v9603_v44 = vpack.c.bf16 %v7990_v51, %v7989_v58  ;;  %v10088_v14 = vpop.eup %10087  ;;  %v1959_v54 = vxor.u32 2147483648, %v10086_v11 }
 0x130   : > { %v1836_v39 = vor.u32 4788187, %v1835_v10  ;;  %v1839_v45 = vcvt.s32.f32 %v1832_v18  ;;  %vm7991_vm0 = vcmask 261120   ;;  %v1956_v49 = vxor.u32 2147483648, %v10088_v14 }
 0x131   : > { %v2124_v24 = vadd.s32 1, %v11793_v61  ;;  %v11811_v50 = vand.u32 8388607, %v1963_v47  ;;  %vm1974_vm1 = vcmp.gt.s32.totalorder %v1973_v43, 0  ;;  %9604 = vmatprep.subr.bf16.mxu0 %v9603_v44  ;;  %9503 = vmatprep.mubr.msk.f32.mxu0 %vm7991_vm0, %v11501_v62  ;;  %v1960_v3 = vsel %vm1958_vm5, %v1959_v54, %v10088_v14  ;;  %v11827_v62 = vld [vmem:[%s17404_s1] ss:$0 sm:$0xff] }
 0x132   : > { %v1837_v55 = vand.u32 2147483647, %v1836_v39  ;;  %v1846_v1 = vsel %vm11769_vm13, 0, %v1844_v30  ;;  %vm2123_vm2 = vc.u32 %v11799_v38, %v11792_v59  ;;  %9606 = vmatpush3.bf16.msra.mxu0 %v9603_v44  ;;  %9608 = vmatprep.subr.bf16.mxu1 %v9603_v44  ;;  %v1957_v35 = vsel %vm1955_vm9, %v10086_v11, %v1956_v49 }
 0x133   : > { %v2125_v19 = vsel %vm2123_vm2, %v2124_v24, %v11793_v61  ;;  %v1975_v4 = vsel %vm1974_vm1, %v1973_v43, 0  ;;  %v766_v26 = vsub.f32 %v487_v9, %v11827_v62  ;;  %9610 = vmatpush3.bf16.msra.mxu1 %v9603_v44  ;;  %v1961_v46 = vsel %vm1954_vm12, %v1957_v35, %v1960_v3  ;;  %v482_v9 = vpop.permute.xlu0 %481 }
 0x134   : > { %v1840_v8 = vmul.f32 %v1839_v45, %v1837_v55  ;;  %10089 = vpow2.f32 %v11732_v48  ;;  %v2126_v5 = vadd.s32 %v2125_v19, %v2121_v31  ;;  %v1962_v2 = vsel %vm1952_vm14, nan, %v1961_v46 }
 0x135   : > { %10091 = vpow2.f32 %v11734_v63  ;;  %v1971_v37 = vor.u32 8388608, %v11811_v50  ;;  %v1977_v57 = vand.u32 31, %v1975_v4  ;;  %9504 = vmatmul.mubr.msk.f32.vlgmr.msra.gmra.mrb[0].mxu0 %vm7991_vm0, %v11528_v52  ;;  %v7738_v33 = vadd.f32 1.0, %v1962_v2 }
 0x136   : > { %v1841_v58 = vxor.u32 2147483648, %v1840_v8  ;;  %v11839_v51 = vand.u32 3, %v1846_v1  ;;  %v2127_v0 = vadd.s32 536870912, %v2126_v5  ;;  %9506 = vmatprep.mubr.msk.f32.mxu0 %vm7991_vm0, %v11498_v6  ;;  %v11843_v48 = vshrl.u32 %v1975_v4, 5 }
 0x137   : > { %v1978_v36 = vsub.s32 32, %v1977_v57  ;;  %v1980_v16 = vshll.u32 %v17469_v17, %v1977_v57  ;;  %v830_v63 = vmul.f32 %v766_v26, %v766_v26  ;;  %v7802_v61 = vmul.f32 0.5, %v7738_v33 }
 0x138   : > { %v1842_v18 = vsel %vm1759_vm4, %v1841_v58, %v1840_v8  ;;  %v11848_v10 = vshrl.u32 %v2127_v0, 30  ;;  %v1983_v52 = vshll.u32 %v17470_v22, %v1977_v57  ;;  %v1986_v30 = vshll.u32 %v17446_v29, %v1977_v57 }
 0x139   : > { %v1845_v25 = vsel %vm11769_vm13, %v11479_v41, %v1842_v18  ;;  %v1981_v6 = vshrl.u32 %v17470_v22, %v1978_v36  ;;  %v1984_v11 = vshrl.u32 %v17446_v29, %v1978_v36  ;;  %9507 = vmatmul.mubr.msk.f32.gmra.mrb[2].mxu0 %vm7991_vm0, %v11505_v21  ;;  %v7930_v31 = vsel %vm7866_vm15, %v7802_v61, 0.0 }
 0x13a   : > { %10093 = vcosq.f32 %v1845_v25  ;;  %v2129_v43 = vshll.u32 %v11848_v10, 30  ;;  %v1989_v44 = vshll.u32 %v17447_v56, %v1977_v57  ;;  %9509 = vmatprep.mubr.msk.f32.mxu0 %vm7991_vm0, %v11699_v20  ;;  %8606 = vperm.xlu1 %9916, %v7930_v31   ;;  %v1979_v27 = vshrl.u32 %v17469_v17, %v1978_v36 }
 0x13b   : > { %10095 = vsinq.f32 %v1845_v25  ;;  %v1982_v14 = vor.u32 %v1981_v6, %v1980_v16  ;;  %v1987_v54 = vshrl.u32 %v17447_v56, %v1978_v36  ;;  %v1985_v21 = vor.u32 %v1984_v11, %v1983_v52 }
 0x13c   : > { %v11867_v39 = vsub.s32 %v2126_v5, %v2129_v43  ;;  %v1990_v53 = vshrl.u32 %v17428_v7, %v1978_v36  ;;  %v1992_v45 = vshll.u32 %v17428_v7, %v1977_v57  ;;  %vm1852_vm3 = vcmp.eq.s32.totalorder %v11839_v51, 0 }
 0x13d   : > { %v1988_v49 = vor.u32 %v1987_v54, %v1986_v30  ;;  %v1993_v20 = vshrl.u32 %v17451_v42, %v1978_v36  ;;  %vm1995_vm4 = vcmp.lt.s32.totalorder %v11843_v48, 1  ;;  %9510 = vmatmul.mubr.msk.f32.gmra.mrb[4].mxu0 %vm7991_vm0, %v11548_v60  ;;  %vm1851_vm5 = vcmp.lt.s32.totalorder %v11839_v51, 2 }
 0x13e   : > { %v10090_v24 = vpop.eup %10089  ;;  %v2132_v50 = vsub.s32 0, %v11867_v39  ;;  %v1991_v3 = vor.u32 %v1990_v53, %v1989_v44  ;;  %v11878_v55 = vshll.u32 %v1971_v37, 8  ;;  %v894_v1 = vmul.f32 -259.48502, %v830_v63  ;;  %9512 = vmatprep.mubr.msk.f32.mxu0 %vm7991_vm0, %v11759_v28 }
 0x13f   : > { %v10092_v35 = vpop.eup %10091  ;;  %vm1849_vm6 = vweird.f32 %v11479_v41  ;;  %v1994_v19 = vor.u32 %v1993_v20, %v1992_v45  ;;  %vm1997_vm7 = vcmp.lt.s32.totalorder %v11843_v48, 3  ;;  %vm1998_vm8 = vcmp.lt.s32.totalorder %v11843_v48, 4  ;;  %v11930_v20 = vld [vmem:[%s10649_s28 + $0x58] sm:$0xff] }
 0x140   : > { %v765_v60 = vsub.f32 %v482_v9, %v11827_v62  ;;  %v9138_v4 = vmin.u32 %v2132_v50, %v11867_v39  ;;  %vm1996_vm9 = vcmp.lt.s32.totalorder %v11843_v48, 2  ;;  %v1999_v26 = vsel %vm1995_vm4, %v1979_v27, %v1982_v14 }
 0x141   : > { %v2003_v28 = vsel %vm1995_vm4, %v1982_v14, %v1985_v21  ;;  %v2000_v46 = vsel %vm1998_vm8, %v1988_v49, 2102212464  ;;  %v2004_v8 = vsel %vm1998_vm8, %v1991_v3, 920167782  ;;  %v2007_v5 = vsel %vm1995_vm4, %v1985_v21, %v1988_v49  ;;  %9513 = vmatmul.mubr.msk.f32.gmra.mrb[6].mxu0 %vm7991_vm0, %v11756_v23 }
 0x142   : > { %v2008_v2 = vsel %vm1998_vm8, %v1994_v19, 1326507024  ;;  %v2134_v37 = vclz %v9138_v4  ;;  %v2001_v57 = vsel %vm1997_vm7, %v1985_v21, %v2000_v46  ;;  %v2005_v33 = vsel %vm1997_vm7, %v1988_v49, %v2004_v8  ;;  %9515 = vmatprep.mubr.msk.f32.mxu0 %vm7991_vm0, %v10092_v35  ;;  %v11940_v19 = vld [vmem:[%s10649_s28 + $0x50] sm:$0xff] }
 0x143   : > { %v2009_v58 = vsel %vm1997_vm7, %v1991_v3, %v2008_v2  ;;  %vm1855_vm10 = vcmp.eq.s32.totalorder %v11839_v51, 2  ;;  %v2122_v0 = vadd.s32 %v11792_v59, %v11799_v38  ;;  %v2006_v36 = vsel %vm1996_vm9, %v2003_v28, %v2005_v33 }
 0x144   : > { %v2010_v16 = vsel %vm1996_vm9, %v2007_v5, %v2009_v58  ;;  %v10094_v63 = vpop.eup %10093  ;;  %vm7865_vm11 = vcmp.lt.f32.partialorder %v11476_v34, 5.0  ;;  %v9139_v23 = vadd.s32 4294967294, %v2134_v37  ;;  %v2002_v61 = vsel %vm1996_vm9, %v1999_v26, %v2001_v57 }
 0x145   : > { %v11908_v18 = vmul.u32.u64.low %v11878_v55, %v2010_v16  ;;  %v11909_v52 = vmul.u32.u64.high %v11878_v55, %v2010_v16, %v11908_v18  ;;  %v10096_v25 = vpop.eup %10095  ;;  %v1856_v6 = vxor.u32 2147483648, %v10094_v63  ;;  %v829_v11 = vmul.f32 %v765_v60, %v765_v60  ;;  %9516 = vmatmul.mubr.msk.f32.gmra.mrb[8].mxu0 %vm7991_vm0, %v10090_v24 }
 0x146   : > { %v11912_v59 = vmul.u32.u64.low %v11878_v55, %v2006_v36  ;;  %v11913_v38 = vmul.u32.u64.high %v11878_v55, %v2006_v36, %v11912_v59  ;;  %v1853_v30 = vxor.u32 2147483648, %v10096_v25  ;;  %vm9140_vm12 = vcmp.lt.s32.totalorder %v9139_v23, 0 }
 0x147   : > { %v2152_v48 = vsub.s32 4, %v11848_v10  ;;  %v969_v31 = vmul.f32 1.442695, %v894_v1  ;;  %v1857_v43 = vsel %vm1855_vm10, %v1856_v6, %v10096_v25  ;;  %v2137_v44 = vsel %vm9140_vm12, 0, %v9139_v23 }
 0x148   : > { %v2018_v27 = vmul.u32 %v11878_v55, %v2002_v61  ;;  %v893_v14 = vmul.f32 -259.48502, %v829_v11  ;;  %v1854_v54 = vsel %vm1852_vm3, %v10094_v63, %v1853_v30  ;;  %v2138_v21 = vsub.s32 32, %v2137_v44 }
 0x149   : > { %v2139_v53 = vshll.u32 %v11867_v39, %v2137_v44  ;;  %v2142_v45 = vsub.s32 4294967266, %v2137_v44  ;;  %v1858_v9 = vsel %vm1851_vm5, %v1854_v54, %v1857_v43  ;;  %vm2020_vm13 = vc.u32 %v11909_v52, %v11912_v59 }
 0x14a   : > { %v2021_v49 = vadd.s32 1, %v11913_v38  ;;  %v11933_v24 = vmul.f32 0.62831855, %v11930_v20  ;;  %v1859_v50 = vsel %vm1849_vm6, nan, %v1858_v9  ;;  %v2140_v3 = vshrl.u32 %v2122_v0, %v2138_v21 }
 0x14b   : > { %v2143_v55 = vadd.s32 127, %v2142_v45  ;;  %v967_v39 = vmul.f32 1.442695, %v893_v14  ;;  %v7737_v1 = vadd.f32 1.0, %v1859_v50  ;;  %v11943_v60 = vmul.f32 0.62831855, %v11940_v19 }
 0x14c   : > { %v2022_v51 = vsel %vm2020_vm13, %v2021_v49, %v11913_v38  ;;  %v2272_v35 = vand.u32 2147483647, %v11933_v24  ;;  %v2141_v4 = vor.u32 %v2140_v3, %v2139_v53  ;;  %vm2068_vm14 = vcmp.lt.s32.totalorder %v11675_v32, 0 }
 0x14d   : > { %v2144_v26 = vshll.u32 %v2143_v55, 23  ;;  %v2023_v28 = vadd.s32 %v2022_v51, %v2018_v27  ;;  %10097 = vpow2.f32 %v967_v39  ;;  %v7801_v46 = vmul.f32 0.5, %v7737_v1 }
 0x14e   : > { %10099 = vpow2.f32 %v969_v31  ;;  %v2275_v41 = vand.u32 2139095040, %v11933_v24  ;;  %v2148_v5 = vcvt.s32.f32 %v2141_v4  ;;  %v2153_v2 = vsel %vm2068_vm14, %v2152_v48, %v11848_v10 }
 0x14f   : > { %v2145_v8 = vor.u32 4788187, %v2144_v26  ;;  %v2024_v37 = vadd.s32 536870912, %v2023_v28  ;;  %v7929_v57 = vsel %vm7865_vm11, %v7801_v46, 0.0  ;;  %v2279_v58 = vand.u32 8388607, %v2272_v35 }
 0x150   : > { %v2276_v33 = vshrl.u32 %v2275_v41, 23  ;;  %v2169_v0 = vand.u32 2147483647, %v11943_v60  ;;  %8601 = vperm.xlu0 %9915, %v7929_v57   ;;  %v2172_v63 = vand.u32 2139095040, %v11943_v60  ;;  %vm11958_vm15 = vcmp.le.f32.partialorder %v2066_v13, 0.7853982 }
 0x151   : > { %v2146_v36 = vand.u32 2147483647, %v2145_v8  ;;  %v2025_v16 = vshrl.u32 %v2024_v37, 30  ;;  %v2155_v61 = vsel %vm11958_vm15, 0, %v2153_v2  ;;  %v2280_v25 = vor.u32 8388608, %v2279_v58 }
 0x152   : > { %v9145_v10 = vadd.s32 4294967169, %v2276_v33  ;;  %v11966_v38 = vand.u32 8388607, %v2169_v0  ;;  %v2173_v13 = vshrl.u32 %v2172_v63, 23  ;;  %v11970_v31 = vand.u32 3, %v2155_v61 }
 0x153   : > { %v2149_v34 = vmul.f32 %v2148_v5, %v2146_v36  ;;  %v2026_v18 = vshll.u32 %v2025_v16, 30  ;;  %v2049_v48 = vsub.s32 4, %v2025_v16  ;;  %vm1965_vm1 = vcmp.lt.s32.totalorder %v11715_v15, 0 }
 0x154   : > { %v2282_v6 = vadd.s32 1, %v9145_v10  ;;  %v2019_v27 = vadd.s32 %v11912_v59, %v11909_v52  ;;  %v11981_v9 = vshll.u32 %v2280_v25, 8  ;;  %v2177_v49 = vor.u32 8388608, %v11966_v38 }
 0x155   : > { %v2150_v11 = vxor.u32 2147483648, %v2149_v34  ;;  %v11968_v30 = vsub.s32 %v2023_v28, %v2026_v18  ;;  %v11988_v52 = vsel %vm1965_vm1, %v2049_v48, %v2025_v16  ;;  %v9141_v59 = vadd.s32 4294967169, %v2173_v13 }
 0x156   : > { %vm2283_vm2 = vcmp.gt.s32.totalorder %v2282_v6, 0  ;;  %vm2164_vm3 = vcmp.eq.s32.totalorder %v11970_v31, 2  ;;  %vm2161_vm4 = vcmp.eq.s32.totalorder %v11970_v31, 0  ;;  %vm2160_vm5 = vcmp.lt.s32.totalorder %v11970_v31, 2 }
 0x157   : > { %v10098_v43 = vpop.eup %10097  ;;  %v2151_v44 = vsel %vm2068_vm14, %v2150_v11, %v2149_v34  ;;  %v2029_v14 = vsub.s32 0, %v11968_v30  ;;  %v2284_v54 = vsel %vm2283_vm2, %v2282_v6, 0  ;;  %vm2158_vm6 = vweird.f32 %v11675_v32 }
 0x158   : > { %v10100_v21 = vpop.eup %10099  ;;  %v2154_v53 = vsel %vm11958_vm15, %v11675_v32, %v2151_v44  ;;  %v2286_v45 = vand.u32 31, %v2284_v54  ;;  %9518 = vmatprep.mubr.msk.f32.mxu0 %vm7991_vm0, %v10098_v43  ;;  %v2285_v3 = vshrl.u32 %v2284_v54, 5  ;;  %vm12008_vm10 = vcmp.le.f32.partialorder %v1963_v47, 0.7853982 }
 0x159   : > { %10101 = vcosq.f32 %v2154_v53  ;;  %v9134_v50 = vmin.u32 %v2029_v14, %v11968_v30  ;;  %9519 = vmatmul.mubr.msk.f32.gmra.mrb[10].mxu0 %vm7991_vm0, %v10100_v21  ;;  %v2179_v13 = vadd.s32 1, %v9141_v59  ;;  %vm7868_vm13 = vcmp.lt.f32.partialorder %v11672_v40, 5.0 }
 0x15a   : > { %10103 = vsinq.f32 %v2154_v53  ;;  %v2287_v55 = vsub.s32 32, %v2286_v45  ;;  %v2289_v39 = vshll.u32 %v17469_v17, %v2286_v45  ;;  %v2292_v51 = vshll.u32 %v17470_v22, %v2286_v45 }
 0x15b   : > { %v2031_v1 = vclz %v9134_v50  ;;  %v2295_v4 = vshll.u32 %v17446_v29, %v2286_v45  ;;  %v2298_v26 = vshll.u32 %v17447_v56, %v2286_v45  ;;  %v2301_v37 = vshll.u32 %v17428_v7, %v2286_v45 }
 0x15c   : > { %v2288_v28 = vshrl.u32 %v17469_v17, %v2287_v55  ;;  %v2290_v46 = vshrl.u32 %v17470_v22, %v2287_v55  ;;  %v2293_v41 = vshrl.u32 %v17446_v29, %v2287_v55  ;;  %v2296_v8 = vshrl.u32 %v17447_v56, %v2287_v55 }
 0x15d   : > { %v9135_v5 = vadd.s32 4294967294, %v2031_v1  ;;  %v2299_v2 = vshrl.u32 %v17428_v7, %v2287_v55  ;;  %v2302_v57 = vshrl.u32 %v17451_v42, %v2287_v55  ;;  %vm2304_vm7 = vcmp.lt.s32.totalorder %v2285_v3, 1 }
 0x15e   : > { %v2291_v33 = vor.u32 %v2290_v46, %v2289_v39  ;;  %v2294_v58 = vor.u32 %v2293_v41, %v2292_v51  ;;  %v2297_v36 = vor.u32 %v2296_v8, %v2295_v4  ;;  %vm2305_vm9 = vcmp.lt.s32.totalorder %v2285_v3, 2 }
 0x15f   : > { %vm9136_vm8 = vcmp.lt.s32.totalorder %v9135_v5, 0  ;;  %v2300_v16 = vor.u32 %v2299_v2, %v2298_v26  ;;  %v2303_v63 = vor.u32 %v2302_v57, %v2301_v37  ;;  %vm2306_vm11 = vcmp.lt.s32.totalorder %v2285_v3, 3 }
 0x160   : > { %v2034_v10 = vsel %vm9136_vm8, 0, %v9135_v5  ;;  %vm2307_vm12 = vcmp.lt.s32.totalorder %v2285_v3, 4  ;;  %v2308_v34 = vsel %vm2304_vm7, %v2288_v28, %v2291_v33  ;;  %v2312_v48 = vsel %vm2304_vm7, %v2291_v33, %v2294_v58 }
 0x161   : > { %v2035_v61 = vsub.s32 32, %v2034_v10  ;;  %v2036_v18 = vshll.u32 %v11968_v30, %v2034_v10  ;;  %v2039_v25 = vsub.s32 4294967266, %v2034_v10  ;;  %v2309_v6 = vsel %vm2307_vm12, %v2297_v36, 2102212464 }
 0x162   : > { %v2310_v11 = vsel %vm2306_vm11, %v2294_v58, %v2309_v6  ;;  %v2313_v47 = vsel %vm2307_vm12, %v2300_v16, 920167782  ;;  %v2316_v21 = vsel %vm2304_vm7, %v2294_v58, %v2297_v36  ;;  %v2317_v55 = vsel %vm2307_vm12, %v2303_v63, 1326507024 }
 0x163   : > { %v10102_v43 = vpop.eup %10101  ;;  %v2037_v44 = vshrl.u32 %v2019_v27, %v2035_v61  ;;  %v2040_v14 = vadd.s32 127, %v2039_v25  ;;  %v2314_v54 = vsel %vm2306_vm11, %v2297_v36, %v2313_v47  ;;  %v2311_v45 = vsel %vm2305_vm9, %v2308_v34, %v2310_v11 }
 0x164   : > { %v10104_v30 = vpop.eup %10103  ;;  %v2165_v53 = vxor.u32 2147483648, %v10102_v43  ;;  %v2315_v50 = vsel %vm2305_vm9, %v2312_v48, %v2314_v54  ;;  %v2318_v51 = vsel %vm2306_vm11, %v2300_v16, %v2317_v55  ;;  %vm2180_vm14 = vcmp.gt.s32.totalorder %v2179_v13, 0 }
 0x165   : > { %v2162_v39 = vxor.u32 2147483648, %v10104_v30  ;;  %v2038_v1 = vor.u32 %v2037_v44, %v2036_v18  ;;  %v2041_v59 = vshll.u32 %v2040_v14, 23  ;;  %v2319_v4 = vsel %vm2305_vm9, %v2316_v21, %v2318_v51 }
 0x166   : > { %v2166_v27 = vsel %vm2164_vm3, %v2165_v53, %v10104_v30  ;;  %v12029_v26 = vmul.u32.u64.low %v11981_v9, %v2315_v50  ;;  %v12030_v28 = vmul.u32.u64.high %v11981_v9, %v2315_v50, %v12029_v26  ;;  %v2181_v3 = vsel %vm2180_vm14, %v2179_v13, 0  ;;  %v497_v30 = vpop.permute.xlu1 %496 }
 0x167   : > { %v2163_v46 = vsel %vm2161_vm4, %v10102_v43, %v2162_v39  ;;  %v2042_v41 = vor.u32 4788187, %v2041_v59  ;;  %v2045_v8 = vcvt.s32.f32 %v2038_v1  ;;  %v2052_v58 = vsel %vm12008_vm10, 0, %v11988_v52 }
 0x168   : > { %v2167_v5 = vsel %vm2160_vm5, %v2163_v46, %v2166_v27  ;;  %v12038_v2 = vmul.u32.u64.low %v11981_v9, %v2319_v4  ;;  %v12039_v37 = vmul.u32.u64.high %v11981_v9, %v2319_v4, %v12038_v2  ;;  %v2183_v36 = vand.u32 31, %v2181_v3 }
 0x169   : > { %v2168_v57 = vsel %vm2158_vm6, nan, %v2167_v5  ;;  %v2043_v33 = vand.u32 2147483647, %v2042_v41  ;;  %v2327_v63 = vmul.u32 %v11981_v9, %v2311_v45  ;;  %v2330_v31 = vadd.s32 1, %v12030_v28  ;;  %v492_v41 = vpop.permute.xlu0 %491 }
 0x16a   : > { %v7740_v16 = vadd.f32 1.0, %v2168_v57  ;;  %v12050_v10 = vshll.u32 %v2177_v49, 8  ;;  %v2182_v61 = vshrl.u32 %v2181_v3, 5  ;;  %v2184_v18 = vsub.s32 32, %v2183_v36 }
 0x16b   : > { %v2046_v34 = vmul.f32 %v2045_v8, %v2043_v33  ;;  %v2186_v32 = vshll.u32 %v17469_v17, %v2183_v36  ;;  %vm2329_vm15 = vc.u32 %v12039_v37, %v12029_v26  ;;  %v2189_v52 = vshll.u32 %v17470_v22, %v2183_v36 }
 0x16c   : > { %v7804_v25 = vmul.f32 0.5, %v7740_v16  ;;  %v2192_v6 = vshll.u32 %v17446_v29, %v2183_v36  ;;  %v2331_v11 = vsel %vm2329_vm15, %v2330_v31, %v12030_v28  ;;  %v2185_v38 = vshrl.u32 %v17469_v17, %v2184_v18 }
 0x16d   : > { %v2047_v9 = vxor.u32 2147483648, %v2046_v34  ;;  %v2187_v49 = vshrl.u32 %v17470_v22, %v2184_v18  ;;  %v2332_v47 = vadd.s32 %v2331_v11, %v2327_v63  ;;  %v2190_v13 = vshrl.u32 %v17446_v29, %v2184_v18 }
 0x16e   : > { %v7932_v48 = vsel %vm7868_vm13, %v7804_v25, 0.0  ;;  %v2193_v43 = vshrl.u32 %v17447_v56, %v2184_v18  ;;  %v2195_v54 = vshll.u32 %v17447_v56, %v2183_v36  ;;  %v2196_v21 = vshrl.u32 %v17428_v7, %v2184_v18 }
 0x16f   : > { %8616 = vperm.xlu1 %9916, %v7932_v48   ;;  %v2048_v44 = vsel %vm1965_vm1, %v2047_v9, %v2046_v34  ;;  %v2188_v14 = vor.u32 %v2187_v49, %v2186_v32  ;;  %v2333_v53 = vadd.s32 536870912, %v2332_v47  ;;  %v2191_v45 = vor.u32 %v2190_v13, %v2189_v52 }
 0x170   : > { %v2051_v40 = vsel %vm12008_vm10, %v11715_v15, %v2048_v44  ;;  %v2194_v50 = vor.u32 %v2193_v43, %v2192_v6  ;;  %v2197_v55 = vor.u32 %v2196_v21, %v2195_v54  ;;  %v2198_v39 = vshll.u32 %v17428_v7, %v2183_v36  ;;  %v12101_v21 = vld [vmem:[%s10649_s28 + $0x68] sm:$0xff] }
 0x171   : > { %10105 = vcosq.f32 %v2051_v40  ;;  %v2199_v1 = vshrl.u32 %v17451_v42, %v2184_v18  ;;  %v2334_v59 = vshrl.u32 %v2333_v53, 30  ;;  %vm2201_vm1 = vcmp.lt.s32.totalorder %v2182_v61, 1 }
 0x172   : > { %10107 = vsinq.f32 %v2051_v40  ;;  %v768_v51 = vsub.f32 %v497_v30, %v11827_v62  ;;  %vm2202_vm2 = vcmp.lt.s32.totalorder %v2182_v61, 2  ;;  %vm2203_vm3 = vcmp.lt.s32.totalorder %v2182_v61, 3 }
 0x173   : > { %v2200_v27 = vor.u32 %v2199_v1, %v2198_v39  ;;  %vm2204_vm4 = vcmp.lt.s32.totalorder %v2182_v61, 4  ;;  %v2335_v23 = vshll.u32 %v2334_v59, 30  ;;  %v2205_v4 = vsel %vm2201_vm1, %v2185_v38, %v2188_v14 }
 0x174   : > { %v2206_v28 = vsel %vm2204_vm4, %v2194_v50, 2102212464  ;;  %v2209_v46 = vsel %vm2201_vm1, %v2188_v14, %v2191_v45  ;;  %v2210_v5 = vsel %vm2204_vm4, %v2197_v55, 920167782  ;;  %v2213_v2 = vsel %vm2201_vm1, %v2191_v45, %v2194_v50 }
 0x175   : > { %v2207_v8 = vsel %vm2203_vm3, %v2191_v45, %v2206_v28  ;;  %v2214_v3 = vsel %vm2204_vm4, %v2200_v27, 1326507024  ;;  %v2056_v57 = vand.u32 3, %v2052_v58  ;;  %v12074_v33 = vsub.s32 %v2332_v47, %v2335_v23 }
 0x176   : > { %v2211_v36 = vsel %vm2203_vm3, %v2194_v50, %v2210_v5  ;;  %v2215_v63 = vsel %vm2203_vm3, %v2197_v55, %v2214_v3  ;;  %v832_v31 = vmul.f32 %v768_v51, %v768_v51  ;;  %v767_v34 = vsub.f32 %v492_v41, %v11827_v62 }
 0x177   : > { %v2212_v16 = vsel %vm2202_vm2, %v2209_v46, %v2211_v36  ;;  %vm2055_vm5 = vweird.f32 %v11715_v15  ;;  %v2338_v18 = vsub.s32 0, %v12074_v33  ;;  %v2208_v32 = vsel %vm2202_vm2, %v2205_v4, %v2207_v8 }
 0x178   : > { %v2216_v25 = vsel %vm2202_vm2, %v2213_v2, %v2215_v63  ;;  %v12087_v6 = vmul.u32.u64.low %v12050_v10, %v2212_v16  ;;  %v12088_v9 = vmul.u32.u64.high %v12050_v10, %v2212_v16, %v12087_v6  ;;  %vm2057_vm6 = vcmp.lt.s32.totalorder %v2056_v57, 2 }
 0x179   : > { %v12083_v52 = vmul.u32.u64.low %v12050_v10, %v2216_v25  ;;  %v12084_v58 = vmul.u32.u64.high %v12050_v10, %v2216_v25, %v12083_v52  ;;  %vm2274_vm7 = vcmp.lt.s32.totalorder %v11933_v24, 0  ;;  %v9146_v62 = vmin.u32 %v2338_v18, %v12074_v33 }
 0x17a   : > { %v2358_v11 = vsub.s32 4, %v2334_v59  ;;  %vm2058_vm8 = vcmp.eq.s32.totalorder %v2056_v57, 0  ;;  %vm2061_vm9 = vcmp.eq.s32.totalorder %v2056_v57, 2  ;;  %vm7867_vm10 = vcmp.lt.f32.partialorder %v11712_v12, 5.0 }
 0x17b   : > { %v10106_v38 = vpop.eup %10105  ;;  %v896_v61 = vmul.f32 -259.48502, %v832_v31  ;;  %v831_v49 = vmul.f32 %v767_v34, %v767_v34  ;;  %v2328_v13 = vadd.s32 %v12029_v26, %v12039_v37  ;;  %v2340_v43 = vclz %v9146_v62 }
 0x17c   : > { %v10108_v48 = vpop.eup %10107  ;;  %v2062_v47 = vxor.u32 2147483648, %v10106_v38  ;;  %v2224_v44 = vmul.u32 %v12050_v10, %v2208_v32  ;;  %vm2226_vm11 = vc.u32 %v12084_v58, %v12087_v6  ;;  %v2227_v54 = vadd.s32 1, %v12088_v9 }
 0x17d   : > { %v2059_v14 = vxor.u32 2147483648, %v10108_v48  ;;  %v12104_v30 = vmul.f32 0.62831855, %v12101_v21  ;;  %v9147_v53 = vadd.s32 4294967294, %v2340_v43  ;;  %v2359_v26 = vsel %vm2274_vm7, %v2358_v11, %v2334_v59  ;;  %v12117_v59 = vld [vmem:[%s10649_s28 + $0x60] sm:$0xff] }
 0x17e   : > { %v2063_v40 = vsel %vm2061_vm9, %v2062_v47, %v10108_v48  ;;  %v895_v37 = vmul.f32 -259.48502, %v831_v49  ;;  %v2228_v45 = vsel %vm2226_vm11, %v2227_v54, %v12088_v9  ;;  %v973_v50 = vmul.f32 1.442695, %v896_v61 }
 0x17f   : > { %v2060_v10 = vsel %vm2058_vm8, %v10106_v38, %v2059_v14  ;;  %v2478_v55 = vand.u32 2147483647, %v12104_v30  ;;  %vm9148_vm12 = vcmp.lt.s32.totalorder %v9147_v53, 0  ;;  %v2229_v1 = vadd.s32 %v2228_v45, %v2224_v44 }
 0x180   : > { %v2064_v39 = vsel %vm2057_vm6, %v2060_v10, %v2063_v40  ;;  %v971_v51 = vmul.f32 1.442695, %v895_v37  ;;  %v2343_v23 = vsel %vm9148_vm12, 0, %v9147_v53  ;;  %v2481_v4 = vand.u32 2139095040, %v12104_v30 }
 0x181   : > { %v2065_v27 = vsel %vm2055_vm5, nan, %v2064_v39  ;;  %v12120_v28 = vmul.f32 0.62831855, %v12117_v59  ;;  %v2344_v41 = vsub.s32 32, %v2343_v23  ;;  %v2345_v8 = vshll.u32 %v12074_v33, %v2343_v23 }
 0x182   : > { %v7739_v46 = vadd.f32 1.0, %v2065_v27  ;;  %v2348_v5 = vsub.s32 4294967266, %v2343_v23  ;;  %v2230_v2 = vadd.s32 536870912, %v2229_v1  ;;  %10109 = vpow2.f32 %v971_v51 }
 0x183   : > { %v2482_v3 = vshrl.u32 %v2481_v4, 23  ;;  %v2485_v15 = vand.u32 8388607, %v2478_v55  ;;  %v2346_v36 = vshrl.u32 %v2328_v13, %v2344_v41  ;;  %10111 = vpow2.f32 %v973_v50 }
 0x184   : > { %v7803_v57 = vmul.f32 0.5, %v7739_v46  ;;  %v2349_v16 = vadd.s32 127, %v2348_v5  ;;  %v2231_v63 = vshrl.u32 %v2230_v2, 30  ;;  %vm12129_vm13 = vcmp.le.f32.partialorder %v2272_v35, 0.7853982 }
 0x185   : > { %v9153_v31 = vadd.s32 4294967169, %v2482_v3  ;;  %v2347_v18 = vor.u32 %v2346_v36, %v2345_v8  ;;  %v2361_v25 = vsel %vm12129_vm13, 0, %v2359_v26  ;;  %v2486_v9 = vor.u32 8388608, %v2485_v15 }
 0x186   : > { %v7931_v34 = vsel %vm7867_vm10, %v7803_v57, 0.0  ;;  %v2350_v32 = vshll.u32 %v2349_v16, 23  ;;  %v2232_v52 = vshll.u32 %v2231_v63, 30  ;;  %v2255_v61 = vsub.s32 4, %v2231_v63 }
 0x187   : > { %8611 = vperm.xlu0 %9915, %v7931_v34   ;;  %v2488_v62 = vadd.s32 1, %v9153_v31  ;;  %v2354_v38 = vcvt.s32.f32 %v2347_v18  ;;  %v2378_v12 = vand.u32 2139095040, %v12120_v28  ;;  %v2375_v35 = vand.u32 2147483647, %v12120_v28 }
 0x188   : > { %v2351_v11 = vor.u32 4788187, %v2350_v32  ;;  %v12136_v49 = vsub.s32 %v2229_v1, %v2232_v52  ;;  %v12139_v43 = vand.u32 3, %v2361_v25  ;;  %vm2171_vm15 = vcmp.lt.s32.totalorder %v11943_v60, 0 }
 0x189   : > { %vm2489_vm14 = vcmp.gt.s32.totalorder %v2488_v62, 0  ;;  %v2379_v13 = vshrl.u32 %v2378_v12, 23  ;;  %v2225_v40 = vadd.s32 %v12087_v6, %v12084_v58  ;;  %v12147_v53 = vsel %vm2171_vm15, %v2255_v61, %v2231_v63 }
 0x18a   : > { %v2352_v48 = vand.u32 2147483647, %v2351_v11  ;;  %v2490_v47 = vsel %vm2489_vm14, %v2488_v62, 0  ;;  %v2235_v44 = vsub.s32 0, %v12136_v49  ;;  %v12149_v26 = vshll.u32 %v2486_v9, 8 }
 0x18b   : > { %v2492_v14 = vand.u32 31, %v2490_v47  ;;  %v12152_v45 = vshrl.u32 %v2490_v47, 5  ;;  %v9149_v50 = vadd.s32 4294967169, %v2379_v13  ;;  %v12156_v39 = vand.u32 8388607, %v2375_v35 }
 0x18c   : > { %v2355_v54 = vmul.f32 %v2354_v38, %v2352_v48  ;;  %v10110_v37 = vpop.eup %10109  ;;  %v9142_v10 = vmin.u32 %v2235_v44, %v12136_v49  ;;  %vm12169_vm1 = vcmp.le.f32.partialorder %v2169_v0, 0.7853982  ;;  %vm2366_vm6 = vcmp.lt.s32.totalorder %v12139_v43, 2 }
 0x18d   : > { %v10112_v1 = vpop.eup %10111  ;;  %v2493_v27 = vsub.s32 32, %v2492_v14  ;;  %v2495_v58 = vshll.u32 %v17469_v17, %v2492_v14  ;;  %v2498_v6 = vshll.u32 %v17470_v22, %v2492_v14  ;;  %9521 = vmatprep.mubr.msk.f32.mxu0 %vm7991_vm0, %v10110_v37  ;;  %v2501_v4 = vshll.u32 %v17446_v29, %v2492_v14 }
 0x18e   : > { %v2356_v51 = vxor.u32 2147483648, %v2355_v54  ;;  %v2237_v23 = vclz %v9142_v10  ;;  %v2504_v46 = vshll.u32 %v17447_v56, %v2492_v14  ;;  %v2507_v41 = vshll.u32 %v17428_v7, %v2492_v14  ;;  %9522 = vmatmul.mubr.msk.f32.gmra.mrb[12].mxu0 %vm7991_vm0, %v10112_v1 }
 0x18f   : > { %v2494_v2 = vshrl.u32 %v17469_v17, %v2493_v27  ;;  %v2496_v3 = vshrl.u32 %v17470_v22, %v2493_v27  ;;  %v2499_v15 = vshrl.u32 %v17446_v29, %v2493_v27  ;;  %v2502_v16 = vshrl.u32 %v17447_v56, %v2493_v27 }
 0x190   : > { %v2357_v8 = vsel %vm2274_vm7, %v2356_v51, %v2355_v54  ;;  %v9143_v36 = vadd.s32 4294967294, %v2237_v23  ;;  %v2505_v63 = vshrl.u32 %v17428_v7, %v2493_v27  ;;  %v2508_v34 = vshrl.u32 %v17451_v42, %v2493_v27 }
 0x191   : > { %v2360_v57 = vsel %vm12129_vm13, %v11933_v24, %v2357_v8  ;;  %v2497_v0 = vor.u32 %v2496_v3, %v2495_v58  ;;  %v2500_v31 = vor.u32 %v2499_v15, %v2498_v6  ;;  %v2503_v18 = vor.u32 %v2502_v16, %v2501_v4 }
 0x192   : > { %10113 = vcosq.f32 %v2360_v57  ;;  %vm9144_vm2 = vcmp.lt.s32.totalorder %v9143_v36, 0  ;;  %v2506_v32 = vor.u32 %v2505_v63, %v2504_v46  ;;  %v2509_v52 = vor.u32 %v2508_v34, %v2507_v41 }
 0x193   : > { %10115 = vsinq.f32 %v2360_v57  ;;  %v2240_v25 = vsel %vm9144_vm2, 0, %v9143_v36  ;;  %vm2510_vm3 = vcmp.lt.s32.totalorder %v12152_v45, 1  ;;  %vm2511_vm4 = vcmp.lt.s32.totalorder %v12152_v45, 2 }
 0x194   : > { %v2241_v33 = vsub.s32 32, %v2240_v25  ;;  %v2242_v9 = vshll.u32 %v12136_v49, %v2240_v25  ;;  %v2245_v62 = vsub.s32 4294967266, %v2240_v25  ;;  %vm2512_vm5 = vcmp.lt.s32.totalorder %v12152_v45, 3 }
 0x195   : > { %vm2513_vm7 = vcmp.lt.s32.totalorder %v12152_v45, 4  ;;  %v2514_v11 = vsel %vm2510_vm3, %v2494_v2, %v2497_v0  ;;  %v2518_v38 = vsel %vm2510_vm3, %v2497_v0, %v2500_v31  ;;  %v2522_v61 = vsel %vm2510_vm3, %v2500_v31, %v2503_v18 }
 0x196   : > { %vm2364_vm8 = vweird.f32 %v11933_v24  ;;  %v2243_v12 = vshrl.u32 %v2225_v40, %v2241_v33  ;;  %v2246_v48 = vadd.s32 127, %v2245_v62  ;;  %v2515_v47 = vsel %vm2513_vm7, %v2503_v18, 2102212464 }
 0x197   : > { %v2519_v13 = vsel %vm2513_vm7, %v2506_v32, 920167782  ;;  %v2516_v44 = vsel %vm2512_vm5, %v2500_v31, %v2515_v47  ;;  %v2523_v14 = vsel %vm2513_vm7, %v2509_v52, 1326507024  ;;  %v2385_v54 = vadd.s32 1, %v9149_v50 }
 0x198   : > { %v2520_v49 = vsel %vm2512_vm5, %v2503_v18, %v2519_v13  ;;  %v2244_v37 = vor.u32 %v2243_v12, %v2242_v9  ;;  %v2247_v10 = vshll.u32 %v2246_v48, 23  ;;  %v2258_v1 = vsel %vm12169_vm1, 0, %v12147_v53 }
 0x199   : > { %v2521_v40 = vsel %vm2511_vm4, %v2518_v38, %v2520_v49  ;;  %v2517_v51 = vsel %vm2511_vm4, %v2514_v11, %v2516_v44  ;;  %v2524_v27 = vsel %vm2512_vm5, %v2506_v32, %v2523_v14  ;;  %vm2386_vm9 = vcmp.gt.s32.totalorder %v2385_v54, 0 }
 0x19a   : > { %v12203_v58 = vmul.u32.u64.low %v12149_v26, %v2521_v40  ;;  %v12204_v6 = vmul.u32.u64.high %v12149_v26, %v2521_v40, %v12203_v58  ;;  %v2248_v50 = vor.u32 4788187, %v2247_v10  ;;  %v2251_v23 = vcvt.s32.f32 %v2244_v37 }
 0x19b   : > { %v2525_v4 = vsel %vm2511_vm4, %v2522_v61, %v2524_v27  ;;  %vm2370_vm10 = vcmp.eq.s32.totalorder %v12139_v43, 2  ;;  %vm7870_vm11 = vcmp.lt.f32.partialorder %v11930_v20, 5.0  ;;  %v2387_v8 = vsel %vm2386_vm9, %v2385_v54, 0 }
 0x19c   : > { %v10114_v53 = vpop.eup %10113  ;;  %v12212_v46 = vmul.u32.u64.low %v12149_v26, %v2525_v4  ;;  %v12213_v41 = vmul.u32.u64.high %v12149_v26, %v2525_v4, %v12212_v46  ;;  %vm2367_vm12 = vcmp.eq.s32.totalorder %v12139_v43, 0  ;;  %v2249_v15 = vand.u32 2147483647, %v2248_v50  ;;  %v507_v4 = vpop.permute.xlu1 %506 }
 0x19d   : > { %v10116_v2 = vpop.eup %10115  ;;  %v2371_v3 = vxor.u32 2147483648, %v10114_v53  ;;  %v2389_v57 = vand.u32 31, %v2387_v8  ;;  %v12216_v45 = vand.u32 3, %v2258_v1  ;;  %v2533_v16 = vmul.u32 %v12149_v26, %v2517_v51 }
 0x19e   : > { %v2368_v36 = vxor.u32 2147483648, %v10116_v2  ;;  %v2536_v63 = vadd.s32 1, %v12204_v6  ;;  %v2252_v31 = vmul.f32 %v2251_v23, %v2249_v15  ;;  %v2383_v34 = vor.u32 8388608, %v12156_v39 }
 0x19f   : > { %v2372_v0 = vsel %vm2370_vm10, %v2371_v3, %v10116_v2  ;;  %v2390_v18 = vsub.s32 32, %v2389_v57  ;;  %vm2535_vm13 = vc.u32 %v12213_v41, %v12203_v58  ;;  %v12223_v25 = vshrl.u32 %v2387_v8, 5 }
 0x1a0   : > { %v2369_v32 = vsel %vm2367_vm12, %v10114_v53, %v2368_v36  ;;  %v2392_v52 = vshll.u32 %v17469_v17, %v2389_v57  ;;  %v2253_v9 = vxor.u32 2147483648, %v2252_v31  ;;  %v2537_v26 = vsel %vm2535_vm13, %v2536_v63, %v12204_v6  ;;  %v502_v53 = vpop.permute.xlu0 %501 }
 0x1a1   : > { %v2373_v33 = vsel %vm2366_vm6, %v2369_v32, %v2372_v0  ;;  %v2395_v62 = vshll.u32 %v17470_v22, %v2389_v57  ;;  %v2538_v11 = vadd.s32 %v2537_v26, %v2533_v16  ;;  %v2393_v38 = vshrl.u32 %v17470_v22, %v2390_v18 }
 0x1a2   : > { %v2374_v39 = vsel %vm2364_vm8, nan, %v2373_v33  ;;  %v2396_v61 = vshrl.u32 %v17446_v29, %v2390_v18  ;;  %v2254_v48 = vsel %vm2171_vm15, %v2253_v9, %v2252_v31  ;;  %v2398_v43 = vshll.u32 %v17446_v29, %v2389_v57 }
 0x1a3   : > { %v7742_v12 = vadd.f32 1.0, %v2374_v39  ;;  %v2399_v47 = vshrl.u32 %v17447_v56, %v2390_v18  ;;  %v2257_v13 = vsel %vm12169_vm1, %v11943_v60, %v2254_v48  ;;  %v2539_v44 = vadd.s32 536870912, %v2538_v11 }
 0x1a4   : > { %v2394_v24 = vor.u32 %v2393_v38, %v2392_v52  ;;  %v12241_v49 = vshll.u32 %v2383_v34, 8  ;;  %10117 = vcosq.f32 %v2257_v13  ;;  %v2397_v54 = vor.u32 %v2396_v61, %v2395_v62  ;;  %v12301_v61 = vld [vmem:[%s10649_s28 + $0x78] sm:$0xff] }
 0x1a5   : > { %v7806_v14 = vmul.f32 0.5, %v7742_v12  ;;  %v2401_v37 = vshll.u32 %v17447_v56, %v2389_v57  ;;  %10119 = vsinq.f32 %v2257_v13  ;;  %v12244_v10 = vshrl.u32 %v2539_v44, 30 }
 0x1a6   : > { %v2402_v1 = vshrl.u32 %v17428_v7, %v2390_v18  ;;  %v2404_v40 = vshll.u32 %v17428_v7, %v2389_v57  ;;  %v2400_v51 = vor.u32 %v2399_v47, %v2398_v43  ;;  %v2405_v27 = vshrl.u32 %v17451_v42, %v2390_v18  ;;  %v12272_v57 = vld [vmem:[%s17404_s1] ss:$0 sm:$0xff] }
 0x1a7   : > { %v7934_v5 = vsel %vm7870_vm11, %v7806_v14, 0.0  ;;  %vm2407_vm14 = vcmp.lt.s32.totalorder %v12223_v25, 1  ;;  %v2541_v6 = vshll.u32 %v12244_v10, 30  ;;  %v2391_v50 = vshrl.u32 %v17469_v17, %v2390_v18 }
 0x1a8   : > { %8626 = vperm.xlu1 %9916, %v7934_v5   ;;  %v2403_v23 = vor.u32 %v2402_v1, %v2401_v37  ;;  %vm2409_vm15 = vcmp.lt.s32.totalorder %v12223_v25, 3  ;;  %v2406_v46 = vor.u32 %v2405_v27, %v2404_v40  ;;  %vm2408_vm1 = vcmp.lt.s32.totalorder %v12223_v25, 2 }
 0x1a9   : > { %vm2410_vm2 = vcmp.lt.s32.totalorder %v12223_v25, 4  ;;  %v2415_v20 = vsel %vm2407_vm14, %v2394_v24, %v2397_v54  ;;  %vm2261_vm3 = vweird.f32 %v11943_v60  ;;  %v12260_v8 = vsub.s32 %v2538_v11, %v2541_v6 }
 0x1aa   : > { %v2412_v2 = vsel %vm2410_vm2, %v2400_v51, 2102212464  ;;  %v2416_v3 = vsel %vm2410_vm2, %v2403_v23, 920167782  ;;  %vm2263_vm4 = vcmp.lt.s32.totalorder %v12216_v45, 2  ;;  %v770_v36 = vsub.f32 %v507_v4, %v12272_v57 }
 0x1ab   : > { %v2417_v15 = vsel %vm2409_vm15, %v2400_v51, %v2416_v3  ;;  %v769_v16 = vsub.f32 %v502_v53, %v12272_v57  ;;  %v2544_v63 = vsub.s32 0, %v12260_v8  ;;  %v2411_v0 = vsel %vm2407_vm14, %v2391_v50, %v2394_v24 }
 0x1ac   : > { %v2413_v31 = vsel %vm2409_vm15, %v2397_v54, %v2412_v2  ;;  %v2418_v34 = vsel %vm2408_vm1, %v2415_v20, %v2417_v15  ;;  %v2419_v18 = vsel %vm2407_vm14, %v2397_v54, %v2400_v51  ;;  %v2420_v32 = vsel %vm2410_vm2, %v2406_v46, 1326507024 }
 0x1ad   : > { %v12288_v52 = vmul.u32.u64.low %v12241_v49, %v2418_v34  ;;  %v12289_v33 = vmul.u32.u64.high %v12241_v49, %v2418_v34, %v12288_v52  ;;  %vm2264_vm5 = vcmp.eq.s32.totalorder %v12216_v45, 0  ;;  %vm2267_vm6 = vcmp.eq.s32.totalorder %v12216_v45, 2 }
 0x1ae   : > { %v2534_v9 = vadd.s32 %v12203_v58, %v12213_v41  ;;  %v9154_v26 = vmin.u32 %v2544_v63, %v12260_v8  ;;  %v10118_v62 = vpop.eup %10117  ;;  %vm7869_vm7 = vcmp.lt.f32.partialorder %v11940_v19, 5.0  ;;  %v2421_v39 = vsel %vm2409_vm15, %v2403_v23, %v2420_v32 }
 0x1af   : > { %v834_v11 = vmul.f32 %v770_v36, %v770_v36  ;;  %v833_v38 = vmul.f32 %v769_v16, %v769_v16  ;;  %v12304_v12 = vmul.f32 0.62831855, %v12301_v61  ;;  %v10120_v48 = vpop.eup %10119  ;;  %v2268_v43 = vxor.u32 2147483648, %v10118_v62 }
 0x1b0   : > { %v2546_v47 = vclz %v9154_v26  ;;  %v2414_v58 = vsel %vm2408_vm1, %v2411_v0, %v2413_v31  ;;  %v2422_v41 = vsel %vm2408_vm1, %v2419_v18, %v2421_v39  ;;  %v2265_v13 = vxor.u32 2147483648, %v10120_v48 }
 0x1b1   : > { %v2564_v44 = vsub.s32 4, %v12244_v10  ;;  %v12312_v24 = vmul.u32.u64.low %v12241_v49, %v2422_v41  ;;  %v12313_v14 = vmul.u32.u64.high %v12241_v49, %v2422_v41, %v12312_v24  ;;  %v2269_v54 = vsel %vm2267_vm6, %v2268_v43, %v10120_v48 }
 0x1b2   : > { %v9155_v37 = vadd.s32 4294967294, %v2546_v47  ;;  %v898_v1 = vmul.f32 -259.48502, %v834_v11  ;;  %v897_v40 = vmul.f32 -259.48502, %v833_v38  ;;  %v2266_v5 = vsel %vm2264_vm5, %v10118_v62, %v2265_v13  ;;  %v12355_v13 = vld [vmem:[%s10649_s28 + $0x70] sm:$0xff] }
 0x1b3   : > { %v2430_v51 = vmul.u32 %v12241_v49, %v2414_v58  ;;  %v2433_v25 = vadd.s32 1, %v12289_v33  ;;  %v2687_v27 = vand.u32 2139095040, %v12304_v12  ;;  %v2270_v6 = vsel %vm2263_vm4, %v2266_v5, %v2269_v54 }
 0x1b4   : > { %vm9156_vm8 = vcmp.lt.s32.totalorder %v9155_v37, 0  ;;  %v977_v50 = vmul.f32 1.442695, %v898_v1  ;;  %v2684_v23 = vand.u32 2147483647, %v12304_v12  ;;  %v2271_v4 = vsel %vm2261_vm3, nan, %v2270_v6 }
 0x1b5   : > { %v2549_v53 = vsel %vm9156_vm8, 0, %v9155_v37  ;;  %vm2432_vm9 = vc.u32 %v12313_v14, %v12288_v52  ;;  %v975_v46 = vmul.f32 1.442695, %v897_v40  ;;  %v7741_v49 = vadd.f32 1.0, %v2271_v4 }
 0x1b6   : > { %v2550_v20 = vsub.s32 32, %v2549_v53  ;;  %v2551_v2 = vshll.u32 %v12260_v8, %v2549_v53  ;;  %v2554_v3 = vsub.s32 4294967266, %v2549_v53  ;;  %vm2480_vm10 = vcmp.lt.s32.totalorder %v12104_v30, 0 }
 0x1b7   : > { %v2434_v45 = vsel %vm2432_vm9, %v2433_v25, %v12289_v33  ;;  %10121 = vpow2.f32 %v977_v50  ;;  %v2688_v15 = vshrl.u32 %v2687_v27, 23  ;;  %v7805_v36 = vmul.f32 0.5, %v7741_v49 }
 0x1b8   : > { %v2552_v16 = vshrl.u32 %v2534_v9, %v2550_v20  ;;  %v2555_v60 = vadd.s32 127, %v2554_v3  ;;  %v2435_v63 = vadd.s32 %v2434_v45, %v2430_v51  ;;  %v2565_v0 = vsel %vm2480_vm10, %v2564_v44, %v12244_v10 }
 0x1b9   : > { %10123 = vpow2.f32 %v975_v46  ;;  %v9161_v31 = vadd.s32 4294967169, %v2688_v15  ;;  %v2691_v8 = vand.u32 8388607, %v2684_v23  ;;  %v7933_v34 = vsel %vm7869_vm7, %v7805_v36, 0.0 }
 0x1ba   : > { %v2553_v18 = vor.u32 %v2552_v16, %v2551_v2  ;;  %v2556_v32 = vshll.u32 %v2555_v60, 23  ;;  %v2436_v33 = vadd.s32 536870912, %v2435_v63  ;;  %8621 = vperm.xlu0 %9915, %v7933_v34   ;;  %vm12341_vm11 = vcmp.le.f32.partialorder %v2478_v55, 0.7853982 }
 0x1bb   : > { %v2694_v9 = vadd.s32 1, %v9161_v31  ;;  %v2567_v19 = vsel %vm12341_vm11, 0, %v2565_v0  ;;  %v2692_v48 = vor.u32 8388608, %v2691_v8  ;;  %v12358_v44 = vmul.f32 0.62831855, %v12355_v13 }
 0x1bc   : > { %v2557_v10 = vor.u32 4788187, %v2556_v32  ;;  %v2560_v62 = vcvt.s32.f32 %v2553_v18  ;;  %v12345_v39 = vshrl.u32 %v2436_v33, 30  ;;  %v12350_v41 = vand.u32 3, %v2567_v19 }
 0x1bd   : > { %vm2695_vm12 = vcmp.gt.s32.totalorder %v2694_v9, 0  ;;  %v2431_v54 = vadd.s32 %v12288_v52, %v12313_v14  ;;  %v12366_v27 = vshll.u32 %v2692_v48, 8  ;;  %v2581_v52 = vand.u32 2147483647, %v12358_v44 }
 0x1be   : > { %v2558_v11 = vand.u32 2147483647, %v2557_v10  ;;  %v2438_v38 = vshll.u32 %v12345_v39, 30  ;;  %v2696_v43 = vsel %vm2695_vm12, %v2694_v9, 0  ;;  %v2584_v20 = vand.u32 2139095040, %v12358_v44 }
 0x1bf   : > { %v2698_v47 = vand.u32 31, %v2696_v43  ;;  %v2697_v49 = vshrl.u32 %v2696_v43, 5  ;;  %vm2377_vm13 = vcmp.lt.s32.totalorder %v12120_v28, 0  ;;  %vm2573_vm2 = vcmp.eq.s32.totalorder %v12350_v41, 0 }
 0x1c0   : > { %v2561_v58 = vmul.f32 %v2560_v62, %v2558_v11  ;;  %v12352_v55 = vsub.s32 %v2435_v63, %v2438_v38  ;;  %vm2572_vm4 = vcmp.lt.s32.totalorder %v12350_v41, 2  ;;  %vm2570_vm6 = vweird.f32 %v12104_v30 }
 0x1c1   : > { %v10122_v24 = vpop.eup %10121  ;;  %v2699_v37 = vsub.s32 32, %v2698_v47  ;;  %v2701_v1 = vshll.u32 %v17469_v17, %v2698_v47  ;;  %v2704_v40 = vshll.u32 %v17470_v22, %v2698_v47  ;;  %v2707_v25 = vshll.u32 %v17446_v29, %v2698_v47 }
 0x1c2   : > { %v2562_v5 = vxor.u32 2147483648, %v2561_v58  ;;  %v2441_v51 = vsub.s32 0, %v12352_v55  ;;  %v2710_v60 = vshll.u32 %v17447_v56, %v2698_v47  ;;  %v2713_v0 = vshll.u32 %v17428_v7, %v2698_v47 }
 0x1c3   : > { %v10124_v6 = vpop.eup %10123  ;;  %v2702_v50 = vshrl.u32 %v17470_v22, %v2699_v37  ;;  %v2705_v4 = vshrl.u32 %v17446_v29, %v2699_v37  ;;  %v2708_v53 = vshrl.u32 %v17447_v56, %v2699_v37  ;;  %v2700_v3 = vshrl.u32 %v17469_v17, %v2699_v37 }
 0x1c4   : > { %v2563_v14 = vsel %vm2480_vm10, %v2562_v5, %v2561_v58  ;;  %v9150_v46 = vmin.u32 %v2441_v51, %v12352_v55  ;;  %9524 = vmatprep.mubr.msk.f32.mxu0 %vm7991_vm0, %v10124_v6  ;;  %v2711_v63 = vshrl.u32 %v17428_v7, %v2699_v37  ;;  %v2714_v31 = vshrl.u32 %v17451_v42, %v2699_v37  ;;  %v517_v6 = vpop.permute.xlu1 %516 }
 0x1c5   : > { %v2566_v2 = vsel %vm12341_vm11, %v12104_v30, %v2563_v14  ;;  %v2703_v45 = vor.u32 %v2702_v50, %v2701_v1  ;;  %v2706_v15 = vor.u32 %v2705_v4, %v2704_v40  ;;  %9525 = vmatmul.mubr.msk.f32.gmra.mrb[14].mxu0 %vm7991_vm0, %v10122_v24  ;;  %v2709_v16 = vor.u32 %v2708_v53, %v2707_v25 }
 0x1c6   : > { %10125 = vcosq.f32 %v2566_v2  ;;  %v2443_v36 = vclz %v9150_v46  ;;  %vm2716_vm14 = vcmp.lt.s32.totalorder %v2697_v49, 1  ;;  %vm2717_vm15 = vcmp.lt.s32.totalorder %v2697_v49, 2 }
 0x1c7   : > { %10127 = vsinq.f32 %v2566_v2  ;;  %vm2718_vm1 = vcmp.lt.s32.totalorder %v2697_v49, 3  ;;  %v2712_v34 = vor.u32 %v2711_v63, %v2710_v60  ;;  %v2715_v18 = vor.u32 %v2714_v31, %v2713_v0 }
 0x1c8   : > { %v9151_v8 = vadd.s32 4294967294, %v2443_v36  ;;  %vm2719_vm3 = vcmp.lt.s32.totalorder %v2697_v49, 4  ;;  %v2720_v32 = vsel %vm2716_vm14, %v2700_v3, %v2703_v45  ;;  %v2724_v9 = vsel %vm2716_vm14, %v2703_v45, %v2706_v15 }
 0x1c9   : > { %v2721_v33 = vsel %vm2719_vm3, %v2709_v16, 2102212464  ;;  %v2728_v26 = vsel %vm2716_vm14, %v2706_v15, %v2709_v16  ;;  %vm12392_vm7 = vcmp.le.f32.partialorder %v2375_v35, 0.7853982  ;;  %v2725_v11 = vsel %vm2719_vm3, %v2712_v34, 920167782 }
 0x1ca   : > { %vm9152_vm5 = vcmp.lt.s32.totalorder %v9151_v8, 0  ;;  %v2722_v19 = vsel %vm2718_vm1, %v2706_v15, %v2721_v33  ;;  %v2729_v38 = vsel %vm2719_vm3, %v2715_v18, 1326507024  ;;  %v2461_v58 = vsub.s32 4, %v12345_v39 }
 0x1cb   : > { %v2446_v62 = vsel %vm9152_vm5, 0, %v9151_v8  ;;  %v2723_v24 = vsel %vm2717_vm15, %v2720_v32, %v2722_v19  ;;  %v2726_v37 = vsel %vm2718_vm1, %v2709_v16, %v2725_v11  ;;  %v2730_v35 = vsel %vm2718_vm1, %v2712_v34, %v2729_v38 }
 0x1cc   : > { %v2447_v48 = vsub.s32 32, %v2446_v62  ;;  %v2448_v43 = vshll.u32 %v12352_v55, %v2446_v62  ;;  %v2451_v47 = vsub.s32 4294967266, %v2446_v62  ;;  %v2585_v1 = vshrl.u32 %v2584_v20, 23 }
 0x1cd   : > { %v2727_v51 = vsel %vm2717_vm15, %v2724_v9, %v2726_v37  ;;  %v2731_v25 = vsel %vm2717_vm15, %v2728_v26, %v2730_v35  ;;  %vm2576_vm8 = vcmp.eq.s32.totalorder %v12350_v41, 2  ;;  %v2462_v49 = vsel %vm2377_vm13, %v2461_v58, %v12345_v39 }
 0x1ce   : > { %v2449_v40 = vshrl.u32 %v2431_v54, %v2447_v48  ;;  %v2452_v5 = vadd.s32 127, %v2451_v47  ;;  %v12405_v50 = vmul.u32.u64.low %v12366_v27, %v2731_v25  ;;  %v12406_v55 = vmul.u32.u64.high %v12366_v27, %v2731_v25, %v12405_v50 }
 0x1cf   : > { %v12409_v4 = vmul.u32.u64.low %v12366_v27, %v2727_v51  ;;  %v12410_v53 = vmul.u32.u64.high %v12366_v27, %v2727_v51, %v12409_v4  ;;  %v9157_v20 = vadd.s32 4294967169, %v2585_v1  ;;  %v2739_v45 = vmul.u32 %v12366_v27, %v2723_v24  ;;  %v512_v1 = vpop.permute.xlu0 %511 }
 0x1d0   : > { %v10126_v14 = vpop.eup %10125  ;;  %v2450_v46 = vor.u32 %v2449_v40, %v2448_v43  ;;  %v2453_v54 = vshll.u32 %v2452_v5, 23  ;;  %v772_v15 = vsub.f32 %v517_v6, %v12272_v57  ;;  %v2588_v8 = vand.u32 8388607, %v2581_v52 }
 0x1d1   : > { %v10128_v2 = vpop.eup %10127  ;;  %v2577_v3 = vxor.u32 2147483648, %v10126_v14  ;;  %v2591_v63 = vadd.s32 1, %v9157_v20  ;;  %vm2741_vm9 = vc.u32 %v12406_v55, %v12409_v4  ;;  %v2742_v31 = vadd.s32 1, %v12410_v53 }
 0x1d2   : > { %v2574_v36 = vxor.u32 2147483648, %v10128_v2  ;;  %v2454_v16 = vor.u32 4788187, %v2453_v54  ;;  %v2457_v60 = vcvt.s32.f32 %v2450_v46  ;;  %v2464_v27 = vsel %vm12392_vm7, 0, %v2462_v49 }
 0x1d3   : > { %v2578_v0 = vsel %vm2576_vm8, %v2577_v3, %v10128_v2  ;;  %vm2592_vm10 = vcmp.gt.s32.totalorder %v2591_v63, 0  ;;  %v2743_v32 = vsel %vm2741_vm9, %v2742_v31, %v12410_v53  ;;  %vm7872_vm11 = vcmp.lt.f32.partialorder %v12101_v21, 5.0 }
 0x1d4   : > { %v2575_v39 = vsel %vm2573_vm2, %v10126_v14, %v2574_v36  ;;  %v2455_v34 = vand.u32 2147483647, %v2454_v16  ;;  %v2593_v33 = vsel %vm2592_vm10, %v2591_v63, 0  ;;  %v2744_v62 = vadd.s32 %v2743_v32, %v2739_v45 }
 0x1d5   : > { %v2579_v18 = vsel %vm2572_vm4, %v2575_v39, %v2578_v0  ;;  %v12434_v11 = vand.u32 3, %v2464_v27  ;;  %v2595_v38 = vand.u32 31, %v2593_v33  ;;  %v2589_v47 = vor.u32 8388608, %v2588_v8 }
 0x1d6   : > { %v2580_v9 = vsel %vm2570_vm6, nan, %v2579_v18  ;;  %v2458_v26 = vmul.f32 %v2457_v60, %v2455_v34  ;;  %v2745_v43 = vadd.s32 536870912, %v2744_v62  ;;  %v836_v58 = vmul.f32 %v772_v15, %v772_v15 }
 0x1d7   : > { %v7744_v19 = vadd.f32 1.0, %v2580_v9  ;;  %v2594_v24 = vshrl.u32 %v2593_v33, 5  ;;  %v2596_v37 = vsub.s32 32, %v2595_v38  ;;  %v2598_v35 = vshll.u32 %v17469_v17, %v2595_v38 }
 0x1d8   : > { %v2459_v48 = vxor.u32 2147483648, %v2458_v26  ;;  %v12439_v40 = vshrl.u32 %v2745_v43, 30  ;;  %v2601_v5 = vshll.u32 %v17470_v22, %v2595_v38  ;;  %v2604_v51 = vshll.u32 %v17446_v29, %v2595_v38 }
 0x1d9   : > { %v7808_v41 = vmul.f32 0.5, %v7744_v19  ;;  %v2599_v50 = vshrl.u32 %v17470_v22, %v2596_v37  ;;  %v2607_v53 = vshll.u32 %v17447_v56, %v2595_v38  ;;  %v2602_v46 = vshrl.u32 %v17446_v29, %v2596_v37 }
 0x1da   : > { %v2460_v30 = vsel %vm2377_vm13, %v2459_v48, %v2458_v26  ;;  %v2747_v14 = vshll.u32 %v12439_v40, 30  ;;  %v771_v54 = vsub.f32 %v512_v1, %v12272_v57  ;;  %v2597_v21 = vshrl.u32 %v17469_v17, %v2596_v37 }
 0x1db   : > { %v7936_v25 = vsel %vm7872_vm11, %v7808_v41, 0.0  ;;  %v2463_v6 = vsel %vm12392_vm7, %v12120_v28, %v2460_v30  ;;  %v2605_v20 = vshrl.u32 %v17447_v56, %v2596_v37  ;;  %v2608_v10 = vshrl.u32 %v17428_v7, %v2596_v37 }
 0x1dc   : > { %8636 = vperm.xlu1 %9916, %v7936_v25   ;;  %10129 = vcosq.f32 %v2463_v6  ;;  %v12456_v2 = vsub.s32 %v2744_v62, %v2747_v14  ;;  %v2600_v3 = vor.u32 %v2599_v50, %v2598_v35  ;;  %v2603_v49 = vor.u32 %v2602_v46, %v2601_v5 }
 0x1dd   : > { %10131 = vsinq.f32 %v2463_v6  ;;  %v2610_v45 = vshll.u32 %v17428_v7, %v2595_v38  ;;  %vm2470_vm12 = vcmp.eq.s32.totalorder %v12434_v11, 0  ;;  %v2606_v15 = vor.u32 %v2605_v20, %v2604_v51 }
 0x1de   : > { %v2609_v36 = vor.u32 %v2608_v10, %v2607_v53  ;;  %v2611_v16 = vshrl.u32 %v17451_v42, %v2596_v37  ;;  %vm2613_vm13 = vcmp.lt.s32.totalorder %v2594_v24, 1  ;;  %vm2469_vm14 = vcmp.lt.s32.totalorder %v12434_v11, 2 }
 0x1df   : > { %v2750_v60 = vsub.s32 0, %v12456_v2  ;;  %vm2616_vm15 = vcmp.lt.s32.totalorder %v2594_v24, 4  ;;  %v12463_v63 = vshll.u32 %v2589_v47, 8  ;;  %v900_v0 = vmul.f32 -259.48502, %v836_v58 }
 0x1e0   : > { %vm2467_vm1 = vweird.f32 %v12120_v28  ;;  %v2612_v31 = vor.u32 %v2611_v16, %v2610_v45  ;;  %vm2615_vm2 = vcmp.lt.s32.totalorder %v2594_v24, 3  ;;  %v2618_v8 = vsel %vm2616_vm15, %v2606_v15, 2102212464 }
 0x1e1   : > { %v835_v39 = vmul.f32 %v771_v54, %v771_v54  ;;  %v9162_v34 = vmin.u32 %v2750_v60, %v12456_v2  ;;  %vm2614_vm3 = vcmp.lt.s32.totalorder %v2594_v24, 2  ;;  %v2617_v27 = vsel %vm2613_vm13, %v2597_v21, %v2600_v3  ;;  %v12488_v54 = vld [vmem:[%s10649_s28 + $0x88] sm:$0xff] }
 0x1e2   : > { %v2621_v18 = vsel %vm2613_vm13, %v2600_v3, %v2603_v49  ;;  %v2619_v32 = vsel %vm2615_vm2, %v2603_v49, %v2618_v8  ;;  %v2622_v33 = vsel %vm2616_vm15, %v2609_v36, 920167782  ;;  %v2625_v9 = vsel %vm2613_vm13, %v2603_v49, %v2606_v15 }
 0x1e3   : > { %v2626_v26 = vsel %vm2616_vm15, %v2612_v31, 1326507024  ;;  %vm2473_vm4 = vcmp.eq.s32.totalorder %v12434_v11, 2  ;;  %v2752_v62 = vclz %v9162_v34  ;;  %v2623_v19 = vsel %vm2615_vm2, %v2606_v15, %v2622_v33 }
 0x1e4   : > { %v2627_v38 = vsel %vm2615_vm2, %v2609_v36, %v2626_v26  ;;  %v2740_v48 = vadd.s32 %v12409_v4, %v12406_v55  ;;  %v2620_v43 = vsel %vm2614_vm3, %v2617_v27, %v2619_v32  ;;  %v2624_v47 = vsel %vm2614_vm3, %v2621_v18, %v2623_v19  ;;  %v12511_v18 = vld [vmem:[%s10649_s28 + $0x80] sm:$0xff] }
 0x1e5   : > { %v2628_v58 = vsel %vm2614_vm3, %v2625_v9, %v2627_v38  ;;  %vm7871_vm5 = vcmp.lt.f32.partialorder %v12117_v59, 5.0  ;;  %v9163_v37 = vadd.s32 4294967294, %v2752_v62  ;;  %v899_v1 = vmul.f32 -259.48502, %v835_v39 }
 0x1e6   : > { %v10130_v41 = vpop.eup %10129  ;;  %v12475_v24 = vmul.u32.u64.low %v12463_v63, %v2628_v58  ;;  %v12476_v35 = vmul.u32.u64.high %v12463_v63, %v2628_v58, %v12475_v24  ;;  %v12479_v51 = vmul.u32.u64.low %v12463_v63, %v2624_v47  ;;  %v12480_v25 = vmul.u32.u64.high %v12463_v63, %v2624_v47, %v12479_v51 }
 0x1e7   : > { %v10132_v30 = vpop.eup %10131  ;;  %v2474_v5 = vxor.u32 2147483648, %v10130_v41  ;;  %v981_v55 = vmul.f32 1.442695, %v900_v0  ;;  %vm9164_vm6 = vcmp.lt.s32.totalorder %v9163_v37, 0  ;;  %v2770_v6 = vsub.s32 4, %v12439_v40 }
 0x1e8   : > { %v2471_v4 = vxor.u32 2147483648, %v10132_v30  ;;  %v979_v50 = vmul.f32 1.442695, %v899_v1  ;;  %v2755_v14 = vsel %vm9164_vm6, 0, %v9163_v37  ;;  %v2636_v46 = vmul.u32 %v12463_v63, %v2620_v43 }
 0x1e9   : > { %v2475_v53 = vsel %vm2473_vm4, %v2474_v5, %v10132_v30  ;;  %v12491_v21 = vmul.f32 0.62831855, %v12488_v54  ;;  %v2756_v10 = vsub.s32 32, %v2755_v14  ;;  %v2757_v3 = vshll.u32 %v12456_v2, %v2755_v14 }
 0x1ea   : > { %v2472_v20 = vsel %vm2470_vm12, %v10130_v41, %v2471_v4  ;;  %v2760_v49 = vsub.s32 4294967266, %v2755_v14  ;;  %vm2638_vm7 = vc.u32 %v12476_v35, %v12479_v51  ;;  %v2639_v15 = vadd.s32 1, %v12480_v25 }
 0x1eb   : > { %v2476_v45 = vsel %vm2469_vm14, %v2472_v20, %v2475_v53  ;;  %v2890_v36 = vand.u32 2147483647, %v12491_v21  ;;  %v2758_v60 = vshrl.u32 %v2740_v48, %v2756_v10  ;;  %10133 = vpow2.f32 %v979_v50 }
 0x1ec   : > { %v2477_v16 = vsel %vm2467_vm1, nan, %v2476_v45  ;;  %v2761_v63 = vadd.s32 127, %v2760_v49  ;;  %v2640_v2 = vsel %vm2638_vm7, %v2639_v15, %v12480_v25  ;;  %10135 = vpow2.f32 %v981_v55 }
 0x1ed   : > { %v7743_v0 = vadd.f32 1.0, %v2477_v16  ;;  %v2893_v11 = vand.u32 2139095040, %v12491_v21  ;;  %vm2686_vm8 = vcmp.lt.s32.totalorder %v12304_v12, 0  ;;  %v2759_v31 = vor.u32 %v2758_v60, %v2757_v3 }
 0x1ee   : > { %v2762_v8 = vshll.u32 %v2761_v63, 23  ;;  %v2641_v39 = vadd.s32 %v2640_v2, %v2636_v46  ;;  %v2771_v28 = vsel %vm2686_vm8, %v2770_v6, %v12439_v40  ;;  %v12514_v32 = vmul.f32 0.62831855, %v12511_v18  ;;  %v527_v6 = vpop.permute.xlu1 %526 }
 0x1ef   : > { %v7807_v34 = vmul.f32 0.5, %v7743_v0  ;;  %v2894_v27 = vshrl.u32 %v2893_v11, 23  ;;  %v2766_v9 = vcvt.s32.f32 %v2759_v31  ;;  %v2897_v62 = vand.u32 8388607, %v2890_v36 }
 0x1f0   : > { %v2763_v33 = vor.u32 4788187, %v2762_v8  ;;  %v2642_v26 = vadd.s32 536870912, %v2641_v39  ;;  %v2787_v48 = vand.u32 2147483647, %v12514_v32  ;;  %v2790_v37 = vand.u32 2139095040, %v12514_v32 }
 0x1f1   : > { %v7935_v19 = vsel %vm7871_vm5, %v7807_v34, 0.0  ;;  %v9169_v38 = vadd.s32 4294967169, %v2894_v27  ;;  %vm12523_vm9 = vcmp.le.f32.partialorder %v2684_v23, 0.7853982  ;;  %v2898_v1 = vor.u32 8388608, %v2897_v62 }
 0x1f2   : > { %8631 = vperm.xlu0 %9915, %v7935_v19   ;;  %v2764_v43 = vand.u32 2147483647, %v2763_v33  ;;  %v2643_v47 = vshrl.u32 %v2642_v26, 30  ;;  %v2773_v58 = vsel %vm12523_vm9, 0, %v2771_v28  ;;  %v12532_v30 = vand.u32 8388607, %v2787_v48 }
 0x1f3   : > { %v2900_v41 = vadd.s32 1, %v9169_v38  ;;  %vm2583_vm10 = vcmp.lt.s32.totalorder %v12358_v44, 0  ;;  %v12537_v53 = vand.u32 3, %v2773_v58  ;;  %v2637_v14 = vadd.s32 %v12479_v51, %v12476_v35 }
 0x1f4   : > { %v2767_v59 = vmul.f32 %v2766_v9, %v2764_v43  ;;  %v2644_v24 = vshll.u32 %v2643_v47, 30  ;;  %v2667_v55 = vsub.s32 4, %v2643_v47  ;;  %v2791_v20 = vshrl.u32 %v2790_v37, 23 }
 0x1f5   : > { %vm2901_vm11 = vcmp.gt.s32.totalorder %v2900_v41, 0  ;;  %v10134_v23 = vpop.eup %10133  ;;  %v12545_v49 = vshll.u32 %v2898_v1, 8  ;;  %v2795_v45 = vor.u32 8388608, %v12532_v30  ;;  %v12554_v16 = vsub.f32 %v527_v6, %v12272_v57 }
 0x1f6   : > { %v2768_v5 = vxor.u32 2147483648, %v2767_v59  ;;  %v12535_v25 = vsub.s32 %v2641_v39, %v2644_v24  ;;  %v2902_v4 = vsel %vm2901_vm11, %v2900_v41, 0  ;;  %v10136_v50 = vpop.eup %10135  ;;  %9527 = vmatprep.mubr.msk.f32.mxu0 %vm7991_vm0, %v10134_v23  ;;  %v12559_v63 = vsel %vm2583_vm10, %v2667_v55, %v2643_v47 }
 0x1f7   : > { %v2904_v46 = vand.u32 31, %v2902_v4  ;;  %9528 = vmatmul.mubr.msk.f32.gmra.mrb[16].mxu0 %vm7991_vm0, %v10136_v50  ;;  %v2903_v2 = vshrl.u32 %v2902_v4, 5  ;;  %v9165_v31 = vadd.s32 4294967169, %v2791_v20  ;;  %vm2782_vm12 = vcmp.eq.s32.totalorder %v12537_v53, 2 }
 0x1f8   : > { %v2769_v10 = vsel %vm2686_vm8, %v2768_v5, %v2767_v59  ;;  %v2647_v3 = vsub.s32 0, %v12535_v25  ;;  %vm2779_vm13 = vcmp.eq.s32.totalorder %v12537_v53, 0  ;;  %vm2778_vm14 = vcmp.lt.s32.totalorder %v12537_v53, 2 }
 0x1f9   : > { %v2772_v15 = vsel %vm12523_vm9, %v12304_v12, %v2769_v10  ;;  %v2905_v35 = vsub.s32 32, %v2904_v46  ;;  %v2907_v51 = vshll.u32 %v17469_v17, %v2904_v46  ;;  %v2910_v0 = vshll.u32 %v17470_v22, %v2904_v46 }
 0x1fa   : > { %10137 = vcosq.f32 %v2772_v15  ;;  %v9158_v60 = vmin.u32 %v2647_v3, %v12535_v25  ;;  %v2913_v34 = vshll.u32 %v17446_v29, %v2904_v46  ;;  %v2916_v33 = vshll.u32 %v17447_v56, %v2904_v46 }
 0x1fb   : > { %10139 = vsinq.f32 %v2772_v15  ;;  %v2908_v11 = vshrl.u32 %v17470_v22, %v2905_v35  ;;  %v2911_v39 = vshrl.u32 %v17446_v29, %v2905_v35  ;;  %v2914_v28 = vshrl.u32 %v17447_v56, %v2905_v35 }
 0x1fc   : > { %v2649_v8 = vclz %v9158_v60  ;;  %v2917_v9 = vshrl.u32 %v17428_v7, %v2905_v35  ;;  %v2919_v26 = vshll.u32 %v17428_v7, %v2904_v46  ;;  %v2906_v19 = vshrl.u32 %v17469_v17, %v2905_v35 }
 0x1fd   : > { %v2909_v27 = vor.u32 %v2908_v11, %v2907_v51  ;;  %v2912_v38 = vor.u32 %v2911_v39, %v2910_v0  ;;  %v2920_v40 = vshrl.u32 %v17451_v42, %v2905_v35  ;;  %vm2776_vm15 = vweird.f32 %v12304_v12 }
 0x1fe   : > { %v9159_v62 = vadd.s32 4294967294, %v2649_v8  ;;  %vm12577_vm1 = vcmp.le.f32.partialorder %v2581_v52, 0.7853982  ;;  %v2915_v47 = vor.u32 %v2914_v28, %v2913_v34  ;;  %v2918_v58 = vor.u32 %v2917_v9, %v2916_v33 }
 0x1ff   : > { %vm2922_vm2 = vcmp.lt.s32.totalorder %v2903_v2, 1  ;;  %vm2923_vm3 = vcmp.lt.s32.totalorder %v2903_v2, 2  ;;  %v2921_v41 = vor.u32 %v2920_v40, %v2919_v26  ;;  %vm2924_vm5 = vcmp.lt.s32.totalorder %v2903_v2, 3 }
 0x200   : > { %vm9160_vm4 = vcmp.lt.s32.totalorder %v9159_v62, 0  ;;  %vm2925_vm6 = vcmp.lt.s32.totalorder %v2903_v2, 4  ;;  %v2930_v24 = vsel %vm2922_vm2, %v2909_v27, %v2912_v38  ;;  %v2926_v55 = vsel %vm2922_vm2, %v2906_v19, %v2909_v27 }
 0x201   : > { %v2652_v37 = vsel %vm9160_vm4, 0, %v9159_v62  ;;  %v2927_v59 = vsel %vm2925_vm6, %v2915_v47, 2102212464  ;;  %v2931_v1 = vsel %vm2925_vm6, %v2918_v58, 920167782  ;;  %v2934_v50 = vsel %vm2922_vm2, %v2912_v38, %v2915_v47 }
 0x202   : > { %v2653_v23 = vsub.s32 32, %v2652_v37  ;;  %v2654_v5 = vshll.u32 %v12535_v25, %v2652_v37  ;;  %v2657_v52 = vsub.s32 4294967266, %v2652_v37  ;;  %v2928_v4 = vsel %vm2924_vm5, %v2912_v38, %v2927_v59 }
 0x203   : > { %v2932_v6 = vsel %vm2924_vm5, %v2915_v47, %v2931_v1  ;;  %v2935_v46 = vsel %vm2925_vm6, %v2921_v41, 1326507024  ;;  %v2929_v28 = vsel %vm2923_vm3, %v2926_v55, %v2928_v4  ;;  %v2797_v9 = vadd.s32 1, %v9165_v31 }
 0x204   : > { %v10138_v20 = vpop.eup %10137  ;;  %v2655_v10 = vshrl.u32 %v2637_v14, %v2653_v23  ;;  %v2658_v3 = vadd.s32 127, %v2657_v52  ;;  %v2933_v15 = vsel %vm2923_vm3, %v2930_v24, %v2932_v6  ;;  %v2936_v35 = vsel %vm2924_vm5, %v2918_v58, %v2935_v46 }
 0x205   : > { %v10140_v51 = vpop.eup %10139  ;;  %v2783_v60 = vxor.u32 2147483648, %v10138_v20  ;;  %v2937_v25 = vsel %vm2923_vm3, %v2934_v50, %v2936_v35  ;;  %v12591_v0 = vmul.u32.u64.low %v12545_v49, %v2933_v15  ;;  %v12592_v11 = vmul.u32.u64.high %v12545_v49, %v2933_v15, %v12591_v0 }
 0x206   : > { %v2780_v8 = vxor.u32 2147483648, %v10140_v51  ;;  %v2656_v39 = vor.u32 %v2655_v10, %v2654_v5  ;;  %v2659_v34 = vshll.u32 %v2658_v3, 23  ;;  %v2670_v38 = vsel %vm12577_vm1, 0, %v12559_v63 }
 0x207   : > { %v2784_v14 = vsel %vm2782_vm12, %v2783_v60, %v10140_v51  ;;  %v12599_v27 = vmul.u32.u64.low %v12545_v49, %v2937_v25  ;;  %v12600_v33 = vmul.u32.u64.high %v12545_v49, %v2937_v25, %v12599_v27  ;;  %v2945_v40 = vmul.u32 %v12545_v49, %v2929_v28 }
 0x208   : > { %v2781_v26 = vsel %vm2779_vm13, %v10138_v20, %v2780_v8  ;;  %v2660_v62 = vor.u32 4788187, %v2659_v34  ;;  %v2663_v19 = vcvt.s32.f32 %v2656_v39  ;;  %v2948_v47 = vadd.s32 1, %v12592_v11  ;;  %v522_v34 = vpop.permute.xlu0 %521 }
 0x209   : > { %v2785_v2 = vsel %vm2778_vm14, %v2781_v26, %v2784_v14  ;;  %vm2798_vm7 = vcmp.gt.s32.totalorder %v2797_v9, 0  ;;  %vm7874_vm8 = vcmp.lt.f32.partialorder %v12301_v61, 5.0  ;;  %vm2947_vm9 = vc.u32 %v12600_v33, %v12591_v0 }
 0x20a   : > { %v2786_v31 = vsel %vm2776_vm15, nan, %v2785_v2  ;;  %v2661_v58 = vand.u32 2147483647, %v2660_v62  ;;  %v2799_v41 = vsel %vm2798_vm7, %v2797_v9, 0  ;;  %v12616_v59 = vand.u32 3, %v2670_v38 }
 0x20b   : > { %v7746_v37 = vadd.f32 1.0, %v2786_v31  ;;  %v2949_v53 = vsel %vm2947_vm9, %v2948_v47, %v12592_v11  ;;  %v2801_v49 = vand.u32 31, %v2799_v41  ;;  %v12621_v12 = vshll.u32 %v2795_v45, 8 }
 0x20c   : > { %v2664_v63 = vmul.f32 %v2663_v19, %v2661_v58  ;;  %v2950_v1 = vadd.s32 %v2949_v53, %v2945_v40  ;;  %v838_v23 = vmul.f32 %v12554_v16, %v12554_v16  ;;  %v2800_v61 = vshrl.u32 %v2799_v41, 5 }
 0x20d   : > { %v7810_v24 = vmul.f32 0.5, %v7746_v37  ;;  %v2802_v52 = vsub.s32 32, %v2801_v49  ;;  %v2804_v55 = vshll.u32 %v17469_v17, %v2801_v49  ;;  %v2807_v50 = vshll.u32 %v17470_v22, %v2801_v49 }
 0x20e   : > { %v2665_v5 = vxor.u32 2147483648, %v2664_v63  ;;  %v2951_v6 = vadd.s32 536870912, %v2950_v1  ;;  %v2810_v46 = vshll.u32 %v17446_v29, %v2801_v49  ;;  %v2813_v16 = vshll.u32 %v17447_v56, %v2801_v49 }
 0x20f   : > { %v7938_v4 = vsel %vm7874_vm8, %v7810_v24, 0.0  ;;  %v2805_v45 = vshrl.u32 %v17470_v22, %v2802_v52  ;;  %v2808_v20 = vshrl.u32 %v17446_v29, %v2802_v52  ;;  %v2811_v15 = vshrl.u32 %v17447_v56, %v2802_v52 }
 0x210   : > { %8646 = vperm.xlu1 %9916, %v7938_v4   ;;  %v2666_v30 = vsel %vm2583_vm10, %v2665_v5, %v2664_v63  ;;  %v12636_v3 = vshrl.u32 %v2951_v6, 30  ;;  %v2814_v35 = vshrl.u32 %v17428_v7, %v2802_v52  ;;  %v2803_v51 = vshrl.u32 %v17469_v17, %v2802_v52 }
 0x211   : > { %v2669_v10 = vsel %vm12577_vm1, %v12358_v44, %v2666_v30  ;;  %v2806_v60 = vor.u32 %v2805_v45, %v2804_v55  ;;  %v2816_v25 = vshll.u32 %v17428_v7, %v2801_v49  ;;  %v2809_v8 = vor.u32 %v2808_v20, %v2807_v50 }
 0x212   : > { %10141 = vcosq.f32 %v2669_v10  ;;  %v2953_v11 = vshll.u32 %v12636_v3, 30  ;;  %v2812_v39 = vor.u32 %v2811_v15, %v2810_v46  ;;  %v2815_v43 = vor.u32 %v2814_v35, %v2813_v16  ;;  %v12676_v46 = vld [vmem:[%s10649_s28 + $0x98] sm:$0xff] }
 0x213   : > { %10143 = vsinq.f32 %v2669_v10  ;;  %v2817_v28 = vshrl.u32 %v17451_v42, %v2802_v52  ;;  %vm2819_vm10 = vcmp.lt.s32.totalorder %v2800_v61, 1  ;;  %vm2822_vm11 = vcmp.lt.s32.totalorder %v2800_v61, 4 }
 0x214   : > { %v12644_v14 = vsub.s32 %v2950_v1, %v2953_v11  ;;  %vm2821_vm12 = vcmp.lt.s32.totalorder %v2800_v61, 3  ;;  %v2824_v27 = vsel %vm2822_vm11, %v2812_v39, 2102212464  ;;  %v902_v9 = vmul.f32 -259.48502, %v838_v23 }
 0x215   : > { %v2818_v26 = vor.u32 %v2817_v28, %v2816_v25  ;;  %vm2820_vm13 = vcmp.lt.s32.totalorder %v2800_v61, 2  ;;  %v2823_v62 = vsel %vm2819_vm10, %v2803_v51, %v2806_v60  ;;  %v773_v19 = vsub.f32 %v522_v34, %v12272_v57 }
 0x216   : > { %vm2673_vm14 = vweird.f32 %v12358_v44  ;;  %v2956_v38 = vsub.s32 0, %v12644_v14  ;;  %v2825_v2 = vsel %vm2821_vm12, %v2809_v8, %v2824_v27  ;;  %v2827_v40 = vsel %vm2819_vm10, %v2806_v60, %v2809_v8 }
 0x217   : > { %v2828_v47 = vsel %vm2822_vm11, %v2815_v43, 920167782  ;;  %vm2675_vm15 = vcmp.lt.s32.totalorder %v12616_v59, 2  ;;  %v2831_v58 = vsel %vm2819_vm10, %v2809_v8, %v2812_v39  ;;  %v2832_v41 = vsel %vm2822_vm11, %v2818_v26, 1326507024 }
 0x218   : > { %v2829_v31 = vsel %vm2821_vm12, %v2812_v39, %v2828_v47  ;;  %vm2676_vm1 = vcmp.eq.s32.totalorder %v12616_v59, 0  ;;  %vm2679_vm2 = vcmp.eq.s32.totalorder %v12616_v59, 2  ;;  %v9170_v57 = vmin.u32 %v2956_v38, %v12644_v14 }
 0x219   : > { %v985_v37 = vmul.f32 1.442695, %v902_v9  ;;  %v2826_v63 = vsel %vm2820_vm13, %v2823_v62, %v2825_v2  ;;  %v2830_v53 = vsel %vm2820_vm13, %v2827_v40, %v2829_v31  ;;  %v2833_v49 = vsel %vm2821_vm12, %v2815_v43, %v2832_v41  ;;  %v12707_v2 = vld [vmem:[%s10649_s28 + $0x90] sm:$0xff] }
 0x21a   : > { %v837_v24 = vmul.f32 %v773_v19, %v773_v19  ;;  %v2958_v1 = vclz %v9170_v57  ;;  %v2834_v23 = vsel %vm2820_vm13, %v2831_v58, %v2833_v49  ;;  %vm7873_vm3 = vcmp.lt.f32.partialorder %v12355_v13, 5.0 }
 0x21b   : > { %v12666_v5 = vmul.u32.u64.low %v12621_v12, %v2830_v53  ;;  %v12667_v52 = vmul.u32.u64.high %v12621_v12, %v2830_v53, %v12666_v5  ;;  %v12672_v4 = vmul.u32.u64.low %v12621_v12, %v2834_v23  ;;  %v12673_v6 = vmul.u32.u64.high %v12621_v12, %v2834_v23, %v12672_v4 }
 0x21c   : > { %v10142_v55 = vpop.eup %10141  ;;  %v901_v50 = vmul.f32 -259.48502, %v837_v24  ;;  %v12679_v30 = vmul.f32 0.62831855, %v12676_v46  ;;  %v2946_v20 = vadd.s32 %v12591_v0, %v12600_v33  ;;  %v9171_v16 = vadd.s32 4294967294, %v2958_v1 }
 0x21d   : > { %v10144_v61 = vpop.eup %10143  ;;  %v2680_v45 = vxor.u32 2147483648, %v10142_v55  ;;  %v2976_v10 = vsub.s32 4, %v12636_v3  ;;  %v2842_v35 = vmul.u32 %v12621_v12, %v2826_v63  ;;  %10145 = vpow2.f32 %v985_v37 }
 0x21e   : > { %v2677_v15 = vxor.u32 2147483648, %v10144_v61  ;;  %v983_v51 = vmul.f32 1.442695, %v901_v50  ;;  %vm9172_vm4 = vcmp.lt.s32.totalorder %v9171_v16, 0  ;;  %v2845_v25 = vadd.s32 1, %v12667_v52 }
 0x21f   : > { %v2681_v60 = vsel %vm2679_vm2, %v2680_v45, %v10144_v61  ;;  %v3096_v11 = vand.u32 2147483647, %v12679_v30  ;;  %v2961_v0 = vsel %vm9172_vm4, 0, %v9171_v16  ;;  %vm2844_vm5 = vc.u32 %v12673_v6, %v12666_v5 }
 0x220   : > { %v2678_v8 = vsel %vm2676_vm1, %v10142_v55, %v2677_v15  ;;  %v3099_v33 = vand.u32 2139095040, %v12679_v30  ;;  %v2962_v39 = vsub.s32 32, %v2961_v0  ;;  %v2963_v34 = vshll.u32 %v12644_v14, %v2961_v0 }
 0x221   : > { %v2682_v12 = vsel %vm2675_vm15, %v2678_v8, %v2681_v60  ;;  %v2966_v43 = vsub.s32 4294967266, %v2961_v0  ;;  %vm2892_vm6 = vcmp.lt.s32.totalorder %v12491_v21, 0  ;;  %v2846_v27 = vsel %vm2844_vm5, %v2845_v25, %v12667_v52 }
 0x222   : > { %v2683_v28 = vsel %vm2673_vm14, nan, %v2682_v12  ;;  %10147 = vpow2.f32 %v983_v51  ;;  %v2964_v26 = vshrl.u32 %v2946_v20, %v2962_v39  ;;  %v2847_v19 = vadd.s32 %v2846_v27, %v2842_v35 }
 0x223   : > { %v7745_v9 = vadd.f32 1.0, %v2683_v28  ;;  %v2967_v62 = vadd.s32 127, %v2966_v43  ;;  %v2977_v59 = vsel %vm2892_vm6, %v2976_v10, %v12636_v3  ;;  %v3100_v38 = vshrl.u32 %v3099_v33, 23 }
 0x224   : > { %v3103_v14 = vand.u32 8388607, %v3096_v11  ;;  %v12710_v44 = vmul.f32 0.62831855, %v12707_v2  ;;  %v2965_v47 = vor.u32 %v2964_v26, %v2963_v34  ;;  %v2848_v58 = vadd.s32 536870912, %v2847_v19 }
 0x225   : > { %v7809_v40 = vmul.f32 0.5, %v7745_v9  ;;  %v2968_v31 = vshll.u32 %v2967_v62, 23  ;;  %vm12714_vm7 = vcmp.le.f32.partialorder %v2890_v36, 0.7853982  ;;  %v9177_v3 = vadd.s32 4294967169, %v3100_v38 }
 0x226   : > { %v2972_v63 = vcvt.s32.f32 %v2965_v47  ;;  %v12720_v53 = vshrl.u32 %v2848_v58, 30  ;;  %v2979_v24 = vsel %vm12714_vm7, 0, %v2977_v59  ;;  %v2996_v23 = vand.u32 2139095040, %v12710_v44 }
 0x227   : > { %v7937_v57 = vsel %vm7873_vm3, %v7809_v40, 0.0  ;;  %v2969_v37 = vor.u32 4788187, %v2968_v31  ;;  %v10146_v49 = vpop.eup %10145  ;;  %v3106_v1 = vadd.s32 1, %v9177_v3  ;;  %v3104_v55 = vor.u32 8388608, %v3103_v14 }
 0x228   : > { %8641 = vperm.xlu0 %9915, %v7937_v57   ;;  %v2850_v52 = vshll.u32 %v12720_v53, 30  ;;  %v2993_v4 = vand.u32 2147483647, %v12710_v44  ;;  %v12729_v20 = vand.u32 3, %v2979_v24  ;;  %v2843_v16 = vadd.s32 %v12666_v5, %v12673_v6 }
 0x229   : > { %v2970_v36 = vand.u32 2147483647, %v2969_v37  ;;  %vm3107_vm8 = vcmp.gt.s32.totalorder %v3106_v1, 0  ;;  %v2997_v15 = vshrl.u32 %v2996_v23, 23  ;;  %v12734_v60 = vshll.u32 %v3104_v55, 8 }
 0x22a   : > { %v12727_v50 = vsub.s32 %v2847_v19, %v2850_v52  ;;  %v3108_v61 = vsel %vm3107_vm8, %v3106_v1, 0  ;;  %v12738_v25 = vand.u32 8388607, %v2993_v4  ;;  %v2873_v8 = vsub.s32 4, %v12720_v53 }
 0x22b   : > { %v2973_v13 = vmul.f32 %v2972_v63, %v2970_v36  ;;  %v3110_v10 = vand.u32 31, %v3108_v61  ;;  %v3109_v0 = vshrl.u32 %v3108_v61, 5  ;;  %vm2789_vm9 = vcmp.lt.s32.totalorder %v12514_v32, 0 }
 0x22c   : > { %v10148_v45 = vpop.eup %10147  ;;  %v2853_v51 = vsub.s32 0, %v12727_v50  ;;  %v9173_v9 = vadd.s32 4294967169, %v2997_v15  ;;  %vm2988_vm10 = vcmp.eq.s32.totalorder %v12729_v20, 2  ;;  %vm2985_vm11 = vcmp.eq.s32.totalorder %v12729_v20, 0 }
 0x22d   : > { %v2974_v35 = vxor.u32 2147483648, %v2973_v13  ;;  %9530 = vmatprep.mubr.msk.f32.mxu0 %vm7991_vm0, %v10148_v45  ;;  %v3111_v33 = vsub.s32 32, %v3110_v10  ;;  %v3113_v12 = vshll.u32 %v17469_v17, %v3110_v10  ;;  %v3116_v39 = vshll.u32 %v17470_v22, %v3110_v10 }
 0x22e   : > { %9531 = vmatmul.mubr.msk.f32.gmra.mrb[18].mxu0 %vm7991_vm0, %v10146_v49  ;;  %v9166_v6 = vmin.u32 %v2853_v51, %v12727_v50  ;;  %v3119_v34 = vshll.u32 %v17446_v29, %v3110_v10  ;;  %v3122_v38 = vshll.u32 %v17447_v56, %v3110_v10  ;;  %v3125_v58 = vshll.u32 %v17428_v7, %v3110_v10 }
 0x22f   : > { %v2975_v5 = vsel %vm2892_vm6, %v2974_v35, %v2973_v13  ;;  %v3112_v28 = vshrl.u32 %v17469_v17, %v3111_v33  ;;  %v3114_v27 = vshrl.u32 %v17470_v22, %v3111_v33  ;;  %v3117_v62 = vshrl.u32 %v17446_v29, %v3111_v33 }
 0x230   : > { %v2978_v43 = vsel %vm12714_vm7, %v12491_v21, %v2975_v5  ;;  %v2855_v26 = vclz %v9166_v6  ;;  %v3120_v19 = vshrl.u32 %v17447_v56, %v3111_v33  ;;  %v3123_v14 = vshrl.u32 %v17428_v7, %v3111_v33 }
 0x231   : > { %10149 = vcosq.f32 %v2978_v43  ;;  %v3115_v59 = vor.u32 %v3114_v27, %v3113_v12  ;;  %v3118_v47 = vor.u32 %v3117_v62, %v3116_v39  ;;  %v3126_v3 = vshrl.u32 %v17451_v42, %v3111_v33 }
 0x232   : > { %10151 = vsinq.f32 %v2978_v43  ;;  %v9167_v40 = vadd.s32 4294967294, %v2855_v26  ;;  %v3121_v31 = vor.u32 %v3120_v19, %v3119_v34  ;;  %v3124_v41 = vor.u32 %v3123_v14, %v3122_v38 }
 0x233   : > { %vm3128_vm12 = vcmp.lt.s32.totalorder %v3109_v0, 1  ;;  %vm3129_vm13 = vcmp.lt.s32.totalorder %v3109_v0, 2  ;;  %vm2984_vm14 = vcmp.lt.s32.totalorder %v12729_v20, 2  ;;  %vm12766_vm15 = vcmp.le.f32.partialorder %v2787_v48, 0.7853982 }
 0x234   : > { %vm9168_vm1 = vcmp.lt.s32.totalorder %v9167_v40, 0  ;;  %vm3130_vm2 = vcmp.lt.s32.totalorder %v3109_v0, 3  ;;  %vm3131_vm3 = vcmp.lt.s32.totalorder %v3109_v0, 4  ;;  %v3132_v37 = vsel %vm3128_vm12, %v3112_v28, %v3115_v59 }
 0x235   : > { %vm2982_vm4 = vweird.f32 %v12491_v21  ;;  %v2858_v63 = vsel %vm9168_vm1, 0, %v9167_v40  ;;  %v3127_v49 = vor.u32 %v3126_v3, %v3125_v58  ;;  %v3133_v24 = vsel %vm3131_vm3, %v3121_v31, 2102212464 }
 0x236   : > { %v3136_v1 = vsel %vm3128_vm12, %v3115_v59, %v3118_v47  ;;  %v2859_v23 = vsub.s32 32, %v2858_v63  ;;  %v2860_v36 = vshll.u32 %v12727_v50, %v2858_v63  ;;  %v2863_v52 = vsub.s32 4294967266, %v2858_v63 }
 0x237   : > { %v3134_v48 = vsel %vm3130_vm2, %v3118_v47, %v3133_v24  ;;  %v12778_v55 = vsel %vm2789_vm9, %v2873_v8, %v12720_v53  ;;  %v3137_v13 = vsel %vm3131_vm3, %v3124_v41, 920167782  ;;  %v3140_v61 = vsel %vm3128_vm12, %v3118_v47, %v3121_v31 }
 0x238   : > { %v3141_v45 = vsel %vm3131_vm3, %v3127_v49, 1326507024  ;;  %v2861_v10 = vshrl.u32 %v2843_v16, %v2859_v23  ;;  %v2864_v15 = vadd.s32 127, %v2863_v52  ;;  %v3138_v35 = vsel %vm3130_vm2, %v3121_v31, %v3137_v13 }
 0x239   : > { %v3142_v51 = vsel %vm3130_vm2, %v3124_v41, %v3141_v45  ;;  %v3135_v50 = vsel %vm3129_vm13, %v3132_v37, %v3134_v48  ;;  %v3139_v33 = vsel %vm3129_vm13, %v3136_v1, %v3138_v35  ;;  %v3003_v5 = vadd.s32 1, %v9173_v9 }
 0x23a   : > { %v3143_v12 = vsel %vm3129_vm13, %v3140_v61, %v3142_v51  ;;  %vm7876_vm5 = vcmp.lt.f32.partialorder %v12488_v54, 5.0  ;;  %v2862_v53 = vor.u32 %v2861_v10, %v2860_v36  ;;  %v2865_v8 = vshll.u32 %v2864_v15, 23 }
 0x23b   : > { %v10150_v6 = vpop.eup %10149  ;;  %v12788_v39 = vmul.u32.u64.low %v12734_v60, %v3143_v12  ;;  %v12789_v16 = vmul.u32.u64.high %v12734_v60, %v3143_v12, %v12788_v39  ;;  %v12792_v28 = vmul.u32.u64.low %v12734_v60, %v3139_v33  ;;  %v12793_v27 = vmul.u32.u64.high %v12734_v60, %v3139_v33, %v12792_v28 }
 0x23c   : > { %v10152_v34 = vpop.eup %10151  ;;  %v2989_v43 = vxor.u32 2147483648, %v10150_v6  ;;  %vm3004_vm6 = vcmp.gt.s32.totalorder %v3003_v5, 0  ;;  %v2866_v26 = vor.u32 4788187, %v2865_v8  ;;  %v2869_v9 = vcvt.s32.f32 %v2862_v53  ;;  %v537_v8 = vpop.permute.xlu1 %536 }
 0x23d   : > { %v2986_v0 = vxor.u32 2147483648, %v10152_v34  ;;  %v3005_v62 = vsel %vm3004_vm6, %v3003_v5, 0  ;;  %v2876_v59 = vsel %vm12766_vm15, 0, %v12778_v55  ;;  %v3001_v38 = vor.u32 8388608, %v12738_v25 }
 0x23e   : > { %v2990_v19 = vsel %vm2988_vm10, %v2989_v43, %v10152_v34  ;;  %v3007_v14 = vand.u32 31, %v3005_v62  ;;  %v2867_v47 = vand.u32 2147483647, %v2866_v26  ;;  %v3151_v31 = vmul.u32 %v12734_v60, %v3135_v50  ;;  %v12840_v26 = vld [vmem:[%s17404_s1] ss:$0 sm:$0xff] }
 0x23f   : > { %v2987_v40 = vsel %vm2985_vm11, %v10150_v6, %v2986_v0  ;;  %vm3153_vm7 = vc.u32 %v12789_v16, %v12792_v28  ;;  %v3154_v41 = vadd.s32 1, %v12793_v27  ;;  %v3006_v23 = vshrl.u32 %v3005_v62, 5 }
 0x240   : > { %v2991_v58 = vsel %vm2984_vm14, %v2987_v40, %v2990_v19  ;;  %v3008_v3 = vsub.s32 32, %v3007_v14  ;;  %v3010_v37 = vshll.u32 %v17469_v17, %v3007_v14  ;;  %v2870_v63 = vmul.f32 %v2869_v9, %v2867_v47 }
 0x241   : > { %v2992_v25 = vsel %vm2982_vm4, nan, %v2991_v58  ;;  %v3013_v49 = vshll.u32 %v17470_v22, %v3007_v14  ;;  %v3016_v24 = vshll.u32 %v17446_v29, %v3007_v14  ;;  %v3155_v1 = vsel %vm3153_vm7, %v3154_v41, %v12793_v27 }
 0x242   : > { %v7748_v60 = vadd.f32 1.0, %v2992_v25  ;;  %v3011_v20 = vshrl.u32 %v17470_v22, %v3008_v3  ;;  %v2871_v36 = vxor.u32 2147483648, %v2870_v63  ;;  %v3156_v52 = vadd.s32 %v3155_v1, %v3151_v31 }
 0x243   : > { %v3014_v48 = vshrl.u32 %v17446_v29, %v3008_v3  ;;  %v3017_v55 = vshrl.u32 %v17447_v56, %v3008_v3  ;;  %v3019_v61 = vshll.u32 %v17447_v56, %v3007_v14  ;;  %v3020_v45 = vshrl.u32 %v17428_v7, %v3008_v3 }
 0x244   : > { %v7812_v13 = vmul.f32 0.5, %v7748_v60  ;;  %v3012_v21 = vor.u32 %v3011_v20, %v3010_v37  ;;  %v2872_v10 = vsel %vm2789_vm9, %v2871_v36, %v2870_v63  ;;  %v3157_v15 = vadd.s32 536870912, %v3156_v52  ;;  %v532_v37 = vpop.permute.xlu0 %531 }
 0x245   : > { %v3015_v35 = vor.u32 %v3014_v48, %v3013_v49  ;;  %v3018_v51 = vor.u32 %v3017_v55, %v3016_v24  ;;  %v2875_v33 = vsel %vm12766_vm15, %v12514_v32, %v2872_v10  ;;  %v3021_v12 = vor.u32 %v3020_v45, %v3019_v61 }
 0x246   : > { %v7940_v50 = vsel %vm7876_vm5, %v7812_v13, 0.0  ;;  %v3022_v5 = vshll.u32 %v17428_v7, %v3007_v14  ;;  %10153 = vcosq.f32 %v2875_v33  ;;  %v12829_v6 = vshrl.u32 %v3157_v15, 30 }
 0x247   : > { %8656 = vperm.xlu1 %9916, %v7940_v50   ;;  %v3023_v53 = vshrl.u32 %v17451_v42, %v3008_v3  ;;  %vm3025_vm8 = vcmp.lt.s32.totalorder %v3006_v23, 1  ;;  %10155 = vsinq.f32 %v2875_v33  ;;  %v3009_v39 = vshrl.u32 %v17469_v17, %v3008_v3 }
 0x248   : > { %vm3027_vm9 = vcmp.lt.s32.totalorder %v3006_v23, 3  ;;  %vm3028_vm10 = vcmp.lt.s32.totalorder %v3006_v23, 4  ;;  %v3159_v54 = vshll.u32 %v12829_v6, 30  ;;  %vm3026_vm11 = vcmp.lt.s32.totalorder %v3006_v23, 2 }
 0x249   : > { %v3024_v57 = vor.u32 %v3023_v53, %v3022_v5  ;;  %v3041_v34 = vshll.u32 %v3001_v38, 8  ;;  %v3030_v43 = vsel %vm3028_vm10, %v3018_v51, 2102212464  ;;  %v3033_v27 = vsel %vm3025_vm8, %v3012_v21, %v3015_v35 }
 0x24a   : > { %v3034_v0 = vsel %vm3028_vm10, %v3021_v12, 920167782  ;;  %v776_v9 = vsub.f32 %v537_v8, %v12840_v26  ;;  %v12843_v62 = vsub.s32 %v3156_v52, %v3159_v54  ;;  %v3037_v14 = vsel %vm3025_vm8, %v3015_v35, %v3018_v51 }
 0x24b   : > { %v3035_v19 = vsel %vm3027_vm9, %v3018_v51, %v3034_v0  ;;  %v3029_v38 = vsel %vm3025_vm8, %v3009_v39, %v3012_v21  ;;  %v3031_v40 = vsel %vm3027_vm9, %v3015_v35, %v3030_v43  ;;  %v3038_v31 = vsel %vm3028_vm10, %v3024_v57, 1326507024 }
 0x24c   : > { %v3036_v47 = vsel %vm3026_vm11, %v3033_v27, %v3035_v19  ;;  %v2880_v58 = vand.u32 3, %v2876_v59  ;;  %v3162_v41 = vsub.s32 0, %v12843_v62  ;;  %v3039_v3 = vsel %vm3027_vm9, %v3021_v12, %v3038_v31  ;;  %v12873_v12 = vld [vmem:[%s10649_s28 + $0xa8] sm:$0xff] }
 0x24d   : > { %v3040_v25 = vsel %vm3026_vm11, %v3037_v14, %v3039_v3  ;;  %v12854_v63 = vmul.u32.u64.low %v3041_v34, %v3036_v47  ;;  %v12855_v49 = vmul.u32.u64.high %v3041_v34, %v3036_v47, %v12854_v63  ;;  %v840_v24 = vmul.f32 %v776_v9, %v776_v9 }
 0x24e   : > { %vm2879_vm12 = vweird.f32 %v12514_v32  ;;  %v9178_v60 = vmin.u32 %v3162_v41, %v12843_v62  ;;  %v3032_v1 = vsel %vm3026_vm11, %v3029_v38, %v3031_v40  ;;  %vm3098_vm13 = vcmp.lt.s32.totalorder %v12679_v30, 0 }
 0x24f   : > { %v12862_v59 = vmul.u32.u64.low %v3041_v34, %v3040_v25  ;;  %v12863_v20 = vmul.u32.u64.high %v3041_v34, %v3040_v25, %v12862_v59  ;;  %v904_v36 = vmul.f32 -259.48502, %v840_v24  ;;  %v775_v52 = vsub.f32 %v532_v37, %v12840_v26 }
 0x250   : > { %v10154_v48 = vpop.eup %10153  ;;  %vm2881_vm14 = vcmp.lt.s32.totalorder %v2880_v58, 2  ;;  %vm2882_vm15 = vcmp.eq.s32.totalorder %v2880_v58, 0  ;;  %vm2885_vm1 = vcmp.eq.s32.totalorder %v2880_v58, 2  ;;  %v3164_v55 = vclz %v9178_v60 }
 0x251   : > { %v10156_v13 = vpop.eup %10155  ;;  %v2886_v21 = vxor.u32 2147483648, %v10154_v48  ;;  %v3048_v61 = vmul.u32 %v3041_v34, %v3032_v1  ;;  %v3051_v23 = vadd.s32 1, %v12855_v49  ;;  %v839_v45 = vmul.f32 %v775_v52, %v775_v52 }
 0x252   : > { %v2883_v10 = vxor.u32 2147483648, %v10156_v13  ;;  %v3152_v15 = vadd.s32 %v12792_v28, %v12789_v16  ;;  %v9179_v35 = vadd.s32 4294967294, %v3164_v55  ;;  %v3182_v51 = vsub.s32 4, %v12829_v6 }
 0x253   : > { %v2887_v50 = vsel %vm2885_vm1, %v2886_v21, %v10156_v13  ;;  %vm3050_vm2 = vc.u32 %v12863_v20, %v12854_v63  ;;  %v989_v33 = vmul.f32 1.442695, %v904_v36  ;;  %v12876_v5 = vmul.f32 0.62831855, %v12873_v12 }
 0x254   : > { %v2884_v53 = vsel %vm2882_vm15, %v10154_v48, %v2883_v10  ;;  %vm9180_vm3 = vcmp.lt.s32.totalorder %v9179_v35, 0  ;;  %v3052_v8 = vsel %vm3050_vm2, %v3051_v23, %v12855_v49  ;;  %v903_v39 = vmul.f32 -259.48502, %v839_v45 }
 0x255   : > { %v2888_v16 = vsel %vm2881_vm14, %v2884_v53, %v2887_v50  ;;  %v3167_v28 = vsel %vm9180_vm3, 0, %v9179_v35  ;;  %v3053_v54 = vadd.s32 %v3052_v8, %v3048_v61  ;;  %v3302_v57 = vand.u32 2147483647, %v12876_v5 }
 0x256   : > { %v2889_v34 = vsel %vm2879_vm12, nan, %v2888_v16  ;;  %v3168_v43 = vsub.s32 32, %v3167_v28  ;;  %v3169_v27 = vshll.u32 %v12843_v62, %v3167_v28  ;;  %v3172_v0 = vsub.s32 4294967266, %v3167_v28 }
 0x257   : > { %v7747_v9 = vadd.f32 1.0, %v2889_v34  ;;  %v3054_v19 = vadd.s32 536870912, %v3053_v54  ;;  %v987_v14 = vmul.f32 1.442695, %v903_v39  ;;  %v3305_v38 = vand.u32 2139095040, %v12876_v5 }
 0x258   : > { %vm7875_vm4 = vcmp.lt.f32.partialorder %v12511_v18, 5.0  ;;  %v3170_v40 = vshrl.u32 %v3152_v15, %v3168_v43  ;;  %v3173_v47 = vadd.s32 127, %v3172_v0  ;;  %v3183_v31 = vsel %vm3098_vm13, %v3182_v51, %v12829_v6  ;;  %v12893_v18 = vld [vmem:[%s10649_s28 + $0xa0] sm:$0xff] }
 0x259   : > { %v7811_v32 = vmul.f32 0.5, %v7747_v9  ;;  %v3055_v58 = vshrl.u32 %v3054_v19, 30  ;;  %10157 = vpow2.f32 %v987_v14  ;;  %v3306_v41 = vshrl.u32 %v3305_v38, 23 }
 0x25a   : > { %v3171_v62 = vor.u32 %v3170_v40, %v3169_v27  ;;  %v3174_v3 = vshll.u32 %v3173_v47, 23  ;;  %10159 = vpow2.f32 %v989_v33  ;;  %v3309_v37 = vand.u32 8388607, %v3302_v57 }
 0x25b   : > { %v7939_v25 = vsel %vm7875_vm4, %v7811_v32, 0.0  ;;  %v3056_v49 = vshll.u32 %v3055_v58, 30  ;;  %v9185_v24 = vadd.s32 4294967169, %v3306_v41  ;;  %v12896_v60 = vmul.f32 0.62831855, %v12893_v18 }
 0x25c   : > { %8651 = vperm.xlu0 %9915, %v7939_v25   ;;  %v3175_v6 = vor.u32 4788187, %v3174_v3  ;;  %v3178_v1 = vcvt.s32.f32 %v3171_v62  ;;  %vm12900_vm5 = vcmp.le.f32.partialorder %v3096_v11, 0.7853982  ;;  %v3310_v13 = vor.u32 8388608, %v3309_v37 }
 0x25d   : > { %v12904_v36 = vsub.s32 %v3053_v54, %v3056_v49  ;;  %v3312_v52 = vadd.s32 1, %v9185_v24  ;;  %v3185_v55 = vsel %vm12900_vm5, 0, %v3183_v31  ;;  %v3079_v61 = vsub.s32 4, %v3055_v58 }
 0x25e   : > { %v3176_v48 = vand.u32 2147483647, %v3175_v6  ;;  %v3202_v23 = vand.u32 2139095040, %v12896_v60  ;;  %v12910_v11 = vand.u32 3, %v3185_v55  ;;  %vm2995_vm7 = vcmp.lt.s32.totalorder %v12710_v44, 0 }
 0x25f   : > { %v3059_v21 = vsub.s32 0, %v12904_v36  ;;  %vm3313_vm6 = vcmp.gt.s32.totalorder %v3312_v52, 0  ;;  %v3049_v15 = vadd.s32 %v12854_v63, %v12863_v20  ;;  %v12916_v33 = vshll.u32 %v3310_v13, 8 }
 0x260   : > { %v3179_v45 = vmul.f32 %v3178_v1, %v3176_v48  ;;  %v3314_v10 = vsel %vm3313_vm6, %v3312_v52, 0  ;;  %v3199_v53 = vand.u32 2147483647, %v12896_v60  ;;  %v12921_v16 = vsel %vm2995_vm7, %v3079_v61, %v3055_v58 }
 0x261   : > { %v9174_v35 = vmin.u32 %v3059_v21, %v12904_v36  ;;  %v3316_v50 = vand.u32 31, %v3314_v10  ;;  %v3315_v28 = vshrl.u32 %v3314_v10, 5  ;;  %v3203_v54 = vshrl.u32 %v3202_v23, 23 }
 0x262   : > { %v3180_v51 = vxor.u32 2147483648, %v3179_v45  ;;  %vm3194_vm9 = vcmp.eq.s32.totalorder %v12910_v11, 2  ;;  %vm3191_vm10 = vcmp.eq.s32.totalorder %v12910_v11, 0  ;;  %vm12944_vm11 = vcmp.le.f32.partialorder %v2993_v4, 0.7853982 }
 0x263   : > { %v10158_v8 = vpop.eup %10157  ;;  %v3061_v39 = vclz %v9174_v35  ;;  %v3317_v20 = vsub.s32 32, %v3316_v50  ;;  %v3319_v43 = vshll.u32 %v17469_v17, %v3316_v50  ;;  %v3322_v27 = vshll.u32 %v17470_v22, %v3316_v50 }
 0x264   : > { %v10160_v34 = vpop.eup %10159  ;;  %v3181_v63 = vsel %vm3098_vm13, %v3180_v51, %v3179_v45  ;;  %9533 = vmatprep.mubr.msk.f32.mxu0 %vm7991_vm0, %v10158_v8  ;;  %v3325_v19 = vshll.u32 %v17446_v29, %v3316_v50  ;;  %v3328_v14 = vshll.u32 %v17447_v56, %v3316_v50  ;;  %v3331_v3 = vshll.u32 %v17428_v7, %v3316_v50 }
 0x265   : > { %v3184_v0 = vsel %vm12900_vm5, %v12679_v30, %v3181_v63  ;;  %v9175_v9 = vadd.s32 4294967294, %v3061_v39  ;;  %9534 = vmatmul.mubr.msk.f32.gmra.mrb[20].mxu0 %vm7991_vm0, %v10160_v34  ;;  %v3318_v38 = vshrl.u32 %v17469_v17, %v3317_v20  ;;  %v3320_v40 = vshrl.u32 %v17470_v22, %v3317_v20 }
 0x266   : > { %10161 = vcosq.f32 %v3184_v0  ;;  %v3323_v47 = vshrl.u32 %v17446_v29, %v3317_v20  ;;  %v3326_v31 = vshrl.u32 %v17447_v56, %v3317_v20  ;;  %v3329_v32 = vshrl.u32 %v17428_v7, %v3317_v20 }
 0x267   : > { %10163 = vsinq.f32 %v3184_v0  ;;  %vm9176_vm8 = vcmp.lt.s32.totalorder %v9175_v9, 0  ;;  %v3321_v41 = vor.u32 %v3320_v40, %v3319_v43  ;;  %v3332_v59 = vshrl.u32 %v17451_v42, %v3317_v20  ;;  %v547_v40 = vpop.permute.xlu1 %546 }
 0x268   : > { %v3064_v58 = vsel %vm9176_vm8, 0, %v9175_v9  ;;  %v3324_v62 = vor.u32 %v3323_v47, %v3322_v27  ;;  %v3327_v6 = vor.u32 %v3326_v31, %v3325_v19  ;;  %v3330_v1 = vor.u32 %v3329_v32, %v3328_v14 }
 0x269   : > { %v3065_v25 = vsub.s32 32, %v3064_v58  ;;  %v3066_v49 = vshll.u32 %v12904_v36, %v3064_v58  ;;  %v3069_v24 = vsub.s32 4294967266, %v3064_v58  ;;  %vm3334_vm12 = vcmp.lt.s32.totalorder %v3315_v28, 1 }
 0x26a   : > { %vm3335_vm13 = vcmp.lt.s32.totalorder %v3315_v28, 2  ;;  %vm3188_vm14 = vweird.f32 %v12679_v30  ;;  %vm3336_vm15 = vcmp.lt.s32.totalorder %v3315_v28, 3  ;;  %vm3337_vm1 = vcmp.lt.s32.totalorder %v3315_v28, 4 }
 0x26b   : > { %v3067_v52 = vshrl.u32 %v3049_v15, %v3065_v25  ;;  %v3070_v48 = vadd.s32 127, %v3069_v24  ;;  %v3333_v4 = vor.u32 %v3332_v59, %v3331_v3  ;;  %v3338_v55 = vsel %vm3334_vm12, %v3318_v38, %v3321_v41 }
 0x26c   : > { %v3339_v13 = vsel %vm3337_vm1, %v3327_v6, 2102212464  ;;  %v3342_v21 = vsel %vm3334_vm12, %v3321_v41, %v3324_v62  ;;  %v3343_v45 = vsel %vm3337_vm1, %v3330_v1, 920167782  ;;  %v3346_v35 = vsel %vm3334_vm12, %v3324_v62, %v3327_v6 }
 0x26d   : > { %v3068_v36 = vor.u32 %v3067_v52, %v3066_v49  ;;  %v3071_v61 = vshll.u32 %v3070_v48, 23  ;;  %v3340_v23 = vsel %vm3336_vm15, %v3324_v62, %v3339_v13  ;;  %v3344_v10 = vsel %vm3336_vm15, %v3327_v6, %v3343_v45 }
 0x26e   : > { %v3347_v51 = vsel %vm3337_vm1, %v3333_v4, 1326507024  ;;  %v9181_v15 = vadd.s32 4294967169, %v3203_v54  ;;  %v3345_v39 = vsel %vm3335_vm13, %v3342_v21, %v3344_v10  ;;  %v3341_v20 = vsel %vm3335_vm13, %v3338_v55, %v3340_v23  ;;  %v542_v23 = vpop.permute.xlu0 %541 }
 0x26f   : > { %v3072_v50 = vor.u32 4788187, %v3071_v61  ;;  %v3075_v8 = vcvt.s32.f32 %v3068_v36  ;;  %v3348_v34 = vsel %vm3336_vm15, %v3330_v1, %v3347_v51  ;;  %vm3190_vm2 = vcmp.lt.s32.totalorder %v12910_v11, 2 }
 0x270   : > { %v10162_v63 = vpop.eup %10161  ;;  %v3349_v43 = vsel %vm3335_vm13, %v3346_v35, %v3348_v34  ;;  %v12961_v27 = vmul.u32.u64.low %v12916_v33, %v3345_v39  ;;  %v12962_v0 = vmul.u32.u64.high %v12916_v33, %v3345_v39, %v12961_v27  ;;  %v3082_v28 = vsel %vm12944_vm11, 0, %v12921_v16 }
 0x271   : > { %v10164_v9 = vpop.eup %10163  ;;  %v3195_v19 = vxor.u32 2147483648, %v10162_v63  ;;  %v3073_v14 = vand.u32 2147483647, %v3072_v50  ;;  %v12966_v54 = vmul.u32.u64.low %v12916_v33, %v3349_v43  ;;  %v12967_v38 = vmul.u32.u64.high %v12916_v33, %v3349_v43, %v12966_v54 }
 0x272   : > { %v3192_v47 = vxor.u32 2147483648, %v10164_v9  ;;  %v3209_v31 = vadd.s32 1, %v9181_v15  ;;  %v3357_v41 = vmul.u32 %v12916_v33, %v3341_v20  ;;  %v3206_v62 = vand.u32 8388607, %v3199_v53 }
 0x273   : > { %v3196_v32 = vsel %vm3194_vm9, %v3195_v19, %v10164_v9  ;;  %v3076_v58 = vmul.f32 %v3075_v8, %v3073_v14  ;;  %v3360_v25 = vadd.s32 1, %v12962_v0  ;;  %v778_v49 = vsub.f32 %v547_v40, %v12840_v26 }
 0x274   : > { %v3193_v3 = vsel %vm3191_vm10, %v10162_v63, %v3192_v47  ;;  %vm3210_vm3 = vcmp.gt.s32.totalorder %v3209_v31, 0  ;;  %vm3359_vm4 = vc.u32 %v12967_v38, %v12961_v27  ;;  %vm7878_vm5 = vcmp.lt.f32.partialorder %v12676_v46, 5.0 }
 0x275   : > { %v3197_v24 = vsel %vm3190_vm2, %v3193_v3, %v3196_v32  ;;  %v3077_v16 = vxor.u32 2147483648, %v3076_v58  ;;  %v3361_v33 = vsel %vm3359_vm4, %v3360_v25, %v12962_v0  ;;  %v3211_v1 = vsel %vm3210_vm3, %v3209_v31, 0 }
 0x276   : > { %v3198_v6 = vsel %vm3188_vm14, nan, %v3197_v24  ;;  %v12990_v52 = vand.u32 3, %v3082_v28  ;;  %v3362_v48 = vadd.s32 %v3361_v33, %v3357_v41  ;;  %v3207_v55 = vor.u32 8388608, %v3206_v62 }
 0x277   : > { %v7750_v11 = vadd.f32 1.0, %v3198_v6  ;;  %v3078_v59 = vsel %vm2995_vm7, %v3077_v16, %v3076_v58  ;;  %v3213_v13 = vand.u32 31, %v3211_v1  ;;  %v842_v30 = vmul.f32 %v778_v49, %v778_v49  ;;  %v13019_v58 = vld [vmem:[%s10649_s28 + $0xb8] sm:$0xff] }
 0x278   : > { %v3081_v4 = vsel %vm12944_vm11, %v12710_v44, %v3078_v59  ;;  %v3363_v36 = vadd.s32 536870912, %v3362_v48  ;;  %v3212_v61 = vshrl.u32 %v3211_v1, 5  ;;  %vm3091_vm6 = vcmp.eq.s32.totalorder %v12990_v52, 2 }
 0x279   : > { %v7814_v21 = vmul.f32 0.5, %v7750_v11  ;;  %10165 = vcosq.f32 %v3081_v4  ;;  %v3214_v45 = vsub.s32 32, %v3213_v13  ;;  %v3216_v10 = vshll.u32 %v17469_v17, %v3213_v13 }
 0x27a   : > { %10167 = vsinq.f32 %v3081_v4  ;;  %v3219_v35 = vshll.u32 %v17470_v22, %v3213_v13  ;;  %v13000_v37 = vshrl.u32 %v3363_v36, 30  ;;  %v3222_v15 = vshll.u32 %v17446_v29, %v3213_v13 }
 0x27b   : > { %v7942_v51 = vsel %vm7878_vm5, %v7814_v21, 0.0  ;;  %v3225_v50 = vshll.u32 %v17447_v56, %v3213_v13  ;;  %vm3088_vm7 = vcmp.eq.s32.totalorder %v12990_v52, 0  ;;  %v3217_v8 = vshrl.u32 %v17470_v22, %v3214_v45 }
 0x27c   : > { %8666 = vperm.xlu1 %9916, %v7942_v51   ;;  %v3220_v39 = vshrl.u32 %v17446_v29, %v3214_v45  ;;  %v3223_v34 = vshrl.u32 %v17447_v56, %v3214_v45  ;;  %v777_v46 = vsub.f32 %v542_v23, %v12840_v26  ;;  %vm3087_vm8 = vcmp.lt.s32.totalorder %v12990_v52, 2 }
 0x27d   : > { %v3365_v63 = vshll.u32 %v13000_v37, 30  ;;  %v3215_v20 = vshrl.u32 %v17469_v17, %v3214_v45  ;;  %v3226_v43 = vshrl.u32 %v17428_v7, %v3214_v45  ;;  %v3228_v0 = vshll.u32 %v17428_v7, %v3213_v13 }
 0x27e   : > { %vm3085_vm9 = vweird.f32 %v12710_v44  ;;  %v3218_v9 = vor.u32 %v3217_v8, %v3216_v10  ;;  %v3221_v19 = vor.u32 %v3220_v39, %v3219_v35  ;;  %v3229_v14 = vshrl.u32 %v17451_v42, %v3214_v45 }
 0x27f   : > { %v906_v54 = vmul.f32 -259.48502, %v842_v30  ;;  %v13016_v40 = vsub.s32 %v3362_v48, %v3365_v63  ;;  %v3224_v47 = vor.u32 %v3223_v34, %v3222_v15  ;;  %v3227_v28 = vor.u32 %v3226_v43, %v3225_v50 }
 0x280   : > { %vm3231_vm10 = vcmp.lt.s32.totalorder %v3212_v61, 1  ;;  %v3230_v31 = vor.u32 %v3229_v14, %v3228_v0  ;;  %vm3234_vm11 = vcmp.lt.s32.totalorder %v3212_v61, 4  ;;  %v3247_v32 = vshll.u32 %v3207_v55, 8 }
 0x281   : > { %v13022_v41 = vmul.f32 0.62831855, %v13019_v58  ;;  %v3368_v62 = vsub.s32 0, %v13016_v40  ;;  %vm3233_vm12 = vcmp.lt.s32.totalorder %v3212_v61, 3  ;;  %v3235_v3 = vsel %vm3231_vm10, %v3215_v20, %v3218_v9 }
 0x282   : > { %v3236_v25 = vsel %vm3234_vm11, %v3224_v47, 2102212464  ;;  %vm3232_vm13 = vcmp.lt.s32.totalorder %v3212_v61, 2  ;;  %v3239_v24 = vsel %vm3231_vm10, %v3218_v9, %v3221_v19  ;;  %v3240_v16 = vsel %vm3234_vm11, %v3227_v28, 920167782 }
 0x283   : > { %v3237_v49 = vsel %vm3233_vm12, %v3221_v19, %v3236_v25  ;;  %v10166_v6 = vpop.eup %10165  ;;  %vm7877_vm14 = vcmp.lt.f32.partialorder %v12707_v2, 5.0  ;;  %v9186_v33 = vmin.u32 %v3368_v62, %v13016_v40  ;;  %v3243_v1 = vsel %vm3231_vm10, %v3221_v19, %v3224_v47 }
 0x284   : > { %v993_v11 = vmul.f32 1.442695, %v906_v54  ;;  %v841_v59 = vmul.f32 %v777_v46, %v777_v46  ;;  %v10168_v48 = vpop.eup %10167  ;;  %v3092_v4 = vxor.u32 2147483648, %v10166_v6  ;;  %v3238_v55 = vsel %vm3232_vm13, %v3235_v3, %v3237_v49 }
 0x285   : > { %v3241_v13 = vsel %vm3233_vm12, %v3224_v47, %v3240_v16  ;;  %v3244_v30 = vsel %vm3234_vm11, %v3230_v31, 1326507024  ;;  %v3089_v21 = vxor.u32 2147483648, %v10168_v48  ;;  %v3370_v36 = vclz %v9186_v33 }
 0x286   : > { %v3242_v23 = vsel %vm3232_vm13, %v3239_v24, %v3241_v13  ;;  %v3245_v45 = vsel %vm3233_vm12, %v3227_v28, %v3244_v30  ;;  %v3093_v10 = vsel %vm3091_vm6, %v3092_v4, %v10168_v48  ;;  %v3358_v63 = vadd.s32 %v12961_v27, %v12967_v38  ;;  %v13079_v13 = vld [vmem:[%s10649_s28 + $0xb0] sm:$0xff] }
 0x287   : > { %v3246_v35 = vsel %vm3232_vm13, %v3243_v1, %v3245_v45  ;;  %v13041_v51 = vmul.u32.u64.low %v3247_v32, %v3242_v23  ;;  %v13042_v15 = vmul.u32.u64.high %v3247_v32, %v3242_v23, %v13041_v51  ;;  %v3090_v50 = vsel %vm3088_vm7, %v10166_v6, %v3089_v21 }
 0x288   : > { %v9187_v8 = vadd.s32 4294967294, %v3370_v36  ;;  %v13046_v39 = vmul.u32.u64.low %v3247_v32, %v3246_v35  ;;  %v13047_v34 = vmul.u32.u64.high %v3247_v32, %v3246_v35, %v13046_v39  ;;  %v3094_v46 = vsel %vm3087_vm8, %v3090_v50, %v3093_v10 }
 0x289   : > { %10169 = vpow2.f32 %v993_v11  ;;  %v905_v20 = vmul.f32 -259.48502, %v841_v59  ;;  %v3095_v61 = vsel %vm3085_vm9, nan, %v3094_v46  ;;  %v3254_v43 = vmul.u32 %v3247_v32, %v3238_v55 }
 0x28a   : > { %vm9188_vm15 = vcmp.lt.s32.totalorder %v9187_v8, 0  ;;  %v3511_v0 = vand.u32 2139095040, %v13022_v41  ;;  %v7749_v9 = vadd.f32 1.0, %v3095_v61  ;;  %v3257_v14 = vadd.s32 1, %v13042_v15 }
 0x28b   : > { %v3373_v19 = vsel %vm9188_vm15, 0, %v9187_v8  ;;  %v991_v54 = vmul.f32 1.442695, %v905_v20  ;;  %v3388_v27 = vsub.s32 4, %v13000_v37  ;;  %vm3256_vm1 = vc.u32 %v13047_v34, %v13041_v51 }
 0x28c   : > { %v3374_v47 = vsub.s32 32, %v3373_v19  ;;  %v3375_v52 = vshll.u32 %v13016_v40, %v3373_v19  ;;  %v3378_v28 = vsub.s32 4294967266, %v3373_v19  ;;  %v7813_v38 = vmul.f32 0.5, %v7749_v9 }
 0x28d   : > { %10171 = vpow2.f32 %v991_v54  ;;  %v3508_v44 = vand.u32 2147483647, %v13022_v41  ;;  %v3258_v62 = vsel %vm3256_vm1, %v3257_v14, %v13042_v15  ;;  %v3512_v3 = vshrl.u32 %v3511_v0, 23 }
 0x28e   : > { %v3376_v31 = vshrl.u32 %v3358_v63, %v3374_v47  ;;  %v3379_v32 = vadd.s32 127, %v3378_v28  ;;  %v7941_v25 = vsel %vm7877_vm14, %v7813_v38, 0.0  ;;  %v3259_v49 = vadd.s32 %v3258_v62, %v3254_v43 }
 0x28f   : > { %8661 = vperm.xlu0 %9915, %v7941_v25   ;;  %vm3304_vm2 = vcmp.lt.s32.totalorder %v12876_v5, 0  ;;  %v9193_v16 = vadd.s32 4294967169, %v3512_v3  ;;  %v3515_v1 = vand.u32 8388607, %v3508_v44  ;;  %vm13072_vm3 = vcmp.le.f32.partialorder %v3302_v57, 0.7853982  ;;  %v557_v57 = vpop.permute.xlu1 %556 }
 0x290   : > { %v3377_v40 = vor.u32 %v3376_v31, %v3375_v52  ;;  %v3380_v24 = vshll.u32 %v3379_v32, 23  ;;  %v3389_v6 = vsel %vm3304_vm2, %v3388_v27, %v13000_v37  ;;  %v3260_v33 = vadd.s32 536870912, %v3259_v49 }
 0x291   : > { %v3518_v2 = vadd.s32 1, %v9193_v16  ;;  %v13082_v37 = vmul.f32 0.62831855, %v13079_v13  ;;  %v3391_v21 = vsel %vm13072_vm3, 0, %v3389_v6  ;;  %v3516_v23 = vor.u32 8388608, %v3515_v1 }
 0x292   : > { %v3381_v11 = vor.u32 4788187, %v3380_v24  ;;  %v3384_v59 = vcvt.s32.f32 %v3377_v40  ;;  %v13076_v55 = vshrl.u32 %v3260_v33, 30  ;;  %v13087_v50 = vand.u32 3, %v3391_v21 }
 0x293   : > { %v10170_v48 = vpop.eup %10169  ;;  %vm3519_vm4 = vcmp.gt.s32.totalorder %v3518_v2, 0  ;;  %v13090_v8 = vadd.s32 %v13041_v51, %v13047_v34  ;;  %v3408_v46 = vand.u32 2139095040, %v13082_v37  ;;  %v13097_v43 = vsub.f32 %v557_v57, %v12840_v26 }
 0x294   : > { %v3382_v30 = vand.u32 2147483647, %v3381_v11  ;;  %v3262_v36 = vshll.u32 %v13076_v55, 30  ;;  %v3520_v45 = vsel %vm3519_vm4, %v3518_v2, 0  ;;  %v13102_v19 = vshll.u32 %v3516_v23, 8 }
 0x295   : > { %v3522_v35 = vand.u32 31, %v3520_v45  ;;  %v3405_v51 = vand.u32 2147483647, %v13082_v37  ;;  %v3521_v14 = vshrl.u32 %v3520_v45, 5  ;;  %v3409_v38 = vshrl.u32 %v3408_v46, 23 }
 0x296   : > { %v3385_v10 = vmul.f32 %v3384_v59, %v3382_v30  ;;  %v13092_v39 = vsub.s32 %v3259_v49, %v3262_v36  ;;  %vm3400_vm5 = vcmp.eq.s32.totalorder %v13087_v50, 2  ;;  %vm3397_vm7 = vcmp.eq.s32.totalorder %v13087_v50, 0 }
 0x297   : > { %v10172_v15 = vpop.eup %10171  ;;  %v3523_v20 = vsub.s32 32, %v3522_v35  ;;  %v3525_v61 = vshll.u32 %v17469_v17, %v3522_v35  ;;  %v3528_v9 = vshll.u32 %v17470_v22, %v3522_v35  ;;  %v3531_v27 = vshll.u32 %v17446_v29, %v3522_v35 }
 0x298   : > { %v3386_v63 = vxor.u32 2147483648, %v3385_v10  ;;  %9536 = vmatprep.mubr.msk.f32.mxu0 %vm7991_vm0, %v10172_v15  ;;  %v3265_v0 = vsub.s32 0, %v13092_v39  ;;  %v3534_v49 = vshll.u32 %v17447_v56, %v3522_v35  ;;  %v3537_v24 = vshll.u32 %v17428_v7, %v3522_v35 }
 0x299   : > { %9537 = vmatmul.mubr.msk.f32.gmra.mrb[22].mxu0 %vm7991_vm0, %v10170_v48  ;;  %v3526_v54 = vshrl.u32 %v17470_v22, %v3523_v20  ;;  %v3529_v47 = vshrl.u32 %v17446_v29, %v3523_v20  ;;  %v3524_v31 = vshrl.u32 %v17469_v17, %v3523_v20  ;;  %v3532_v25 = vshrl.u32 %v17447_v56, %v3523_v20 }
 0x29a   : > { %v3387_v34 = vsel %vm3304_vm2, %v3386_v63, %v3385_v10  ;;  %v9182_v28 = vmin.u32 %v3265_v0, %v13092_v39  ;;  %v3535_v40 = vshrl.u32 %v17428_v7, %v3523_v20  ;;  %v3538_v16 = vshrl.u32 %v17451_v42, %v3523_v20 }
 0x29b   : > { %v3390_v52 = vsel %vm13072_vm3, %v12876_v5, %v3387_v34  ;;  %v3527_v32 = vor.u32 %v3526_v54, %v3525_v61  ;;  %v3530_v62 = vor.u32 %v3529_v47, %v3528_v9  ;;  %vm3540_vm6 = vcmp.lt.s32.totalorder %v3521_v14, 1 }
 0x29c   : > { %10173 = vcosq.f32 %v3390_v52  ;;  %v3267_v3 = vclz %v9182_v28  ;;  %vm3201_vm8 = vcmp.lt.s32.totalorder %v12896_v60, 0  ;;  %v3533_v33 = vor.u32 %v3532_v25, %v3531_v27 }
 0x29d   : > { %10175 = vsinq.f32 %v3390_v52  ;;  %vm3541_vm9 = vcmp.lt.s32.totalorder %v3521_v14, 2  ;;  %vm3542_vm10 = vcmp.lt.s32.totalorder %v3521_v14, 3  ;;  %vm3396_vm11 = vcmp.lt.s32.totalorder %v13087_v50, 2 }
 0x29e   : > { %v9183_v6 = vadd.s32 4294967294, %v3267_v3  ;;  %v3536_v1 = vor.u32 %v3535_v40, %v3534_v49  ;;  %v3539_v11 = vor.u32 %v3538_v16, %v3537_v24  ;;  %vm3543_vm12 = vcmp.lt.s32.totalorder %v3521_v14, 4 }
 0x29f   : > { %v3544_v59 = vsel %vm3540_vm6, %v3524_v31, %v3527_v32  ;;  %vm3394_vm13 = vweird.f32 %v12876_v5  ;;  %v3545_v2 = vsel %vm3543_vm12, %v3533_v33, 2102212464  ;;  %v3548_v48 = vsel %vm3540_vm6, %v3527_v32, %v3530_v62 }
 0x2a0   : > { %vm9184_vm14 = vcmp.lt.s32.totalorder %v9183_v6, 0  ;;  %v3552_v4 = vsel %vm3540_vm6, %v3530_v62, %v3533_v33  ;;  %v3546_v21 = vsel %vm3542_vm10, %v3530_v62, %v3545_v2  ;;  %v3549_v36 = vsel %vm3543_vm12, %v3536_v1, 920167782 }
 0x2a1   : > { %v3270_v30 = vsel %vm9184_vm14, 0, %v9183_v6  ;;  %v3553_v23 = vsel %vm3543_vm12, %v3539_v11, 1326507024  ;;  %v9189_v35 = vadd.s32 4294967169, %v3409_v38  ;;  %v3285_v15 = vsub.s32 4, %v13076_v55 }
 0x2a2   : > { %v3271_v45 = vsub.s32 32, %v3270_v30  ;;  %v3272_v57 = vshll.u32 %v13092_v39, %v3270_v30  ;;  %v3275_v10 = vsub.s32 4294967266, %v3270_v30  ;;  %v3547_v46 = vsel %vm3541_vm9, %v3544_v59, %v3546_v21 }
 0x2a3   : > { %v3550_v63 = vsel %vm3542_vm10, %v3533_v33, %v3549_v36  ;;  %v3554_v20 = vsel %vm3542_vm10, %v3536_v1, %v3553_v23  ;;  %vm7880_vm15 = vcmp.lt.f32.partialorder %v12873_v12, 5.0  ;;  %v3415_v32 = vadd.s32 1, %v9189_v35 }
 0x2a4   : > { %v3273_v61 = vshrl.u32 %v13090_v8, %v3271_v45  ;;  %v3276_v0 = vadd.s32 127, %v3275_v10  ;;  %v3551_v9 = vsel %vm3541_vm9, %v3548_v48, %v3550_v63  ;;  %v3555_v34 = vsel %vm3541_vm9, %v3552_v4, %v3554_v20 }
 0x2a5   : > { %v13140_v39 = vmul.u32.u64.low %v13102_v19, %v3555_v34  ;;  %v13141_v47 = vmul.u32.u64.high %v13102_v19, %v3555_v34, %v13140_v39  ;;  %v13144_v52 = vmul.u32.u64.low %v13102_v19, %v3551_v9  ;;  %v13145_v28 = vmul.u32.u64.high %v13102_v19, %v3551_v9, %v13144_v52 }
 0x2a6   : > { %v10174_v54 = vpop.eup %10173  ;;  %v3274_v8 = vor.u32 %v3273_v61, %v3272_v57  ;;  %v3277_v31 = vshll.u32 %v3276_v0, 23  ;;  %v3286_v14 = vsel %vm3201_vm8, %v3285_v15, %v13076_v55  ;;  %v3563_v3 = vmul.u32 %v13102_v19, %v3547_v46 }
 0x2a7   : > { %v10176_v27 = vpop.eup %10175  ;;  %v3401_v38 = vxor.u32 2147483648, %v10174_v54  ;;  %v3412_v25 = vand.u32 8388607, %v3405_v51  ;;  %vm3416_vm1 = vcmp.gt.s32.totalorder %v3415_v32, 0  ;;  %vm13160_vm2 = vcmp.le.f32.partialorder %v3199_v53, 0.7853982 }
 0x2a8   : > { %v3398_v62 = vxor.u32 2147483648, %v10176_v27  ;;  %v3278_v40 = vor.u32 4788187, %v3277_v31  ;;  %v3281_v24 = vcvt.s32.f32 %v3274_v8  ;;  %vm3565_vm3 = vc.u32 %v13141_v47, %v13144_v52 }
 0x2a9   : > { %v3402_v49 = vsel %vm3400_vm5, %v3401_v38, %v10176_v27  ;;  %v3566_v55 = vadd.s32 1, %v13145_v28  ;;  %v3417_v1 = vsel %vm3416_vm1, %v3415_v32, 0  ;;  %v844_v11 = vmul.f32 %v13097_v43, %v13097_v43  ;;  %v552_v38 = vpop.permute.xlu0 %551 }
 0x2aa   : > { %v3399_v16 = vsel %vm3397_vm7, %v10174_v54, %v3398_v62  ;;  %v3279_v33 = vand.u32 2147483647, %v3278_v40  ;;  %v3288_v53 = vsel %vm13160_vm2, 0, %v3286_v14  ;;  %v3419_v48 = vand.u32 31, %v3417_v1 }
 0x2ab   : > { %v3403_v19 = vsel %vm3396_vm11, %v3399_v16, %v3402_v49  ;;  %v3567_v2 = vsel %vm3565_vm3, %v3566_v55, %v13145_v28  ;;  %v3413_v36 = vor.u32 8388608, %v3412_v25  ;;  %v3418_v15 = vshrl.u32 %v3417_v1, 5 }
 0x2ac   : > { %v3404_v59 = vsel %vm3394_vm13, nan, %v3403_v19  ;;  %v3282_v30 = vmul.f32 %v3281_v24, %v3279_v33  ;;  %v3568_v21 = vadd.s32 %v3567_v2, %v3563_v3  ;;  %v3420_v50 = vsub.s32 32, %v3419_v48 }
 0x2ad   : > { %v7752_v4 = vadd.f32 1.0, %v3404_v59  ;;  %v3422_v23 = vshll.u32 %v17469_v17, %v3419_v48  ;;  %v3425_v45 = vshll.u32 %v17470_v22, %v3419_v48  ;;  %v3428_v43 = vshll.u32 %v17446_v29, %v3419_v48 }
 0x2ae   : > { %v3283_v5 = vxor.u32 2147483648, %v3282_v30  ;;  %v3569_v10 = vadd.s32 536870912, %v3568_v21  ;;  %v3431_v35 = vshll.u32 %v17447_v56, %v3419_v48  ;;  %v3423_v46 = vshrl.u32 %v17470_v22, %v3420_v50 }
 0x2af   : > { %v7816_v57 = vmul.f32 0.5, %v7752_v4  ;;  %v3426_v63 = vshrl.u32 %v17446_v29, %v3420_v50  ;;  %v3429_v20 = vshrl.u32 %v17447_v56, %v3420_v50  ;;  %v3432_v34 = vshrl.u32 %v17428_v7, %v3420_v50 }
 0x2b0   : > { %v3284_v0 = vsel %vm3201_vm8, %v3283_v5, %v3282_v30  ;;  %v13187_v9 = vshrl.u32 %v3569_v10, 30  ;;  %v3421_v39 = vshrl.u32 %v17469_v17, %v3420_v50  ;;  %v3424_v28 = vor.u32 %v3423_v46, %v3422_v23 }
 0x2b1   : > { %v7944_v61 = vsel %vm7880_vm15, %v7816_v57, 0.0  ;;  %v3287_v54 = vsel %vm13160_vm2, %v12896_v60, %v3284_v0  ;;  %v3427_v27 = vor.u32 %v3426_v63, %v3425_v45  ;;  %v3430_v8 = vor.u32 %v3429_v20, %v3428_v43 }
 0x2b2   : > { %8676 = vperm.xlu1 %9916, %v7944_v61   ;;  %10177 = vcosq.f32 %v3287_v54  ;;  %v3571_v12 = vshll.u32 %v13187_v9, 30  ;;  %v3433_v31 = vor.u32 %v3432_v34, %v3431_v35  ;;  %v3434_v32 = vshll.u32 %v17428_v7, %v3419_v48 }
 0x2b3   : > { %10179 = vsinq.f32 %v3287_v54  ;;  %v3435_v62 = vshrl.u32 %v17451_v42, %v3420_v50  ;;  %vm3437_vm4 = vcmp.lt.s32.totalorder %v3418_v15, 1  ;;  %v3292_v14 = vand.u32 3, %v3288_v53 }
 0x2b4   : > { %v13197_v3 = vsub.s32 %v3568_v21, %v3571_v12  ;;  %v13199_v25 = vshll.u32 %v3413_v36, 8  ;;  %v779_v49 = vsub.f32 %v552_v38, %v12840_v26  ;;  %vm3438_vm5 = vcmp.lt.s32.totalorder %v3418_v15, 2 }
 0x2b5   : > { %v3436_v40 = vor.u32 %v3435_v62, %v3434_v32  ;;  %vm3439_vm6 = vcmp.lt.s32.totalorder %v3418_v15, 3  ;;  %vm3440_vm7 = vcmp.lt.s32.totalorder %v3418_v15, 4  ;;  %v3441_v16 = vsel %vm3437_vm4, %v3421_v39, %v3424_v28 }
 0x2b6   : > { %v3574_v24 = vsub.s32 0, %v13197_v3  ;;  %v3442_v6 = vsel %vm3440_vm7, %v3430_v8, 2102212464  ;;  %v3445_v55 = vsel %vm3437_vm4, %v3424_v28, %v3427_v27  ;;  %v3446_v33 = vsel %vm3440_vm7, %v3433_v31, 920167782  ;;  %v13225_v28 = vld [vmem:[%s10649_s28 + $0xc8] sm:$0xff] }
 0x2b7   : > { %v3443_v19 = vsel %vm3439_vm6, %v3427_v27, %v3442_v6  ;;  %v3449_v1 = vsel %vm3437_vm4, %v3427_v27, %v3430_v8  ;;  %v3450_v59 = vsel %vm3440_vm7, %v3436_v40, 1326507024  ;;  %vm3291_vm8 = vweird.f32 %v12896_v60 }
 0x2b8   : > { %vm3293_vm9 = vcmp.lt.s32.totalorder %v3292_v14, 2  ;;  %v9194_v53 = vmin.u32 %v3574_v24, %v13197_v3  ;;  %v3447_v2 = vsel %vm3439_vm6, %v3430_v8, %v3446_v33  ;;  %v3451_v26 = vsel %vm3439_vm6, %v3433_v31, %v3450_v59 }
 0x2b9   : > { %v908_v48 = vmul.f32 -259.48502, %v844_v11  ;;  %v843_v4 = vmul.f32 %v779_v49, %v779_v49  ;;  %v3444_v21 = vsel %vm3438_vm5, %v3441_v16, %v3443_v19  ;;  %v3448_v36 = vsel %vm3438_vm5, %v3445_v55, %v3447_v2 }
 0x2ba   : > { %v3576_v30 = vclz %v9194_v53  ;;  %v3452_v50 = vsel %vm3438_vm5, %v3449_v1, %v3451_v26  ;;  %v13213_v43 = vmul.u32.u64.low %v13199_v25, %v3448_v36  ;;  %v13214_v57 = vmul.u32.u64.high %v13199_v25, %v3448_v36, %v13213_v43  ;;  %v13249_v1 = vld [vmem:[%s10649_s28 + $0xc0] sm:$0xff] }
 0x2bb   : > { %v13209_v23 = vmul.u32.u64.low %v13199_v25, %v3452_v50  ;;  %v13210_v45 = vmul.u32.u64.high %v13199_v25, %v3452_v50, %v13209_v23  ;;  %vm3294_vm10 = vcmp.eq.s32.totalorder %v3292_v14, 0  ;;  %vm3297_vm11 = vcmp.eq.s32.totalorder %v3292_v14, 2 }
 0x2bc   : > { %v10178_v5 = vpop.eup %10177  ;;  %vm7879_vm12 = vcmp.lt.f32.partialorder %v12893_v18, 5.0  ;;  %v9195_v11 = vadd.s32 4294967294, %v3576_v30  ;;  %v907_v10 = vmul.f32 -259.48502, %v843_v4  ;;  %v3564_v46 = vadd.s32 %v13144_v52, %v13141_v47 }
 0x2bd   : > { %v10180_v35 = vpop.eup %10179  ;;  %v3298_v15 = vxor.u32 2147483648, %v10178_v5  ;;  %v3594_v63 = vsub.s32 4, %v13187_v9  ;;  %v997_v20 = vmul.f32 1.442695, %v908_v48  ;;  %v3460_v0 = vmul.u32 %v13199_v25, %v3444_v21  ;;  %v567_v21 = vpop.permute.xlu1 %566 }
 0x2be   : > { %v3295_v61 = vxor.u32 2147483648, %v10180_v35  ;;  %vm9196_vm13 = vcmp.lt.s32.totalorder %v9195_v11, 0  ;;  %v995_v34 = vmul.f32 1.442695, %v907_v10  ;;  %vm3462_vm14 = vc.u32 %v13210_v45, %v13213_v43 }
 0x2bf   : > { %v3299_v54 = vsel %vm3297_vm11, %v3298_v15, %v10180_v35  ;;  %v3579_v39 = vsel %vm9196_vm13, 0, %v9195_v11  ;;  %v13228_v27 = vmul.f32 0.62831855, %v13225_v28  ;;  %v3463_v31 = vadd.s32 1, %v13214_v57  ;;  %v562_v11 = vpop.permute.xlu0 %561  ;;  %v13272_v35 = vld [vmem:[%s17404_s1] ss:$0 sm:$0xff] }
 0x2c0   : > { %v3296_v47 = vsel %vm3294_vm10, %v10178_v5, %v3295_v61  ;;  %v3580_v52 = vsub.s32 32, %v3579_v39  ;;  %v3581_v38 = vshll.u32 %v13197_v3, %v3579_v39  ;;  %v3584_v12 = vsub.s32 4294967266, %v3579_v39 }
 0x2c1   : > { %v3300_v8 = vsel %vm3293_vm9, %v3296_v47, %v3299_v54  ;;  %10181 = vpow2.f32 %v995_v34  ;;  %v3714_v32 = vand.u32 2147483647, %v13228_v27  ;;  %vm3510_vm15 = vcmp.lt.s32.totalorder %v13022_v41, 0 }
 0x2c2   : > { %v3301_v62 = vsel %vm3291_vm8, nan, %v3300_v8  ;;  %v3582_v25 = vshrl.u32 %v3564_v46, %v3580_v52  ;;  %v3585_v49 = vadd.s32 127, %v3584_v12  ;;  %10183 = vpow2.f32 %v997_v20 }
 0x2c3   : > { %v7751_v40 = vadd.f32 1.0, %v3301_v62  ;;  %v3464_v14 = vsel %vm3462_vm14, %v3463_v31, %v13214_v57  ;;  %v3717_v3 = vand.u32 2139095040, %v13228_v27  ;;  %v3595_v60 = vsel %vm3510_vm15, %v3594_v63, %v13187_v9 }
 0x2c4   : > { %v3583_v24 = vor.u32 %v3582_v25, %v3581_v38  ;;  %v3586_v16 = vshll.u32 %v3585_v49, 23  ;;  %v3465_v6 = vadd.s32 %v3464_v14, %v3460_v0  ;;  %v3721_v33 = vand.u32 8388607, %v3714_v32 }
 0x2c5   : > { %v7815_v55 = vmul.f32 0.5, %v7751_v40  ;;  %v3718_v19 = vshrl.u32 %v3717_v3, 23  ;;  %v13252_v59 = vmul.f32 0.62831855, %v13249_v1  ;;  %vm13258_vm1 = vcmp.le.f32.partialorder %v3508_v44, 0.7853982 }
 0x2c6   : > { %v3587_v53 = vor.u32 4788187, %v3586_v16  ;;  %v3590_v2 = vcvt.s32.f32 %v3583_v24  ;;  %v3466_v26 = vadd.s32 536870912, %v3465_v6  ;;  %v3597_v50 = vsel %vm13258_vm1, 0, %v3595_v60 }
 0x2c7   : > { %v7943_v48 = vsel %vm7879_vm12, %v7815_v55, 0.0  ;;  %v9201_v4 = vadd.s32 4294967169, %v3718_v19  ;;  %v3611_v30 = vand.u32 2147483647, %v13252_v59  ;;  %v3722_v57 = vor.u32 8388608, %v3721_v33 }
 0x2c8   : > { %8671 = vperm.xlu0 %9915, %v7943_v48   ;;  %v3588_v36 = vand.u32 2147483647, %v3587_v53  ;;  %v13265_v23 = vshrl.u32 %v3466_v26, 30  ;;  %v3614_v5 = vand.u32 2139095040, %v13252_v59  ;;  %v782_v15 = vsub.f32 %v567_v21, %v13272_v35 }
 0x2c9   : > { %v3724_v18 = vadd.s32 1, %v9201_v4  ;;  %v13275_v63 = vand.u32 3, %v3597_v50  ;;  %v13279_v20 = vand.u32 8388607, %v3611_v30  ;;  %v781_v39 = vsub.f32 %v562_v11, %v13272_v35 }
 0x2ca   : > { %v3591_v44 = vmul.f32 %v3590_v2, %v3588_v36  ;;  %v3468_v10 = vshll.u32 %v13265_v23, 30  ;;  %v3461_v47 = vadd.s32 %v13213_v43, %v13210_v45  ;;  %v13287_v38 = vshll.u32 %v3722_v57, 8 }
 0x2cb   : > { %v10182_v46 = vpop.eup %10181  ;;  %vm3725_vm2 = vcmp.gt.s32.totalorder %v3724_v18, 0  ;;  %v3615_v12 = vshrl.u32 %v3614_v5, 23  ;;  %v3491_v62 = vsub.s32 4, %v13265_v23  ;;  %v13294_v25 = vmul.f32 %v782_v15, %v782_v15 }
 0x2cc   : > { %v10184_v61 = vpop.eup %10183  ;;  %v3592_v0 = vxor.u32 2147483648, %v3591_v44  ;;  %v13281_v34 = vsub.s32 %v3465_v6, %v3468_v10  ;;  %v3726_v54 = vsel %vm3725_vm2, %v3724_v18, 0  ;;  %9539 = vmatprep.mubr.msk.f32.mxu0 %vm7991_vm0, %v10182_v46  ;;  %v3619_v40 = vor.u32 8388608, %v13279_v20 }
 0x2cd   : > { %v3728_v52 = vand.u32 31, %v3726_v54  ;;  %9540 = vmatmul.mubr.msk.f32.gmra.mrb[24].mxu0 %vm7991_vm0, %v10184_v61  ;;  %v13303_v24 = vmul.f32 %v781_v39, %v781_v39  ;;  %v3727_v16 = vshrl.u32 %v3726_v54, 5  ;;  %v9197_v6 = vadd.s32 4294967169, %v3615_v12 }
 0x2ce   : > { %v3593_v8 = vsel %vm3510_vm15, %v3592_v0, %v3591_v44  ;;  %v3471_v31 = vsub.s32 0, %v13281_v34  ;;  %vm3606_vm3 = vcmp.eq.s32.totalorder %v13275_v63, 2  ;;  %vm3603_vm4 = vcmp.eq.s32.totalorder %v13275_v63, 0 }
 0x2cf   : > { %v3596_v49 = vsel %vm13258_vm1, %v13022_v41, %v3593_v8  ;;  %v3729_v45 = vsub.s32 32, %v3728_v52  ;;  %v3731_v43 = vshll.u32 %v17469_v17, %v3728_v52  ;;  %v3734_v3 = vshll.u32 %v17470_v22, %v3728_v52 }
 0x2d0   : > { %10185 = vcosq.f32 %v3596_v49  ;;  %v9190_v14 = vmin.u32 %v3471_v31, %v13281_v34  ;;  %v3737_v33 = vshll.u32 %v17446_v29, %v3728_v52  ;;  %v3740_v26 = vshll.u32 %v17447_v56, %v3728_v52 }
 0x2d1   : > { %10187 = vsinq.f32 %v3596_v49  ;;  %v3732_v60 = vshrl.u32 %v17470_v22, %v3729_v45  ;;  %v3735_v19 = vshrl.u32 %v17446_v29, %v3729_v45  ;;  %v3738_v53 = vshrl.u32 %v17447_v56, %v3729_v45 }
 0x2d2   : > { %v3473_v55 = vclz %v9190_v14  ;;  %v3741_v48 = vshrl.u32 %v17428_v7, %v3729_v45  ;;  %v3743_v9 = vshll.u32 %v17428_v7, %v3728_v52  ;;  %vm3602_vm5 = vcmp.lt.s32.totalorder %v13275_v63, 2 }
 0x2d3   : > { %v3733_v2 = vor.u32 %v3732_v60, %v3731_v43  ;;  %v3730_v21 = vshrl.u32 %v17469_v17, %v3729_v45  ;;  %v3736_v36 = vor.u32 %v3735_v19, %v3734_v3  ;;  %v3744_v50 = vshrl.u32 %v17451_v42, %v3729_v45 }
 0x2d4   : > { %v9191_v4 = vadd.s32 4294967294, %v3473_v55  ;;  %vm3600_vm6 = vweird.f32 %v13022_v41  ;;  %vm3407_vm7 = vcmp.lt.s32.totalorder %v13082_v37, 0  ;;  %v3739_v57 = vor.u32 %v3738_v53, %v3737_v33 }
 0x2d5   : > { %v3742_v18 = vor.u32 %v3741_v48, %v3740_v26  ;;  %vm3746_vm8 = vcmp.lt.s32.totalorder %v3727_v16, 1  ;;  %vm3747_vm9 = vcmp.lt.s32.totalorder %v3727_v16, 2  ;;  %v3745_v5 = vor.u32 %v3744_v50, %v3743_v9 }
 0x2d6   : > { %vm9192_vm10 = vcmp.lt.s32.totalorder %v9191_v4, 0  ;;  %vm3748_vm11 = vcmp.lt.s32.totalorder %v3727_v16, 3  ;;  %vm3749_vm12 = vcmp.lt.s32.totalorder %v3727_v16, 4  ;;  %v3754_v10 = vsel %vm3746_vm8, %v3733_v2, %v3736_v36 }
 0x2d7   : > { %v3476_v11 = vsel %vm9192_vm10, 0, %v9191_v4  ;;  %v3751_v44 = vsel %vm3749_vm12, %v3739_v57, 2102212464  ;;  %v3755_v15 = vsel %vm3749_vm12, %v3742_v18, 920167782  ;;  %v3750_v54 = vsel %vm3746_vm8, %v3730_v21, %v3733_v2 }
 0x2d8   : > { %v3477_v46 = vsub.s32 32, %v3476_v11  ;;  %v3478_v61 = vshll.u32 %v13281_v34, %v3476_v11  ;;  %v3481_v0 = vsub.s32 4294967266, %v3476_v11  ;;  %v3752_v39 = vsel %vm3748_vm11, %v3736_v36, %v3751_v44 }
 0x2d9   : > { %v3756_v52 = vsel %vm3748_vm11, %v3739_v57, %v3755_v15  ;;  %v3758_v12 = vsel %vm3746_vm8, %v3736_v36, %v3739_v57  ;;  %v3759_v8 = vsel %vm3749_vm12, %v3745_v5, 1326507024  ;;  %v3753_v26 = vsel %vm3747_vm9, %v3750_v54, %v3752_v39 }
 0x2da   : > { %v10186_v31 = vpop.eup %10185  ;;  %v3479_v49 = vshrl.u32 %v3461_v47, %v3477_v46  ;;  %v3482_v45 = vadd.s32 127, %v3481_v0  ;;  %v3757_v43 = vsel %vm3747_vm9, %v3754_v10, %v3756_v52  ;;  %v3760_v14 = vsel %vm3748_vm11, %v3742_v18, %v3759_v8 }
 0x2db   : > { %v10188_v3 = vpop.eup %10187  ;;  %v3607_v60 = vxor.u32 2147483648, %v10186_v31  ;;  %v3761_v34 = vsel %vm3747_vm9, %v3758_v12, %v3760_v14  ;;  %v13329_v55 = vmul.u32.u64.low %v13287_v38, %v3757_v43  ;;  %v13330_v19 = vmul.u32.u64.high %v13287_v38, %v3757_v43, %v13329_v55 }
 0x2dc   : > { %v3604_v33 = vxor.u32 2147483648, %v10188_v3  ;;  %v3480_v53 = vor.u32 %v3479_v49, %v3478_v61  ;;  %v3483_v2 = vshll.u32 %v3482_v45, 23  ;;  %v3621_v4 = vadd.s32 1, %v9197_v6 }
 0x2dd   : > { %v3608_v47 = vsel %vm3606_vm3, %v3607_v60, %v10188_v3  ;;  %v13337_v48 = vmul.u32.u64.low %v13287_v38, %v3761_v34  ;;  %v13338_v9 = vmul.u32.u64.high %v13287_v38, %v3761_v34, %v13337_v48  ;;  %v13347_v16 = vsel %vm3407_vm7, %v3491_v62, %v13265_v23 }
 0x2de   : > { %v3605_v21 = vsel %vm3603_vm4, %v10186_v31, %v3604_v33  ;;  %v3484_v36 = vor.u32 4788187, %v3483_v2  ;;  %v3487_v50 = vcvt.s32.f32 %v3480_v53  ;;  %v3769_v18 = vmul.u32 %v13287_v38, %v3753_v26 }
 0x2df   : > { %v3609_v57 = vsel %vm3602_vm5, %v3605_v21, %v3608_v47  ;;  %v3772_v5 = vadd.s32 1, %v13330_v19  ;;  %vm3622_vm13 = vcmp.gt.s32.totalorder %v3621_v4, 0  ;;  %vm7882_vm14 = vcmp.lt.f32.partialorder %v13019_v58, 5.0 }
 0x2e0   : > { %v3610_v6 = vsel %vm3600_vm6, nan, %v3609_v57  ;;  %v3485_v11 = vand.u32 2147483647, %v3484_v36  ;;  %v3623_v44 = vsel %vm3622_vm13, %v3621_v4, 0  ;;  %vm13358_vm15 = vcmp.le.f32.partialorder %v3405_v51, 0.7853982 }
 0x2e1   : > { %v7754_v10 = vadd.f32 1.0, %v3610_v6  ;;  %vm3771_vm1 = vc.u32 %v13338_v9, %v13329_v55  ;;  %v910_v63 = vmul.f32 -259.48502, %v13294_v25  ;;  %v3494_v41 = vsel %vm13358_vm15, 0, %v13347_v16 }
 0x2e2   : > { %v3488_v38 = vmul.f32 %v3487_v50, %v3485_v11  ;;  %v3773_v62 = vsel %vm3771_vm1, %v3772_v5, %v13330_v19  ;;  %v3625_v15 = vand.u32 31, %v3623_v44  ;;  %v13371_v51 = vshll.u32 %v3619_v40, 8 }
 0x2e3   : > { %v7818_v46 = vmul.f32 0.5, %v7754_v10  ;;  %v3774_v61 = vadd.s32 %v3773_v62, %v3769_v18  ;;  %v909_v0 = vmul.f32 -259.48502, %v13303_v24  ;;  %v3624_v39 = vshrl.u32 %v3623_v44, 5 }
 0x2e4   : > { %v3489_v54 = vxor.u32 2147483648, %v3488_v38  ;;  %v3626_v52 = vsub.s32 32, %v3625_v15  ;;  %v3628_v25 = vshll.u32 %v17469_v17, %v3625_v15  ;;  %v3631_v31 = vshll.u32 %v17470_v22, %v3625_v15 }
 0x2e5   : > { %v7946_v12 = vsel %vm7882_vm14, %v7818_v46, 0.0  ;;  %v3775_v8 = vadd.s32 536870912, %v3774_v61  ;;  %v3634_v49 = vshll.u32 %v17446_v29, %v3625_v15  ;;  %v3637_v45 = vshll.u32 %v17447_v56, %v3625_v15  ;;  %v13413_v46 = vld [vmem:[%s10649_s28 + $0xd8] sm:$0xff] }
 0x2e6   : > { %8686 = vperm.xlu1 %9916, %v7946_v12   ;;  %v3490_v20 = vsel %vm3407_vm7, %v3489_v54, %v3488_v38  ;;  %v3629_v40 = vshrl.u32 %v17470_v22, %v3626_v52  ;;  %v3632_v24 = vshrl.u32 %v17446_v29, %v3626_v52  ;;  %v3635_v14 = vshrl.u32 %v17447_v56, %v3626_v52 }
 0x2e7   : > { %v3493_v58 = vsel %vm13358_vm15, %v13082_v37, %v3490_v20  ;;  %v13387_v43 = vshrl.u32 %v3775_v8, 30  ;;  %v3638_v3 = vshrl.u32 %v17428_v7, %v3626_v52  ;;  %v3627_v60 = vshrl.u32 %v17469_v17, %v3626_v52 }
 0x2e8   : > { %10189 = vcosq.f32 %v3493_v58  ;;  %v3630_v34 = vor.u32 %v3629_v40, %v3628_v25  ;;  %v3640_v19 = vshll.u32 %v17428_v7, %v3625_v15  ;;  %v3633_v53 = vor.u32 %v3632_v24, %v3631_v31 }
 0x2e9   : > { %10191 = vsinq.f32 %v3493_v58  ;;  %v3777_v33 = vshll.u32 %v13387_v43, 30  ;;  %v3636_v2 = vor.u32 %v3635_v14, %v3634_v49  ;;  %v3639_v26 = vor.u32 %v3638_v3, %v3637_v45 }
 0x2ea   : > { %v3641_v47 = vshrl.u32 %v17451_v42, %v3626_v52  ;;  %vm3643_vm2 = vcmp.lt.s32.totalorder %v3624_v39, 1  ;;  %vm3646_vm3 = vcmp.lt.s32.totalorder %v3624_v39, 4  ;;  %vm3645_vm4 = vcmp.lt.s32.totalorder %v3624_v39, 3 }
 0x2eb   : > { %v13395_v48 = vsub.s32 %v3774_v61, %v3777_v33  ;;  %v3648_v4 = vsel %vm3646_vm3, %v3636_v2, 2102212464  ;;  %v1001_v21 = vmul.f32 1.442695, %v910_v63  ;;  %v3647_v50 = vsel %vm3643_vm2, %v3627_v60, %v3630_v34 }
 0x2ec   : > { %v3642_v36 = vor.u32 %v3641_v47, %v3640_v19  ;;  %v3649_v16 = vsel %vm3645_vm4, %v3633_v53, %v3648_v4  ;;  %v999_v57 = vmul.f32 1.442695, %v909_v0  ;;  %vm3497_vm5 = vweird.f32 %v13082_v37 }
 0x2ed   : > { %v3780_v18 = vsub.s32 0, %v13395_v48  ;;  %vm3644_vm6 = vcmp.lt.s32.totalorder %v3624_v39, 2  ;;  %v3651_v5 = vsel %vm3643_vm2, %v3630_v34, %v3633_v53  ;;  %v3652_v6 = vsel %vm3646_vm3, %v3639_v26, 920167782 }
 0x2ee   : > { %v3498_v11 = vand.u32 3, %v3494_v41  ;;  %v3653_v44 = vsel %vm3645_vm4, %v3636_v2, %v3652_v6  ;;  %v3655_v10 = vsel %vm3643_vm2, %v3633_v53, %v3636_v2  ;;  %v3656_v23 = vsel %vm3646_vm3, %v3642_v36, 1326507024 }
 0x2ef   : > { %vm3716_vm7 = vcmp.lt.s32.totalorder %v13228_v27, 0  ;;  %v9202_v63 = vmin.u32 %v3780_v18, %v13395_v48  ;;  %v3650_v38 = vsel %vm3644_vm6, %v3647_v50, %v3649_v16  ;;  %10193 = vpow2.f32 %v1001_v21 }
 0x2f0   : > { %v3654_v62 = vsel %vm3644_vm6, %v3651_v5, %v3653_v44  ;;  %v3657_v15 = vsel %vm3645_vm4, %v3639_v26, %v3656_v23  ;;  %10195 = vpow2.f32 %v999_v57  ;;  %v13416_v41 = vmul.f32 0.62831855, %v13413_v46  ;;  %v13455_v5 = vld [vmem:[%s10649_s28 + $0xd0] sm:$0xff] }
 0x2f1   : > { %v3782_v61 = vclz %v9202_v63  ;;  %v3658_v0 = vsel %vm3644_vm6, %v3655_v10, %v3657_v15  ;;  %v13420_v54 = vmul.u32.u64.low %v13371_v51, %v3654_v62  ;;  %v13421_v52 = vmul.u32.u64.high %v13371_v51, %v3654_v62, %v13420_v54 }
 0x2f2   : > { %v10190_v25 = vpop.eup %10189  ;;  %vm3499_vm8 = vcmp.lt.s32.totalorder %v3498_v11, 2  ;;  %vm3503_vm9 = vcmp.eq.s32.totalorder %v3498_v11, 2  ;;  %v13425_v12 = vmul.u32.u64.low %v13371_v51, %v3658_v0  ;;  %v13426_v8 = vmul.u32.u64.high %v13371_v51, %v3658_v0, %v13425_v12 }
 0x2f3   : > { %v10192_v31 = vpop.eup %10191  ;;  %vm3500_vm10 = vcmp.eq.s32.totalorder %v3498_v11, 0  ;;  %v3504_v49 = vxor.u32 2147483648, %v10190_v25  ;;  %vm13430_vm11 = vcmp.le.f32.partialorder %v3714_v32, 0.7853982  ;;  %v9203_v20 = vadd.s32 4294967294, %v3782_v61 }
 0x2f4   : > { %v3923_v40 = vand.u32 2139095040, %v13416_v41  ;;  %v3501_v24 = vxor.u32 2147483648, %v10192_v31  ;;  %v3770_v45 = vadd.s32 %v13329_v55, %v13338_v9  ;;  %v3800_v58 = vsub.s32 4, %v13387_v43 }
 0x2f5   : > { %v3666_v14 = vmul.u32 %v13371_v51, %v3650_v38  ;;  %v3505_v3 = vsel %vm3503_vm9, %v3504_v49, %v10192_v31  ;;  %vm9204_vm12 = vcmp.lt.s32.totalorder %v9203_v20, 0  ;;  %v3669_v60 = vadd.s32 1, %v13421_v52 }
 0x2f6   : > { %v3924_v34 = vshrl.u32 %v3923_v40, 23  ;;  %v3502_v32 = vsel %vm3500_vm10, %v10190_v25, %v3501_v24  ;;  %v3785_v19 = vsel %vm9204_vm12, 0, %v9203_v20  ;;  %vm3668_vm13 = vc.u32 %v13426_v8, %v13420_v54 }
 0x2f7   : > { %v3920_v33 = vand.u32 2147483647, %v13416_v41  ;;  %v3506_v53 = vsel %vm3499_vm8, %v3502_v32, %v3505_v3  ;;  %v3786_v2 = vsub.s32 32, %v3785_v19  ;;  %v3787_v55 = vshll.u32 %v13395_v48, %v3785_v19 }
 0x2f8   : > { %v3790_v9 = vsub.s32 4294967266, %v3785_v19  ;;  %v3507_v51 = vsel %vm3497_vm5, nan, %v3506_v53  ;;  %v3801_v26 = vsel %vm3716_vm7, %v3800_v58, %v13387_v43  ;;  %v3670_v47 = vsel %vm3668_vm13, %v3669_v60, %v13421_v52 }
 0x2f9   : > { %v9209_v4 = vadd.s32 4294967169, %v3924_v34  ;;  %v10194_v21 = vpop.eup %10193  ;;  %v7753_v36 = vadd.f32 1.0, %v3507_v51  ;;  %v3788_v50 = vshrl.u32 %v3770_v45, %v3786_v2  ;;  %v3671_v57 = vadd.s32 %v3670_v47, %v3666_v14 }
 0x2fa   : > { %v3791_v16 = vadd.s32 127, %v3790_v9  ;;  %v10196_v18 = vpop.eup %10195  ;;  %vm7881_vm14 = vcmp.lt.f32.partialorder %v13079_v13, 5.0  ;;  %v3927_v48 = vand.u32 8388607, %v3920_v33  ;;  %v13458_v6 = vmul.f32 0.62831855, %v13455_v5 }
 0x2fb   : > { %v3930_v37 = vadd.s32 1, %v9209_v4  ;;  %v7817_v43 = vmul.f32 0.5, %v7753_v36  ;;  %v3789_v11 = vor.u32 %v3788_v50, %v3787_v55  ;;  %v3672_v10 = vadd.s32 536870912, %v3671_v57  ;;  %9542 = vmatprep.mubr.msk.f32.mxu0 %vm7991_vm0, %v10196_v18 }
 0x2fc   : > { %v3792_v44 = vshll.u32 %v3791_v16, 23  ;;  %v3803_v23 = vsel %vm13430_vm11, 0, %v3801_v26  ;;  %9543 = vmatmul.mubr.msk.f32.gmra.mrb[26].mxu0 %vm7991_vm0, %v10194_v21  ;;  %v3928_v15 = vor.u32 8388608, %v3927_v48  ;;  %v3820_v25 = vand.u32 2139095040, %v13458_v6 }
 0x2fd   : > { %vm3931_vm15 = vcmp.gt.s32.totalorder %v3930_v37, 0  ;;  %v7945_v13 = vsel %vm7881_vm14, %v7817_v43, 0.0  ;;  %v3796_v38 = vcvt.s32.f32 %v3789_v11  ;;  %v13464_v62 = vshrl.u32 %v3672_v10, 30 }
 0x2fe   : > { %v3793_v63 = vor.u32 4788187, %v3792_v44  ;;  %8681 = vperm.xlu0 %9915, %v7945_v13   ;;  %v3932_v61 = vsel %vm3931_vm15, %v3930_v37, 0  ;;  %v13468_v12 = vand.u32 3, %v3803_v23  ;;  %v3817_v49 = vand.u32 2147483647, %v13458_v6 }
 0x2ff   : > { %v3674_v52 = vshll.u32 %v13464_v62, 30  ;;  %v3934_v31 = vand.u32 31, %v3932_v61  ;;  %v3667_v40 = vadd.s32 %v13420_v54, %v13426_v8  ;;  %v13475_v45 = vshrl.u32 %v3932_v61, 5 }
 0x300   : > { %v3794_v0 = vand.u32 2147483647, %v3793_v63  ;;  %v13479_v60 = vshll.u32 %v3928_v15, 8  ;;  %v3821_v53 = vshrl.u32 %v3820_v25, 23  ;;  %v13488_v55 = vand.u32 8388607, %v3817_v49 }
 0x301   : > { %v13473_v24 = vsub.s32 %v3671_v57, %v3674_v52  ;;  %v3935_v58 = vsub.s32 32, %v3934_v31  ;;  %v3937_v14 = vshll.u32 %v17469_v17, %v3934_v31  ;;  %v3940_v3 = vshll.u32 %v17470_v22, %v3934_v31 }
 0x302   : > { %v3797_v20 = vmul.f32 %v3796_v38, %v3794_v0  ;;  %v3943_v19 = vshll.u32 %v17446_v29, %v3934_v31  ;;  %vm3613_vm1 = vcmp.lt.s32.totalorder %v13252_v59, 0  ;;  %v3697_v26 = vsub.s32 4, %v13464_v62 }
 0x303   : > { %v3677_v32 = vsub.s32 0, %v13473_v24  ;;  %v3938_v2 = vshrl.u32 %v17470_v22, %v3935_v58  ;;  %v3941_v54 = vshrl.u32 %v17446_v29, %v3935_v58  ;;  %v3944_v8 = vshrl.u32 %v17447_v56, %v3935_v58 }
 0x304   : > { %v3798_v34 = vxor.u32 2147483648, %v3797_v20  ;;  %vm3952_vm2 = vcmp.lt.s32.totalorder %v13475_v45, 1  ;;  %v3936_v4 = vshrl.u32 %v17469_v17, %v3935_v58  ;;  %v3946_v57 = vshll.u32 %v17447_v56, %v3934_v31 }
 0x305   : > { %v9198_v51 = vmin.u32 %v3677_v32, %v13473_v24  ;;  %v3939_v21 = vor.u32 %v3938_v2, %v3937_v14  ;;  %v3942_v36 = vor.u32 %v3941_v54, %v3940_v3  ;;  %v3945_v16 = vor.u32 %v3944_v8, %v3943_v19 }
 0x306   : > { %v3799_v9 = vsel %vm3716_vm7, %v3798_v34, %v3797_v20  ;;  %v3947_v18 = vshrl.u32 %v17428_v7, %v3935_v58  ;;  %v3949_v48 = vshll.u32 %v17428_v7, %v3934_v31  ;;  %v3950_v37 = vshrl.u32 %v17451_v42, %v3935_v58 }
 0x307   : > { %v3802_v47 = vsel %vm13430_vm11, %v13228_v27, %v3799_v9  ;;  %v3679_v50 = vclz %v9198_v51  ;;  %vm13506_vm3 = vcmp.le.f32.partialorder %v3611_v30, 0.7853982  ;;  %vm3953_vm4 = vcmp.lt.s32.totalorder %v13475_v45, 2 }
 0x308   : > { %10197 = vcosq.f32 %v3802_v47  ;;  %vm3955_vm5 = vcmp.lt.s32.totalorder %v13475_v45, 4  ;;  %v9205_v11 = vadd.s32 4294967169, %v3821_v53  ;;  %vm3809_vm6 = vcmp.eq.s32.totalorder %v13468_v12, 0 }
 0x309   : > { %10199 = vsinq.f32 %v3802_v47  ;;  %v9199_v43 = vadd.s32 4294967294, %v3679_v50  ;;  %v3948_v44 = vor.u32 %v3947_v18, %v3946_v57  ;;  %v3951_v10 = vor.u32 %v3950_v37, %v3949_v48 }
 0x30a   : > { %vm3954_vm7 = vcmp.lt.s32.totalorder %v13475_v45, 3  ;;  %v3957_v23 = vsel %vm3955_vm5, %v3945_v16, 2102212464  ;;  %vm3808_vm8 = vcmp.lt.s32.totalorder %v13468_v12, 2  ;;  %v3956_v30 = vsel %vm3952_vm2, %v3936_v4, %v3939_v21 }
 0x30b   : > { %vm9200_vm9 = vcmp.lt.s32.totalorder %v9199_v43, 0  ;;  %v3958_v13 = vsel %vm3954_vm7, %v3942_v36, %v3957_v23  ;;  %v3960_v63 = vsel %vm3952_vm2, %v3939_v21, %v3942_v36  ;;  %vm3806_vm10 = vweird.f32 %v13228_v27 }
 0x30c   : > { %v3682_v38 = vsel %vm9200_vm9, 0, %v9199_v43  ;;  %v3961_v15 = vsel %vm3955_vm5, %v3948_v44, 920167782  ;;  %v3964_v61 = vsel %vm3952_vm2, %v3942_v36, %v3945_v16  ;;  %v3965_v0 = vsel %vm3955_vm5, %v3951_v10, 1326507024 }
 0x30d   : > { %v3683_v52 = vsub.s32 32, %v3682_v38  ;;  %v3684_v25 = vshll.u32 %v13473_v24, %v3682_v38  ;;  %v3687_v31 = vsub.s32 4294967266, %v3682_v38  ;;  %v3962_v20 = vsel %vm3954_vm7, %v3945_v16, %v3961_v15 }
 0x30e   : > { %v3698_v58 = vsel %vm3613_vm1, %v3697_v26, %v13464_v62  ;;  %v3963_v14 = vsel %vm3953_vm4, %v3960_v63, %v3962_v20  ;;  %v3966_v3 = vsel %vm3954_vm7, %v3948_v44, %v3965_v0  ;;  %v3827_v34 = vadd.s32 1, %v9205_v11 }
 0x30f   : > { %v3685_v32 = vshrl.u32 %v3667_v40, %v3683_v52  ;;  %v3688_v19 = vadd.s32 127, %v3687_v31  ;;  %v3959_v24 = vsel %vm3953_vm4, %v3956_v30, %v3958_v13  ;;  %v3967_v53 = vsel %vm3953_vm4, %v3964_v61, %v3966_v3 }
 0x310   : > { %v13545_v2 = vmul.u32.u64.low %v13479_v60, %v3967_v53  ;;  %v13546_v54 = vmul.u32.u64.high %v13479_v60, %v3967_v53, %v13545_v2  ;;  %v13549_v62 = vmul.u32.u64.low %v13479_v60, %v3963_v14  ;;  %v13550_v8 = vmul.u32.u64.high %v13479_v60, %v3963_v14, %v13549_v62 }
 0x311   : > { %vm3812_vm11 = vcmp.eq.s32.totalorder %v13468_v12, 2  ;;  %v3686_v40 = vor.u32 %v3685_v32, %v3684_v25  ;;  %v3689_v51 = vshll.u32 %v3688_v19, 23  ;;  %vm3828_vm12 = vcmp.gt.s32.totalorder %v3827_v34, 0 }
 0x312   : > { %v10198_v9 = vpop.eup %10197  ;;  %v3700_v45 = vsel %vm13506_vm3, 0, %v3698_v58  ;;  %v3825_v4 = vor.u32 8388608, %v13488_v55  ;;  %v3829_v21 = vsel %vm3828_vm12, %v3827_v34, 0  ;;  %v3975_v57 = vmul.u32 %v13479_v60, %v3959_v24 }
 0x313   : > { %v10200_v26 = vpop.eup %10199  ;;  %v3813_v47 = vxor.u32 2147483648, %v10198_v9  ;;  %v3690_v50 = vor.u32 4788187, %v3689_v51  ;;  %v3693_v16 = vcvt.s32.f32 %v3686_v40  ;;  %vm3977_vm13 = vc.u32 %v13546_v54, %v13549_v62 }
 0x314   : > { %v3810_v36 = vxor.u32 2147483648, %v10200_v26  ;;  %v3978_v48 = vadd.s32 1, %v13550_v8  ;;  %v13561_v37 = vshrl.u32 %v3829_v21, 5  ;;  %vm7884_vm14 = vcmp.lt.f32.partialorder %v13225_v28, 5.0 }
 0x315   : > { %v3814_v18 = vsel %vm3812_vm11, %v3813_v47, %v10200_v26  ;;  %v3691_v55 = vand.u32 2147483647, %v3690_v50  ;;  %v3831_v11 = vand.u32 31, %v3829_v21  ;;  %v13568_v10 = vand.u32 3, %v3700_v45  ;;  %v572_v47 = vpop.permute.xlu0 %571 }
 0x316   : > { %v3811_v43 = vsel %vm3809_vm6, %v10198_v9, %v3810_v36  ;;  %v3979_v60 = vsel %vm3977_vm13, %v3978_v48, %v13550_v8  ;;  %v13571_v23 = vshll.u32 %v3825_v4, 8  ;;  %vm3849_vm15 = vcmp.lt.s32.totalorder %v13561_v37, 1  ;;  %v577_v9 = vpop.permute.xlu1 %576 }
 0x317   : > { %v3815_v44 = vsel %vm3808_vm8, %v3811_v43, %v3814_v18  ;;  %v3694_v13 = vmul.f32 %v3693_v16, %v3691_v55  ;;  %v3980_v63 = vadd.s32 %v3979_v60, %v3975_v57  ;;  %v3832_v38 = vsub.s32 32, %v3831_v11 }
 0x318   : > { %v3816_v30 = vsel %vm3806_vm10, nan, %v3815_v44  ;;  %v3834_v61 = vshll.u32 %v17469_v17, %v3831_v11  ;;  %v3837_v0 = vshll.u32 %v17470_v22, %v3831_v11  ;;  %v3840_v31 = vshll.u32 %v17446_v29, %v3831_v11 }
 0x319   : > { %v7756_v15 = vadd.f32 1.0, %v3816_v30  ;;  %v3695_v12 = vxor.u32 2147483648, %v3694_v13  ;;  %v3981_v52 = vadd.s32 536870912, %v3980_v63  ;;  %v3835_v25 = vshrl.u32 %v17470_v22, %v3832_v38  ;;  %v13628_v30 = vld [vmem:[%s10649_s28 + $0xe8] sm:$0xff] }
 0x31a   : > { %v3838_v27 = vshrl.u32 %v17446_v29, %v3832_v38  ;;  %v3841_v58 = vshrl.u32 %v17447_v56, %v3832_v38  ;;  %v3843_v14 = vshll.u32 %v17447_v56, %v3831_v11  ;;  %v3833_v32 = vshrl.u32 %v17469_v17, %v3832_v38 }
 0x31b   : > { %v7820_v20 = vmul.f32 0.5, %v7756_v15  ;;  %v3696_v3 = vsel %vm3613_vm1, %v3695_v12, %v3694_v13  ;;  %v13585_v34 = vshrl.u32 %v3981_v52, 30  ;;  %v3844_v19 = vshrl.u32 %v17428_v7, %v3832_v38 }
 0x31c   : > { %v3699_v53 = vsel %vm13506_vm3, %v13252_v59, %v3696_v3  ;;  %v3836_v2 = vor.u32 %v3835_v25, %v3834_v61  ;;  %v3839_v8 = vor.u32 %v3838_v27, %v3837_v0  ;;  %v3842_v51 = vor.u32 %v3841_v58, %v3840_v31 }
 0x31d   : > { %v7948_v24 = vsel %vm7884_vm14, %v7820_v20, 0.0  ;;  %10201 = vcosq.f32 %v3699_v53  ;;  %v3983_v40 = vshll.u32 %v13585_v34, 30  ;;  %v3845_v26 = vor.u32 %v3844_v19, %v3843_v14 }
 0x31e   : > { %8696 = vperm.xlu1 %9916, %v7948_v24   ;;  %10203 = vsinq.f32 %v3699_v53  ;;  %v3846_v45 = vshll.u32 %v17428_v7, %v3831_v11  ;;  %v3847_v28 = vshrl.u32 %v17451_v42, %v3832_v38  ;;  %vm3852_vm1 = vcmp.lt.s32.totalorder %v13561_v37, 4 }
 0x31f   : > { %v13598_v4 = vsub.s32 %v3980_v63, %v3983_v40  ;;  %vm3851_vm2 = vcmp.lt.s32.totalorder %v13561_v37, 3  ;;  %v3854_v39 = vsel %vm3852_vm1, %v3842_v51, 2102212464  ;;  %v784_v21 = vsub.f32 %v577_v9, %v13272_v35 }
 0x320   : > { %v3848_v36 = vor.u32 %v3847_v28, %v3846_v45  ;;  %v3853_v50 = vsel %vm3849_vm15, %v3833_v32, %v3836_v2  ;;  %v3855_v16 = vsel %vm3851_vm2, %v3839_v8, %v3854_v39  ;;  %v783_v57 = vsub.f32 %v572_v47, %v13272_v35 }
 0x321   : > { %v3986_v18 = vsub.s32 0, %v13598_v4  ;;  %vm3850_vm3 = vcmp.lt.s32.totalorder %v13561_v37, 2  ;;  %v3857_v48 = vsel %vm3849_vm15, %v3836_v2, %v3839_v8  ;;  %v3858_v43 = vsel %vm3852_vm1, %v3845_v26, 920167782 }
 0x322   : > { %vm3703_vm4 = vweird.f32 %v13252_v59  ;;  %vm3705_vm5 = vcmp.lt.s32.totalorder %v13568_v10, 2  ;;  %v3859_v55 = vsel %vm3851_vm2, %v3842_v51, %v3858_v43  ;;  %v3861_v35 = vsel %vm3849_vm15, %v3839_v8, %v3842_v51 }
 0x323   : > { %v3862_v11 = vsel %vm3852_vm1, %v3848_v36, 1326507024  ;;  %vm3706_vm6 = vcmp.eq.s32.totalorder %v13568_v10, 0  ;;  %v9210_v44 = vmin.u32 %v3986_v18, %v13598_v4  ;;  %v3856_v60 = vsel %vm3850_vm3, %v3853_v50, %v3855_v16 }
 0x324   : > { %v13631_v13 = vmul.f32 0.62831855, %v13628_v30  ;;  %v3860_v63 = vsel %vm3850_vm3, %v3857_v48, %v3859_v55  ;;  %v3863_v38 = vsel %vm3851_vm2, %v3845_v26, %v3862_v11  ;;  %v848_v15 = vmul.f32 %v784_v21, %v784_v21 }
 0x325   : > { %v847_v61 = vmul.f32 %v783_v57, %v783_v57  ;;  %vm3922_vm7 = vcmp.lt.s32.totalorder %v13416_v41, 0  ;;  %v3988_v0 = vclz %v9210_v44  ;;  %v3864_v12 = vsel %vm3850_vm3, %v3861_v35, %v3863_v38 }
 0x326   : > { %v13641_v52 = vmul.u32.u64.low %v13571_v23, %v3860_v63  ;;  %v13642_v25 = vmul.u32.u64.high %v13571_v23, %v3860_v63, %v13641_v52  ;;  %v13646_v31 = vmul.u32.u64.low %v13571_v23, %v3864_v12  ;;  %v13647_v20 = vmul.u32.u64.high %v13571_v23, %v3864_v12, %v13646_v31 }
 0x327   : > { %v912_v27 = vmul.f32 -259.48502, %v848_v15  ;;  %v911_v58 = vmul.f32 -259.48502, %v847_v61  ;;  %v10202_v14 = vpop.eup %10201  ;;  %vm3709_vm8 = vcmp.eq.s32.totalorder %v13568_v10, 2  ;;  %vm7883_vm9 = vcmp.lt.f32.partialorder %v13249_v1, 5.0 }
 0x328   : > { %v3976_v37 = vadd.s32 %v13549_v62, %v13546_v54  ;;  %v9211_v3 = vadd.s32 4294967294, %v3988_v0  ;;  %v4006_v32 = vsub.s32 4, %v13585_v34  ;;  %v10204_v19 = vpop.eup %10203  ;;  %v3710_v24 = vxor.u32 2147483648, %v10202_v14 }
 0x329   : > { %v3872_v53 = vmul.u32 %v13571_v23, %v3856_v60  ;;  %v1005_v2 = vmul.f32 1.442695, %v912_v27  ;;  %v4129_v8 = vand.u32 2139095040, %v13631_v13  ;;  %v3707_v9 = vxor.u32 2147483648, %v10204_v19 }
 0x32a   : > { %vm9212_vm10 = vcmp.lt.s32.totalorder %v9211_v3, 0  ;;  %v3875_v40 = vadd.s32 1, %v13642_v25  ;;  %v4126_v51 = vand.u32 2147483647, %v13631_v13  ;;  %v3711_v26 = vsel %vm3709_vm8, %v3710_v24, %v10204_v19 }
 0x32b   : > { %v3991_v54 = vsel %vm9212_vm10, 0, %v9211_v3  ;;  %vm3874_vm11 = vc.u32 %v13647_v20, %v13641_v52  ;;  %v1003_v62 = vmul.f32 1.442695, %v911_v58  ;;  %v3708_v23 = vsel %vm3706_vm6, %v10202_v14, %v3707_v9 }
 0x32c   : > { %v3992_v47 = vsub.s32 32, %v3991_v54  ;;  %v3993_v45 = vshll.u32 %v13598_v4, %v3991_v54  ;;  %v3996_v28 = vsub.s32 4294967266, %v3991_v54  ;;  %v3712_v39 = vsel %vm3705_vm5, %v3708_v23, %v3711_v26 }
 0x32d   : > { %v3876_v21 = vsel %vm3874_vm11, %v3875_v40, %v13642_v25  ;;  %10205 = vpow2.f32 %v1005_v2  ;;  %v4130_v36 = vshrl.u32 %v4129_v8, 23  ;;  %v3713_v50 = vsel %vm3703_vm4, nan, %v3712_v39 }
 0x32e   : > { %v3994_v16 = vshrl.u32 %v3976_v37, %v3992_v47  ;;  %v3997_v57 = vadd.s32 127, %v3996_v28  ;;  %v3877_v18 = vadd.s32 %v3876_v21, %v3872_v53  ;;  %v7755_v48 = vadd.f32 1.0, %v3713_v50  ;;  %v13693_v37 = vld [vmem:[%s10649_s28 + $0xe0] sm:$0xff] }
 0x32f   : > { %v4007_v43 = vsel %vm3922_vm7, %v4006_v32, %v13585_v34  ;;  %10207 = vpow2.f32 %v1003_v62  ;;  %v9217_v4 = vadd.s32 4294967169, %v4130_v36  ;;  %v4133_v11 = vand.u32 8388607, %v4126_v51 }
 0x330   : > { %v3995_v55 = vor.u32 %v3994_v16, %v3993_v45  ;;  %v3998_v10 = vshll.u32 %v3997_v57, 23  ;;  %v3878_v35 = vadd.s32 536870912, %v3877_v18  ;;  %v7819_v44 = vmul.f32 0.5, %v7755_v48 }
 0x331   : > { %v4136_v60 = vadd.s32 1, %v9217_v4  ;;  %vm13677_vm12 = vcmp.le.f32.partialorder %v3920_v33, 0.7853982  ;;  %v4134_v33 = vor.u32 8388608, %v4133_v11  ;;  %v13696_v1 = vmul.f32 0.62831855, %v13693_v37 }
 0x332   : > { %v3999_v63 = vor.u32 4788187, %v3998_v10  ;;  %v4002_v38 = vcvt.s32.f32 %v3995_v55  ;;  %v13681_v34 = vshrl.u32 %v3878_v35, 30  ;;  %v7947_v15 = vsel %vm7883_vm9, %v7819_v44, 0.0 }
 0x333   : > { %v4009_v61 = vsel %vm13677_vm12, 0, %v4007_v43  ;;  %vm4137_vm13 = vcmp.gt.s32.totalorder %v4136_v60, 0  ;;  %8691 = vperm.xlu0 %9915, %v7947_v15   ;;  %v3873_v32 = vadd.s32 %v13641_v52, %v13647_v20  ;;  %v13704_v40 = vshll.u32 %v4134_v33, 8 }
 0x334   : > { %v4000_v0 = vand.u32 2147483647, %v3999_v63  ;;  %v3880_v12 = vshll.u32 %v13681_v34, 30  ;;  %v4138_v25 = vsel %vm4137_vm13, %v4136_v60, 0  ;;  %v13688_v58 = vand.u32 3, %v4009_v61 }
 0x335   : > { %v4140_v31 = vand.u32 31, %v4138_v25  ;;  %v4023_v52 = vand.u32 2147483647, %v13696_v1  ;;  %v4139_v45 = vshrl.u32 %v4138_v25, 5  ;;  %v4026_v28 = vand.u32 2139095040, %v13696_v1 }
 0x336   : > { %v4003_v27 = vmul.f32 %v4002_v38, %v4000_v0  ;;  %v13690_v14 = vsub.s32 %v3877_v18, %v3880_v12  ;;  %vm3819_vm14 = vcmp.lt.s32.totalorder %v13458_v6, 0  ;;  %vm4018_vm15 = vcmp.eq.s32.totalorder %v13688_v58, 2 }
 0x337   : > { %v10206_v3 = vpop.eup %10205  ;;  %v4141_v19 = vsub.s32 32, %v4140_v31  ;;  %v4143_v24 = vshll.u32 %v17469_v17, %v4140_v31  ;;  %v4146_v53 = vshll.u32 %v17470_v22, %v4140_v31  ;;  %v4149_v9 = vshll.u32 %v17446_v29, %v4140_v31 }
 0x338   : > { %v4004_v2 = vxor.u32 2147483648, %v4003_v27  ;;  %v3883_v8 = vsub.s32 0, %v13690_v14  ;;  %v4152_v18 = vshll.u32 %v17447_v56, %v4140_v31  ;;  %v4155_v43 = vshll.u32 %v17428_v7, %v4140_v31 }
 0x339   : > { %v10208_v26 = vpop.eup %10207  ;;  %v4144_v54 = vshrl.u32 %v17470_v22, %v4141_v19  ;;  %v4147_v62 = vshrl.u32 %v17446_v29, %v4141_v19  ;;  %v4150_v23 = vshrl.u32 %v17447_v56, %v4141_v19  ;;  %v4142_v21 = vshrl.u32 %v17469_v17, %v4141_v19 }
 0x33a   : > { %v4005_v20 = vsel %vm3922_vm7, %v4004_v2, %v4003_v27  ;;  %v9206_v47 = vmin.u32 %v3883_v8, %v13690_v14  ;;  %9545 = vmatprep.mubr.msk.f32.mxu0 %vm7991_vm0, %v10208_v26  ;;  %v4153_v48 = vshrl.u32 %v17428_v7, %v4141_v19  ;;  %v4156_v4 = vshrl.u32 %v17451_v42, %v4141_v19 }
 0x33b   : > { %v4008_v39 = vsel %vm13677_vm12, %v13416_v41, %v4005_v20  ;;  %v4145_v36 = vor.u32 %v4144_v54, %v4143_v24  ;;  %v4148_v50 = vor.u32 %v4147_v62, %v4146_v53  ;;  %9546 = vmatmul.mubr.msk.f32.gmra.mrb[28].mxu0 %vm7991_vm0, %v10206_v3  ;;  %v4151_v57 = vor.u32 %v4150_v23, %v4149_v9  ;;  %v587_v9 = vpop.permute.xlu1 %586 }
 0x33c   : > { %10209 = vcosq.f32 %v4008_v39  ;;  %v3885_v16 = vclz %v9206_v47  ;;  %vm4158_vm1 = vcmp.lt.s32.totalorder %v4139_v45, 1  ;;  %vm4159_vm2 = vcmp.lt.s32.totalorder %v4139_v45, 2 }
 0x33d   : > { %10211 = vsinq.f32 %v4008_v39  ;;  %vm4160_vm3 = vcmp.lt.s32.totalorder %v4139_v45, 3  ;;  %v4154_v10 = vor.u32 %v4153_v48, %v4152_v18  ;;  %v4157_v35 = vor.u32 %v4156_v4, %v4155_v43 }
 0x33e   : > { %v9207_v55 = vadd.s32 4294967294, %v3885_v16  ;;  %vm4161_vm4 = vcmp.lt.s32.totalorder %v4139_v45, 4  ;;  %v4162_v11 = vsel %vm4158_vm1, %v4142_v21, %v4145_v36  ;;  %vm13728_vm5 = vcmp.le.f32.partialorder %v3817_v49, 0.7853982  ;;  %v13758_v21 = vld [vmem:[%s17404_s1] ss:$0 sm:$0xff] }
 0x33f   : > { %v4163_v60 = vsel %vm4161_vm4, %v4151_v57, 2102212464  ;;  %v4166_v59 = vsel %vm4158_vm1, %v4145_v36, %v4148_v50  ;;  %v4170_v63 = vsel %vm4158_vm1, %v4148_v50, %v4151_v57  ;;  %vm4012_vm7 = vweird.f32 %v13416_v41 }
 0x340   : > { %vm9208_vm6 = vcmp.lt.s32.totalorder %v9207_v55, 0  ;;  %v4164_v15 = vsel %vm4160_vm3, %v4148_v50, %v4163_v60  ;;  %v4167_v61 = vsel %vm4161_vm4, %v4154_v10, 920167782  ;;  %v4171_v0 = vsel %vm4161_vm4, %v4157_v35, 1326507024 }
 0x341   : > { %v3888_v38 = vsel %vm9208_vm6, 0, %v9207_v55  ;;  %v3903_v49 = vsub.s32 4, %v13681_v34  ;;  %v4165_v31 = vsel %vm4159_vm2, %v4162_v11, %v4164_v15  ;;  %v4168_v27 = vsel %vm4160_vm3, %v4151_v57, %v4167_v61 }
 0x342   : > { %v3889_v12 = vsub.s32 32, %v3888_v38  ;;  %v3890_v33 = vshll.u32 %v13690_v14, %v3888_v38  ;;  %v3893_v25 = vsub.s32 4294967266, %v3888_v38  ;;  %v4172_v3 = vsel %vm4160_vm3, %v4154_v10, %v4171_v0 }
 0x343   : > { %v4027_v19 = vshrl.u32 %v4026_v28, 23  ;;  %v4169_v2 = vsel %vm4159_vm2, %v4166_v59, %v4168_v27  ;;  %v4173_v8 = vsel %vm4159_vm2, %v4170_v63, %v4172_v3  ;;  %vm4014_vm8 = vcmp.lt.s32.totalorder %v13688_v58, 2 }
 0x344   : > { %v3891_v24 = vshrl.u32 %v3873_v32, %v3889_v12  ;;  %v3894_v53 = vadd.s32 127, %v3893_v25  ;;  %v13742_v26 = vmul.u32.u64.low %v13704_v40, %v4173_v8  ;;  %v13743_v14 = vmul.u32.u64.high %v13704_v40, %v4173_v8, %v13742_v26 }
 0x345   : > { %v13746_v54 = vmul.u32.u64.low %v13704_v40, %v4169_v2  ;;  %v13747_v62 = vmul.u32.u64.high %v13704_v40, %v4169_v2, %v13746_v54  ;;  %v3904_v32 = vsel %vm3819_vm14, %v3903_v49, %v13681_v34  ;;  %v9213_v28 = vadd.s32 4294967169, %v4027_v19  ;;  %v582_v34 = vpop.permute.xlu0 %581 }
 0x346   : > { %v10210_v23 = vpop.eup %10209  ;;  %v3892_v20 = vor.u32 %v3891_v24, %v3890_v33  ;;  %v3895_v47 = vshll.u32 %v3894_v53, 23  ;;  %vm4015_vm9 = vcmp.eq.s32.totalorder %v13688_v58, 0  ;;  %v786_v36 = vsub.f32 %v587_v9, %v13758_v21 }
 0x347   : > { %v10212_v45 = vpop.eup %10211  ;;  %v4019_v39 = vxor.u32 2147483648, %v10210_v23  ;;  %v4181_v18 = vmul.u32 %v13704_v40, %v4165_v31  ;;  %v3906_v43 = vsel %vm13728_vm5, 0, %v3904_v32  ;;  %vm4183_vm10 = vc.u32 %v13743_v14, %v13746_v54 }
 0x348   : > { %v4016_v50 = vxor.u32 2147483648, %v10212_v45  ;;  %v3896_v16 = vor.u32 4788187, %v3895_v47  ;;  %v3899_v57 = vcvt.s32.f32 %v3892_v20  ;;  %v4184_v4 = vadd.s32 1, %v13747_v62 }
 0x349   : > { %v4020_v48 = vsel %vm4018_vm15, %v4019_v39, %v10212_v45  ;;  %v4030_v35 = vand.u32 8388607, %v4023_v52  ;;  %v4033_v11 = vadd.s32 1, %v9213_v28  ;;  %v850_v59 = vmul.f32 %v786_v36, %v786_v36 }
 0x34a   : > { %v4017_v55 = vsel %vm4015_vm9, %v10210_v23, %v4016_v50  ;;  %v3897_v10 = vand.u32 2147483647, %v3896_v16  ;;  %v4185_v60 = vsel %vm4183_vm10, %v4184_v4, %v13747_v62  ;;  %v785_v63 = vsub.f32 %v582_v34, %v13758_v21 }
 0x34b   : > { %v4021_v40 = vsel %vm4014_vm8, %v4017_v55, %v4020_v48  ;;  %v4186_v61 = vadd.s32 %v4185_v60, %v4181_v18  ;;  %vm4034_vm11 = vcmp.gt.s32.totalorder %v4033_v11, 0  ;;  %vm7886_vm12 = vcmp.lt.f32.partialorder %v13413_v46, 5.0 }
 0x34c   : > { %v4022_v38 = vsel %vm4012_vm7, nan, %v4021_v40  ;;  %v3900_v15 = vmul.f32 %v3899_v57, %v3897_v10  ;;  %v4035_v12 = vsel %vm4034_vm11, %v4033_v11, 0  ;;  %v13778_v31 = vand.u32 3, %v3906_v43 }
 0x34d   : > { %v7758_v0 = vadd.f32 1.0, %v4022_v38  ;;  %v4187_v25 = vadd.s32 536870912, %v4186_v61  ;;  %v4037_v49 = vand.u32 31, %v4035_v12  ;;  %v4031_v27 = vor.u32 8388608, %v4030_v35 }
 0x34e   : > { %v3901_v33 = vxor.u32 2147483648, %v3900_v15  ;;  %v849_v3 = vmul.f32 %v785_v63, %v785_v63  ;;  %v914_v53 = vmul.f32 -259.48502, %v850_v59  ;;  %v4036_v62 = vshrl.u32 %v4035_v12, 5 }
 0x34f   : > { %v7822_v58 = vmul.f32 0.5, %v7758_v0  ;;  %v13782_v41 = vshrl.u32 %v4187_v25, 30  ;;  %v4038_v24 = vsub.s32 32, %v4037_v49  ;;  %v4040_v8 = vshll.u32 %v17469_v17, %v4037_v49 }
 0x350   : > { %v3902_v19 = vsel %vm3819_vm14, %v3901_v33, %v3900_v15  ;;  %v4043_v9 = vshll.u32 %v17470_v22, %v4037_v49  ;;  %v4046_v23 = vshll.u32 %v17446_v29, %v4037_v49  ;;  %vm3915_vm13 = vcmp.eq.s32.totalorder %v13778_v31, 2 }
 0x351   : > { %v7950_v2 = vsel %vm7886_vm12, %v7822_v58, 0.0  ;;  %v3905_v46 = vsel %vm13728_vm5, %v13458_v6, %v3902_v19  ;;  %v4189_v26 = vshll.u32 %v13782_v41, 30  ;;  %v4041_v20 = vshrl.u32 %v17470_v22, %v4038_v24 }
 0x352   : > { %8706 = vperm.xlu1 %9916, %v7950_v2   ;;  %10213 = vcosq.f32 %v3905_v46  ;;  %v4044_v47 = vshrl.u32 %v17446_v29, %v4038_v24  ;;  %v4047_v32 = vshrl.u32 %v17447_v56, %v4038_v24  ;;  %v4049_v28 = vshll.u32 %v17447_v56, %v4037_v49 }
 0x353   : > { %10215 = vsinq.f32 %v3905_v46  ;;  %v13795_v44 = vsub.s32 %v4186_v61, %v4189_v26  ;;  %v4050_v45 = vshrl.u32 %v17428_v7, %v4038_v24  ;;  %v913_v39 = vmul.f32 -259.48502, %v849_v3 }
 0x354   : > { %vm3912_vm14 = vcmp.eq.s32.totalorder %v13778_v31, 0  ;;  %v4182_v36 = vadd.s32 %v13746_v54, %v13743_v14  ;;  %v4039_v50 = vshrl.u32 %v17469_v17, %v4038_v24  ;;  %v4042_v16 = vor.u32 %v4041_v20, %v4040_v8 }
 0x355   : > { %v4045_v57 = vor.u32 %v4044_v47, %v4043_v9  ;;  %vm3911_vm15 = vcmp.lt.s32.totalorder %v13778_v31, 2  ;;  %v4192_v18 = vsub.s32 0, %v13795_v44  ;;  %v4048_v34 = vor.u32 %v4047_v32, %v4046_v23 }
 0x356   : > { %v4051_v48 = vor.u32 %v4050_v45, %v4049_v28  ;;  %v4052_v43 = vshll.u32 %v17428_v7, %v4037_v49  ;;  %v4053_v4 = vshrl.u32 %v17451_v42, %v4038_v24  ;;  %vm4055_vm1 = vcmp.lt.s32.totalorder %v4036_v62, 1 }
 0x357   : > { %v4071_v55 = vshll.u32 %v4031_v27, 8  ;;  %v1009_v10 = vmul.f32 1.442695, %v914_v53  ;;  %v9218_v35 = vmin.u32 %v4192_v18, %v13795_v44  ;;  %vm4056_vm2 = vcmp.lt.s32.totalorder %v4036_v62, 2 }
 0x358   : > { %vm4057_vm3 = vcmp.lt.s32.totalorder %v4036_v62, 3  ;;  %v1007_v14 = vmul.f32 1.442695, %v913_v39  ;;  %v4054_v54 = vor.u32 %v4053_v4, %v4052_v43  ;;  %vm4058_vm4 = vcmp.lt.s32.totalorder %v4036_v62, 4  ;;  %v13831_v39 = vld [vmem:[%s10649_s28 + $0xf8] sm:$0xff] }
 0x359   : > { %v4059_v11 = vsel %vm4055_vm1, %v4039_v50, %v4042_v16  ;;  %v4063_v40 = vsel %vm4055_vm1, %v4042_v16, %v4045_v57  ;;  %v4194_v60 = vclz %v9218_v35  ;;  %v4060_v59 = vsel %vm4058_vm4, %v4048_v34, 2102212464  ;;  %v13845_v35 = vld [vmem:[%s10649_s28 + $0xf0] sm:$0xff] }
 0x35a   : > { %v4064_v63 = vsel %vm4058_vm4, %v4051_v48, 920167782  ;;  %v4067_v38 = vsel %vm4055_vm1, %v4045_v57, %v4048_v34  ;;  %v4061_v15 = vsel %vm4057_vm3, %v4045_v57, %v4060_v59  ;;  %v4068_v0 = vsel %vm4058_vm4, %v4054_v54, 1326507024 }
 0x35b   : > { %v4065_v61 = vsel %vm4057_vm3, %v4048_v34, %v4064_v63  ;;  %10217 = vpow2.f32 %v1009_v10  ;;  %v9219_v33 = vadd.s32 4294967294, %v4194_v60  ;;  %v4062_v25 = vsel %vm4056_vm2, %v4059_v11, %v4061_v15 }
 0x35c   : > { %v10214_v12 = vpop.eup %10213  ;;  %v4066_v49 = vsel %vm4056_vm2, %v4063_v40, %v4065_v61  ;;  %v4069_v58 = vsel %vm4057_vm3, %v4051_v48, %v4068_v0  ;;  %vm3909_vm6 = vweird.f32 %v13458_v6  ;;  %10219 = vpow2.f32 %v1007_v14 }
 0x35d   : > { %v10216_v27 = vpop.eup %10215  ;;  %v3916_v3 = vxor.u32 2147483648, %v10214_v12  ;;  %v4070_v19 = vsel %vm4056_vm2, %v4067_v38, %v4069_v58  ;;  %v13814_v24 = vmul.u32.u64.low %v4071_v55, %v4066_v49  ;;  %v13815_v53 = vmul.u32.u64.high %v4071_v55, %v4066_v49, %v13814_v24 }
 0x35e   : > { %v3913_v2 = vxor.u32 2147483648, %v10216_v27  ;;  %vm9220_vm5 = vcmp.lt.s32.totalorder %v9219_v33, 0  ;;  %v13818_v46 = vmul.u32.u64.low %v4071_v55, %v4070_v19  ;;  %v13819_v8 = vmul.u32.u64.high %v4071_v55, %v4070_v19, %v13818_v46 }
 0x35f   : > { %v3917_v9 = vsel %vm3915_vm13, %v3916_v3, %v10216_v27  ;;  %v4197_v26 = vsel %vm9220_vm5, 0, %v9219_v33  ;;  %v4078_v28 = vmul.u32 %v4071_v55, %v4062_v25  ;;  %v4081_v45 = vadd.s32 1, %v13815_v53 }
 0x360   : > { %v3914_v62 = vsel %vm3912_vm14, %v10214_v12, %v3913_v2  ;;  %v4198_v23 = vsub.s32 32, %v4197_v26  ;;  %v4199_v20 = vshll.u32 %v13795_v44, %v4197_v26  ;;  %v4202_v47 = vsub.s32 4294967266, %v4197_v26 }
 0x361   : > { %v3918_v32 = vsel %vm3911_vm15, %v3914_v62, %v3917_v9  ;;  %v13834_v6 = vmul.f32 0.62831855, %v13831_v39  ;;  %v4212_v18 = vsub.s32 4, %v13782_v41  ;;  %vm7885_vm7 = vcmp.lt.f32.partialorder %v13455_v5, 5.0 }
 0x362   : > { %v3919_v50 = vsel %vm3909_vm6, nan, %v3918_v32  ;;  %v4200_v16 = vshrl.u32 %v4182_v36, %v4198_v23  ;;  %v4203_v57 = vadd.s32 127, %v4202_v47  ;;  %vm4080_vm8 = vc.u32 %v13819_v8, %v13814_v24 }
 0x363   : > { %v7757_v34 = vadd.f32 1.0, %v3919_v50  ;;  %v4332_v31 = vand.u32 2147483647, %v13834_v6  ;;  %v4082_v43 = vsel %vm4080_vm8, %v4081_v45, %v13815_v53  ;;  %v4335_v4 = vand.u32 2139095040, %v13834_v6 }
 0x364   : > { %v4201_v44 = vor.u32 %v4200_v16, %v4199_v20  ;;  %v4204_v48 = vshll.u32 %v4203_v57, 23  ;;  %vm4128_vm9 = vcmp.lt.s32.totalorder %v13631_v13, 0  ;;  %v4083_v36 = vadd.s32 %v4082_v43, %v4078_v28 }
 0x365   : > { %v10218_v55 = vpop.eup %10217  ;;  %v7821_v10 = vmul.f32 0.5, %v7757_v34  ;;  %v13848_v14 = vmul.f32 0.62831855, %v13845_v35  ;;  %v4213_v40 = vsel %vm4128_vm9, %v4212_v18, %v13782_v41  ;;  %v4336_v60 = vshrl.u32 %v4335_v4, 23 }
 0x366   : > { %v4205_v54 = vor.u32 4788187, %v4204_v48  ;;  %v4208_v11 = vcvt.s32.f32 %v4201_v44  ;;  %v4084_v63 = vadd.s32 536870912, %v4083_v36  ;;  %v4339_v38 = vand.u32 8388607, %v4332_v31  ;;  %v10220_v12 = vpop.eup %10219 }
 0x367   : > { %v7949_v59 = vsel %vm7885_vm7, %v7821_v10, 0.0  ;;  %v4229_v15 = vand.u32 2147483647, %v13848_v14  ;;  %v9225_v0 = vadd.s32 4294967169, %v4336_v60  ;;  %vm13860_vm10 = vcmp.le.f32.partialorder %v4126_v51, 0.7853982  ;;  %9548 = vmatprep.mubr.msk.f32.mxu0 %vm7991_vm0, %v10220_v12 }
 0x368   : > { %8701 = vperm.xlu0 %9915, %v7949_v59   ;;  %v4206_v61 = vand.u32 2147483647, %v4205_v54  ;;  %v4085_v41 = vshrl.u32 %v4084_v63, 30  ;;  %v4232_v5 = vand.u32 2139095040, %v13848_v14  ;;  %v4215_v49 = vsel %vm13860_vm10, 0, %v4213_v40  ;;  %9549 = vmatmul.mubr.msk.f32.gmra.mrb[30].mxu0 %vm7991_vm0, %v10218_v55 }
 0x369   : > { %v4342_v58 = vadd.s32 1, %v9225_v0  ;;  %v4340_v3 = vor.u32 8388608, %v4339_v38  ;;  %v13870_v19 = vand.u32 8388607, %v4229_v15  ;;  %vm4025_vm11 = vcmp.lt.s32.totalorder %v13696_v1, 0 }
 0x36a   : > { %v4209_v25 = vmul.f32 %v4208_v11, %v4206_v61  ;;  %v4086_v27 = vshll.u32 %v4085_v41, 30  ;;  %v13874_v53 = vand.u32 3, %v4215_v49  ;;  %v4233_v9 = vshrl.u32 %v4232_v5, 23 }
 0x36b   : > { %vm4343_vm12 = vcmp.gt.s32.totalorder %v4342_v58, 0  ;;  %v4079_v62 = vadd.s32 %v13814_v24, %v13819_v8  ;;  %v4109_v23 = vsub.s32 4, %v4085_v41  ;;  %v13886_v28 = vshll.u32 %v4340_v3, 8 }
 0x36c   : > { %v4210_v51 = vxor.u32 2147483648, %v4209_v25  ;;  %v13876_v2 = vsub.s32 %v4083_v36, %v4086_v27  ;;  %v4344_v46 = vsel %vm4343_vm12, %v4342_v58, 0  ;;  %v4237_v45 = vor.u32 8388608, %v13870_v19 }
 0x36d   : > { %v4346_v20 = vand.u32 31, %v4344_v46  ;;  %v4345_v8 = vshrl.u32 %v4344_v46, 5  ;;  %v9221_v18 = vadd.s32 4294967169, %v4233_v9  ;;  %vm4224_vm13 = vcmp.eq.s32.totalorder %v13874_v53, 2 }
 0x36e   : > { %v4211_v26 = vsel %vm4128_vm9, %v4210_v51, %v4209_v25  ;;  %v4089_v32 = vsub.s32 0, %v13876_v2  ;;  %v13895_v34 = vsel %vm4025_vm11, %v4109_v23, %v4085_v41  ;;  %vm4221_vm14 = vcmp.eq.s32.totalorder %v13874_v53, 0 }
 0x36f   : > { %v4214_v47 = vsel %vm13860_vm10, %v13631_v13, %v4211_v26  ;;  %v4347_v50 = vsub.s32 32, %v4346_v20  ;;  %v4349_v16 = vshll.u32 %v17469_v17, %v4346_v20  ;;  %v4352_v57 = vshll.u32 %v17470_v22, %v4346_v20 }
 0x370   : > { %10221 = vcosq.f32 %v4214_v47  ;;  %v9214_v24 = vmin.u32 %v4089_v32, %v13876_v2  ;;  %v4355_v55 = vshll.u32 %v17446_v29, %v4346_v20  ;;  %v4358_v36 = vshll.u32 %v17447_v56, %v4346_v20 }
 0x371   : > { %10223 = vsinq.f32 %v4214_v47  ;;  %v4348_v44 = vshrl.u32 %v17469_v17, %v4347_v50  ;;  %v4350_v48 = vshrl.u32 %v17470_v22, %v4347_v50  ;;  %v4353_v43 = vshrl.u32 %v17446_v29, %v4347_v50 }
 0x372   : > { %v4091_v4 = vclz %v9214_v24  ;;  %v4356_v10 = vshrl.u32 %v17447_v56, %v4347_v50  ;;  %vm4220_vm15 = vcmp.lt.s32.totalorder %v13874_v53, 2  ;;  %v4359_v40 = vshrl.u32 %v17428_v7, %v4347_v50 }
 0x373   : > { %v4351_v54 = vor.u32 %v4350_v48, %v4349_v16  ;;  %v4354_v11 = vor.u32 %v4353_v43, %v4352_v57  ;;  %v4361_v60 = vshll.u32 %v17428_v7, %v4346_v20  ;;  %vm4218_vm1 = vweird.f32 %v13631_v13 }
 0x374   : > { %v9215_v59 = vadd.s32 4294967294, %v4091_v4  ;;  %v4357_v63 = vor.u32 %v4356_v10, %v4355_v55  ;;  %v4362_v38 = vshrl.u32 %v17451_v42, %v4347_v50  ;;  %vm4364_vm2 = vcmp.lt.s32.totalorder %v4345_v8, 1 }
 0x375   : > { %v4360_v61 = vor.u32 %v4359_v40, %v4358_v36  ;;  %vm4365_vm3 = vcmp.lt.s32.totalorder %v4345_v8, 2  ;;  %vm4366_vm4 = vcmp.lt.s32.totalorder %v4345_v8, 3  ;;  %vm4367_vm5 = vcmp.lt.s32.totalorder %v4345_v8, 4 }
 0x376   : > { %vm9216_vm6 = vcmp.lt.s32.totalorder %v9215_v59, 0  ;;  %v4363_v0 = vor.u32 %v4362_v38, %v4361_v60  ;;  %v4368_v12 = vsel %vm4364_vm2, %v4348_v44, %v4351_v54  ;;  %v4369_v33 = vsel %vm4367_vm5, %v4357_v63, 2102212464 }
 0x377   : > { %v4094_v41 = vsel %vm9216_vm6, 0, %v9215_v59  ;;  %v4370_v5 = vsel %vm4366_vm4, %v4354_v11, %v4369_v33  ;;  %v4372_v25 = vsel %vm4364_vm2, %v4351_v54, %v4354_v11  ;;  %v4373_v49 = vsel %vm4367_vm5, %v4360_v61, 920167782  ;;  %v597_v54 = vpop.permute.xlu1 %596 }
 0x378   : > { %vm13916_vm7 = vcmp.le.f32.partialorder %v4023_v52, 0.7853982  ;;  %v4095_v27 = vsub.s32 32, %v4094_v41  ;;  %v4096_v3 = vshll.u32 %v13876_v2, %v4094_v41  ;;  %v4099_v51 = vsub.s32 4294967266, %v4094_v41 }
 0x379   : > { %v4239_v46 = vadd.s32 1, %v9221_v18  ;;  %vm7888_vm8 = vcmp.lt.f32.partialorder %v13628_v30, 5.0  ;;  %v4371_v26 = vsel %vm4365_vm3, %v4368_v12, %v4370_v5  ;;  %v4374_v23 = vsel %vm4366_vm4, %v4357_v63, %v4373_v49 }
 0x37a   : > { %v10222_v9 = vpop.eup %10221  ;;  %v4376_v20 = vsel %vm4364_vm2, %v4354_v11, %v4357_v63  ;;  %v4377_v47 = vsel %vm4367_vm5, %v4363_v0, 1326507024  ;;  %v4097_v50 = vshrl.u32 %v4079_v62, %v4095_v27  ;;  %v4100_v16 = vadd.s32 127, %v4099_v51 }
 0x37b   : > { %v10224_v52 = vpop.eup %10223  ;;  %v4225_v32 = vxor.u32 2147483648, %v10222_v9  ;;  %v4375_v57 = vsel %vm4365_vm3, %v4372_v25, %v4374_v23  ;;  %v4378_v24 = vsel %vm4366_vm4, %v4360_v61, %v4377_v47  ;;  %vm4240_vm9 = vcmp.gt.s32.totalorder %v4239_v46, 0 }
 0x37c   : > { %v4222_v2 = vxor.u32 2147483648, %v10224_v52  ;;  %v13929_v18 = vmul.u32.u64.low %v13886_v28, %v4375_v57  ;;  %v13930_v44 = vmul.u32.u64.high %v13886_v28, %v4375_v57, %v13929_v18  ;;  %v4098_v43 = vor.u32 %v4097_v50, %v4096_v3 }
 0x37d   : > { %v4226_v48 = vsel %vm4224_vm13, %v4225_v32, %v10224_v52  ;;  %v4101_v4 = vshll.u32 %v4100_v16, 23  ;;  %v4379_v55 = vsel %vm4365_vm3, %v4376_v20, %v4378_v24  ;;  %v4241_v59 = vsel %vm4240_vm9, %v4239_v46, 0 }
 0x37e   : > { %v4223_v62 = vsel %vm4221_vm14, %v10222_v9, %v4222_v2  ;;  %v13939_v10 = vmul.u32.u64.low %v13886_v28, %v4379_v55  ;;  %v13940_v36 = vmul.u32.u64.high %v13886_v28, %v4379_v55, %v13939_v10  ;;  %v4105_v60 = vcvt.s32.f32 %v4098_v43 }
 0x37f   : > { %v4227_v11 = vsel %vm4220_vm15, %v4223_v62, %v4226_v48  ;;  %v4102_v40 = vor.u32 4788187, %v4101_v4  ;;  %v4387_v8 = vmul.u32 %v13886_v28, %v4371_v26  ;;  %v4390_v38 = vadd.s32 1, %v13930_v44  ;;  %v592_v4 = vpop.permute.xlu0 %591 }
 0x380   : > { %v4228_v63 = vsel %vm4218_vm1, nan, %v4227_v11  ;;  %v4243_v61 = vand.u32 31, %v4241_v59  ;;  %v13950_v33 = vshll.u32 %v4237_v45, 8  ;;  %v788_v53 = vsub.f32 %v597_v54, %v13758_v21 }
 0x381   : > { %v7760_v0 = vadd.f32 1.0, %v4228_v63  ;;  %v4103_v12 = vand.u32 2147483647, %v4102_v40  ;;  %v4112_v41 = vsel %vm13916_vm7, 0, %v13895_v34  ;;  %vm4389_vm10 = vc.u32 %v13940_v36, %v13929_v18 }
 0x382   : > { %v4244_v13 = vsub.s32 32, %v4243_v61  ;;  %v4246_v28 = vshll.u32 %v17469_v17, %v4243_v61  ;;  %v4391_v49 = vsel %vm4389_vm10, %v4390_v38, %v13930_v44  ;;  %v4249_v19 = vshll.u32 %v17470_v22, %v4243_v61 }
 0x383   : > { %v7824_v5 = vmul.f32 0.5, %v7760_v0  ;;  %v4106_v25 = vmul.f32 %v4105_v60, %v4103_v12  ;;  %v4392_v45 = vadd.s32 %v4391_v49, %v4387_v8  ;;  %v4242_v27 = vshrl.u32 %v4241_v59, 5 }
 0x384   : > { %v4247_v3 = vshrl.u32 %v17470_v22, %v4244_v13  ;;  %v4250_v51 = vshrl.u32 %v17446_v29, %v4244_v13  ;;  %v4252_v9 = vshll.u32 %v17446_v29, %v4243_v61  ;;  %v4253_v26 = vshrl.u32 %v17447_v56, %v4244_v13 }
 0x385   : > { %v7952_v34 = vsel %vm7888_vm8, %v7824_v5, 0.0  ;;  %v4107_v46 = vxor.u32 2147483648, %v4106_v25  ;;  %v13967_v23 = vand.u32 3, %v4112_v41  ;;  %v4393_v20 = vadd.s32 536870912, %v4392_v45 }
 0x386   : > { %8716 = vperm.xlu1 %9916, %v7952_v34   ;;  %v4248_v47 = vor.u32 %v4247_v3, %v4246_v28  ;;  %v4255_v52 = vshll.u32 %v17447_v56, %v4243_v61  ;;  %v4251_v50 = vor.u32 %v4250_v51, %v4249_v19  ;;  %v4256_v16 = vshrl.u32 %v17428_v7, %v4244_v13 }
 0x387   : > { %v4108_v32 = vsel %vm4025_vm11, %v4107_v46, %v4106_v25  ;;  %v4258_v30 = vshll.u32 %v17428_v7, %v4243_v61  ;;  %v13977_v2 = vshrl.u32 %v4393_v20, 30  ;;  %v4259_v24 = vshrl.u32 %v17451_v42, %v4244_v13 }
 0x388   : > { %v4111_v57 = vsel %vm13916_vm7, %v13696_v1, %v4108_v32  ;;  %vm4261_vm12 = vcmp.lt.s32.totalorder %v4242_v27, 1  ;;  %v4245_v44 = vshrl.u32 %v17469_v17, %v4244_v13  ;;  %v4254_v48 = vor.u32 %v4253_v26, %v4252_v9 }
 0x389   : > { %10225 = vcosq.f32 %v4111_v57  ;;  %v4257_v43 = vor.u32 %v4256_v16, %v4255_v52  ;;  %v4395_v55 = vshll.u32 %v13977_v2, 30  ;;  %v4260_v62 = vor.u32 %v4259_v24, %v4258_v30 }
 0x38a   : > { %10227 = vsinq.f32 %v4111_v57  ;;  %vm4263_vm11 = vcmp.lt.s32.totalorder %v4242_v27, 3  ;;  %vm4262_vm13 = vcmp.lt.s32.totalorder %v4242_v27, 2  ;;  %vm4264_vm14 = vcmp.lt.s32.totalorder %v4242_v27, 4 }
 0x38b   : > { %v4269_v58 = vsel %vm4261_vm12, %v4248_v47, %v4251_v50  ;;  %v852_v10 = vmul.f32 %v788_v53, %v788_v53  ;;  %v13983_v54 = vsub.s32 %v4392_v45, %v4395_v55  ;;  %v4266_v11 = vsel %vm4264_vm14, %v4254_v48, 2102212464  ;;  %v14005_v45 = vld [vmem:[%s10649_s28 + $0x108] sm:$0xff] }
 0x38c   : > { %v4270_v40 = vsel %vm4264_vm14, %v4257_v43, 920167782  ;;  %v787_v60 = vsub.f32 %v592_v4, %v13758_v21  ;;  %v4265_v59 = vsel %vm4261_vm12, %v4245_v44, %v4248_v47  ;;  %v4267_v63 = vsel %vm4263_vm11, %v4251_v50, %v4266_v11 }
 0x38d   : > { %v4271_v8 = vsel %vm4263_vm11, %v4254_v48, %v4270_v40  ;;  %v4274_v38 = vsel %vm4264_vm14, %v4260_v62, 1326507024  ;;  %v4398_v61 = vsub.s32 0, %v13983_v54  ;;  %v4273_v12 = vsel %vm4261_vm12, %v4251_v50, %v4254_v48 }
 0x38e   : > { %v4272_v0 = vsel %vm4262_vm13, %v4269_v58, %v4271_v8  ;;  %vm4115_vm15 = vweird.f32 %v13696_v1  ;;  %v4275_v53 = vsel %vm4263_vm11, %v4257_v43, %v4274_v38  ;;  %vm4117_vm1 = vcmp.lt.s32.totalorder %v13967_v23, 2 }
 0x38f   : > { %v13995_v41 = vmul.u32.u64.low %v13950_v33, %v4272_v0  ;;  %v13996_v13 = vmul.u32.u64.high %v13950_v33, %v4272_v0, %v13995_v41  ;;  %vm4118_vm2 = vcmp.eq.s32.totalorder %v13967_v23, 0  ;;  %v9226_v28 = vmin.u32 %v4398_v61, %v13983_v54 }
 0x390   : > { %v4268_v5 = vsel %vm4262_vm13, %v4265_v59, %v4267_v63  ;;  %v4276_v25 = vsel %vm4262_vm13, %v4273_v12, %v4275_v53  ;;  %v916_v49 = vmul.f32 -259.48502, %v852_v10  ;;  %v851_v19 = vmul.f32 %v787_v60, %v787_v60 }
 0x391   : > { %v14008_v3 = vmul.f32 0.62831855, %v14005_v45  ;;  %vm4121_vm3 = vcmp.eq.s32.totalorder %v13967_v23, 2  ;;  %v4400_v51 = vclz %v9226_v28  ;;  %v4388_v26 = vadd.s32 %v13929_v18, %v13940_v36 }
 0x392   : > { %v14012_v34 = vmul.u32.u64.low %v13950_v33, %v4276_v25  ;;  %v14013_v46 = vmul.u32.u64.high %v13950_v33, %v4276_v25, %v14012_v34  ;;  %v4287_v27 = vadd.s32 1, %v13996_v13  ;;  %v1013_v20 = vmul.f32 1.442695, %v916_v49 }
 0x393   : > { %v10226_v9 = vpop.eup %10225  ;;  %v915_v47 = vmul.f32 -259.48502, %v851_v19  ;;  %v9227_v50 = vadd.s32 4294967294, %v4400_v51  ;;  %v4418_v16 = vsub.s32 4, %v13977_v2  ;;  %v4284_v30 = vmul.u32 %v13950_v33, %v4268_v5 }
 0x394   : > { %v10228_v52 = vpop.eup %10227  ;;  %v4122_v32 = vxor.u32 2147483648, %v10226_v9  ;;  %v4538_v44 = vand.u32 2147483647, %v14008_v3  ;;  %v4541_v48 = vand.u32 2139095040, %v14008_v3  ;;  %vm4286_vm5 = vc.u32 %v14013_v46, %v13995_v41 }
 0x395   : > { %v4119_v57 = vxor.u32 2147483648, %v10228_v52  ;;  %v1011_v24 = vmul.f32 1.442695, %v915_v47  ;;  %vm9228_vm4 = vcmp.lt.s32.totalorder %v9227_v50, 0  ;;  %10229 = vpow2.f32 %v1013_v20 }
 0x396   : > { %v4123_v18 = vsel %vm4121_vm3, %v4122_v32, %v10228_v52  ;;  %v4403_v43 = vsel %vm9228_vm4, 0, %v9227_v50  ;;  %v4288_v33 = vsel %vm4286_vm5, %v4287_v27, %v13996_v13  ;;  %v4542_v40 = vshrl.u32 %v4541_v48, 23 }
 0x397   : > { %v4120_v36 = vsel %vm4118_vm2, %v10226_v9, %v4119_v57  ;;  %10231 = vpow2.f32 %v1011_v24  ;;  %v4404_v55 = vsub.s32 32, %v4403_v43  ;;  %v4405_v62 = vshll.u32 %v13983_v54, %v4403_v43  ;;  %v14053_v9 = vld [vmem:[%s10649_s28 + $0x100] sm:$0xff] }
 0x398   : > { %v4124_v4 = vsel %vm4117_vm1, %v4120_v36, %v4123_v18  ;;  %v4408_v58 = vsub.s32 4294967266, %v4403_v43  ;;  %v4289_v11 = vadd.s32 %v4288_v33, %v4284_v30  ;;  %vm7887_vm6 = vcmp.lt.f32.partialorder %v13693_v37, 5.0 }
 0x399   : > { %v4125_v10 = vsel %vm4115_vm15, nan, %v4124_v4  ;;  %v4406_v59 = vshrl.u32 %v4388_v26, %v4404_v55  ;;  %vm4334_vm7 = vcmp.lt.s32.totalorder %v13834_v6, 0  ;;  %v9233_v38 = vadd.s32 4294967169, %v4542_v40 }
 0x39a   : > { %v7759_v60 = vadd.f32 1.0, %v4125_v10  ;;  %v4409_v63 = vadd.s32 127, %v4408_v58  ;;  %v4290_v8 = vadd.s32 536870912, %v4289_v11  ;;  %v4545_v23 = vand.u32 8388607, %v4538_v44 }
 0x39b   : > { %v4407_v54 = vor.u32 %v4406_v59, %v4405_v62  ;;  %v4419_v1 = vsel %vm4334_vm7, %v4418_v16, %v13977_v2  ;;  %v4548_v37 = vadd.s32 1, %v9233_v38  ;;  %vm14045_vm8 = vcmp.le.f32.partialorder %v4332_v31, 0.7853982 }
 0x39c   : > { %v7823_v61 = vmul.f32 0.5, %v7759_v60  ;;  %v4410_v0 = vshll.u32 %v4409_v63, 23  ;;  %v14041_v12 = vshrl.u32 %v4290_v8, 30  ;;  %v4421_v25 = vsel %vm14045_vm8, 0, %v4419_v1 }
 0x39d   : > { %v4414_v5 = vcvt.s32.f32 %v4407_v54  ;;  %v4546_v19 = vor.u32 8388608, %v4545_v23  ;;  %vm4549_vm9 = vcmp.gt.s32.totalorder %v4548_v37, 0  ;;  %v14056_v31 = vmul.f32 0.62831855, %v14053_v9 }
 0x39e   : > { %v7951_v53 = vsel %vm7887_vm6, %v7823_v61, 0.0  ;;  %v4411_v28 = vor.u32 4788187, %v4410_v0  ;;  %v4292_v49 = vshll.u32 %v14041_v12, 30  ;;  %v4550_v34 = vsel %vm4549_vm9, %v4548_v37, 0 }
 0x39f   : > { %8711 = vperm.xlu0 %9915, %v7951_v53   ;;  %v10230_v2 = vpop.eup %10229  ;;  %v4552_v20 = vand.u32 31, %v4550_v34  ;;  %v14060_v52 = vand.u32 3, %v4421_v25  ;;  %v4285_v32 = vadd.s32 %v13995_v41, %v14013_v46  ;;  %v4435_v50 = vand.u32 2147483647, %v14056_v31 }
 0x3a0   : > { %v4412_v51 = vand.u32 2147483647, %v4411_v28  ;;  %v14058_v27 = vsub.s32 %v4289_v11, %v4292_v49  ;;  %v4315_v30 = vsub.s32 4, %v14041_v12  ;;  %v14068_v24 = vshll.u32 %v4546_v19, 8 }
 0x3a1   : > { %v10232_v26 = vpop.eup %10231  ;;  %v4553_v57 = vsub.s32 32, %v4552_v20  ;;  %v4555_v18 = vshll.u32 %v17469_v17, %v4552_v20  ;;  %v4558_v36 = vshll.u32 %v17470_v22, %v4552_v20  ;;  %v4438_v41 = vand.u32 2139095040, %v14056_v31 }
 0x3a2   : > { %v4415_v47 = vmul.f32 %v4414_v5, %v4412_v51  ;;  %9551 = vmatprep.mubr.msk.f32.mxu1 %vm7991_vm0, %v10232_v26  ;;  %v4295_v16 = vsub.s32 0, %v14058_v27  ;;  %v4551_v43 = vshrl.u32 %v4550_v34, 5  ;;  %v4561_v33 = vshll.u32 %v17446_v29, %v4552_v20 }
 0x3a3   : > { %9552 = vmatmul.mubr.msk.f32.vlgmr.msra.gmra.mrb[0].mxu1 %vm7991_vm0, %v10230_v2  ;;  %v4564_v4 = vshll.u32 %v17447_v56, %v4552_v20  ;;  %v4554_v62 = vshrl.u32 %v17469_v17, %v4553_v57  ;;  %v4556_v58 = vshrl.u32 %v17470_v22, %v4553_v57  ;;  %v4559_v10 = vshrl.u32 %v17446_v29, %v4553_v57 }
 0x3a4   : > { %v4416_v48 = vxor.u32 2147483648, %v4415_v47  ;;  %v9222_v46 = vmin.u32 %v4295_v16, %v14058_v27  ;;  %v4562_v60 = vshrl.u32 %v17447_v56, %v4553_v57  ;;  %v4565_v59 = vshrl.u32 %v17428_v7, %v4553_v57 }
 0x3a5   : > { %v4557_v63 = vor.u32 %v4556_v58, %v4555_v18  ;;  %v4560_v8 = vor.u32 %v4559_v10, %v4558_v36  ;;  %v4567_v38 = vshll.u32 %v17428_v7, %v4552_v20  ;;  %vm4231_vm10 = vcmp.lt.s32.totalorder %v13848_v14, 0 }
 0x3a6   : > { %v4417_v55 = vsel %vm4334_vm7, %v4416_v48, %v4415_v47  ;;  %v4297_v40 = vclz %v9222_v46  ;;  %v4563_v61 = vor.u32 %v4562_v60, %v4561_v33  ;;  %v4566_v54 = vor.u32 %v4565_v59, %v4564_v4 }
 0x3a7   : > { %v4420_v11 = vsel %vm14045_vm8, %v13834_v6, %v4417_v55  ;;  %v4568_v0 = vshrl.u32 %v17451_v42, %v4553_v57  ;;  %vm4570_vm12 = vcmp.lt.s32.totalorder %v4551_v43, 1  ;;  %vm4571_vm11 = vcmp.lt.s32.totalorder %v4551_v43, 2 }
 0x3a8   : > { %10233 = vcosq.f32 %v4420_v11  ;;  %v9223_v23 = vadd.s32 4294967294, %v4297_v40  ;;  %vm4572_vm13 = vcmp.lt.s32.totalorder %v4551_v43, 3  ;;  %vm4573_vm15 = vcmp.lt.s32.totalorder %v4551_v43, 4 }
 0x3a9   : > { %10235 = vsinq.f32 %v4420_v11  ;;  %v4574_v1 = vsel %vm4570_vm12, %v4554_v62, %v4557_v63  ;;  %v4578_v37 = vsel %vm4570_vm12, %v4557_v63, %v4560_v8  ;;  %vm4426_vm1 = vcmp.lt.s32.totalorder %v14060_v52, 2 }
 0x3aa   : > { %vm9224_vm14 = vcmp.lt.s32.totalorder %v9223_v23, 0  ;;  %v4569_v13 = vor.u32 %v4568_v0, %v4567_v38  ;;  %v4575_v28 = vsel %vm4573_vm15, %v4563_v61, 2102212464  ;;  %v4579_v5 = vsel %vm4573_vm15, %v4566_v54, 920167782 }
 0x3ab   : > { %v4300_v53 = vsel %vm9224_vm14, 0, %v9223_v23  ;;  %vm4424_vm2 = vweird.f32 %v13834_v6  ;;  %v4576_v2 = vsel %vm4572_vm13, %v4560_v8, %v4575_v28  ;;  %v4580_v51 = vsel %vm4572_vm13, %v4563_v61, %v4579_v5 }
 0x3ac   : > { %v4301_v25 = vsub.s32 32, %v4300_v53  ;;  %v4302_v49 = vshll.u32 %v14058_v27, %v4300_v53  ;;  %v4305_v19 = vsub.s32 4294967266, %v4300_v53  ;;  %v4582_v34 = vsel %vm4570_vm12, %v4560_v8, %v4563_v61  ;;  %v607_v53 = vpop.permute.xlu1 %606 }
 0x3ad   : > { %v4583_v26 = vsel %vm4573_vm15, %v4569_v13, 1326507024  ;;  %v4439_v20 = vshrl.u32 %v4438_v41, 23  ;;  %v4581_v57 = vsel %vm4571_vm11, %v4578_v37, %v4580_v51  ;;  %v4577_v18 = vsel %vm4571_vm11, %v4574_v1, %v4576_v2 }
 0x3ae   : > { %v4303_v47 = vshrl.u32 %v4285_v32, %v4301_v25  ;;  %v4306_v16 = vadd.s32 127, %v4305_v19  ;;  %v4584_v48 = vsel %vm4572_vm13, %v4566_v54, %v4583_v26  ;;  %vm4427_vm3 = vcmp.eq.s32.totalorder %v14060_v52, 0 }
 0x3af   : > { %v4585_v36 = vsel %vm4571_vm11, %v4582_v34, %v4584_v48  ;;  %v14103_v27 = vmul.u32.u64.low %v14068_v24, %v4581_v57  ;;  %v14104_v46 = vmul.u32.u64.high %v14068_v24, %v4581_v57, %v14103_v27  ;;  %vm4430_vm4 = vcmp.eq.s32.totalorder %v14060_v52, 2  ;;  %v602_v57 = vpop.permute.xlu0 %601 }
 0x3b0   : > { %v4304_v33 = vor.u32 %v4303_v47, %v4302_v49  ;;  %v4307_v4 = vshll.u32 %v4306_v16, 23  ;;  %v14108_v55 = vmul.u32.u64.low %v14068_v24, %v4585_v36  ;;  %v14109_v41 = vmul.u32.u64.high %v14068_v24, %v4585_v36, %v14108_v55 }
 0x3b1   : > { %v4316_v43 = vsel %vm4231_vm10, %v4315_v30, %v14041_v12  ;;  %v9229_v62 = vadd.s32 4294967169, %v4439_v20  ;;  %v4593_v60 = vmul.u32 %v14068_v24, %v4577_v18  ;;  %v4596_v63 = vadd.s32 1, %v14104_v46 }
 0x3b2   : > { %v10234_v32 = vpop.eup %10233  ;;  %v4308_v11 = vor.u32 4788187, %v4307_v4  ;;  %v4311_v40 = vcvt.s32.f32 %v4304_v33  ;;  %v4442_v8 = vand.u32 8388607, %v4435_v50  ;;  %vm14124_vm5 = vcmp.le.f32.partialorder %v4229_v15, 0.7853982 }
 0x3b3   : > { %v10236_v58 = vpop.eup %10235  ;;  %v4431_v10 = vxor.u32 2147483648, %v10234_v32  ;;  %v4445_v38 = vadd.s32 1, %v9229_v62  ;;  %vm4595_vm6 = vc.u32 %v14109_v41, %v14103_v27  ;;  %v4318_v24 = vsel %vm14124_vm5, 0, %v4316_v43 }
 0x3b4   : > { %v4428_v59 = vxor.u32 2147483648, %v10236_v58  ;;  %v4309_v12 = vand.u32 2147483647, %v4308_v11  ;;  %v4597_v54 = vsel %vm4595_vm6, %v4596_v63, %v14104_v46  ;;  %vm7890_vm8 = vcmp.lt.f32.partialorder %v13831_v39, 5.0 }
 0x3b5   : > { %v4432_v23 = vsel %vm4430_vm4, %v4431_v10, %v10236_v58  ;;  %vm4446_vm7 = vcmp.gt.s32.totalorder %v4445_v38, 0  ;;  %v4598_v1 = vadd.s32 %v4597_v54, %v4593_v60  ;;  %v4443_v28 = vor.u32 8388608, %v4442_v8 }
 0x3b6   : > { %v4429_v30 = vsel %vm4427_vm3, %v10234_v32, %v4428_v59  ;;  %v4312_v15 = vmul.f32 %v4311_v40, %v4309_v12  ;;  %v4447_v37 = vsel %vm4446_vm7, %v4445_v38, 0  ;;  %v14140_v19 = vand.u32 3, %v4318_v24 }
 0x3b7   : > { %v4433_v0 = vsel %vm4426_vm1, %v4429_v30, %v4432_v23  ;;  %v4449_v5 = vand.u32 31, %v4447_v37  ;;  %v4599_v2 = vadd.s32 536870912, %v4598_v1  ;;  %v14142_v51 = vshrl.u32 %v4447_v37, 5 }
 0x3b8   : > { %v4434_v13 = vsel %vm4424_vm2, nan, %v4433_v0  ;;  %v4313_v49 = vxor.u32 2147483648, %v4312_v15  ;;  %v790_v26 = vsub.f32 %v607_v53, %v13758_v21  ;;  %v789_v62 = vsub.f32 %v602_v57, %v13758_v21 }
 0x3b9   : > { %v7762_v25 = vadd.f32 1.0, %v4434_v13  ;;  %v4450_v52 = vsub.s32 32, %v4449_v5  ;;  %v4452_v34 = vshll.u32 %v17469_v17, %v4449_v5  ;;  %v14148_v47 = vshrl.u32 %v4599_v2, 30 }
 0x3ba   : > { %v4314_v6 = vsel %vm4231_vm10, %v4313_v49, %v4312_v15  ;;  %v4455_v16 = vshll.u32 %v17470_v22, %v4449_v5  ;;  %v4458_v46 = vshll.u32 %v17446_v29, %v4449_v5  ;;  %v4461_v55 = vshll.u32 %v17447_v56, %v4449_v5 }
 0x3bb   : > { %v7826_v20 = vmul.f32 0.5, %v7762_v25  ;;  %v4317_v48 = vsel %vm14124_vm5, %v13848_v14, %v4314_v6  ;;  %v4453_v18 = vshrl.u32 %v17470_v22, %v4450_v52  ;;  %v4456_v36 = vshrl.u32 %v17446_v29, %v4450_v52 }
 0x3bc   : > { %10237 = vcosq.f32 %v4317_v48  ;;  %v4601_v4 = vshll.u32 %v14148_v47, 30  ;;  %v4459_v32 = vshrl.u32 %v17447_v56, %v4450_v52  ;;  %v854_v43 = vmul.f32 %v790_v26, %v790_v26 }
 0x3bd   : > { %v7954_v33 = vsel %vm7890_vm8, %v7826_v20, 0.0  ;;  %10239 = vsinq.f32 %v4317_v48  ;;  %vm4327_vm9 = vcmp.eq.s32.totalorder %v14140_v19, 2  ;;  %v4451_v10 = vshrl.u32 %v17469_v17, %v4450_v52 }
 0x3be   : > { %8726 = vperm.xlu1 %9916, %v7954_v33   ;;  %v14164_v58 = vsub.s32 %v4598_v1, %v4601_v4  ;;  %v4462_v39 = vshrl.u32 %v17428_v7, %v4450_v52  ;;  %v4464_v11 = vshll.u32 %v17428_v7, %v4449_v5  ;;  %vm4324_vm10 = vcmp.eq.s32.totalorder %v14140_v19, 0 }
 0x3bf   : > { %v4454_v40 = vor.u32 %v4453_v18, %v4452_v34  ;;  %v4457_v60 = vor.u32 %v4456_v36, %v4455_v16  ;;  %v4460_v59 = vor.u32 %v4459_v32, %v4458_v46  ;;  %v4465_v63 = vshrl.u32 %v17451_v42, %v4450_v52 }
 0x3c0   : > { %vm4323_vm12 = vcmp.lt.s32.totalorder %v14140_v19, 2  ;;  %v4604_v21 = vsub.s32 0, %v14164_v58  ;;  %v4463_v8 = vor.u32 %v4462_v39, %v4461_v55  ;;  %vm4467_vm11 = vcmp.lt.s32.totalorder %v14142_v51, 1 }
 0x3c1   : > { %v4483_v38 = vshll.u32 %v4443_v28, 8  ;;  %vm4321_vm13 = vweird.f32 %v13848_v14  ;;  %v4466_v23 = vor.u32 %v4465_v63, %v4464_v11  ;;  %vm4469_vm14 = vcmp.lt.s32.totalorder %v14142_v51, 3  ;;  %v14213_v11 = vld [vmem:[%s10649_s28 + $0x118] sm:$0xff] }
 0x3c2   : > { %vm4470_vm15 = vcmp.lt.s32.totalorder %v14142_v51, 4  ;;  %v918_v61 = vmul.f32 -259.48502, %v854_v43  ;;  %v9234_v12 = vmin.u32 %v4604_v21, %v14164_v58  ;;  %vm4468_vm1 = vcmp.lt.s32.totalorder %v14142_v51, 2 }
 0x3c3   : > { %v4471_v30 = vsel %vm4467_vm11, %v4451_v10, %v4454_v40  ;;  %v853_v24 = vmul.f32 %v789_v62, %v789_v62  ;;  %v4472_v54 = vsel %vm4470_vm15, %v4460_v59, 2102212464  ;;  %v4475_v0 = vsel %vm4467_vm11, %v4454_v40, %v4457_v60 }
 0x3c4   : > { %v4476_v15 = vsel %vm4470_vm15, %v4463_v8, 920167782  ;;  %v4479_v1 = vsel %vm4467_vm11, %v4457_v60, %v4460_v59  ;;  %v4606_v37 = vclz %v9234_v12  ;;  %v4473_v53 = vsel %vm4469_vm14, %v4457_v60, %v4472_v54 }
 0x3c5   : > { %v4477_v13 = vsel %vm4469_vm14, %v4460_v59, %v4476_v15  ;;  %v4480_v28 = vsel %vm4470_vm15, %v4466_v23, 1326507024  ;;  %v4474_v5 = vsel %vm4468_vm1, %v4471_v30, %v4473_v53  ;;  %v1017_v2 = vmul.f32 1.442695, %v918_v61 }
 0x3c6   : > { %v4478_v25 = vsel %vm4468_vm1, %v4475_v0, %v4477_v13  ;;  %v4481_v49 = vsel %vm4469_vm14, %v4463_v8, %v4480_v28  ;;  %v10238_v52 = vpop.eup %10237  ;;  %vm7889_vm2 = vcmp.lt.f32.partialorder %v13845_v35, 5.0  ;;  %v9235_v34 = vadd.s32 4294967294, %v4606_v37 }
 0x3c7   : > { %v4482_v26 = vsel %vm4468_vm1, %v4479_v1, %v4481_v49  ;;  %v14192_v20 = vmul.u32.u64.low %v4483_v38, %v4478_v25  ;;  %v14193_v6 = vmul.u32.u64.high %v4483_v38, %v4478_v25, %v14192_v20  ;;  %v10240_v16 = vpop.eup %10239  ;;  %v4328_v57 = vxor.u32 2147483648, %v10238_v52 }
 0x3c8   : > { %v4594_v48 = vadd.s32 %v14103_v27, %v14109_v41  ;;  %v14198_v18 = vmul.u32.u64.low %v4483_v38, %v4482_v26  ;;  %v14199_v36 = vmul.u32.u64.high %v4483_v38, %v4482_v26, %v14198_v18  ;;  %v4325_v46 = vxor.u32 2147483648, %v10240_v16 }
 0x3c9   : > { %vm9236_vm3 = vcmp.lt.s32.totalorder %v9235_v34, 0  ;;  %v4624_v33 = vsub.s32 4, %v14148_v47  ;;  %v917_v4 = vmul.f32 -259.48502, %v853_v24  ;;  %v4329_v51 = vsel %vm4327_vm9, %v4328_v57, %v10240_v16 }
 0x3ca   : > { %v4609_v55 = vsel %vm9236_vm3, 0, %v9235_v34  ;;  %v4490_v32 = vmul.u32 %v4483_v38, %v4474_v5  ;;  %10241 = vpow2.f32 %v1017_v2  ;;  %v4326_v43 = vsel %vm4324_vm10, %v10238_v52, %v4325_v46  ;;  %v14223_v38 = vld [vmem:[%s10649_s28 + $0x110] sm:$0xff] }
 0x3cb   : > { %v4610_v27 = vsub.s32 32, %v4609_v55  ;;  %v4611_v41 = vshll.u32 %v14164_v58, %v4609_v55  ;;  %v4614_v62 = vsub.s32 4294967266, %v4609_v55  ;;  %v4330_v10 = vsel %vm4323_vm12, %v4326_v43, %v4329_v51 }
 0x3cc   : > { %vm4492_vm4 = vc.u32 %v14199_v36, %v14192_v20  ;;  %v4493_v39 = vadd.s32 1, %v14193_v6  ;;  %v14216_v40 = vmul.f32 0.62831855, %v14213_v11  ;;  %v4331_v60 = vsel %vm4321_vm13, nan, %v4330_v10 }
 0x3cd   : > { %v4612_v59 = vshrl.u32 %v4594_v48, %v4610_v27  ;;  %v4615_v63 = vadd.s32 127, %v4614_v62  ;;  %v1015_v58 = vmul.f32 1.442695, %v917_v4  ;;  %v7761_v21 = vadd.f32 1.0, %v4331_v60 }
 0x3ce   : > { %v4494_v19 = vsel %vm4492_vm4, %v4493_v39, %v14193_v6  ;;  %v4744_v8 = vand.u32 2147483647, %v14216_v40  ;;  %v14226_v23 = vmul.f32 0.62831855, %v14223_v38  ;;  %vm4540_vm5 = vcmp.lt.s32.totalorder %v14008_v3, 0 }
 0x3cf   : > { %v4613_v61 = vor.u32 %v4612_v59, %v4611_v41  ;;  %v4616_v12 = vshll.u32 %v4615_v63, 23  ;;  %v4495_v30 = vadd.s32 %v4494_v19, %v4490_v32  ;;  %10243 = vpow2.f32 %v1015_v58 }
 0x3d0   : > { %v7825_v24 = vmul.f32 0.5, %v7761_v21  ;;  %v4747_v14 = vand.u32 2139095040, %v14216_v40  ;;  %v4625_v15 = vsel %vm4540_vm5, %v4624_v33, %v14148_v47  ;;  %v4751_v13 = vand.u32 8388607, %v4744_v8 }
 0x3d1   : > { %v4617_v54 = vor.u32 4788187, %v4616_v12  ;;  %v4620_v0 = vcvt.s32.f32 %v4613_v61  ;;  %v4496_v1 = vadd.s32 536870912, %v4495_v30  ;;  %v4641_v28 = vand.u32 2147483647, %v14226_v23 }
 0x3d2   : > { %v7953_v37 = vsel %vm7889_vm2, %v7825_v24, 0.0  ;;  %v4748_v53 = vshrl.u32 %v4747_v14, 23  ;;  %v4644_v49 = vand.u32 2139095040, %v14226_v23  ;;  %vm14241_vm6 = vcmp.le.f32.partialorder %v4538_v44, 0.7853982 }
 0x3d3   : > { %8721 = vperm.xlu0 %9915, %v7953_v37   ;;  %v4618_v5 = vand.u32 2147483647, %v4617_v54  ;;  %v4497_v25 = vshrl.u32 %v4496_v1, 30  ;;  %v4627_v34 = vsel %vm14241_vm6, 0, %v4625_v15  ;;  %v4752_v16 = vor.u32 8388608, %v4751_v13 }
 0x3d4   : > { %v10242_v2 = vpop.eup %10241  ;;  %v9241_v35 = vadd.s32 4294967169, %v4748_v53  ;;  %v14249_v48 = vand.u32 8388607, %v4641_v28  ;;  %vm4437_vm7 = vcmp.lt.s32.totalorder %v14056_v31, 0  ;;  %v4645_v46 = vshrl.u32 %v4644_v49, 23 }
 0x3d5   : > { %v4621_v52 = vmul.f32 %v4620_v0, %v4618_v5  ;;  %v4498_v26 = vshll.u32 %v4497_v25, 30  ;;  %v4521_v6 = vsub.s32 4, %v4497_v25  ;;  %v14254_v33 = vand.u32 3, %v4627_v34 }
 0x3d6   : > { %v4754_v57 = vadd.s32 1, %v9241_v35  ;;  %vm14258_vm8 = vcmp.le.f32.partialorder %v4435_v50, 0.7853982  ;;  %v4491_v43 = vadd.s32 %v14192_v20, %v14199_v36  ;;  %v14274_v10 = vshll.u32 %v4752_v16, 8 }
 0x3d7   : > { %v4622_v18 = vxor.u32 2147483648, %v4621_v52  ;;  %v14252_v44 = vsub.s32 %v4495_v30, %v4498_v26  ;;  %v14264_v51 = vsel %vm4437_vm7, %v4521_v6, %v4497_v25  ;;  %v4649_v39 = vor.u32 8388608, %v14249_v48 }
 0x3d8   : > { %vm4755_vm9 = vcmp.gt.s32.totalorder %v4754_v57, 0  ;;  %v4524_v20 = vsel %vm14258_vm8, 0, %v14264_v51  ;;  %v9237_v36 = vadd.s32 4294967169, %v4645_v46  ;;  %vm4636_vm10 = vcmp.eq.s32.totalorder %v14254_v33, 2 }
 0x3d9   : > { %v10244_v55 = vpop.eup %10243  ;;  %v4623_v32 = vsel %vm4540_vm5, %v4622_v18, %v4621_v52  ;;  %v4501_v27 = vsub.s32 0, %v14252_v44  ;;  %v4756_v41 = vsel %vm4755_vm9, %v4754_v57, 0  ;;  %vm4633_vm12 = vcmp.eq.s32.totalorder %v14254_v33, 0 }
 0x3da   : > { %v4626_v50 = vsel %vm14241_vm6, %v14008_v3, %v4623_v32  ;;  %v4758_v62 = vand.u32 31, %v4756_v41  ;;  %9554 = vmatprep.mubr.msk.f32.mxu1 %vm7991_vm0, %v10244_v55  ;;  %v4757_v59 = vshrl.u32 %v4756_v41, 5  ;;  %vm4632_vm11 = vcmp.lt.s32.totalorder %v14254_v33, 2 }
 0x3db   : > { %10245 = vcosq.f32 %v4626_v50  ;;  %v9230_v60 = vmin.u32 %v4501_v27, %v14252_v44  ;;  %9555 = vmatmul.mubr.msk.f32.gmra.mrb[2].mxu1 %vm7991_vm0, %v10242_v2  ;;  %vm4630_vm13 = vweird.f32 %v14008_v3  ;;  %v4651_v18 = vadd.s32 1, %v9237_v36 }
 0x3dc   : > { %10247 = vsinq.f32 %v4626_v50  ;;  %v4759_v63 = vsub.s32 32, %v4758_v62  ;;  %v4761_v58 = vshll.u32 %v17469_v17, %v4758_v62  ;;  %v4764_v19 = vshll.u32 %v17470_v22, %v4758_v62 }
 0x3dd   : > { %v4503_v21 = vclz %v9230_v60  ;;  %v4767_v61 = vshll.u32 %v17446_v29, %v4758_v62  ;;  %v4770_v12 = vshll.u32 %v17447_v56, %v4758_v62  ;;  %v4773_v1 = vshll.u32 %v17428_v7, %v4758_v62 }
 0x3de   : > { %v4760_v30 = vshrl.u32 %v17469_v17, %v4759_v63  ;;  %v4762_v24 = vshrl.u32 %v17470_v22, %v4759_v63  ;;  %v4765_v14 = vshrl.u32 %v17446_v29, %v4759_v63  ;;  %v4768_v54 = vshrl.u32 %v17447_v56, %v4759_v63 }
 0x3df   : > { %v9231_v0 = vadd.s32 4294967294, %v4503_v21  ;;  %v4771_v15 = vshrl.u32 %v17428_v7, %v4759_v63  ;;  %v4774_v37 = vshrl.u32 %v17451_v42, %v4759_v63  ;;  %vm4776_vm14 = vcmp.lt.s32.totalorder %v4757_v59, 1 }
 0x3e0   : > { %v4763_v53 = vor.u32 %v4762_v24, %v4761_v58  ;;  %v4766_v13 = vor.u32 %v4765_v14, %v4764_v19  ;;  %v4769_v5 = vor.u32 %v4768_v54, %v4767_v61  ;;  %vm4777_vm1 = vcmp.lt.s32.totalorder %v4757_v59, 2 }
 0x3e1   : > { %vm9232_vm15 = vcmp.lt.s32.totalorder %v9231_v0, 0  ;;  %v4772_v25 = vor.u32 %v4771_v15, %v4770_v12  ;;  %v4775_v49 = vor.u32 %v4774_v37, %v4773_v1  ;;  %vm4778_vm2 = vcmp.lt.s32.totalorder %v4757_v59, 3 }
 0x3e2   : > { %v4506_v2 = vsel %vm9232_vm15, 0, %v9231_v0  ;;  %vm4779_vm3 = vcmp.lt.s32.totalorder %v4757_v59, 4  ;;  %v4780_v47 = vsel %vm4776_vm14, %v4760_v30, %v4763_v53  ;;  %v4784_v16 = vsel %vm4776_vm14, %v4763_v53, %v4766_v13  ;;  %v617_v0 = vpop.permute.xlu1 %616 }
 0x3e3   : > { %v4507_v35 = vsub.s32 32, %v4506_v2  ;;  %v4508_v52 = vshll.u32 %v14252_v44, %v4506_v2  ;;  %v4511_v34 = vsub.s32 4294967266, %v4506_v2  ;;  %v4781_v26 = vsel %vm4779_vm3, %v4769_v5, 2102212464 }
 0x3e4   : > { %v4782_v6 = vsel %vm4778_vm2, %v4766_v13, %v4781_v26  ;;  %v4785_v57 = vsel %vm4779_vm3, %v4772_v25, 920167782  ;;  %vm7892_vm4 = vcmp.lt.f32.partialorder %v14005_v45, 5.0  ;;  %v4788_v41 = vsel %vm4776_vm14, %v4766_v13, %v4769_v5 }
 0x3e5   : > { %v10246_v46 = vpop.eup %10245  ;;  %v4509_v55 = vshrl.u32 %v4491_v43, %v4507_v35  ;;  %v4512_v32 = vadd.s32 127, %v4511_v34  ;;  %v4786_v27 = vsel %vm4778_vm2, %v4769_v5, %v4785_v57  ;;  %v4783_v62 = vsel %vm4777_vm1, %v4780_v47, %v4782_v6  ;;  %v14338_v47 = vld [vmem:[%s17404_s1] ss:$0 sm:$0xff] }
 0x3e6   : > { %v10248_v44 = vpop.eup %10247  ;;  %v4637_v50 = vxor.u32 2147483648, %v10246_v46  ;;  %v4787_v60 = vsel %vm4777_vm1, %v4784_v16, %v4786_v27  ;;  %v4789_v63 = vsel %vm4779_vm3, %v4775_v49, 1326507024  ;;  %vm4652_vm5 = vcmp.gt.s32.totalorder %v4651_v18, 0 }
 0x3e7   : > { %v4634_v58 = vxor.u32 2147483648, %v10248_v44  ;;  %v4510_v21 = vor.u32 %v4509_v55, %v4508_v52  ;;  %v4513_v36 = vshll.u32 %v4512_v32, 23  ;;  %v4790_v19 = vsel %vm4778_vm2, %v4772_v25, %v4789_v63 }
 0x3e8   : > { %v4638_v43 = vsel %vm4636_vm10, %v4637_v50, %v10248_v44  ;;  %v4791_v61 = vsel %vm4777_vm1, %v4788_v41, %v4790_v19  ;;  %v14315_v12 = vmul.u32.u64.low %v14274_v10, %v4787_v60  ;;  %v14316_v30 = vmul.u32.u64.high %v14274_v10, %v4787_v60, %v14315_v12 }
 0x3e9   : > { %v4635_v24 = vsel %vm4633_vm12, %v10246_v46, %v4634_v58  ;;  %v4514_v14 = vor.u32 4788187, %v4513_v36  ;;  %v4517_v54 = vcvt.s32.f32 %v4510_v21  ;;  %v4653_v59 = vsel %vm4652_vm5, %v4651_v18, 0 }
 0x3ea   : > { %v4639_v15 = vsel %vm4632_vm11, %v4635_v24, %v4638_v43  ;;  %v14324_v1 = vmul.u32.u64.low %v14274_v10, %v4791_v61  ;;  %v14325_v37 = vmul.u32.u64.high %v14274_v10, %v4791_v61, %v14324_v1  ;;  %v4655_v5 = vand.u32 31, %v4653_v59 }
 0x3eb   : > { %v4640_v53 = vsel %vm4630_vm13, nan, %v4639_v15  ;;  %v4515_v13 = vand.u32 2147483647, %v4514_v14  ;;  %v14331_v25 = vshll.u32 %v4649_v39, 8  ;;  %v4799_v2 = vmul.u32 %v14274_v10, %v4783_v62  ;;  %v612_v15 = vpop.permute.xlu0 %611 }
 0x3ec   : > { %v7764_v49 = vadd.f32 1.0, %v4640_v53  ;;  %v4802_v33 = vadd.s32 1, %v14316_v30  ;;  %v792_v35 = vsub.f32 %v617_v0, %v14338_v47  ;;  %v4654_v52 = vshrl.u32 %v4653_v59, 5 }
 0x3ed   : > { %v4518_v3 = vmul.f32 %v4517_v54, %v4515_v13  ;;  %v4656_v34 = vsub.s32 32, %v4655_v5  ;;  %v4658_v26 = vshll.u32 %v17469_v17, %v4655_v5  ;;  %vm4801_vm6 = vc.u32 %v14325_v37, %v14315_v12 }
 0x3ee   : > { %v7828_v48 = vmul.f32 0.5, %v7764_v49  ;;  %v4661_v10 = vshll.u32 %v17470_v22, %v4655_v5  ;;  %v4664_v39 = vshll.u32 %v17446_v29, %v4655_v5  ;;  %v4803_v16 = vsel %vm4801_vm6, %v4802_v33, %v14316_v30 }
 0x3ef   : > { %v4519_v6 = vxor.u32 2147483648, %v4518_v3  ;;  %v4657_v57 = vshrl.u32 %v17469_v17, %v4656_v34  ;;  %v4659_v18 = vshrl.u32 %v17470_v22, %v4656_v34  ;;  %v4804_v55 = vadd.s32 %v4803_v16, %v4799_v2 }
 0x3f0   : > { %v7956_v46 = vsel %vm7892_vm4, %v7828_v48, 0.0  ;;  %v4662_v32 = vshrl.u32 %v17446_v29, %v4656_v34  ;;  %v4665_v27 = vshrl.u32 %v17447_v56, %v4656_v34  ;;  %v4667_v50 = vshll.u32 %v17447_v56, %v4655_v5 }
 0x3f1   : > { %8736 = vperm.xlu1 %9916, %v7956_v46   ;;  %v4520_v41 = vsel %vm4437_vm7, %v4519_v6, %v4518_v3  ;;  %v4660_v44 = vor.u32 %v4659_v18, %v4658_v26  ;;  %v4668_v62 = vshrl.u32 %v17428_v7, %v4656_v34  ;;  %v4805_v45 = vadd.s32 536870912, %v4804_v55 }
 0x3f2   : > { %v4523_v60 = vsel %vm14258_vm8, %v14056_v31, %v4520_v41  ;;  %v4663_v63 = vor.u32 %v4662_v32, %v4661_v10  ;;  %v4666_v58 = vor.u32 %v4665_v27, %v4664_v39  ;;  %v4670_v36 = vshll.u32 %v17428_v7, %v4655_v5 }
 0x3f3   : > { %10249 = vcosq.f32 %v4523_v60  ;;  %v4669_v21 = vor.u32 %v4668_v62, %v4667_v50  ;;  %v4671_v19 = vshrl.u32 %v17451_v42, %v4656_v34  ;;  %v4806_v43 = vshrl.u32 %v4805_v45, 30  ;;  %v14391_v50 = vld [vmem:[%s10649_s28 + $0x128] sm:$0xff] }
 0x3f4   : > { %10251 = vsinq.f32 %v4523_v60  ;;  %vm4673_vm7 = vcmp.lt.s32.totalorder %v4654_v52, 1  ;;  %v856_v61 = vmul.f32 %v792_v35, %v792_v35  ;;  %vm4674_vm9 = vcmp.lt.s32.totalorder %v4654_v52, 2 }
 0x3f5   : > { %v4672_v30 = vor.u32 %v4671_v19, %v4670_v36  ;;  %vm4675_vm10 = vcmp.lt.s32.totalorder %v4654_v52, 3  ;;  %vm4676_vm12 = vcmp.lt.s32.totalorder %v4654_v52, 4  ;;  %v4807_v24 = vshll.u32 %v4806_v43, 30 }
 0x3f6   : > { %v4677_v14 = vsel %vm4673_vm7, %v4657_v57, %v4660_v44  ;;  %v4678_v54 = vsel %vm4676_vm12, %v4666_v58, 2102212464  ;;  %v4681_v0 = vsel %vm4673_vm7, %v4660_v44, %v4663_v63  ;;  %v4682_v59 = vsel %vm4676_vm12, %v4669_v21, 920167782 }
 0x3f7   : > { %v4679_v1 = vsel %vm4675_vm10, %v4663_v63, %v4678_v54  ;;  %v4685_v53 = vsel %vm4673_vm7, %v4663_v63, %v4666_v58  ;;  %v4686_v13 = vsel %vm4676_vm12, %v4672_v30, 1326507024  ;;  %v4528_v5 = vand.u32 3, %v4524_v20 }
 0x3f8   : > { %v14366_v49 = vsub.s32 %v4804_v55, %v4807_v24  ;;  %v4683_v2 = vsel %vm4675_vm10, %v4666_v58, %v4682_v59  ;;  %v4687_v35 = vsel %vm4675_vm10, %v4669_v21, %v4686_v13  ;;  %v791_v3 = vsub.f32 %v612_v15, %v14338_v47 }
 0x3f9   : > { %v4684_v33 = vsel %vm4674_vm9, %v4681_v0, %v4683_v2  ;;  %v4680_v26 = vsel %vm4674_vm9, %v4677_v14, %v4679_v1  ;;  %v4688_v48 = vsel %vm4674_vm9, %v4685_v53, %v4687_v35  ;;  %v920_v10 = vmul.f32 -259.48502, %v856_v61  ;;  %v14412_v2 = vld [vmem:[%s10649_s28 + $0x120] sm:$0xff] }
 0x3fa   : > { %v4810_v34 = vsub.s32 0, %v14366_v49  ;;  %v14374_v4 = vmul.u32.u64.low %v14331_v25, %v4688_v48  ;;  %v14375_v39 = vmul.u32.u64.high %v14331_v25, %v4688_v48, %v14374_v4  ;;  %vm4527_vm8 = vweird.f32 %v14056_v31 }
 0x3fb   : > { %v14378_v51 = vmul.u32.u64.low %v14331_v25, %v4684_v33  ;;  %v14379_v20 = vmul.u32.u64.high %v14331_v25, %v4684_v33, %v14378_v51  ;;  %vm4529_vm11 = vcmp.lt.s32.totalorder %v4528_v5, 2  ;;  %vm4746_vm13 = vcmp.lt.s32.totalorder %v14216_v40, 0 }
 0x3fc   : > { %v9242_v6 = vmin.u32 %v4810_v34, %v14366_v49  ;;  %vm4530_vm14 = vcmp.eq.s32.totalorder %v4528_v5, 0  ;;  %vm4533_vm15 = vcmp.eq.s32.totalorder %v4528_v5, 2  ;;  %vm7891_vm1 = vcmp.lt.f32.partialorder %v14053_v9, 5.0 }
 0x3fd   : > { %v10250_v52 = vpop.eup %10249  ;;  %v4830_v16 = vsub.s32 4, %v4806_v43  ;;  %v855_v57 = vmul.f32 %v791_v3, %v791_v3  ;;  %v4696_v32 = vmul.u32 %v14331_v25, %v4680_v26  ;;  %v1021_v27 = vmul.f32 1.442695, %v920_v10 }
 0x3fe   : > { %v10252_v18 = vpop.eup %10251  ;;  %v4534_v46 = vxor.u32 2147483648, %v10250_v52  ;;  %v4812_v55 = vclz %v9242_v6  ;;  %vm4698_vm2 = vc.u32 %v14375_v39, %v14378_v51  ;;  %v4699_v44 = vadd.s32 1, %v14379_v20 }
 0x3ff   : > { %v4531_v41 = vxor.u32 2147483648, %v10252_v18  ;;  %v14394_v62 = vmul.f32 0.62831855, %v14391_v50  ;;  %v4800_v45 = vadd.s32 %v14315_v12, %v14325_v37  ;;  %v919_v58 = vmul.f32 -259.48502, %v855_v57 }
 0x400   : > { %v4535_v60 = vsel %vm4533_vm15, %v4534_v46, %v10252_v18  ;;  %v9243_v63 = vadd.s32 4294967294, %v4812_v55  ;;  %v4831_v21 = vsel %vm4746_vm13, %v4830_v16, %v4806_v43  ;;  %v4700_v36 = vsel %vm4698_vm2, %v4699_v44, %v14379_v20 }
 0x401   : > { %v4532_v25 = vsel %vm4530_vm14, %v10250_v52, %v4531_v41  ;;  %v4950_v19 = vand.u32 2147483647, %v14394_v62  ;;  %v4701_v30 = vadd.s32 %v4700_v36, %v4696_v32  ;;  %v1019_v24 = vmul.f32 1.442695, %v919_v58 }
 0x402   : > { %v4536_v61 = vsel %vm4529_vm11, %v4532_v25, %v4535_v60  ;;  %vm9244_vm3 = vcmp.lt.s32.totalorder %v9243_v63, 0  ;;  %10253 = vpow2.f32 %v1021_v27  ;;  %v4953_v14 = vand.u32 2139095040, %v14394_v62 }
 0x403   : > { %v4537_v12 = vsel %vm4527_vm8, nan, %v4536_v61  ;;  %v4815_v37 = vsel %vm9244_vm3, 0, %v9243_v63  ;;  %v4702_v1 = vadd.s32 536870912, %v4701_v30  ;;  %10255 = vpow2.f32 %v1019_v24 }
 0x404   : > { %v7763_v54 = vadd.f32 1.0, %v4537_v12  ;;  %v4816_v0 = vsub.s32 32, %v4815_v37  ;;  %v4817_v43 = vshll.u32 %v14366_v49, %v4815_v37  ;;  %v4820_v15 = vsub.s32 4294967266, %v4815_v37 }
 0x405   : > { %v4954_v59 = vshrl.u32 %v4953_v14, 23  ;;  %v4957_v53 = vand.u32 8388607, %v4950_v19  ;;  %v14415_v33 = vmul.f32 0.62831855, %v14412_v2  ;;  %v4703_v35 = vshrl.u32 %v4702_v1, 30 }
 0x406   : > { %v7827_v13 = vmul.f32 0.5, %v7763_v54  ;;  %v4818_v5 = vshrl.u32 %v4800_v45, %v4816_v0  ;;  %v4821_v31 = vadd.s32 127, %v4820_v15  ;;  %vm14421_vm4 = vcmp.le.f32.partialorder %v4744_v8, 0.7853982 }
 0x407   : > { %v9249_v3 = vadd.s32 4294967169, %v4954_v59  ;;  %v4833_v10 = vsel %vm14421_vm4, 0, %v4831_v21  ;;  %v4704_v4 = vshll.u32 %v4703_v35, 30  ;;  %v4958_v20 = vor.u32 8388608, %v4957_v53 }
 0x408   : > { %v7955_v49 = vsel %vm7891_vm1, %v7827_v13, 0.0  ;;  %v4819_v26 = vor.u32 %v4818_v5, %v4817_v43  ;;  %v4822_v48 = vshll.u32 %v4821_v31, 23  ;;  %v4727_v57 = vsub.s32 4, %v4703_v35 }
 0x409   : > { %8731 = vperm.xlu0 %9915, %v7955_v49   ;;  %v4960_v6 = vadd.s32 1, %v9249_v3  ;;  %v4850_v9 = vand.u32 2139095040, %v14415_v33  ;;  %v14428_v18 = vsub.s32 %v4701_v30, %v4704_v4  ;;  %v4847_v8 = vand.u32 2147483647, %v14415_v33 }
 0x40a   : > { %v4823_v52 = vor.u32 4788187, %v4822_v48  ;;  %v4826_v16 = vcvt.s32.f32 %v4819_v26  ;;  %v14431_v41 = vand.u32 3, %v4833_v10  ;;  %vm4643_vm6 = vcmp.lt.s32.totalorder %v14226_v23, 0 }
 0x40b   : > { %vm4961_vm5 = vcmp.gt.s32.totalorder %v4960_v6, 0  ;;  %v4851_v32 = vshrl.u32 %v4850_v9, 23  ;;  %v4707_v44 = vsub.s32 0, %v14428_v18  ;;  %v4697_v63 = vadd.s32 %v14378_v51, %v14375_v39 }
 0x40c   : > { %v4824_v46 = vand.u32 2147483647, %v4823_v52  ;;  %v4962_v55 = vsel %vm4961_vm5, %v4960_v6, 0  ;;  %v10254_v27 = vpop.eup %10253  ;;  %v14439_v58 = vsel %vm4643_vm6, %v4727_v57, %v4703_v35  ;;  %v14441_v25 = vshll.u32 %v4958_v20, 8 }
 0x40d   : > { %v4964_v60 = vand.u32 31, %v4962_v55  ;;  %v10256_v21 = vpop.eup %10255  ;;  %v9238_v36 = vmin.u32 %v4707_v44, %v14428_v18  ;;  %v14444_v61 = vshrl.u32 %v4962_v55, 5  ;;  %v9245_v30 = vadd.s32 4294967169, %v4851_v32 }
 0x40e   : > { %v4827_v45 = vmul.f32 %v4826_v16, %v4824_v46  ;;  %v14448_v24 = vand.u32 8388607, %v4847_v8  ;;  %9557 = vmatprep.mubr.msk.f32.mxu1 %vm7991_vm0, %v10256_v21  ;;  %vm14461_vm7 = vcmp.le.f32.partialorder %v4641_v28, 0.7853982  ;;  %vm4838_vm11 = vcmp.lt.s32.totalorder %v14431_v41, 2 }
 0x40f   : > { %v4965_v37 = vsub.s32 32, %v4964_v60  ;;  %v4967_v39 = vshll.u32 %v17469_v17, %v4964_v60  ;;  %v4970_v51 = vshll.u32 %v17470_v22, %v4964_v60  ;;  %v4709_v14 = vclz %v9238_v36  ;;  %9558 = vmatmul.mubr.msk.f32.gmra.mrb[4].mxu1 %vm7991_vm0, %v10254_v27 }
 0x410   : > { %v4828_v12 = vxor.u32 2147483648, %v4827_v45  ;;  %v4973_v54 = vshll.u32 %v17446_v29, %v4964_v60  ;;  %v4976_v0 = vshll.u32 %v17447_v56, %v4964_v60  ;;  %v4979_v43 = vshll.u32 %v17428_v7, %v4964_v60 }
 0x411   : > { %v4966_v59 = vshrl.u32 %v17469_v17, %v4965_v37  ;;  %v4968_v53 = vshrl.u32 %v17470_v22, %v4965_v37  ;;  %v4971_v13 = vshrl.u32 %v17446_v29, %v4965_v37  ;;  %v9239_v31 = vadd.s32 4294967294, %v4709_v14 }
 0x412   : > { %v4829_v15 = vsel %vm4746_vm13, %v4828_v12, %v4827_v45  ;;  %v4974_v35 = vshrl.u32 %v17447_v56, %v4965_v37  ;;  %v4977_v3 = vshrl.u32 %v17428_v7, %v4965_v37  ;;  %v4980_v26 = vshrl.u32 %v17451_v42, %v4965_v37 }
 0x413   : > { %v4832_v5 = vsel %vm14421_vm4, %v14216_v40, %v4829_v15  ;;  %v4969_v28 = vor.u32 %v4968_v53, %v4967_v39  ;;  %v4972_v49 = vor.u32 %v4971_v13, %v4970_v51  ;;  %vm9240_vm9 = vcmp.lt.s32.totalorder %v9239_v31, 0 }
 0x414   : > { %10257 = vcosq.f32 %v4832_v5  ;;  %v4975_v48 = vor.u32 %v4974_v35, %v4973_v54  ;;  %v4978_v10 = vor.u32 %v4977_v3, %v4976_v0  ;;  %v4712_v4 = vsel %vm9240_vm9, 0, %v9239_v31 }
 0x415   : > { %10259 = vsinq.f32 %v4832_v5  ;;  %v4981_v20 = vor.u32 %v4980_v26, %v4979_v43  ;;  %vm4982_vm10 = vcmp.lt.s32.totalorder %v14444_v61, 1  ;;  %vm4983_vm12 = vcmp.lt.s32.totalorder %v14444_v61, 2 }
 0x416   : > { %v4713_v34 = vsub.s32 32, %v4712_v4  ;;  %v4714_v6 = vshll.u32 %v14428_v18, %v4712_v4  ;;  %v4717_v52 = vsub.s32 4294967266, %v4712_v4  ;;  %vm4984_vm8 = vcmp.lt.s32.totalorder %v14444_v61, 3 }
 0x417   : > { %vm4985_vm13 = vcmp.lt.s32.totalorder %v14444_v61, 4  ;;  %v4986_v16 = vsel %vm4982_vm10, %v4966_v59, %v4969_v28  ;;  %v4990_v57 = vsel %vm4982_vm10, %v4969_v28, %v4972_v49  ;;  %v4994_v9 = vsel %vm4982_vm10, %v4972_v49, %v4975_v48 }
 0x418   : > { %vm4836_vm14 = vweird.f32 %v14216_v40  ;;  %v4715_v46 = vshrl.u32 %v4697_v63, %v4713_v34  ;;  %v4718_v55 = vadd.s32 127, %v4717_v52  ;;  %v4987_v32 = vsel %vm4985_vm13, %v4975_v48, 2102212464 }
 0x419   : > { %v4991_v27 = vsel %vm4985_vm13, %v4978_v10, 920167782  ;;  %v4988_v44 = vsel %vm4984_vm8, %v4972_v49, %v4987_v32  ;;  %v4995_v60 = vsel %vm4985_vm13, %v4981_v20, 1326507024  ;;  %v4857_v45 = vadd.s32 1, %v9245_v30 }
 0x41a   : > { %v4992_v18 = vsel %vm4984_vm8, %v4975_v48, %v4991_v27  ;;  %v4716_v21 = vor.u32 %v4715_v46, %v4714_v6  ;;  %v4719_v36 = vshll.u32 %v4718_v55, 23  ;;  %v4730_v12 = vsel %vm14461_vm7, 0, %v14439_v58 }
 0x41b   : > { %v4993_v63 = vsel %vm4983_vm12, %v4990_v57, %v4992_v18  ;;  %v4989_v37 = vsel %vm4983_vm12, %v4986_v16, %v4988_v44  ;;  %v4996_v39 = vsel %vm4984_vm8, %v4978_v10, %v4995_v60  ;;  %vm4858_vm15 = vcmp.gt.s32.totalorder %v4857_v45, 0 }
 0x41c   : > { %v14495_v51 = vmul.u32.u64.low %v14441_v25, %v4993_v63  ;;  %v14496_v14 = vmul.u32.u64.high %v14441_v25, %v4993_v63, %v14495_v51  ;;  %v4720_v30 = vor.u32 4788187, %v4719_v36  ;;  %v4723_v54 = vcvt.s32.f32 %v4716_v21 }
 0x41d   : > { %v4997_v0 = vsel %vm4983_vm12, %v4994_v9, %v4996_v39  ;;  %vm4842_vm1 = vcmp.eq.s32.totalorder %v14431_v41, 2  ;;  %vm7894_vm2 = vcmp.lt.f32.partialorder %v14213_v11, 5.0  ;;  %v4859_v59 = vsel %vm4858_vm15, %v4857_v45, 0 }
 0x41e   : > { %v10258_v58 = vpop.eup %10257  ;;  %v14504_v43 = vmul.u32.u64.low %v14441_v25, %v4997_v0  ;;  %v14505_v15 = vmul.u32.u64.high %v14441_v25, %v4997_v0, %v14504_v43  ;;  %vm4839_vm3 = vcmp.eq.s32.totalorder %v14431_v41, 0  ;;  %v4721_v5 = vand.u32 2147483647, %v4720_v30 }
 0x41f   : > { %v10260_v53 = vpop.eup %10259  ;;  %v4843_v13 = vxor.u32 2147483648, %v10258_v58  ;;  %v4861_v31 = vand.u32 31, %v4859_v59  ;;  %v14508_v61 = vand.u32 3, %v4730_v12  ;;  %v5005_v3 = vmul.u32 %v14441_v25, %v4989_v37  ;;  %v622_v43 = vpop.permute.xlu0 %621 }
 0x420   : > { %v4840_v35 = vxor.u32 2147483648, %v10260_v53  ;;  %v5008_v28 = vadd.s32 1, %v14496_v14  ;;  %v4724_v26 = vmul.f32 %v4723_v54, %v4721_v5  ;;  %v4855_v48 = vor.u32 8388608, %v14448_v24 }
 0x421   : > { %v4844_v49 = vsel %vm4842_vm1, %v4843_v13, %v10260_v53  ;;  %v4862_v10 = vsub.s32 32, %v4861_v31  ;;  %vm5007_vm4 = vc.u32 %v14505_v15, %v14495_v51  ;;  %v14515_v20 = vshrl.u32 %v4859_v59, 5 }
 0x422   : > { %v4841_v4 = vsel %vm4839_vm3, %v10258_v58, %v4840_v35  ;;  %v4864_v34 = vshll.u32 %v17469_v17, %v4861_v31  ;;  %v4725_v52 = vxor.u32 2147483648, %v4724_v26  ;;  %v5009_v25 = vsel %vm5007_vm4, %v5008_v28, %v14496_v14  ;;  %v627_v58 = vpop.permute.xlu1 %626 }
 0x423   : > { %v4845_v6 = vsel %vm4838_vm11, %v4841_v4, %v4844_v49  ;;  %v4867_v16 = vshll.u32 %v17470_v22, %v4861_v31  ;;  %v5010_v57 = vadd.s32 %v5009_v25, %v5005_v3  ;;  %v4865_v9 = vshrl.u32 %v17470_v22, %v4862_v10 }
 0x424   : > { %v4846_v24 = vsel %vm4836_vm14, nan, %v4845_v6  ;;  %v4868_v46 = vshrl.u32 %v17446_v29, %v4862_v10  ;;  %v4726_v32 = vsel %vm4643_vm6, %v4725_v52, %v4724_v26  ;;  %v4870_v41 = vshll.u32 %v17446_v29, %v4861_v31 }
 0x425   : > { %v7766_v55 = vadd.f32 1.0, %v4846_v24  ;;  %v4871_v27 = vshrl.u32 %v17447_v56, %v4862_v10  ;;  %v4729_v44 = vsel %vm14461_vm7, %v14226_v23, %v4726_v32  ;;  %v5011_v18 = vadd.s32 536870912, %v5010_v57 }
 0x426   : > { %v4866_v40 = vor.u32 %v4865_v9, %v4864_v34  ;;  %v14533_v60 = vshll.u32 %v4855_v48, 8  ;;  %10261 = vcosq.f32 %v4729_v44  ;;  %v4869_v21 = vor.u32 %v4868_v46, %v4867_v16  ;;  %v14582_v46 = vld [vmem:[%s10649_s28 + $0x138] sm:$0xff] }
 0x427   : > { %v7830_v45 = vmul.f32 0.5, %v7766_v55  ;;  %v4873_v36 = vshll.u32 %v17447_v56, %v4861_v31  ;;  %10263 = vsinq.f32 %v4729_v44  ;;  %v14536_v12 = vshrl.u32 %v5011_v18, 30 }
 0x428   : > { %v4874_v63 = vshrl.u32 %v17428_v7, %v4862_v10  ;;  %v4876_v37 = vshll.u32 %v17428_v7, %v4861_v31  ;;  %v4872_v39 = vor.u32 %v4871_v27, %v4870_v41  ;;  %v4877_v14 = vshrl.u32 %v17451_v42, %v4862_v10 }
 0x429   : > { %v7958_v1 = vsel %vm7894_vm2, %v7830_v45, 0.0  ;;  %vm4879_vm5 = vcmp.lt.s32.totalorder %v14515_v20, 1  ;;  %v5013_v30 = vshll.u32 %v14536_v12, 30  ;;  %v4863_v54 = vshrl.u32 %v17469_v17, %v4862_v10 }
 0x42a   : > { %8746 = vperm.xlu1 %9916, %v7958_v1   ;;  %v4875_v0 = vor.u32 %v4874_v63, %v4873_v36  ;;  %vm4881_vm6 = vcmp.lt.s32.totalorder %v14515_v20, 3  ;;  %v4878_v59 = vor.u32 %v4877_v14, %v4876_v37  ;;  %vm4880_vm7 = vcmp.lt.s32.totalorder %v14515_v20, 2 }
 0x42b   : > { %vm4882_vm9 = vcmp.lt.s32.totalorder %v14515_v20, 4  ;;  %v4887_v11 = vsel %vm4879_vm5, %v4866_v40, %v4869_v21  ;;  %vm4733_vm10 = vweird.f32 %v14226_v23  ;;  %v14552_v53 = vsub.s32 %v5010_v57, %v5013_v30 }
 0x42c   : > { %v4884_v13 = vsel %vm4882_vm9, %v4872_v39, 2102212464  ;;  %v4888_v5 = vsel %vm4882_vm9, %v4875_v0, 920167782  ;;  %vm4735_vm12 = vcmp.lt.s32.totalorder %v14508_v61, 2  ;;  %v794_v35 = vsub.f32 %v627_v58, %v14338_v47 }
 0x42d   : > { %v4889_v31 = vsel %vm4881_vm6, %v4872_v39, %v4888_v5  ;;  %v793_v3 = vsub.f32 %v622_v43, %v14338_v47  ;;  %v5016_v28 = vsub.s32 0, %v14552_v53  ;;  %v4883_v49 = vsel %vm4879_vm5, %v4863_v54, %v4866_v40 }
 0x42e   : > { %v4885_v26 = vsel %vm4881_vm6, %v4869_v21, %v4884_v13  ;;  %v4890_v48 = vsel %vm4880_vm7, %v4887_v11, %v4889_v31  ;;  %v4891_v10 = vsel %vm4879_vm5, %v4869_v21, %v4872_v39  ;;  %v4892_v4 = vsel %vm4882_vm9, %v4878_v59, 1326507024 }
 0x42f   : > { %v14569_v34 = vmul.u32.u64.low %v14533_v60, %v4890_v48  ;;  %v14570_v6 = vmul.u32.u64.high %v14533_v60, %v4890_v48, %v14569_v34  ;;  %vm4736_vm8 = vcmp.eq.s32.totalorder %v14508_v61, 0  ;;  %vm4739_vm11 = vcmp.eq.s32.totalorder %v14508_v61, 2 }
 0x430   : > { %v5006_v52 = vadd.s32 %v14495_v51, %v14505_v15  ;;  %v9250_v25 = vmin.u32 %v5016_v28, %v14552_v53  ;;  %v10262_v16 = vpop.eup %10261  ;;  %vm7893_vm13 = vcmp.lt.f32.partialorder %v14223_v38, 5.0  ;;  %v4893_v24 = vsel %vm4881_vm6, %v4875_v0, %v4892_v4 }
 0x431   : > { %v858_v57 = vmul.f32 %v794_v35, %v794_v35  ;;  %v857_v9 = vmul.f32 %v793_v3, %v793_v3  ;;  %v14585_v55 = vmul.f32 0.62831855, %v14582_v46  ;;  %v10264_v32 = vpop.eup %10263  ;;  %v4740_v41 = vxor.u32 2147483648, %v10262_v16 }
 0x432   : > { %v5018_v27 = vclz %v9250_v25  ;;  %v4886_v51 = vsel %vm4880_vm7, %v4883_v49, %v4885_v26  ;;  %v4894_v15 = vsel %vm4880_vm7, %v4891_v10, %v4893_v24  ;;  %v4737_v44 = vxor.u32 2147483648, %v10264_v32 }
 0x433   : > { %v5036_v18 = vsub.s32 4, %v14536_v12  ;;  %v14593_v40 = vmul.u32.u64.low %v14533_v60, %v4894_v15  ;;  %v14594_v45 = vmul.u32.u64.high %v14533_v60, %v4894_v15, %v14593_v40  ;;  %v4741_v21 = vsel %vm4739_vm11, %v4740_v41, %v10264_v32 }
 0x434   : > { %v9251_v36 = vadd.s32 4294967294, %v5018_v27  ;;  %v922_v63 = vmul.f32 -259.48502, %v858_v57  ;;  %v921_v37 = vmul.f32 -259.48502, %v857_v9  ;;  %v4738_v1 = vsel %vm4736_vm8, %v10262_v16, %v4737_v44  ;;  %v14636_v44 = vld [vmem:[%s10649_s28 + $0x130] sm:$0xff] }
 0x435   : > { %v4902_v39 = vmul.u32 %v14533_v60, %v4886_v51  ;;  %v4905_v20 = vadd.s32 1, %v14570_v6  ;;  %v5159_v14 = vand.u32 2139095040, %v14585_v55  ;;  %v4742_v30 = vsel %vm4735_vm12, %v4738_v1, %v4741_v21 }
 0x436   : > { %vm9252_vm14 = vcmp.lt.s32.totalorder %v9251_v36, 0  ;;  %v1025_v54 = vmul.f32 1.442695, %v922_v63  ;;  %v5156_v0 = vand.u32 2147483647, %v14585_v55  ;;  %v4743_v58 = vsel %vm4733_vm10, nan, %v4742_v30 }
 0x437   : > { %v5021_v43 = vsel %vm9252_vm14, 0, %v9251_v36  ;;  %vm4904_vm15 = vc.u32 %v14594_v45, %v14569_v34  ;;  %v1023_v59 = vmul.f32 1.442695, %v921_v37  ;;  %v7765_v60 = vadd.f32 1.0, %v4743_v58 }
 0x438   : > { %v5022_v11 = vsub.s32 32, %v5021_v43  ;;  %v5023_v13 = vshll.u32 %v14552_v53, %v5021_v43  ;;  %v5026_v5 = vsub.s32 4294967266, %v5021_v43  ;;  %vm4952_vm1 = vcmp.lt.s32.totalorder %v14394_v62, 0 }
 0x439   : > { %v4906_v61 = vsel %vm4904_vm15, %v4905_v20, %v14570_v6  ;;  %10265 = vpow2.f32 %v1025_v54  ;;  %v5160_v31 = vshrl.u32 %v5159_v14, 23  ;;  %v7829_v35 = vmul.f32 0.5, %v7765_v60 }
 0x43a   : > { %v5024_v3 = vshrl.u32 %v5006_v52, %v5022_v11  ;;  %v5027_v23 = vadd.s32 127, %v5026_v5  ;;  %v4907_v28 = vadd.s32 %v4906_v61, %v4902_v39  ;;  %v5037_v49 = vsel %vm4952_vm1, %v5036_v18, %v14536_v12 }
 0x43b   : > { %10267 = vpow2.f32 %v1023_v59  ;;  %v9257_v26 = vadd.s32 4294967169, %v5160_v31  ;;  %v5163_v53 = vand.u32 8388607, %v5156_v0  ;;  %v7957_v48 = vsel %vm7893_vm13, %v7829_v35, 0.0 }
 0x43c   : > { %v5025_v10 = vor.u32 %v5024_v3, %v5023_v13  ;;  %v5028_v4 = vshll.u32 %v5027_v23, 23  ;;  %v4908_v6 = vadd.s32 536870912, %v4907_v28  ;;  %8741 = vperm.xlu0 %9915, %v7957_v48   ;;  %vm14622_vm2 = vcmp.le.f32.partialorder %v4950_v19, 0.7853982 }
 0x43d   : > { %v5166_v52 = vadd.s32 1, %v9257_v26  ;;  %v5039_v38 = vsel %vm14622_vm2, 0, %v5037_v49  ;;  %v5164_v32 = vor.u32 8388608, %v5163_v53  ;;  %v14639_v18 = vmul.f32 0.62831855, %v14636_v44 }
 0x43e   : > { %v5029_v12 = vor.u32 4788187, %v5028_v4  ;;  %v5032_v16 = vcvt.s32.f32 %v5025_v10  ;;  %v14626_v24 = vshrl.u32 %v4908_v6, 30  ;;  %v14631_v15 = vand.u32 3, %v5039_v38 }
 0x43f   : > { %vm5167_vm3 = vcmp.gt.s32.totalorder %v5166_v52, 0  ;;  %v4903_v21 = vadd.s32 %v14569_v34, %v14594_v45  ;;  %v14647_v14 = vshll.u32 %v5164_v32, 8  ;;  %v5053_v34 = vand.u32 2147483647, %v14639_v18 }
 0x440   : > { %v5030_v57 = vand.u32 2147483647, %v5029_v12  ;;  %v4910_v9 = vshll.u32 %v14626_v24, 30  ;;  %v5168_v41 = vsel %vm5167_vm3, %v5166_v52, 0  ;;  %v5056_v11 = vand.u32 2139095040, %v14639_v18 }
 0x441   : > { %v5170_v27 = vand.u32 31, %v5168_v41  ;;  %v5169_v60 = vshrl.u32 %v5168_v41, 5  ;;  %vm4849_vm4 = vcmp.lt.s32.totalorder %v14415_v33, 0  ;;  %vm5045_vm9 = vcmp.eq.s32.totalorder %v14631_v15, 0 }
 0x442   : > { %v5033_v51 = vmul.f32 %v5032_v16, %v5030_v57  ;;  %v14633_v19 = vsub.s32 %v4907_v28, %v4910_v9  ;;  %vm5044_vm12 = vcmp.lt.s32.totalorder %v14631_v15, 2  ;;  %vm5042_vm11 = vweird.f32 %v14394_v62 }
 0x443   : > { %v10266_v40 = vpop.eup %10265  ;;  %v5171_v36 = vsub.s32 32, %v5170_v27  ;;  %v5173_v63 = vshll.u32 %v17469_v17, %v5170_v27  ;;  %v5176_v37 = vshll.u32 %v17470_v22, %v5170_v27  ;;  %v5179_v20 = vshll.u32 %v17446_v29, %v5170_v27 }
 0x444   : > { %v5034_v1 = vxor.u32 2147483648, %v5033_v51  ;;  %v4913_v39 = vsub.s32 0, %v14633_v19  ;;  %v5182_v23 = vshll.u32 %v17447_v56, %v5170_v27  ;;  %v5185_v49 = vshll.u32 %v17428_v7, %v5170_v27 }
 0x445   : > { %v10268_v30 = vpop.eup %10267  ;;  %v5174_v54 = vshrl.u32 %v17470_v22, %v5171_v36  ;;  %v5177_v58 = vshrl.u32 %v17446_v29, %v5171_v36  ;;  %v5180_v43 = vshrl.u32 %v17447_v56, %v5171_v36  ;;  %v5172_v5 = vshrl.u32 %v17469_v17, %v5171_v36 }
 0x446   : > { %v5035_v45 = vsel %vm4952_vm1, %v5034_v1, %v5033_v51  ;;  %v9246_v59 = vmin.u32 %v4913_v39, %v14633_v19  ;;  %9560 = vmatprep.mubr.msk.f32.mxu1 %vm7991_vm0, %v10268_v30  ;;  %v5183_v28 = vshrl.u32 %v17428_v7, %v5171_v36  ;;  %v5186_v26 = vshrl.u32 %v17451_v42, %v5171_v36  ;;  %v637_v30 = vpop.permute.xlu1 %636 }
 0x447   : > { %v5038_v13 = vsel %vm14622_vm2, %v14394_v62, %v5035_v45  ;;  %v5175_v61 = vor.u32 %v5174_v54, %v5173_v63  ;;  %v5178_v31 = vor.u32 %v5177_v58, %v5176_v37  ;;  %9561 = vmatmul.mubr.msk.f32.gmra.mrb[6].mxu1 %vm7991_vm0, %v10266_v40  ;;  %v5181_v3 = vor.u32 %v5180_v43, %v5179_v20 }
 0x448   : > { %10269 = vcosq.f32 %v5038_v13  ;;  %v4915_v35 = vclz %v9246_v59  ;;  %vm5188_vm5 = vcmp.lt.s32.totalorder %v5169_v60, 1  ;;  %vm5189_vm6 = vcmp.lt.s32.totalorder %v5169_v60, 2 }
 0x449   : > { %10271 = vsinq.f32 %v5038_v13  ;;  %vm5190_vm7 = vcmp.lt.s32.totalorder %v5169_v60, 3  ;;  %v5184_v48 = vor.u32 %v5183_v28, %v5182_v23  ;;  %v5187_v10 = vor.u32 %v5186_v26, %v5185_v49 }
 0x44a   : > { %v9247_v53 = vadd.s32 4294967294, %v4915_v35  ;;  %vm5191_vm10 = vcmp.lt.s32.totalorder %v5169_v60, 4  ;;  %v5192_v4 = vsel %vm5188_vm5, %v5172_v5, %v5175_v61  ;;  %v5196_v52 = vsel %vm5188_vm5, %v5175_v61, %v5178_v31 }
 0x44b   : > { %v5193_v6 = vsel %vm5191_vm10, %v5181_v3, 2102212464  ;;  %v5200_v25 = vsel %vm5188_vm5, %v5178_v31, %v5181_v3  ;;  %vm14673_vm13 = vcmp.le.f32.partialorder %v4847_v8, 0.7853982  ;;  %v5197_v57 = vsel %vm5191_vm10, %v5184_v48, 920167782 }
 0x44c   : > { %vm9248_vm8 = vcmp.lt.s32.totalorder %v9247_v53, 0  ;;  %v5194_v38 = vsel %vm5190_vm7, %v5178_v31, %v5193_v6  ;;  %v5201_v9 = vsel %vm5191_vm10, %v5187_v10, 1326507024  ;;  %v4933_v51 = vsub.s32 4, %v14626_v24 }
 0x44d   : > { %v4918_v16 = vsel %vm9248_vm8, 0, %v9247_v53  ;;  %v5195_v40 = vsel %vm5189_vm6, %v5192_v4, %v5194_v38  ;;  %v5198_v36 = vsel %vm5190_vm7, %v5181_v3, %v5197_v57  ;;  %v5202_v8 = vsel %vm5190_vm7, %v5184_v48, %v5201_v9 }
 0x44e   : > { %v4919_v32 = vsub.s32 32, %v4918_v16  ;;  %v4920_v41 = vshll.u32 %v14633_v19, %v4918_v16  ;;  %v4923_v27 = vsub.s32 4294967266, %v4918_v16  ;;  %v5057_v63 = vshrl.u32 %v5056_v11, 23 }
 0x44f   : > { %v5199_v39 = vsel %vm5189_vm6, %v5196_v52, %v5198_v36  ;;  %v5203_v20 = vsel %vm5189_vm6, %v5200_v25, %v5202_v8  ;;  %vm5048_vm14 = vcmp.eq.s32.totalorder %v14631_v15, 2  ;;  %v4934_v60 = vsel %vm4849_vm4, %v4933_v51, %v14626_v24 }
 0x450   : > { %v4921_v37 = vshrl.u32 %v4903_v21, %v4919_v32  ;;  %v4924_v1 = vadd.s32 127, %v4923_v27  ;;  %v14686_v54 = vmul.u32.u64.low %v14647_v14, %v5203_v20  ;;  %v14687_v19 = vmul.u32.u64.high %v14647_v14, %v5203_v20, %v14686_v54 }
 0x451   : > { %v14690_v58 = vmul.u32.u64.low %v14647_v14, %v5199_v39  ;;  %v14691_v43 = vmul.u32.u64.high %v14647_v14, %v5199_v39, %v14690_v58  ;;  %v9253_v11 = vadd.s32 4294967169, %v5057_v63  ;;  %v5211_v61 = vmul.u32 %v14647_v14, %v5195_v40  ;;  %v632_v63 = vpop.permute.xlu0 %631 }
 0x452   : > { %v10270_v45 = vpop.eup %10269  ;;  %v4922_v59 = vor.u32 %v4921_v37, %v4920_v41  ;;  %v4925_v21 = vshll.u32 %v4924_v1, 23  ;;  %v796_v31 = vsub.f32 %v637_v30, %v14338_v47  ;;  %v5060_v53 = vand.u32 8388607, %v5053_v34 }
 0x453   : > { %v10272_v13 = vpop.eup %10271  ;;  %v5049_v5 = vxor.u32 2147483648, %v10270_v45  ;;  %v5063_v28 = vadd.s32 1, %v9253_v11  ;;  %vm5213_vm15 = vc.u32 %v14687_v19, %v14690_v58  ;;  %v5214_v26 = vadd.s32 1, %v14691_v43 }
 0x454   : > { %v5046_v35 = vxor.u32 2147483648, %v10272_v13  ;;  %v4926_v3 = vor.u32 4788187, %v4925_v21  ;;  %v4929_v23 = vcvt.s32.f32 %v4922_v59  ;;  %v4936_v14 = vsel %vm14673_vm13, 0, %v4934_v60 }
 0x455   : > { %v5050_v49 = vsel %vm5048_vm14, %v5049_v5, %v10272_v13  ;;  %vm5064_vm1 = vcmp.gt.s32.totalorder %v5063_v28, 0  ;;  %v5215_v4 = vsel %vm5213_vm15, %v5214_v26, %v14691_v43  ;;  %vm7896_vm2 = vcmp.lt.f32.partialorder %v14391_v50, 5.0 }
 0x456   : > { %v5047_v24 = vsel %vm5045_vm9, %v10270_v45, %v5046_v35  ;;  %v4927_v48 = vand.u32 2147483647, %v4926_v3  ;;  %v5065_v6 = vsel %vm5064_vm1, %v5063_v28, 0  ;;  %v5216_v16 = vadd.s32 %v5215_v4, %v5211_v61 }
 0x457   : > { %v5051_v10 = vsel %vm5044_vm12, %v5047_v24, %v5050_v49  ;;  %v14715_v57 = vand.u32 3, %v4936_v14  ;;  %v5067_v9 = vand.u32 31, %v5065_v6  ;;  %v5061_v27 = vor.u32 8388608, %v5060_v53 }
 0x458   : > { %v5052_v52 = vsel %vm5042_vm11, nan, %v5051_v10  ;;  %v4930_v25 = vmul.f32 %v4929_v23, %v4927_v48  ;;  %v5217_v41 = vadd.s32 536870912, %v5216_v16  ;;  %v860_v51 = vmul.f32 %v796_v31, %v796_v31 }
 0x459   : > { %v7768_v38 = vadd.f32 1.0, %v5052_v52  ;;  %v5066_v40 = vshrl.u32 %v5065_v6, 5  ;;  %v5068_v36 = vsub.s32 32, %v5067_v9  ;;  %v5070_v8 = vshll.u32 %v17469_v17, %v5067_v9 }
 0x45a   : > { %v4931_v32 = vxor.u32 2147483648, %v4930_v25  ;;  %v14720_v37 = vshrl.u32 %v5217_v41, 30  ;;  %v5073_v1 = vshll.u32 %v17470_v22, %v5067_v9  ;;  %v5076_v39 = vshll.u32 %v17446_v29, %v5067_v9 }
 0x45b   : > { %v7832_v15 = vmul.f32 0.5, %v7768_v38  ;;  %v5071_v54 = vshrl.u32 %v17470_v22, %v5068_v36  ;;  %v5079_v43 = vshll.u32 %v17447_v56, %v5067_v9  ;;  %v5074_v59 = vshrl.u32 %v17446_v29, %v5068_v36 }
 0x45c   : > { %v4932_v62 = vsel %vm4849_vm4, %v4931_v32, %v4930_v25  ;;  %v5219_v45 = vshll.u32 %v14720_v37, 30  ;;  %v795_v21 = vsub.f32 %v632_v63, %v14338_v47  ;;  %v5069_v50 = vshrl.u32 %v17469_v17, %v5068_v36 }
 0x45d   : > { %v7960_v20 = vsel %vm7896_vm2, %v7832_v15, 0.0  ;;  %v4935_v30 = vsel %vm14673_vm13, %v14415_v33, %v4932_v62  ;;  %v5077_v11 = vshrl.u32 %v17447_v56, %v5068_v36  ;;  %v5080_v12 = vshrl.u32 %v17428_v7, %v5068_v36 }
 0x45e   : > { %8756 = vperm.xlu1 %9916, %v7960_v20   ;;  %10273 = vcosq.f32 %v4935_v30  ;;  %vm4945_vm3 = vcmp.eq.s32.totalorder %v14715_v57, 2  ;;  %v14738_v13 = vsub.s32 %v5216_v16, %v5219_v45  ;;  %v5072_v5 = vor.u32 %v5071_v54, %v5070_v8 }
 0x45f   : > { %10275 = vsinq.f32 %v4935_v30  ;;  %v5075_v60 = vor.u32 %v5074_v59, %v5073_v1  ;;  %v5082_v61 = vshll.u32 %v17428_v7, %v5067_v9  ;;  %vm4942_vm4 = vcmp.eq.s32.totalorder %v14715_v57, 0  ;;  %v14763_v59 = vld [vmem:[%s10649_s28 + $0x148] sm:$0xff] }
 0x460   : > { %v5078_v31 = vor.u32 %v5077_v11, %v5076_v39  ;;  %v5081_v35 = vor.u32 %v5080_v12, %v5079_v43  ;;  %v5083_v47 = vshrl.u32 %v17451_v42, %v5068_v36  ;;  %vm5085_vm5 = vcmp.lt.s32.totalorder %v5066_v40, 1 }
 0x461   : > { %vm4941_vm6 = vcmp.lt.s32.totalorder %v14715_v57, 2  ;;  %v5222_v3 = vsub.s32 0, %v14738_v13  ;;  %vm5088_vm7 = vcmp.lt.s32.totalorder %v5066_v40, 4  ;;  %v5101_v23 = vshll.u32 %v5061_v27, 8 }
 0x462   : > { %v924_v28 = vmul.f32 -259.48502, %v860_v51  ;;  %vm4939_vm9 = vweird.f32 %v14415_v33  ;;  %v5084_v49 = vor.u32 %v5083_v47, %v5082_v61  ;;  %vm5087_vm10 = vcmp.lt.s32.totalorder %v5066_v40, 3 }
 0x463   : > { %v5090_v26 = vsel %vm5088_vm7, %v5078_v31, 2102212464  ;;  %v859_v53 = vmul.f32 %v795_v21, %v795_v21  ;;  %v9258_v24 = vmin.u32 %v5222_v3, %v14738_v13  ;;  %vm5086_vm12 = vcmp.lt.s32.totalorder %v5066_v40, 2 }
 0x464   : > { %v5089_v48 = vsel %vm5085_vm5, %v5069_v50, %v5072_v5  ;;  %v5093_v14 = vsel %vm5085_vm5, %v5072_v5, %v5075_v60  ;;  %v5091_v10 = vsel %vm5087_vm10, %v5075_v60, %v5090_v26  ;;  %v5094_v4 = vsel %vm5088_vm7, %v5081_v35, 920167782 }
 0x465   : > { %v5097_v6 = vsel %vm5085_vm5, %v5075_v60, %v5078_v31  ;;  %v5098_v52 = vsel %vm5088_vm7, %v5084_v49, 1326507024  ;;  %v5212_v25 = vadd.s32 %v14690_v58, %v14687_v19  ;;  %v5224_v16 = vclz %v9258_v24 }
 0x466   : > { %v5095_v38 = vsel %vm5087_vm10, %v5078_v31, %v5094_v4  ;;  %v5099_v9 = vsel %vm5087_vm10, %v5081_v35, %v5098_v52  ;;  %v5092_v32 = vsel %vm5086_vm12, %v5089_v48, %v5091_v10  ;;  %v1029_v51 = vmul.f32 1.442695, %v924_v28  ;;  %v14787_v48 = vld [vmem:[%s10649_s28 + $0x140] sm:$0xff] }
 0x467   : > { %v5096_v41 = vsel %vm5086_vm12, %v5093_v14, %v5095_v38  ;;  %v5100_v27 = vsel %vm5086_vm12, %v5097_v6, %v5099_v9  ;;  %v9259_v36 = vadd.s32 4294967294, %v5224_v16  ;;  %v923_v62 = vmul.f32 -259.48502, %v859_v53 }
 0x468   : > { %v10274_v15 = vpop.eup %10273  ;;  %v14752_v8 = vmul.u32.u64.low %v5101_v23, %v5100_v27  ;;  %v14753_v63 = vmul.u32.u64.high %v5101_v23, %v5100_v27, %v14752_v8  ;;  %v5242_v39 = vsub.s32 4, %v14720_v37  ;;  %v5108_v30 = vmul.u32 %v5101_v23, %v5092_v32 }
 0x469   : > { %v10276_v40 = vpop.eup %10275  ;;  %v4946_v1 = vxor.u32 2147483648, %v10274_v15  ;;  %v14756_v20 = vmul.u32.u64.low %v5101_v23, %v5096_v41  ;;  %v14757_v19 = vmul.u32.u64.high %v5101_v23, %v5096_v41, %v14756_v20  ;;  %vm9260_vm8 = vcmp.lt.s32.totalorder %v9259_v36, 0 }
 0x46a   : > { %v4943_v58 = vxor.u32 2147483648, %v10276_v40  ;;  %v1027_v54 = vmul.f32 1.442695, %v923_v62  ;;  %v5227_v45 = vsel %vm9260_vm8, 0, %v9259_v36  ;;  %10277 = vpow2.f32 %v1029_v51 }
 0x46b   : > { %v4947_v43 = vsel %vm4945_vm3, %v4946_v1, %v10276_v40  ;;  %v14766_v21 = vmul.f32 0.62831855, %v14763_v59  ;;  %v5228_v11 = vsub.s32 32, %v5227_v45  ;;  %v5229_v12 = vshll.u32 %v14738_v13, %v5227_v45 }
 0x46c   : > { %v4944_v50 = vsel %vm4942_vm4, %v10274_v15, %v4943_v58  ;;  %v5232_v5 = vsub.s32 4294967266, %v5227_v45  ;;  %vm5110_vm11 = vc.u32 %v14753_v63, %v14756_v20  ;;  %v5111_v61 = vadd.s32 1, %v14757_v19  ;;  %v647_v58 = vpop.permute.xlu1 %646 }
 0x46d   : > { %v4948_v60 = vsel %vm4941_vm6, %v4944_v50, %v4947_v43  ;;  %v5362_v31 = vand.u32 2147483647, %v14766_v21  ;;  %v5230_v47 = vshrl.u32 %v5212_v25, %v5228_v11  ;;  %10279 = vpow2.f32 %v1027_v54 }
 0x46e   : > { %v4949_v35 = vsel %vm4939_vm9, nan, %v4948_v60  ;;  %v5233_v3 = vadd.s32 127, %v5232_v5  ;;  %vm7895_vm13 = vcmp.lt.f32.partialorder %v14412_v2, 5.0  ;;  %v5112_v57 = vsel %vm5110_vm11, %v5111_v61, %v14757_v19  ;;  %v14832_v61 = vld [vmem:[%s17404_s1] ss:$0 sm:$0xff] }
 0x46f   : > { %v7767_v23 = vadd.f32 1.0, %v4949_v35  ;;  %v5365_v13 = vand.u32 2139095040, %v14766_v21  ;;  %vm5158_vm14 = vcmp.lt.s32.totalorder %v14585_v55, 0  ;;  %v5231_v28 = vor.u32 %v5230_v47, %v5229_v12 }
 0x470   : > { %v5234_v49 = vshll.u32 %v5233_v3, 23  ;;  %v5113_v26 = vadd.s32 %v5112_v57, %v5108_v30  ;;  %v5243_v33 = vsel %vm5158_vm14, %v5242_v39, %v14720_v37  ;;  %v14790_v14 = vmul.f32 0.62831855, %v14787_v48 }
 0x471   : > { %v7831_v53 = vmul.f32 0.5, %v7767_v23  ;;  %v5366_v24 = vshrl.u32 %v5365_v13, 23  ;;  %v5238_v4 = vcvt.s32.f32 %v5231_v28  ;;  %v5369_v52 = vand.u32 8388607, %v5362_v31 }
 0x472   : > { %v5235_v10 = vor.u32 4788187, %v5234_v49  ;;  %v5114_v6 = vadd.s32 536870912, %v5113_v26  ;;  %v5259_v38 = vand.u32 2147483647, %v14790_v14  ;;  %v5262_v2 = vand.u32 2139095040, %v14790_v14 }
 0x473   : > { %v7959_v25 = vsel %vm7895_vm13, %v7831_v53, 0.0  ;;  %v9265_v16 = vadd.s32 4294967169, %v5366_v24  ;;  %vm14799_vm15 = vcmp.le.f32.partialorder %v5156_v0, 0.7853982  ;;  %v5370_v8 = vor.u32 8388608, %v5369_v52 }
 0x474   : > { %8751 = vperm.xlu0 %9915, %v7959_v25   ;;  %v5236_v9 = vand.u32 2147483647, %v5235_v10  ;;  %v5115_v32 = vshrl.u32 %v5114_v6, 30  ;;  %v10278_v41 = vpop.eup %10277  ;;  %v5245_v27 = vsel %vm14799_vm15, 0, %v5243_v33  ;;  %v14808_v62 = vand.u32 8388607, %v5259_v38 }
 0x475   : > { %v5372_v51 = vadd.s32 1, %v9265_v16  ;;  %vm5055_vm1 = vcmp.lt.s32.totalorder %v14639_v18, 0  ;;  %v14813_v30 = vand.u32 3, %v5245_v27  ;;  %v5109_v54 = vadd.s32 %v14756_v20, %v14753_v63 }
 0x476   : > { %v5239_v15 = vmul.f32 %v5238_v4, %v5236_v9  ;;  %v5116_v36 = vshll.u32 %v5115_v32, 30  ;;  %v5139_v39 = vsub.s32 4, %v5115_v32  ;;  %v5263_v45 = vshrl.u32 %v5262_v2, 23 }
 0x477   : > { %vm5373_vm2 = vcmp.gt.s32.totalorder %v5372_v51, 0  ;;  %v10280_v0 = vpop.eup %10279  ;;  %v14821_v12 = vshll.u32 %v5370_v8, 8  ;;  %v5267_v5 = vor.u32 8388608, %v14808_v62  ;;  %v14835_v35 = vsub.f32 %v647_v58, %v14832_v61 }
 0x478   : > { %v5240_v40 = vxor.u32 2147483648, %v5239_v15  ;;  %v14811_v1 = vsub.s32 %v5113_v26, %v5116_v36  ;;  %v5374_v19 = vsel %vm5373_vm2, %v5372_v51, 0  ;;  %9563 = vmatprep.mubr.msk.f32.mxu1 %vm7991_vm0, %v10280_v0  ;;  %v14840_v3 = vsel %vm5055_vm1, %v5139_v39, %v5115_v32 }
 0x479   : > { %v5376_v43 = vand.u32 31, %v5374_v19  ;;  %9564 = vmatmul.mubr.msk.f32.gmra.mrb[8].mxu1 %vm7991_vm0, %v10278_v41  ;;  %v5375_v57 = vshrl.u32 %v5374_v19, 5  ;;  %v9261_v28 = vadd.s32 4294967169, %v5263_v45  ;;  %vm5254_vm3 = vcmp.eq.s32.totalorder %v14813_v30, 2 }
 0x47a   : > { %v5241_v50 = vsel %vm5158_vm14, %v5240_v40, %v5239_v15  ;;  %v5119_v11 = vsub.s32 0, %v14811_v1  ;;  %vm5251_vm4 = vcmp.eq.s32.totalorder %v14813_v30, 0  ;;  %vm5250_vm5 = vcmp.lt.s32.totalorder %v14813_v30, 2 }
 0x47b   : > { %v5244_v60 = vsel %vm14799_vm15, %v14585_v55, %v5241_v50  ;;  %v5377_v63 = vsub.s32 32, %v5376_v43  ;;  %v5379_v20 = vshll.u32 %v17469_v17, %v5376_v43  ;;  %v5382_v23 = vshll.u32 %v17470_v22, %v5376_v43 }
 0x47c   : > { %10281 = vcosq.f32 %v5244_v60  ;;  %v9254_v47 = vmin.u32 %v5119_v11, %v14811_v1  ;;  %v5385_v53 = vshll.u32 %v17446_v29, %v5376_v43  ;;  %v5388_v10 = vshll.u32 %v17447_v56, %v5376_v43 }
 0x47d   : > { %10283 = vsinq.f32 %v5244_v60  ;;  %v5380_v13 = vshrl.u32 %v17470_v22, %v5377_v63  ;;  %v5383_v26 = vshrl.u32 %v17446_v29, %v5377_v63  ;;  %v5386_v33 = vshrl.u32 %v17447_v56, %v5377_v63 }
 0x47e   : > { %v5121_v49 = vclz %v9254_v47  ;;  %v5389_v4 = vshrl.u32 %v17428_v7, %v5377_v63  ;;  %v5391_v6 = vshll.u32 %v17428_v7, %v5376_v43  ;;  %v5378_v25 = vshrl.u32 %v17469_v17, %v5377_v63 }
 0x47f   : > { %v5381_v24 = vor.u32 %v5380_v13, %v5379_v20  ;;  %v5384_v16 = vor.u32 %v5383_v26, %v5382_v23  ;;  %v5392_v37 = vshrl.u32 %v17451_v42, %v5377_v63  ;;  %vm5248_vm6 = vweird.f32 %v14585_v55 }
 0x480   : > { %v9255_v52 = vadd.s32 4294967294, %v5121_v49  ;;  %vm14858_vm7 = vcmp.le.f32.partialorder %v5053_v34, 0.7853982  ;;  %v5387_v32 = vor.u32 %v5386_v33, %v5385_v53  ;;  %v5390_v41 = vor.u32 %v5389_v4, %v5388_v10 }
 0x481   : > { %vm5394_vm9 = vcmp.lt.s32.totalorder %v5375_v57, 1  ;;  %vm5395_vm10 = vcmp.lt.s32.totalorder %v5375_v57, 2  ;;  %v5393_v27 = vor.u32 %v5392_v37, %v5391_v6  ;;  %vm5396_vm8 = vcmp.lt.s32.totalorder %v5375_v57, 3 }
 0x482   : > { %vm9256_vm12 = vcmp.lt.s32.totalorder %v9255_v52, 0  ;;  %vm5397_vm11 = vcmp.lt.s32.totalorder %v5375_v57, 4  ;;  %v5402_v15 = vsel %vm5394_vm9, %v5381_v24, %v5384_v16  ;;  %v5398_v40 = vsel %vm5394_vm9, %v5378_v25, %v5381_v24 }
 0x483   : > { %v5124_v51 = vsel %vm9256_vm12, 0, %v9255_v52  ;;  %v5399_v2 = vsel %vm5397_vm11, %v5387_v32, 2102212464  ;;  %v5403_v36 = vsel %vm5397_vm11, %v5390_v41, 920167782  ;;  %v5406_v58 = vsel %vm5394_vm9, %v5384_v16, %v5387_v32 }
 0x484   : > { %v5125_v8 = vsub.s32 32, %v5124_v51  ;;  %v5126_v0 = vshll.u32 %v14811_v1, %v5124_v51  ;;  %v5129_v34 = vsub.s32 4294967266, %v5124_v51  ;;  %v5400_v39 = vsel %vm5396_vm8, %v5384_v16, %v5399_v2 }
 0x485   : > { %v5404_v19 = vsel %vm5396_vm8, %v5387_v32, %v5403_v36  ;;  %v5407_v43 = vsel %vm5397_vm11, %v5393_v27, 1326507024  ;;  %v5401_v33 = vsel %vm5395_vm10, %v5398_v40, %v5400_v39  ;;  %v5269_v4 = vadd.s32 1, %v9261_v28 }
 0x486   : > { %v10282_v45 = vpop.eup %10281  ;;  %v5127_v50 = vshrl.u32 %v5109_v54, %v5125_v8  ;;  %v5130_v11 = vadd.s32 127, %v5129_v34  ;;  %v5405_v60 = vsel %vm5395_vm10, %v5402_v15, %v5404_v19  ;;  %v5408_v63 = vsel %vm5396_vm8, %v5390_v41, %v5407_v43 }
 0x487   : > { %v10284_v20 = vpop.eup %10283  ;;  %v5255_v47 = vxor.u32 2147483648, %v10282_v45  ;;  %v5409_v1 = vsel %vm5395_vm10, %v5406_v58, %v5408_v63  ;;  %v14872_v23 = vmul.u32.u64.low %v14821_v12, %v5405_v60  ;;  %v14873_v13 = vmul.u32.u64.high %v14821_v12, %v5405_v60, %v14872_v23 }
 0x488   : > { %v5252_v49 = vxor.u32 2147483648, %v10284_v20  ;;  %v5128_v26 = vor.u32 %v5127_v50, %v5126_v0  ;;  %v5131_v53 = vshll.u32 %v5130_v11, 23  ;;  %v5142_v16 = vsel %vm14858_vm7, 0, %v14840_v3 }
 0x489   : > { %v5256_v54 = vsel %vm5254_vm3, %v5255_v47, %v10284_v20  ;;  %v14880_v24 = vmul.u32.u64.low %v14821_v12, %v5409_v1  ;;  %v14881_v10 = vmul.u32.u64.high %v14821_v12, %v5409_v1, %v14880_v24  ;;  %v5417_v37 = vmul.u32 %v14821_v12, %v5401_v33 }
 0x48a   : > { %v5253_v6 = vsel %vm5251_vm4, %v10282_v45, %v5252_v49  ;;  %v5132_v52 = vor.u32 4788187, %v5131_v53  ;;  %v5135_v25 = vcvt.s32.f32 %v5128_v26  ;;  %v5420_v32 = vadd.s32 1, %v14873_v13  ;;  %v642_v53 = vpop.permute.xlu0 %641 }
 0x48b   : > { %v5257_v57 = vsel %vm5250_vm5, %v5253_v6, %v5256_v54  ;;  %vm5270_vm13 = vcmp.gt.s32.totalorder %v5269_v4, 0  ;;  %vm7898_vm14 = vcmp.lt.f32.partialorder %v14582_v46, 5.0  ;;  %vm5419_vm15 = vc.u32 %v14881_v10, %v14872_v23 }
 0x48c   : > { %v5258_v28 = vsel %vm5248_vm6, nan, %v5257_v57  ;;  %v5133_v41 = vand.u32 2147483647, %v5132_v52  ;;  %v5271_v27 = vsel %vm5270_vm13, %v5269_v4, 0  ;;  %v14897_v2 = vand.u32 3, %v5142_v16 }
 0x48d   : > { %v7770_v51 = vadd.f32 1.0, %v5258_v28  ;;  %v5421_v30 = vsel %vm5419_vm15, %v5420_v32, %v14873_v13  ;;  %v5273_v12 = vand.u32 31, %v5271_v27  ;;  %v14902_v55 = vshll.u32 %v5267_v5, 8 }
 0x48e   : > { %v5136_v3 = vmul.f32 %v5135_v25, %v5133_v41  ;;  %v5422_v36 = vadd.s32 %v5421_v30, %v5417_v37  ;;  %v862_v8 = vmul.f32 %v14835_v35, %v14835_v35  ;;  %v5272_v46 = vshrl.u32 %v5271_v27, 5 }
 0x48f   : > { %v7834_v15 = vmul.f32 0.5, %v7770_v51  ;;  %v5274_v34 = vsub.s32 32, %v5273_v12  ;;  %v5276_v40 = vshll.u32 %v17469_v17, %v5273_v12  ;;  %v5279_v58 = vshll.u32 %v17470_v22, %v5273_v12 }
 0x490   : > { %v5137_v0 = vxor.u32 2147483648, %v5136_v3  ;;  %v5423_v19 = vadd.s32 536870912, %v5422_v36  ;;  %v5282_v43 = vshll.u32 %v17446_v29, %v5273_v12  ;;  %v5285_v35 = vshll.u32 %v17447_v56, %v5273_v12 }
 0x491   : > { %v7962_v39 = vsel %vm7898_vm14, %v7834_v15, 0.0  ;;  %v5277_v5 = vshrl.u32 %v17470_v22, %v5274_v34  ;;  %v5280_v45 = vshrl.u32 %v17446_v29, %v5274_v34  ;;  %v5283_v60 = vshrl.u32 %v17447_v56, %v5274_v34 }
 0x492   : > { %8766 = vperm.xlu1 %9916, %v7962_v39   ;;  %v5138_v62 = vsel %vm5055_vm1, %v5137_v0, %v5136_v3  ;;  %v14917_v11 = vshrl.u32 %v5423_v19, 30  ;;  %v5286_v63 = vshrl.u32 %v17428_v7, %v5274_v34  ;;  %v5275_v20 = vshrl.u32 %v17469_v17, %v5274_v34 }
 0x493   : > { %v5141_v50 = vsel %vm14858_vm7, %v14639_v18, %v5138_v62  ;;  %v5278_v47 = vor.u32 %v5277_v5, %v5276_v40  ;;  %v5288_v1 = vshll.u32 %v17428_v7, %v5273_v12  ;;  %v5281_v49 = vor.u32 %v5280_v45, %v5279_v58  ;;  %v14957_v62 = vld [vmem:[%s10649_s28 + $0x158] sm:$0xff] }
 0x494   : > { %10285 = vcosq.f32 %v5141_v50  ;;  %v5425_v13 = vshll.u32 %v14917_v11, 30  ;;  %v5284_v26 = vor.u32 %v5283_v60, %v5282_v43  ;;  %v5287_v9 = vor.u32 %v5286_v63, %v5285_v35 }
 0x495   : > { %10287 = vsinq.f32 %v5141_v50  ;;  %v5289_v33 = vshrl.u32 %v17451_v42, %v5274_v34  ;;  %vm5291_vm1 = vcmp.lt.s32.totalorder %v5272_v46, 1  ;;  %vm5294_vm2 = vcmp.lt.s32.totalorder %v5272_v46, 4 }
 0x496   : > { %v14925_v54 = vsub.s32 %v5422_v36, %v5425_v13  ;;  %vm5293_vm3 = vcmp.lt.s32.totalorder %v5272_v46, 3  ;;  %v5296_v24 = vsel %vm5294_vm2, %v5284_v26, 2102212464  ;;  %v926_v4 = vmul.f32 -259.48502, %v862_v8 }
 0x497   : > { %v5290_v6 = vor.u32 %v5289_v33, %v5288_v1  ;;  %vm5292_vm4 = vcmp.lt.s32.totalorder %v5272_v46, 2  ;;  %v5295_v52 = vsel %vm5291_vm1, %v5275_v20, %v5278_v47  ;;  %v797_v25 = vsub.f32 %v642_v53, %v14832_v61 }
 0x498   : > { %vm5145_vm5 = vweird.f32 %v14639_v18  ;;  %v5428_v16 = vsub.s32 0, %v14925_v54  ;;  %v5297_v57 = vsel %vm5293_vm3, %v5281_v49, %v5296_v24  ;;  %v5299_v37 = vsel %vm5291_vm1, %v5278_v47, %v5281_v49 }
 0x499   : > { %v5300_v32 = vsel %vm5294_vm2, %v5287_v9, 920167782  ;;  %vm5147_vm6 = vcmp.lt.s32.totalorder %v14897_v2, 2  ;;  %v5303_v41 = vsel %vm5291_vm1, %v5281_v49, %v5284_v26  ;;  %v5304_v27 = vsel %vm5294_vm2, %v5290_v6, 1326507024 }
 0x49a   : > { %v5301_v28 = vsel %vm5293_vm3, %v5284_v26, %v5300_v32  ;;  %vm5148_vm7 = vcmp.eq.s32.totalorder %v14897_v2, 0  ;;  %vm5151_vm9 = vcmp.eq.s32.totalorder %v14897_v2, 2  ;;  %v9266_v51 = vmin.u32 %v5428_v16, %v14925_v54 }
 0x49b   : > { %v1033_v3 = vmul.f32 1.442695, %v926_v4  ;;  %v5298_v30 = vsel %vm5292_vm4, %v5295_v52, %v5297_v57  ;;  %v5302_v12 = vsel %vm5292_vm4, %v5299_v37, %v5301_v28  ;;  %v5305_v15 = vsel %vm5293_vm3, %v5287_v9, %v5304_v27  ;;  %v14988_v37 = vld [vmem:[%s10649_s28 + $0x150] sm:$0xff] }
 0x49c   : > { %v861_v36 = vmul.f32 %v797_v25, %v797_v25  ;;  %v5430_v8 = vclz %v9266_v51  ;;  %v5306_v0 = vsel %vm5292_vm4, %v5303_v41, %v5305_v15  ;;  %vm7897_vm10 = vcmp.lt.f32.partialorder %v14636_v44, 5.0 }
 0x49d   : > { %v14947_v34 = vmul.u32.u64.low %v14902_v55, %v5302_v12  ;;  %v14948_v40 = vmul.u32.u64.high %v14902_v55, %v5302_v12, %v14947_v34  ;;  %v14953_v19 = vmul.u32.u64.low %v14902_v55, %v5306_v0  ;;  %v14954_v58 = vmul.u32.u64.high %v14902_v55, %v5306_v0, %v14953_v19 }
 0x49e   : > { %v10286_v39 = vpop.eup %10285  ;;  %v925_v43 = vmul.f32 -259.48502, %v861_v36  ;;  %v14960_v5 = vmul.f32 0.62831855, %v14957_v62  ;;  %v5418_v35 = vadd.s32 %v14872_v23, %v14881_v10  ;;  %v9267_v50 = vadd.s32 4294967294, %v5430_v8 }
 0x49f   : > { %v10288_v46 = vpop.eup %10287  ;;  %v5152_v45 = vxor.u32 2147483648, %v10286_v39  ;;  %v5448_v60 = vsub.s32 4, %v14917_v11  ;;  %v5314_v20 = vmul.u32 %v14902_v55, %v5298_v30  ;;  %10289 = vpow2.f32 %v1033_v3 }
 0x4a0   : > { %v5149_v63 = vxor.u32 2147483648, %v10288_v46  ;;  %v1031_v47 = vmul.f32 1.442695, %v925_v43  ;;  %vm9268_vm12 = vcmp.lt.s32.totalorder %v9267_v50, 0  ;;  %v5317_v13 = vadd.s32 1, %v14948_v40 }
 0x4a1   : > { %v5153_v1 = vsel %vm5151_vm9, %v5152_v45, %v10288_v46  ;;  %v5568_v49 = vand.u32 2147483647, %v14960_v5  ;;  %v5433_v23 = vsel %vm9268_vm12, 0, %v9267_v50  ;;  %vm5316_vm8 = vc.u32 %v14954_v58, %v14947_v34 }
 0x4a2   : > { %v5150_v26 = vsel %vm5148_vm7, %v10286_v39, %v5149_v63  ;;  %v5571_v10 = vand.u32 2139095040, %v14960_v5  ;;  %v5434_v53 = vsub.s32 32, %v5433_v23  ;;  %v5435_v9 = vshll.u32 %v14925_v54, %v5433_v23 }
 0x4a3   : > { %v5154_v55 = vsel %vm5147_vm6, %v5150_v26, %v5153_v1  ;;  %v5438_v33 = vsub.s32 4294967266, %v5433_v23  ;;  %vm5364_vm11 = vcmp.lt.s32.totalorder %v14766_v21, 0  ;;  %v5318_v4 = vsel %vm5316_vm8, %v5317_v13, %v14948_v40 }
 0x4a4   : > { %v5155_v24 = vsel %vm5145_vm5, nan, %v5154_v55  ;;  %10291 = vpow2.f32 %v1031_v47  ;;  %v5436_v52 = vshrl.u32 %v5418_v35, %v5434_v53  ;;  %v5319_v16 = vadd.s32 %v5318_v4, %v5314_v20 }
 0x4a5   : > { %v7769_v6 = vadd.f32 1.0, %v5155_v24  ;;  %v5439_v25 = vadd.s32 127, %v5438_v33  ;;  %v5449_v2 = vsel %vm5364_vm11, %v5448_v60, %v14917_v11  ;;  %v5572_v57 = vshrl.u32 %v5571_v10, 23 }
 0x4a6   : > { %v5575_v54 = vand.u32 8388607, %v5568_v49  ;;  %v14991_v18 = vmul.f32 0.62831855, %v14988_v37  ;;  %v5437_v28 = vor.u32 %v5436_v52, %v5435_v9  ;;  %v5320_v27 = vadd.s32 536870912, %v5319_v16 }
 0x4a7   : > { %v7833_v32 = vmul.f32 0.5, %v7769_v6  ;;  %v5440_v41 = vshll.u32 %v5439_v25, 23  ;;  %vm14995_vm13 = vcmp.le.f32.partialorder %v5362_v31, 0.7853982  ;;  %v9273_v11 = vadd.s32 4294967169, %v5572_v57 }
 0x4a8   : > { %v5444_v12 = vcvt.s32.f32 %v5437_v28  ;;  %v15001_v15 = vshrl.u32 %v5320_v27, 30  ;;  %v5451_v8 = vsel %vm14995_vm13, 0, %v5449_v2  ;;  %v5468_v40 = vand.u32 2139095040, %v14991_v18 }
 0x4a9   : > { %v7961_v3 = vsel %vm7897_vm10, %v7833_v32, 0.0  ;;  %v5441_v30 = vor.u32 4788187, %v5440_v41  ;;  %v10290_v36 = vpop.eup %10289  ;;  %v5578_v0 = vadd.s32 1, %v9273_v11  ;;  %v5576_v19 = vor.u32 8388608, %v5575_v54 }
 0x4aa   : > { %8761 = vperm.xlu0 %9915, %v7961_v3   ;;  %v5322_v39 = vshll.u32 %v15001_v15, 30  ;;  %v5465_v43 = vand.u32 2147483647, %v14991_v18  ;;  %v15010_v50 = vand.u32 3, %v5451_v8  ;;  %v5315_v60 = vadd.s32 %v14947_v34, %v14954_v58 }
 0x4ab   : > { %v5442_v31 = vand.u32 2147483647, %v5441_v30  ;;  %vm5579_vm14 = vcmp.gt.s32.totalorder %v5578_v0, 0  ;;  %v5469_v20 = vshrl.u32 %v5468_v40, 23  ;;  %v15015_v13 = vshll.u32 %v5576_v19, 8 }
 0x4ac   : > { %v15008_v46 = vsub.s32 %v5319_v16, %v5322_v39  ;;  %v5580_v45 = vsel %vm5579_vm14, %v5578_v0, 0  ;;  %v15019_v26 = vand.u32 8388607, %v5465_v43  ;;  %v5345_v23 = vsub.s32 4, %v15001_v15 }
 0x4ad   : > { %v5445_v44 = vmul.f32 %v5444_v12, %v5442_v31  ;;  %v5582_v63 = vand.u32 31, %v5580_v45  ;;  %v5581_v10 = vshrl.u32 %v5580_v45, 5  ;;  %vm5261_vm15 = vcmp.lt.s32.totalorder %v14790_v14, 0 }
 0x4ae   : > { %v10292_v35 = vpop.eup %10291  ;;  %v5325_v1 = vsub.s32 0, %v15008_v46  ;;  %v9269_v52 = vadd.s32 4294967169, %v5469_v20  ;;  %vm5460_vm1 = vcmp.eq.s32.totalorder %v15010_v50, 2  ;;  %vm5457_vm2 = vcmp.eq.s32.totalorder %v15010_v50, 0 }
 0x4af   : > { %v5446_v47 = vxor.u32 2147483648, %v5445_v44  ;;  %9566 = vmatprep.mubr.msk.f32.mxu1 %vm7991_vm0, %v10292_v35  ;;  %v5583_v55 = vsub.s32 32, %v5582_v63  ;;  %v5585_v53 = vshll.u32 %v17469_v17, %v5582_v63  ;;  %v5588_v9 = vshll.u32 %v17470_v22, %v5582_v63 }
 0x4b0   : > { %9567 = vmatmul.mubr.msk.f32.gmra.mrb[10].mxu1 %vm7991_vm0, %v10290_v36  ;;  %v9262_v58 = vmin.u32 %v5325_v1, %v15008_v46  ;;  %v5591_v33 = vshll.u32 %v17446_v29, %v5582_v63  ;;  %v5594_v54 = vshll.u32 %v17447_v56, %v5582_v63  ;;  %v5597_v51 = vshll.u32 %v17428_v7, %v5582_v63 }
 0x4b1   : > { %v5447_v34 = vsel %vm5364_vm11, %v5446_v47, %v5445_v44  ;;  %v5584_v4 = vshrl.u32 %v17469_v17, %v5583_v55  ;;  %v5586_v6 = vshrl.u32 %v17470_v22, %v5583_v55  ;;  %v5589_v16 = vshrl.u32 %v17446_v29, %v5583_v55 }
 0x4b2   : > { %v5450_v24 = vsel %vm14995_vm13, %v14766_v21, %v5447_v34  ;;  %v5327_v25 = vclz %v9262_v58  ;;  %v5592_v2 = vshrl.u32 %v17447_v56, %v5583_v55  ;;  %v5595_v32 = vshrl.u32 %v17428_v7, %v5583_v55 }
 0x4b3   : > { %10293 = vcosq.f32 %v5450_v24  ;;  %v5587_v57 = vor.u32 %v5586_v6, %v5585_v53  ;;  %v5590_v41 = vor.u32 %v5589_v16, %v5588_v9  ;;  %v5598_v3 = vshrl.u32 %v17451_v42, %v5583_v55 }
 0x4b4   : > { %10295 = vsinq.f32 %v5450_v24  ;;  %v9263_v28 = vadd.s32 4294967294, %v5327_v25  ;;  %v5593_v27 = vor.u32 %v5592_v2, %v5591_v33  ;;  %v5596_v11 = vor.u32 %v5595_v32, %v5594_v54 }
 0x4b5   : > { %vm5600_vm3 = vcmp.lt.s32.totalorder %v5581_v10, 1  ;;  %vm5601_vm4 = vcmp.lt.s32.totalorder %v5581_v10, 2  ;;  %vm5456_vm5 = vcmp.lt.s32.totalorder %v15010_v50, 2  ;;  %vm15047_vm6 = vcmp.le.f32.partialorder %v5259_v38, 0.7853982 }
 0x4b6   : > { %vm9264_vm7 = vcmp.lt.s32.totalorder %v9263_v28, 0  ;;  %vm5602_vm9 = vcmp.lt.s32.totalorder %v5581_v10, 3  ;;  %vm5603_vm10 = vcmp.lt.s32.totalorder %v5581_v10, 4  ;;  %v5604_v12 = vsel %vm5600_vm3, %v5584_v4, %v5587_v57 }
 0x4b7   : > { %vm5454_vm12 = vweird.f32 %v14766_v21  ;;  %v5330_v36 = vsel %vm9264_vm7, 0, %v9263_v28  ;;  %v5599_v8 = vor.u32 %v5598_v3, %v5597_v51  ;;  %v5605_v0 = vsel %vm5603_vm10, %v5593_v27, 2102212464 }
 0x4b8   : > { %v5608_v40 = vsel %vm5600_vm3, %v5587_v57, %v5590_v41  ;;  %v5331_v31 = vsub.s32 32, %v5330_v36  ;;  %v5332_v39 = vshll.u32 %v15008_v46, %v5330_v36  ;;  %v5335_v19 = vsub.s32 4294967266, %v5330_v36 }
 0x4b9   : > { %v5606_v38 = vsel %vm5602_vm9, %v5590_v41, %v5605_v0  ;;  %v15059_v44 = vsel %vm5261_vm15, %v5345_v23, %v15001_v15  ;;  %v5609_v45 = vsel %vm5603_vm10, %v5596_v11, 920167782  ;;  %v5612_v35 = vsel %vm5600_vm3, %v5590_v41, %v5593_v27 }
 0x4ba   : > { %v5613_v63 = vsel %vm5603_vm10, %v5599_v8, 1326507024  ;;  %v5333_v20 = vshrl.u32 %v5315_v60, %v5331_v31  ;;  %v5336_v47 = vadd.s32 127, %v5335_v19  ;;  %v5610_v1 = vsel %vm5602_vm9, %v5593_v27, %v5609_v45 }
 0x4bb   : > { %v5614_v55 = vsel %vm5602_vm9, %v5596_v11, %v5613_v63  ;;  %v5607_v46 = vsel %vm5601_vm4, %v5604_v12, %v5606_v38  ;;  %v5611_v53 = vsel %vm5601_vm4, %v5608_v40, %v5610_v1  ;;  %v5475_v58 = vadd.s32 1, %v9269_v52 }
 0x4bc   : > { %v5615_v34 = vsel %vm5601_vm4, %v5612_v35, %v5614_v55  ;;  %vm7900_vm8 = vcmp.lt.f32.partialorder %v14763_v59, 5.0  ;;  %v5334_v15 = vor.u32 %v5333_v20, %v5332_v39  ;;  %v5337_v23 = vshll.u32 %v5336_v47, 23 }
 0x4bd   : > { %v10294_v9 = vpop.eup %10293  ;;  %v15069_v33 = vmul.u32.u64.low %v15015_v13, %v5615_v34  ;;  %v15070_v60 = vmul.u32.u64.high %v15015_v13, %v5615_v34, %v15069_v33  ;;  %v15073_v6 = vmul.u32.u64.low %v15015_v13, %v5611_v53  ;;  %v15074_v25 = vmul.u32.u64.high %v15015_v13, %v5611_v53, %v15073_v6 }
 0x4be   : > { %v10296_v24 = vpop.eup %10295  ;;  %v5461_v4 = vxor.u32 2147483648, %v10294_v9  ;;  %vm5476_vm11 = vcmp.gt.s32.totalorder %v5475_v58, 0  ;;  %v5338_v16 = vor.u32 4788187, %v5337_v23  ;;  %v5341_v52 = vcvt.s32.f32 %v5334_v15  ;;  %v657_v33 = vpop.permute.xlu1 %656 }
 0x4bf   : > { %v5458_v10 = vxor.u32 2147483648, %v10296_v24  ;;  %v5477_v2 = vsel %vm5476_vm11, %v5475_v58, 0  ;;  %v5348_v54 = vsel %vm15047_vm6, 0, %v15059_v44  ;;  %v5473_v32 = vor.u32 8388608, %v15019_v26 }
 0x4c0   : > { %v5462_v57 = vsel %vm5460_vm1, %v5461_v4, %v10296_v24  ;;  %v5479_v28 = vand.u32 31, %v5477_v2  ;;  %v5339_v27 = vand.u32 2147483647, %v5338_v16  ;;  %v5623_v51 = vmul.u32 %v15015_v13, %v5607_v46 }
 0x4c1   : > { %v5459_v41 = vsel %vm5457_vm2, %v10294_v9, %v5458_v10  ;;  %vm5625_vm13 = vc.u32 %v15070_v60, %v15073_v6  ;;  %v5626_v3 = vadd.s32 1, %v15074_v25  ;;  %v5478_v39 = vshrl.u32 %v5477_v2, 5 }
 0x4c2   : > { %v5463_v11 = vsel %vm5456_vm5, %v5459_v41, %v5462_v57  ;;  %v5480_v12 = vsub.s32 32, %v5479_v28  ;;  %v5482_v36 = vshll.u32 %v17469_v17, %v5479_v28  ;;  %v5342_v8 = vmul.f32 %v5341_v52, %v5339_v27 }
 0x4c3   : > { %v5464_v26 = vsel %vm5454_vm12, nan, %v5463_v11  ;;  %v5485_v0 = vshll.u32 %v17470_v22, %v5479_v28  ;;  %v5488_v40 = vshll.u32 %v17446_v29, %v5479_v28  ;;  %v5627_v31 = vsel %vm5625_vm13, %v5626_v3, %v15074_v25 }
 0x4c4   : > { %v7772_v13 = vadd.f32 1.0, %v5464_v26  ;;  %v5483_v50 = vshrl.u32 %v17470_v22, %v5480_v12  ;;  %v5343_v19 = vxor.u32 2147483648, %v5342_v8  ;;  %v5628_v38 = vadd.s32 %v5627_v31, %v5623_v51 }
 0x4c5   : > { %v5486_v44 = vshrl.u32 %v17446_v29, %v5480_v12  ;;  %v5489_v45 = vshrl.u32 %v17447_v56, %v5480_v12  ;;  %v5491_v63 = vshll.u32 %v17447_v56, %v5479_v28  ;;  %v5492_v20 = vshrl.u32 %v17428_v7, %v5480_v12 }
 0x4c6   : > { %v7836_v35 = vmul.f32 0.5, %v7772_v13  ;;  %v5484_v21 = vor.u32 %v5483_v50, %v5482_v36  ;;  %v5344_v47 = vsel %vm5261_vm15, %v5343_v19, %v5342_v8  ;;  %v5629_v1 = vadd.s32 536870912, %v5628_v38  ;;  %v652_v36 = vpop.permute.xlu0 %651 }
 0x4c7   : > { %v5487_v55 = vor.u32 %v5486_v44, %v5485_v0  ;;  %v5490_v46 = vor.u32 %v5489_v45, %v5488_v40  ;;  %v5347_v34 = vsel %vm15047_vm6, %v14790_v14, %v5344_v47  ;;  %v5493_v58 = vor.u32 %v5492_v20, %v5491_v63 }
 0x4c8   : > { %v7964_v53 = vsel %vm7900_vm8, %v7836_v35, 0.0  ;;  %v5494_v9 = vshll.u32 %v17428_v7, %v5479_v28  ;;  %10297 = vcosq.f32 %v5347_v34  ;;  %v15110_v15 = vshrl.u32 %v5629_v1, 30 }
 0x4c9   : > { %8776 = vperm.xlu1 %9916, %v7964_v53   ;;  %v5495_v23 = vshrl.u32 %v17451_v42, %v5480_v12  ;;  %vm5497_vm14 = vcmp.lt.s32.totalorder %v5478_v39, 1  ;;  %10299 = vsinq.f32 %v5347_v34  ;;  %v5481_v24 = vshrl.u32 %v17469_v17, %v5480_v12  ;;  %v15146_v34 = vld [vmem:[%s10649_s28 + $0x168] sm:$0xff] }
 0x4ca   : > { %vm5499_vm15 = vcmp.lt.s32.totalorder %v5478_v39, 3  ;;  %vm5500_vm1 = vcmp.lt.s32.totalorder %v5478_v39, 4  ;;  %v5631_v59 = vshll.u32 %v15110_v15, 30  ;;  %vm5498_vm2 = vcmp.lt.s32.totalorder %v5478_v39, 2 }
 0x4cb   : > { %v5496_v30 = vor.u32 %v5495_v23, %v5494_v9  ;;  %v5513_v4 = vshll.u32 %v5473_v32, 8  ;;  %v5502_v25 = vsel %vm5500_vm1, %v5490_v46, 2102212464  ;;  %v5505_v10 = vsel %vm5497_vm14, %v5484_v21, %v5487_v55 }
 0x4cc   : > { %v5506_v16 = vsel %vm5500_vm1, %v5493_v58, 920167782  ;;  %v800_v52 = vsub.f32 %v657_v33, %v14832_v61  ;;  %v15117_v2 = vsub.s32 %v5628_v38, %v5631_v59  ;;  %v5509_v28 = vsel %vm5497_vm14, %v5487_v55, %v5490_v46 }
 0x4cd   : > { %v5507_v57 = vsel %vm5499_vm15, %v5490_v46, %v5506_v16  ;;  %v5501_v41 = vsel %vm5497_vm14, %v5481_v24, %v5484_v21  ;;  %v5503_v27 = vsel %vm5499_vm15, %v5487_v55, %v5502_v25  ;;  %v5510_v11 = vsel %vm5500_vm1, %v5496_v30, 1326507024 }
 0x4ce   : > { %v5508_v51 = vsel %vm5498_vm2, %v5505_v10, %v5507_v57  ;;  %v5352_v32 = vand.u32 3, %v5348_v54  ;;  %v5634_v3 = vsub.s32 0, %v15117_v2  ;;  %v5511_v12 = vsel %vm5499_vm15, %v5493_v58, %v5510_v11 }
 0x4cf   : > { %v5512_v26 = vsel %vm5498_vm2, %v5509_v28, %v5511_v12  ;;  %v15127_v8 = vmul.u32.u64.low %v5513_v4, %v5508_v51  ;;  %v15128_v0 = vmul.u32.u64.high %v5513_v4, %v5508_v51, %v15127_v8  ;;  %v864_v40 = vmul.f32 %v800_v52, %v800_v52 }
 0x4d0   : > { %vm5351_vm3 = vweird.f32 %v14790_v14  ;;  %v9274_v13 = vmin.u32 %v5634_v3, %v15117_v2  ;;  %v5504_v31 = vsel %vm5498_vm2, %v5501_v41, %v5503_v27  ;;  %v799_v38 = vsub.f32 %v652_v36, %v14832_v61 }
 0x4d1   : > { %v15134_v50 = vmul.u32.u64.low %v5513_v4, %v5512_v26  ;;  %v15135_v54 = vmul.u32.u64.high %v5513_v4, %v5512_v26, %v15134_v50  ;;  %v928_v19 = vmul.f32 -259.48502, %v864_v40  ;;  %vm5353_vm4 = vcmp.lt.s32.totalorder %v5352_v32, 2  ;;  %v15168_v40 = vld [vmem:[%s10649_s28 + $0x160] sm:$0xff] }
 0x4d2   : > { %v10298_v44 = vpop.eup %10297  ;;  %vm5354_vm5 = vcmp.eq.s32.totalorder %v5352_v32, 0  ;;  %vm5357_vm6 = vcmp.eq.s32.totalorder %v5352_v32, 2  ;;  %vm7899_vm7 = vcmp.lt.f32.partialorder %v14787_v48, 5.0  ;;  %v5636_v45 = vclz %v9274_v13 }
 0x4d3   : > { %v10300_v35 = vpop.eup %10299  ;;  %v5358_v21 = vxor.u32 2147483648, %v10298_v44  ;;  %v5520_v63 = vmul.u32 %v5513_v4, %v5504_v31  ;;  %v5523_v39 = vadd.s32 1, %v15128_v0  ;;  %v863_v20 = vmul.f32 %v799_v38, %v799_v38 }
 0x4d4   : > { %v5355_v47 = vxor.u32 2147483648, %v10300_v35  ;;  %v5624_v1 = vadd.s32 %v15073_v6, %v15070_v60  ;;  %v9275_v55 = vadd.s32 4294967294, %v5636_v45  ;;  %v5654_v61 = vsub.s32 4, %v15110_v15 }
 0x4d5   : > { %v5359_v46 = vsel %vm5357_vm6, %v5358_v21, %v10300_v35  ;;  %vm5522_vm9 = vc.u32 %v15135_v54, %v15127_v8  ;;  %v1037_v53 = vmul.f32 1.442695, %v928_v19  ;;  %v15149_v58 = vmul.f32 0.62831855, %v15146_v34 }
 0x4d6   : > { %v5356_v9 = vsel %vm5354_vm5, %v10298_v44, %v5355_v47  ;;  %vm9276_vm10 = vcmp.lt.s32.totalorder %v9275_v55, 0  ;;  %v5524_v23 = vsel %vm5522_vm9, %v5523_v39, %v15128_v0  ;;  %v927_v33 = vmul.f32 -259.48502, %v863_v20 }
 0x4d7   : > { %v5360_v60 = vsel %vm5353_vm4, %v5356_v9, %v5359_v46  ;;  %v5639_v6 = vsel %vm9276_vm10, 0, %v9275_v55  ;;  %v5525_v24 = vadd.s32 %v5524_v23, %v5520_v63  ;;  %v5774_v59 = vand.u32 2147483647, %v15149_v58 }
 0x4d8   : > { %v5361_v30 = vsel %vm5351_vm3, nan, %v5360_v60  ;;  %v5640_v4 = vsub.s32 32, %v5639_v6  ;;  %v5641_v25 = vshll.u32 %v15117_v2, %v5639_v6  ;;  %v5644_v10 = vsub.s32 4294967266, %v5639_v6 }
 0x4d9   : > { %v7771_v16 = vadd.f32 1.0, %v5361_v30  ;;  %v5526_v52 = vadd.s32 536870912, %v5525_v24  ;;  %v1035_v57 = vmul.f32 1.442695, %v927_v33  ;;  %v5777_v28 = vand.u32 2139095040, %v15149_v58 }
 0x4da   : > { %vm5570_vm12 = vcmp.lt.s32.totalorder %v14960_v5, 0  ;;  %v5642_v41 = vshrl.u32 %v5624_v1, %v5640_v4  ;;  %v5645_v27 = vadd.s32 127, %v5644_v10  ;;  %10301 = vpow2.f32 %v1037_v53 }
 0x4db   : > { %v7835_v51 = vmul.f32 0.5, %v7771_v16  ;;  %v5527_v11 = vshrl.u32 %v5526_v52, 30  ;;  %10303 = vpow2.f32 %v1035_v57  ;;  %v5778_v14 = vshrl.u32 %v5777_v28, 23 }
 0x4dc   : > { %v5643_v32 = vor.u32 %v5642_v41, %v5641_v25  ;;  %v5646_v3 = vshll.u32 %v5645_v27, 23  ;;  %v5655_v2 = vsel %vm5570_vm12, %v5654_v61, %v15110_v15  ;;  %v5781_v12 = vand.u32 8388607, %v5774_v59 }
 0x4dd   : > { %v7963_v36 = vsel %vm7899_vm7, %v7835_v51, 0.0  ;;  %v5528_v26 = vshll.u32 %v5527_v11, 30  ;;  %v9281_v0 = vadd.s32 4294967169, %v5778_v14  ;;  %v15171_v13 = vmul.f32 0.62831855, %v15168_v40 }
 0x4de   : > { %8771 = vperm.xlu0 %9915, %v7963_v36   ;;  %v5647_v31 = vor.u32 4788187, %v5646_v3  ;;  %v5650_v50 = vcvt.s32.f32 %v5643_v32  ;;  %vm15175_vm8 = vcmp.le.f32.partialorder %v5568_v49, 0.7853982  ;;  %v5782_v45 = vor.u32 8388608, %v5781_v12 }
 0x4df   : > { %v15179_v19 = vsub.s32 %v5525_v24, %v5528_v26  ;;  %v5784_v48 = vadd.s32 1, %v9281_v0  ;;  %v5657_v44 = vsel %vm15175_vm8, 0, %v5655_v2  ;;  %v5551_v21 = vsub.s32 4, %v5527_v11 }
 0x4e0   : > { %v5648_v38 = vand.u32 2147483647, %v5647_v31  ;;  %v5674_v63 = vand.u32 2139095040, %v15171_v13  ;;  %v15185_v49 = vand.u32 3, %v5657_v44  ;;  %vm5467_vm13 = vcmp.lt.s32.totalorder %v14991_v18, 0 }
 0x4e1   : > { %v5531_v35 = vsub.s32 0, %v15179_v19  ;;  %vm5785_vm11 = vcmp.gt.s32.totalorder %v5784_v48, 0  ;;  %v5521_v47 = vadd.s32 %v15127_v8, %v15135_v54  ;;  %v15191_v53 = vshll.u32 %v5782_v45, 8 }
 0x4e2   : > { %v5651_v39 = vmul.f32 %v5650_v50, %v5648_v38  ;;  %v5786_v20 = vsel %vm5785_vm11, %v5784_v48, 0  ;;  %v5671_v9 = vand.u32 2147483647, %v15171_v13  ;;  %v15196_v60 = vsel %vm5467_vm13, %v5551_v21, %v5527_v11 }
 0x4e3   : > { %v9270_v1 = vmin.u32 %v5531_v35, %v15179_v19  ;;  %v5788_v46 = vand.u32 31, %v5786_v20  ;;  %v5787_v6 = vshrl.u32 %v5786_v20, 5  ;;  %v5675_v24 = vshrl.u32 %v5674_v63, 23 }
 0x4e4   : > { %v10302_v55 = vpop.eup %10301  ;;  %v5652_v61 = vxor.u32 2147483648, %v5651_v39  ;;  %vm5666_vm15 = vcmp.eq.s32.totalorder %v15185_v49, 2  ;;  %vm5663_vm1 = vcmp.eq.s32.totalorder %v15185_v49, 0  ;;  %vm15219_vm2 = vcmp.le.f32.partialorder %v5465_v43, 0.7853982 }
 0x4e5   : > { %v10304_v23 = vpop.eup %10303  ;;  %v5533_v33 = vclz %v9270_v1  ;;  %v5789_v54 = vsub.s32 32, %v5788_v46  ;;  %v5791_v30 = vshll.u32 %v17469_v17, %v5788_v46  ;;  %v5794_v4 = vshll.u32 %v17470_v22, %v5788_v46 }
 0x4e6   : > { %v5653_v8 = vsel %vm5570_vm12, %v5652_v61, %v5651_v39  ;;  %9569 = vmatprep.mubr.msk.f32.mxu1 %vm7991_vm0, %v10304_v23  ;;  %v5797_v16 = vshll.u32 %v17446_v29, %v5788_v46  ;;  %v5800_v52 = vshll.u32 %v17447_v56, %v5788_v46  ;;  %v5803_v3 = vshll.u32 %v17428_v7, %v5788_v46 }
 0x4e7   : > { %v5656_v25 = vsel %vm15175_vm8, %v14960_v5, %v5653_v8  ;;  %v9271_v10 = vadd.s32 4294967294, %v5533_v33  ;;  %9570 = vmatmul.mubr.msk.f32.gmra.mrb[12].mxu1 %vm7991_vm0, %v10302_v55  ;;  %v5790_v57 = vshrl.u32 %v17469_v17, %v5789_v54  ;;  %v5792_v28 = vshrl.u32 %v17470_v22, %v5789_v54 }
 0x4e8   : > { %10305 = vcosq.f32 %v5656_v25  ;;  %v5795_v41 = vshrl.u32 %v17446_v29, %v5789_v54  ;;  %v5798_v27 = vshrl.u32 %v17447_v56, %v5789_v54  ;;  %v5801_v51 = vshrl.u32 %v17428_v7, %v5789_v54 }
 0x4e9   : > { %10307 = vsinq.f32 %v5656_v25  ;;  %vm9272_vm14 = vcmp.lt.s32.totalorder %v9271_v10, 0  ;;  %v5793_v14 = vor.u32 %v5792_v28, %v5791_v30  ;;  %v5804_v50 = vshrl.u32 %v17451_v42, %v5789_v54 }
 0x4ea   : > { %v5536_v11 = vsel %vm9272_vm14, 0, %v9271_v10  ;;  %v5796_v32 = vor.u32 %v5795_v41, %v5794_v4  ;;  %v5799_v0 = vor.u32 %v5798_v27, %v5797_v16  ;;  %v5802_v31 = vor.u32 %v5801_v51, %v5800_v52 }
 0x4eb   : > { %v5537_v12 = vsub.s32 32, %v5536_v11  ;;  %v5538_v36 = vshll.u32 %v15179_v19, %v5536_v11  ;;  %v5541_v26 = vsub.s32 4294967266, %v5536_v11  ;;  %vm5806_vm3 = vcmp.lt.s32.totalorder %v5787_v6, 1 }
 0x4ec   : > { %vm5807_vm4 = vcmp.lt.s32.totalorder %v5787_v6, 2  ;;  %vm5660_vm5 = vweird.f32 %v14960_v5  ;;  %vm5808_vm6 = vcmp.lt.s32.totalorder %v5787_v6, 3  ;;  %vm5809_vm7 = vcmp.lt.s32.totalorder %v5787_v6, 4 }
 0x4ed   : > { %v5539_v15 = vshrl.u32 %v5521_v47, %v5537_v12  ;;  %v5542_v48 = vadd.s32 127, %v5541_v26  ;;  %v5805_v43 = vor.u32 %v5804_v50, %v5803_v3  ;;  %v5810_v38 = vsel %vm5806_vm3, %v5790_v57, %v5793_v14  ;;  %v667_v57 = vpop.permute.xlu1 %666 }
 0x4ee   : > { %v5811_v44 = vsel %vm5809_vm7, %v5799_v0, 2102212464  ;;  %v5814_v45 = vsel %vm5806_vm3, %v5793_v14, %v5796_v32  ;;  %v5815_v63 = vsel %vm5809_vm7, %v5802_v31, 920167782  ;;  %v5818_v20 = vsel %vm5806_vm3, %v5796_v32, %v5799_v0 }
 0x4ef   : > { %v5540_v19 = vor.u32 %v5539_v15, %v5538_v36  ;;  %v5543_v35 = vshll.u32 %v5542_v48, 23  ;;  %v5812_v21 = vsel %vm5808_vm6, %v5796_v32, %v5811_v44  ;;  %v5816_v39 = vsel %vm5808_vm6, %v5799_v0, %v5815_v63 }
 0x4f0   : > { %v5819_v1 = vsel %vm5809_vm7, %v5805_v43, 1326507024  ;;  %v9277_v47 = vadd.s32 4294967169, %v5675_v24  ;;  %v5817_v46 = vsel %vm5807_vm4, %v5814_v45, %v5816_v39  ;;  %v5813_v8 = vsel %vm5807_vm4, %v5810_v38, %v5812_v21  ;;  %v662_v21 = vpop.permute.xlu0 %661 }
 0x4f1   : > { %v5544_v55 = vor.u32 4788187, %v5543_v35  ;;  %v5547_v61 = vcvt.s32.f32 %v5540_v19  ;;  %v5820_v23 = vsel %vm5808_vm6, %v5802_v31, %v5819_v1  ;;  %vm5662_vm9 = vcmp.lt.s32.totalorder %v15185_v49, 2 }
 0x4f2   : > { %v10306_v33 = vpop.eup %10305  ;;  %v5821_v54 = vsel %vm5807_vm4, %v5818_v20, %v5820_v23  ;;  %v15236_v30 = vmul.u32.u64.low %v15191_v53, %v5817_v46  ;;  %v15237_v4 = vmul.u32.u64.high %v15191_v53, %v5817_v46, %v15236_v30  ;;  %v5554_v6 = vsel %vm15219_vm2, 0, %v15196_v60  ;;  %v15259_v60 = vld [vmem:[%s17404_s1] ss:$0 sm:$0xff] }
 0x4f3   : > { %v10308_v25 = vpop.eup %10307  ;;  %v5667_v10 = vxor.u32 2147483648, %v10306_v33  ;;  %v5545_v16 = vand.u32 2147483647, %v5544_v55  ;;  %v15241_v24 = vmul.u32.u64.low %v15191_v53, %v5821_v54  ;;  %v15242_v52 = vmul.u32.u64.high %v15191_v53, %v5821_v54, %v15241_v24 }
 0x4f4   : > { %v5664_v28 = vxor.u32 2147483648, %v10308_v25  ;;  %v5681_v41 = vadd.s32 1, %v9277_v47  ;;  %v5829_v11 = vmul.u32 %v15191_v53, %v5813_v8  ;;  %v5678_v14 = vand.u32 8388607, %v5671_v9 }
 0x4f5   : > { %v5668_v27 = vsel %vm5666_vm15, %v5667_v10, %v10308_v25  ;;  %v5548_v51 = vmul.f32 %v5547_v61, %v5545_v16  ;;  %v5832_v3 = vadd.s32 1, %v15237_v4  ;;  %v802_v12 = vsub.f32 %v667_v57, %v15259_v60 }
 0x4f6   : > { %v5665_v32 = vsel %vm5663_vm1, %v10306_v33, %v5664_v28  ;;  %vm5682_vm10 = vcmp.gt.s32.totalorder %v5681_v41, 0  ;;  %vm5831_vm12 = vc.u32 %v15242_v52, %v15236_v30  ;;  %vm7902_vm8 = vcmp.lt.f32.partialorder %v14957_v62, 5.0 }
 0x4f7   : > { %v5669_v36 = vsel %vm5662_vm9, %v5665_v32, %v5668_v27  ;;  %v5549_v26 = vxor.u32 2147483648, %v5548_v51  ;;  %v5833_v49 = vsel %vm5831_vm12, %v5832_v3, %v15237_v4  ;;  %v5683_v0 = vsel %vm5682_vm10, %v5681_v41, 0 }
 0x4f8   : > { %v5670_v53 = vsel %vm5660_vm5, nan, %v5669_v36  ;;  %v15270_v15 = vand.u32 3, %v5554_v6  ;;  %v5834_v48 = vadd.s32 %v5833_v49, %v5829_v11  ;;  %v5679_v38 = vor.u32 8388608, %v5678_v14 }
 0x4f9   : > { %v7774_v31 = vadd.f32 1.0, %v5670_v53  ;;  %v5550_v50 = vsel %vm5467_vm13, %v5549_v26, %v5548_v51  ;;  %v5685_v44 = vand.u32 31, %v5683_v0  ;;  %v866_v5 = vmul.f32 %v802_v12, %v802_v12  ;;  %v15299_v51 = vld [vmem:[%s10649_s28 + $0x178] sm:$0xff] }
 0x4fa   : > { %v5553_v43 = vsel %vm15219_vm2, %v14991_v18, %v5550_v50  ;;  %v5835_v19 = vadd.s32 536870912, %v5834_v48  ;;  %v5684_v35 = vshrl.u32 %v5683_v0, 5  ;;  %vm5563_vm11 = vcmp.eq.s32.totalorder %v15270_v15, 2 }
 0x4fb   : > { %v7838_v45 = vmul.f32 0.5, %v7774_v31  ;;  %10309 = vcosq.f32 %v5553_v43  ;;  %v5686_v63 = vsub.s32 32, %v5685_v44  ;;  %v5688_v39 = vshll.u32 %v17469_v17, %v5685_v44 }
 0x4fc   : > { %10311 = vsinq.f32 %v5553_v43  ;;  %v5691_v20 = vshll.u32 %v17470_v22, %v5685_v44  ;;  %v15280_v2 = vshrl.u32 %v5835_v19, 30  ;;  %v5694_v47 = vshll.u32 %v17446_v29, %v5685_v44 }
 0x4fd   : > { %v7966_v1 = vsel %vm7902_vm8, %v7838_v45, 0.0  ;;  %v5697_v55 = vshll.u32 %v17447_v56, %v5685_v44  ;;  %vm5560_vm13 = vcmp.eq.s32.totalorder %v15270_v15, 0  ;;  %v5689_v61 = vshrl.u32 %v17470_v22, %v5686_v63 }
 0x4fe   : > { %8786 = vperm.xlu1 %9916, %v7966_v1   ;;  %v5692_v46 = vshrl.u32 %v17446_v29, %v5686_v63  ;;  %v5695_v23 = vshrl.u32 %v17447_v56, %v5686_v63  ;;  %v801_v62 = vsub.f32 %v662_v21, %v15259_v60  ;;  %vm5559_vm14 = vcmp.lt.s32.totalorder %v15270_v15, 2 }
 0x4ff   : > { %v5837_v33 = vshll.u32 %v15280_v2, 30  ;;  %v5687_v8 = vshrl.u32 %v17469_v17, %v5686_v63  ;;  %v5698_v54 = vshrl.u32 %v17428_v7, %v5686_v63  ;;  %v5700_v4 = vshll.u32 %v17428_v7, %v5685_v44 }
 0x500   : > { %vm5557_vm15 = vweird.f32 %v14991_v18  ;;  %v5690_v25 = vor.u32 %v5689_v61, %v5688_v39  ;;  %v5693_v10 = vor.u32 %v5692_v46, %v5691_v20  ;;  %v5701_v16 = vshrl.u32 %v17451_v42, %v5686_v63 }
 0x501   : > { %v930_v24 = vmul.f32 -259.48502, %v866_v5  ;;  %v15296_v57 = vsub.s32 %v5834_v48, %v5837_v33  ;;  %v5696_v28 = vor.u32 %v5695_v23, %v5694_v47  ;;  %v5699_v6 = vor.u32 %v5698_v54, %v5697_v55 }
 0x502   : > { %vm5703_vm1 = vcmp.lt.s32.totalorder %v5684_v35, 1  ;;  %v5702_v41 = vor.u32 %v5701_v16, %v5700_v4  ;;  %vm5706_vm2 = vcmp.lt.s32.totalorder %v5684_v35, 4  ;;  %v5719_v27 = vshll.u32 %v5679_v38, 8 }
 0x503   : > { %v15302_v11 = vmul.f32 0.62831855, %v15299_v51  ;;  %v5840_v14 = vsub.s32 0, %v15296_v57  ;;  %vm5705_vm3 = vcmp.lt.s32.totalorder %v5684_v35, 3  ;;  %v5707_v32 = vsel %vm5703_vm1, %v5687_v8, %v5690_v25 }
 0x504   : > { %v5708_v3 = vsel %vm5706_vm2, %v5696_v28, 2102212464  ;;  %vm5704_vm4 = vcmp.lt.s32.totalorder %v5684_v35, 2  ;;  %v5711_v36 = vsel %vm5703_vm1, %v5690_v25, %v5693_v10  ;;  %v5712_v26 = vsel %vm5706_vm2, %v5699_v6, 920167782 }
 0x505   : > { %v5709_v12 = vsel %vm5705_vm3, %v5693_v10, %v5708_v3  ;;  %v10310_v53 = vpop.eup %10309  ;;  %vm7901_vm5 = vcmp.lt.f32.partialorder %v14988_v37, 5.0  ;;  %v9282_v49 = vmin.u32 %v5840_v14, %v15296_v57  ;;  %v5715_v0 = vsel %vm5703_vm1, %v5693_v10, %v5696_v28 }
 0x506   : > { %v1041_v31 = vmul.f32 1.442695, %v930_v24  ;;  %v865_v50 = vmul.f32 %v801_v62, %v801_v62  ;;  %v10312_v48 = vpop.eup %10311  ;;  %v5564_v43 = vxor.u32 2147483648, %v10310_v53  ;;  %v5710_v38 = vsel %vm5704_vm4, %v5707_v32, %v5709_v12 }
 0x507   : > { %v5713_v44 = vsel %vm5705_vm3, %v5696_v28, %v5712_v26  ;;  %v5716_v5 = vsel %vm5706_vm2, %v5702_v41, 1326507024  ;;  %v5561_v45 = vxor.u32 2147483648, %v10312_v48  ;;  %v5842_v19 = vclz %v9282_v49 }
 0x508   : > { %v5714_v21 = vsel %vm5704_vm4, %v5711_v36, %v5713_v44  ;;  %v5717_v63 = vsel %vm5705_vm3, %v5699_v6, %v5716_v5  ;;  %v5565_v39 = vsel %vm5563_vm11, %v5564_v43, %v10312_v48  ;;  %v5830_v33 = vadd.s32 %v15236_v30, %v15242_v52 }
 0x509   : > { %v5718_v20 = vsel %vm5704_vm4, %v5715_v0, %v5717_v63  ;;  %v15321_v1 = vmul.u32.u64.low %v5719_v27, %v5714_v21  ;;  %v15322_v47 = vmul.u32.u64.high %v5719_v27, %v5714_v21, %v15321_v1  ;;  %v5562_v55 = vsel %vm5560_vm13, %v10310_v53, %v5561_v45 }
 0x50a   : > { %v9283_v61 = vadd.s32 4294967294, %v5842_v19  ;;  %v15326_v46 = vmul.u32.u64.low %v5719_v27, %v5718_v20  ;;  %v15327_v23 = vmul.u32.u64.high %v5719_v27, %v5718_v20, %v15326_v46  ;;  %v5566_v62 = vsel %vm5559_vm14, %v5562_v55, %v5565_v39 }
 0x50b   : > { %10313 = vpow2.f32 %v1041_v31  ;;  %v929_v8 = vmul.f32 -259.48502, %v865_v50  ;;  %v5567_v35 = vsel %vm5557_vm15, nan, %v5566_v62  ;;  %v5726_v54 = vmul.u32 %v5719_v27, %v5710_v38 }
 0x50c   : > { %vm9284_vm6 = vcmp.lt.s32.totalorder %v9283_v61, 0  ;;  %v5983_v4 = vand.u32 2139095040, %v15302_v11  ;;  %v7773_v25 = vadd.f32 1.0, %v5567_v35  ;;  %v5729_v16 = vadd.s32 1, %v15322_v47 }
 0x50d   : > { %v5845_v10 = vsel %vm9284_vm6, 0, %v9283_v61  ;;  %v1039_v24 = vmul.f32 1.442695, %v929_v8  ;;  %v5860_v30 = vsub.s32 4, %v15280_v2  ;;  %vm5728_vm7 = vc.u32 %v15327_v23, %v15321_v1 }
 0x50e   : > { %v5846_v28 = vsub.s32 32, %v5845_v10  ;;  %v5847_v15 = vshll.u32 %v15296_v57, %v5845_v10  ;;  %v5850_v6 = vsub.s32 4294967266, %v5845_v10  ;;  %v7837_v52 = vmul.f32 0.5, %v7773_v25 }
 0x50f   : > { %10315 = vpow2.f32 %v1039_v24  ;;  %v5980_v18 = vand.u32 2147483647, %v15302_v11  ;;  %v5730_v14 = vsel %vm5728_vm7, %v5729_v16, %v15322_v47  ;;  %v5984_v32 = vshrl.u32 %v5983_v4, 23 }
 0x510   : > { %v5848_v41 = vshrl.u32 %v5830_v33, %v5846_v28  ;;  %v5851_v27 = vadd.s32 127, %v5850_v6  ;;  %v7965_v3 = vsel %vm7901_vm5, %v7837_v52, 0.0  ;;  %vm5776_vm9 = vcmp.lt.s32.totalorder %v15149_v58, 0 }
 0x511   : > { %v5731_v57 = vadd.s32 %v5730_v14, %v5726_v54  ;;  %8781 = vperm.xlu0 %9915, %v7965_v3   ;;  %v5861_v26 = vsel %vm5776_vm9, %v5860_v30, %v15280_v2  ;;  %v9289_v53 = vadd.s32 4294967169, %v5984_v32  ;;  %v5987_v0 = vand.u32 8388607, %v5980_v18  ;;  %v15361_v2 = vld [vmem:[%s10649_s28 + $0x170] sm:$0xff] }
 0x512   : > { %v5849_v12 = vor.u32 %v5848_v41, %v5847_v15  ;;  %v5852_v36 = vshll.u32 %v5851_v27, 23  ;;  %vm15352_vm10 = vcmp.le.f32.partialorder %v5774_v59, 0.7853982  ;;  %v15364_v5 = vmul.f32 0.62831855, %v15361_v2  ;;  %v677_v59 = vpop.permute.xlu1 %676 }
 0x513   : > { %v5732_v49 = vadd.s32 536870912, %v5731_v57  ;;  %v5990_v48 = vadd.s32 1, %v9289_v53  ;;  %v5863_v38 = vsel %vm15352_vm10, 0, %v5861_v26  ;;  %v5988_v21 = vor.u32 8388608, %v5987_v0 }
 0x514   : > { %v5853_v31 = vor.u32 4788187, %v5852_v36  ;;  %v5856_v50 = vcvt.s32.f32 %v5849_v12  ;;  %v15367_v20 = vand.u32 3, %v5863_v38  ;;  %v15370_v61 = vadd.s32 %v15321_v1, %v15327_v23 }
 0x515   : > { %v10314_v43 = vpop.eup %10313  ;;  %v15358_v44 = vshrl.u32 %v5732_v49, 30  ;;  %vm5991_vm12 = vcmp.gt.s32.totalorder %v5990_v48, 0  ;;  %v5880_v62 = vand.u32 2139095040, %v15364_v5  ;;  %v15376_v33 = vsub.f32 %v677_v59, %v15259_v60 }
 0x516   : > { %v5854_v45 = vand.u32 2147483647, %v5853_v31  ;;  %v5992_v63 = vsel %vm5991_vm12, %v5990_v48, 0  ;;  %v5877_v4 = vand.u32 2147483647, %v15364_v5  ;;  %v15384_v10 = vshll.u32 %v5988_v21, 8 }
 0x517   : > { %v5734_v19 = vshll.u32 %v15358_v44, 30  ;;  %v5994_v47 = vand.u32 31, %v5992_v63  ;;  %v5757_v1 = vsub.s32 4, %v15358_v44  ;;  %v5993_v24 = vshrl.u32 %v5992_v63, 5 }
 0x518   : > { %v5857_v39 = vmul.f32 %v5856_v50, %v5854_v45  ;;  %vm5673_vm8 = vcmp.lt.s32.totalorder %v15171_v13, 0  ;;  %v5881_v41 = vshrl.u32 %v5880_v62, 23  ;;  %vm5872_vm11 = vcmp.eq.s32.totalorder %v15367_v20, 2 }
 0x519   : > { %v10316_v55 = vpop.eup %10315  ;;  %v15372_v46 = vsub.s32 %v5731_v57, %v5734_v19  ;;  %v5995_v35 = vsub.s32 32, %v5994_v47  ;;  %v5997_v54 = vshll.u32 %v17469_v17, %v5994_v47  ;;  %v6000_v23 = vshll.u32 %v17470_v22, %v5994_v47 }
 0x51a   : > { %v5858_v8 = vxor.u32 2147483648, %v5857_v39  ;;  %9572 = vmatprep.mubr.msk.f32.mxu1 %vm7991_vm0, %v10316_v55  ;;  %v6003_v52 = vshll.u32 %v17446_v29, %v5994_v47  ;;  %v6006_v12 = vshll.u32 %v17447_v56, %v5994_v47  ;;  %v6009_v26 = vshll.u32 %v17428_v7, %v5994_v47 }
 0x51b   : > { %v5737_v25 = vsub.s32 0, %v15372_v46  ;;  %9573 = vmatmul.mubr.msk.f32.gmra.mrb[14].mxu1 %vm7991_vm0, %v10314_v43  ;;  %v5998_v28 = vshrl.u32 %v17470_v22, %v5995_v35  ;;  %v6001_v15 = vshrl.u32 %v17446_v29, %v5995_v35  ;;  %v5996_v27 = vshrl.u32 %v17469_v17, %v5995_v35 }
 0x51c   : > { %v5859_v16 = vsel %vm5776_vm9, %v5858_v8, %v5857_v39  ;;  %v6004_v57 = vshrl.u32 %v17447_v56, %v5995_v35  ;;  %v6007_v36 = vshrl.u32 %v17428_v7, %v5995_v35  ;;  %v6010_v53 = vshrl.u32 %v17451_v42, %v5995_v35 }
 0x51d   : > { %v5862_v6 = vsel %vm15352_vm10, %v15149_v58, %v5859_v16  ;;  %v9278_v30 = vmin.u32 %v5737_v25, %v15372_v46  ;;  %v5999_v14 = vor.u32 %v5998_v28, %v5997_v54  ;;  %v6002_v32 = vor.u32 %v6001_v15, %v6000_v23 }
 0x51e   : > { %10317 = vcosq.f32 %v5862_v6  ;;  %vm6012_vm13 = vcmp.lt.s32.totalorder %v5993_v24, 1  ;;  %vm5869_vm14 = vcmp.eq.s32.totalorder %v15367_v20, 0  ;;  %vm15407_vm15 = vcmp.le.f32.partialorder %v5671_v9, 0.7853982 }
 0x51f   : > { %10319 = vsinq.f32 %v5862_v6  ;;  %v5739_v3 = vclz %v9278_v30  ;;  %v6005_v37 = vor.u32 %v6004_v57, %v6003_v52  ;;  %vm6013_vm1 = vcmp.lt.s32.totalorder %v5993_v24, 2 }
 0x520   : > { %vm6014_vm2 = vcmp.lt.s32.totalorder %v5993_v24, 3  ;;  %vm5868_vm3 = vcmp.lt.s32.totalorder %v15367_v20, 2  ;;  %v6008_v31 = vor.u32 %v6007_v36, %v6006_v12  ;;  %v6011_v50 = vor.u32 %v6010_v53, %v6009_v26 }
 0x521   : > { %v9279_v0 = vadd.s32 4294967294, %v5739_v3  ;;  %vm6015_vm4 = vcmp.lt.s32.totalorder %v5993_v24, 4  ;;  %v6016_v48 = vsel %vm6012_vm13, %v5996_v27, %v5999_v14  ;;  %vm5866_vm5 = vweird.f32 %v15149_v58 }
 0x522   : > { %v6017_v43 = vsel %vm6015_vm4, %v6005_v37, 2102212464  ;;  %v6020_v9 = vsel %vm6012_vm13, %v5999_v14, %v6002_v32  ;;  %v6024_v38 = vsel %vm6012_vm13, %v6002_v32, %v6005_v37  ;;  %v6021_v19 = vsel %vm6015_vm4, %v6008_v31, 920167782 }
 0x523   : > { %vm9280_vm6 = vcmp.lt.s32.totalorder %v9279_v0, 0  ;;  %v6018_v59 = vsel %vm6014_vm2, %v6002_v32, %v6017_v43  ;;  %v6025_v21 = vsel %vm6015_vm4, %v6011_v50, 1326507024  ;;  %v9285_v55 = vadd.s32 4294967169, %v5881_v41 }
 0x524   : > { %v5742_v45 = vsel %vm9280_vm6, 0, %v9279_v0  ;;  %v5758_v62 = vsel %vm5673_vm8, %v5757_v1, %v15358_v44  ;;  %v6019_v8 = vsel %vm6013_vm1, %v6016_v48, %v6018_v59  ;;  %v6022_v35 = vsel %vm6014_vm2, %v6005_v37, %v6021_v19 }
 0x525   : > { %v5743_v63 = vsub.s32 32, %v5742_v45  ;;  %v5744_v39 = vshll.u32 %v15372_v46, %v5742_v45  ;;  %v5747_v47 = vsub.s32 4294967266, %v5742_v45  ;;  %v6026_v54 = vsel %vm6014_vm2, %v6008_v31, %v6025_v21 }
 0x526   : > { %v6023_v16 = vsel %vm6013_vm1, %v6020_v9, %v6022_v35  ;;  %v6027_v28 = vsel %vm6013_vm1, %v6024_v38, %v6026_v54  ;;  %v5760_v24 = vsel %vm15407_vm15, 0, %v5758_v62  ;;  %v6035_v32 = vmul.u32 %v15384_v10, %v6019_v8 }
 0x527   : > { %v5745_v25 = vshrl.u32 %v15370_v61, %v5743_v63  ;;  %v5748_v23 = vadd.s32 127, %v5747_v47  ;;  %v15428_v15 = vmul.u32.u64.low %v15384_v10, %v6027_v28  ;;  %v15429_v6 = vmul.u32.u64.high %v15384_v10, %v6027_v28, %v15428_v15 }
 0x528   : > { %v10318_v46 = vpop.eup %10317  ;;  %v15432_v44 = vmul.u32.u64.low %v15384_v10, %v6023_v16  ;;  %v15433_v1 = vmul.u32.u64.high %v15384_v10, %v6023_v16, %v15432_v44  ;;  %v5887_v61 = vadd.s32 1, %v9285_v55  ;;  %v5884_v3 = vand.u32 8388607, %v5877_v4 }
 0x529   : > { %v10320_v30 = vpop.eup %10319  ;;  %v5873_v52 = vxor.u32 2147483648, %v10318_v46  ;;  %v5746_v41 = vor.u32 %v5745_v25, %v5744_v39  ;;  %v5749_v27 = vshll.u32 %v5748_v23, 23  ;;  %vm7904_vm9 = vcmp.lt.f32.partialorder %v15146_v34, 5.0 }
 0x52a   : > { %v5870_v14 = vxor.u32 2147483648, %v10320_v30  ;;  %vm5888_vm7 = vcmp.gt.s32.totalorder %v5887_v61, 0  ;;  %vm6037_vm10 = vc.u32 %v15429_v6, %v15432_v44  ;;  %v6038_v53 = vadd.s32 1, %v15433_v1 }
 0x52b   : > { %v5874_v57 = vsel %vm5872_vm11, %v5873_v52, %v10320_v30  ;;  %v5750_v12 = vor.u32 4788187, %v5749_v27  ;;  %v5753_v36 = vcvt.s32.f32 %v5746_v41  ;;  %v5889_v37 = vsel %vm5888_vm7, %v5887_v61, 0  ;;  %v672_v52 = vpop.permute.xlu0 %671 }
 0x52c   : > { %v5871_v26 = vsel %vm5869_vm14, %v10318_v46, %v5870_v14  ;;  %v868_v31 = vmul.f32 %v15376_v33, %v15376_v33  ;;  %v15455_v48 = vand.u32 3, %v5760_v24  ;;  %v6039_v43 = vsel %vm6037_vm10, %v6038_v53, %v15433_v1 }
 0x52d   : > { %v5875_v10 = vsel %vm5868_vm3, %v5871_v26, %v5874_v57  ;;  %v5751_v0 = vand.u32 2147483647, %v5750_v12  ;;  %v5891_v9 = vand.u32 31, %v5889_v37  ;;  %v6040_v59 = vadd.s32 %v6039_v43, %v6035_v32 }
 0x52e   : > { %v5876_v50 = vsel %vm5866_vm5, nan, %v5875_v10  ;;  %v5885_v19 = vor.u32 8388608, %v5884_v3  ;;  %v5890_v62 = vshrl.u32 %v5889_v37, 5  ;;  %v932_v32 = vmul.f32 -259.48502, %v868_v31 }
 0x52f   : > { %v7776_v38 = vadd.f32 1.0, %v5876_v50  ;;  %v5754_v45 = vmul.f32 %v5753_v36, %v5751_v0  ;;  %v5892_v21 = vsub.s32 32, %v5891_v9  ;;  %v5894_v20 = vshll.u32 %v17469_v17, %v5891_v9 }
 0x530   : > { %v5897_v63 = vshll.u32 %v17470_v22, %v5891_v9  ;;  %v5900_v39 = vshll.u32 %v17446_v29, %v5891_v9  ;;  %v6041_v58 = vadd.s32 536870912, %v6040_v59  ;;  %v5903_v55 = vshll.u32 %v17447_v56, %v5891_v9 }
 0x531   : > { %v7840_v33 = vmul.f32 0.5, %v7776_v38  ;;  %v5755_v47 = vxor.u32 2147483648, %v5754_v45  ;;  %v5895_v8 = vshrl.u32 %v17470_v22, %v5892_v21  ;;  %v5898_v35 = vshrl.u32 %v17446_v29, %v5892_v21 }
 0x532   : > { %v5901_v54 = vshrl.u32 %v17447_v56, %v5892_v21  ;;  %v15469_v16 = vshrl.u32 %v6041_v58, 30  ;;  %v5904_v28 = vshrl.u32 %v17428_v7, %v5892_v21  ;;  %v5893_v15 = vshrl.u32 %v17469_v17, %v5892_v21 }
 0x533   : > { %v7968_v25 = vsel %vm7904_vm9, %v7840_v33, 0.0  ;;  %v5756_v23 = vsel %vm5673_vm8, %v5755_v47, %v5754_v45  ;;  %v5896_v1 = vor.u32 %v5895_v8, %v5894_v20  ;;  %v5899_v30 = vor.u32 %v5898_v35, %v5897_v63 }
 0x534   : > { %8796 = vperm.xlu1 %9916, %v7968_v25   ;;  %v5759_v46 = vsel %vm15407_vm15, %v15171_v13, %v5756_v23  ;;  %v6043_v34 = vshll.u32 %v15469_v16, 30  ;;  %v5902_v41 = vor.u32 %v5901_v54, %v5900_v39  ;;  %v5905_v27 = vor.u32 %v5904_v28, %v5903_v55 }
 0x535   : > { %10321 = vcosq.f32 %v5759_v46  ;;  %v5906_v61 = vshll.u32 %v17428_v7, %v5891_v9  ;;  %v5907_v14 = vshrl.u32 %v17451_v42, %v5892_v21  ;;  %vm5909_vm12 = vcmp.lt.s32.totalorder %v5890_v62, 1 }
 0x536   : > { %10323 = vsinq.f32 %v5759_v46  ;;  %v15479_v24 = vsub.s32 %v6040_v59, %v6043_v34  ;;  %v15481_v49 = vshll.u32 %v5885_v19, 8  ;;  %v803_v3 = vsub.f32 %v672_v52, %v15259_v60 }
 0x537   : > { %v5908_v57 = vor.u32 %v5907_v14, %v5906_v61  ;;  %vm5910_vm8 = vcmp.lt.s32.totalorder %v5890_v62, 2  ;;  %vm5911_vm11 = vcmp.lt.s32.totalorder %v5890_v62, 3  ;;  %vm5912_vm13 = vcmp.lt.s32.totalorder %v5890_v62, 4 }
 0x538   : > { %v6046_v12 = vsub.s32 0, %v15479_v24  ;;  %v5913_v36 = vsel %vm5909_vm12, %v5893_v15, %v5896_v1  ;;  %v5914_v26 = vsel %vm5912_vm13, %v5902_v41, 2102212464  ;;  %v5917_v53 = vsel %vm5909_vm12, %v5896_v1, %v5899_v30 }
 0x539   : > { %v5915_v10 = vsel %vm5911_vm11, %v5899_v30, %v5914_v26  ;;  %v5918_v0 = vsel %vm5912_vm13, %v5905_v27, 920167782  ;;  %v5921_v37 = vsel %vm5909_vm12, %v5899_v30, %v5902_v41  ;;  %v5922_v50 = vsel %vm5912_vm13, %v5908_v57, 1326507024  ;;  %v15509_v30 = vld [vmem:[%s10649_s28 + $0x188] sm:$0xff] }
 0x53a   : > { %vm5763_vm14 = vweird.f32 %v15171_v13  ;;  %vm5765_vm15 = vcmp.lt.s32.totalorder %v15455_v48, 2  ;;  %v9290_v31 = vmin.u32 %v6046_v12, %v15479_v24  ;;  %v5919_v43 = vsel %vm5911_vm11, %v5902_v41, %v5918_v0 }
 0x53b   : > { %v5923_v9 = vsel %vm5911_vm11, %v5905_v27, %v5922_v50  ;;  %v1045_v38 = vmul.f32 1.442695, %v932_v32  ;;  %v867_v45 = vmul.f32 %v803_v3, %v803_v3  ;;  %v5916_v19 = vsel %vm5910_vm8, %v5913_v36, %v5915_v10 }
 0x53c   : > { %v6048_v59 = vclz %v9290_v31  ;;  %v5920_v21 = vsel %vm5910_vm8, %v5917_v53, %v5919_v43  ;;  %v5924_v20 = vsel %vm5910_vm8, %v5921_v37, %v5923_v9  ;;  %vm5766_vm1 = vcmp.eq.s32.totalorder %v15455_v48, 0  ;;  %v15536_v37 = vld [vmem:[%s10649_s28 + $0x180] sm:$0xff] }
 0x53d   : > { %v15492_v63 = vmul.u32.u64.low %v15481_v49, %v5924_v20  ;;  %v15493_v39 = vmul.u32.u64.high %v15481_v49, %v5924_v20, %v15492_v63  ;;  %v15496_v33 = vmul.u32.u64.low %v15481_v49, %v5920_v21  ;;  %v15497_v47 = vmul.u32.u64.high %v15481_v49, %v5920_v21, %v15496_v33  ;;  %v687_v21 = vpop.permute.xlu1 %686 }
 0x53e   : > { %vm5769_vm2 = vcmp.eq.s32.totalorder %v15455_v48, 2  ;;  %v9291_v55 = vadd.s32 4294967294, %v6048_v59  ;;  %v931_v8 = vmul.f32 -259.48502, %v867_v45  ;;  %v6036_v54 = vadd.s32 %v15432_v44, %v15429_v6 }
 0x53f   : > { %v10322_v58 = vpop.eup %10321  ;;  %v6066_v25 = vsub.s32 4, %v15469_v16  ;;  %10325 = vpow2.f32 %v1045_v38  ;;  %v5932_v28 = vmul.u32 %v15481_v49, %v5916_v19  ;;  %vm5934_vm4 = vc.u32 %v15493_v39, %v15496_v33 }
 0x540   : > { %v10324_v35 = vpop.eup %10323  ;;  %v5770_v62 = vxor.u32 2147483648, %v10322_v58  ;;  %vm9292_vm3 = vcmp.lt.s32.totalorder %v9291_v55, 0  ;;  %v1043_v46 = vmul.f32 1.442695, %v931_v8  ;;  %v15512_v52 = vmul.f32 0.62831855, %v15509_v30  ;;  %v682_v8 = vpop.permute.xlu0 %681 }
 0x541   : > { %v5767_v23 = vxor.u32 2147483648, %v10324_v35  ;;  %v6051_v1 = vsel %vm9292_vm3, 0, %v9291_v55  ;;  %v5935_v61 = vadd.s32 1, %v15497_v47  ;;  %vm7903_vm5 = vcmp.lt.f32.partialorder %v15168_v40, 5.0 }
 0x542   : > { %v5771_v15 = vsel %vm5769_vm2, %v5770_v62, %v10324_v35  ;;  %v6052_v44 = vsub.s32 32, %v6051_v1  ;;  %v6053_v34 = vshll.u32 %v15479_v24, %v6051_v1  ;;  %v6056_v41 = vsub.s32 4294967266, %v6051_v1 }
 0x543   : > { %v5768_v6 = vsel %vm5766_vm1, %v10322_v58, %v5767_v23  ;;  %10327 = vpow2.f32 %v1043_v46  ;;  %v6186_v14 = vand.u32 2147483647, %v15512_v52  ;;  %vm5982_vm6 = vcmp.lt.s32.totalorder %v15302_v11, 0 }
 0x544   : > { %v5772_v27 = vsel %vm5765_vm15, %v5768_v6, %v5771_v15  ;;  %v6054_v32 = vshrl.u32 %v6036_v54, %v6052_v44  ;;  %v6057_v3 = vadd.s32 127, %v6056_v41  ;;  %v5936_v48 = vsel %vm5934_vm4, %v5935_v61, %v15497_v47 }
 0x545   : > { %v5773_v49 = vsel %vm5763_vm14, nan, %v5772_v27  ;;  %v6189_v24 = vand.u32 2139095040, %v15512_v52  ;;  %v6067_v13 = vsel %vm5982_vm6, %v6066_v25, %v15469_v16  ;;  %v5937_v26 = vadd.s32 %v5936_v48, %v5932_v28 }
 0x546   : > { %v7775_v57 = vadd.f32 1.0, %v5773_v49  ;;  %v6055_v12 = vor.u32 %v6054_v32, %v6053_v34  ;;  %v6058_v36 = vshll.u32 %v6057_v3, 23  ;;  %v6193_v0 = vand.u32 8388607, %v6186_v14 }
 0x547   : > { %v6190_v10 = vshrl.u32 %v6189_v24, 23  ;;  %v15539_v50 = vmul.f32 0.62831855, %v15536_v37  ;;  %v5938_v9 = vadd.s32 536870912, %v5937_v26  ;;  %vm15545_vm7 = vcmp.le.f32.partialorder %v5980_v18, 0.7853982 }
 0x548   : > { %v7839_v53 = vmul.f32 0.5, %v7775_v57  ;;  %v6059_v31 = vor.u32 4788187, %v6058_v36  ;;  %v6062_v43 = vcvt.s32.f32 %v6055_v12  ;;  %v6069_v63 = vsel %vm15545_vm7, 0, %v6067_v13 }
 0x549   : > { %v10326_v38 = vpop.eup %10325  ;;  %v9297_v59 = vadd.s32 4294967169, %v6190_v10  ;;  %v6083_v19 = vand.u32 2147483647, %v15539_v50  ;;  %v15552_v47 = vshrl.u32 %v5938_v9, 30  ;;  %v6194_v58 = vor.u32 8388608, %v6193_v0 }
 0x54a   : > { %v7967_v45 = vsel %vm7903_vm5, %v7839_v53, 0.0  ;;  %v6060_v20 = vand.u32 2147483647, %v6059_v31  ;;  %v6086_v55 = vand.u32 2139095040, %v15539_v50  ;;  %v806_v62 = vsub.f32 %v687_v21, %v15259_v60 }
 0x54b   : > { %8791 = vperm.xlu0 %9915, %v7967_v45   ;;  %v6196_v40 = vadd.s32 1, %v9297_v59  ;;  %v5940_v35 = vshll.u32 %v15552_v47, 30  ;;  %v15557_v25 = vand.u32 3, %v6069_v63  ;;  %v15561_v23 = vand.u32 8388607, %v6083_v19 }
 0x54c   : > { %v6063_v18 = vmul.f32 %v6062_v43, %v6060_v20  ;;  %v805_v1 = vsub.f32 %v682_v8, %v15259_v60  ;;  %v5933_v6 = vadd.s32 %v15496_v33, %v15493_v39  ;;  %v15569_v34 = vshll.u32 %v6194_v58, 8 }
 0x54d   : > { %v10328_v54 = vpop.eup %10327  ;;  %vm6197_vm9 = vcmp.gt.s32.totalorder %v6196_v40, 0  ;;  %v15563_v46 = vsub.s32 %v5937_v26, %v5940_v35  ;;  %v6087_v41 = vshrl.u32 %v6086_v55, 23  ;;  %v5963_v49 = vsub.s32 4, %v15552_v47 }
 0x54e   : > { %v6064_v28 = vxor.u32 2147483648, %v6063_v18  ;;  %v6198_v15 = vsel %vm6197_vm9, %v6196_v40, 0  ;;  %9575 = vmatprep.mubr.msk.f32.mxu1 %vm7991_vm0, %v10328_v54  ;;  %v15576_v32 = vmul.f32 %v806_v62, %v806_v62  ;;  %v6091_v3 = vor.u32 8388608, %v15561_v23 }
 0x54f   : > { %v6200_v44 = vand.u32 31, %v6198_v15  ;;  %9576 = vmatmul.mubr.msk.f32.gmra.mrb[16].mxu1 %vm7991_vm0, %v10326_v38  ;;  %v5943_v61 = vsub.s32 0, %v15563_v46  ;;  %v15585_v24 = vmul.f32 %v805_v1, %v805_v1  ;;  %v6199_v12 = vshrl.u32 %v6198_v15, 5 }
 0x550   : > { %v6065_v27 = vsel %vm5982_vm6, %v6064_v28, %v6063_v18  ;;  %v9293_v13 = vadd.s32 4294967169, %v6087_v41  ;;  %vm6078_vm10 = vcmp.eq.s32.totalorder %v15557_v25, 2  ;;  %vm6075_vm12 = vcmp.eq.s32.totalorder %v15557_v25, 0 }
 0x551   : > { %v6068_v60 = vsel %vm15545_vm7, %v15302_v11, %v6065_v27  ;;  %v6201_v39 = vsub.s32 32, %v6200_v44  ;;  %v6203_v33 = vshll.u32 %v17469_v17, %v6200_v44  ;;  %v9286_v57 = vmin.u32 %v5943_v61, %v15563_v46 }
 0x552   : > { %10329 = vcosq.f32 %v6068_v60  ;;  %v6206_v48 = vshll.u32 %v17470_v22, %v6200_v44  ;;  %v6209_v10 = vshll.u32 %v17446_v29, %v6200_v44  ;;  %v6212_v43 = vshll.u32 %v17447_v56, %v6200_v44 }
 0x553   : > { %10331 = vsinq.f32 %v6068_v60  ;;  %v6204_v36 = vshrl.u32 %v17470_v22, %v6201_v39  ;;  %v5945_v26 = vclz %v9286_v57  ;;  %v6207_v53 = vshrl.u32 %v17446_v29, %v6201_v39 }
 0x554   : > { %v6210_v0 = vshrl.u32 %v17447_v56, %v6201_v39  ;;  %v6213_v9 = vshrl.u32 %v17428_v7, %v6201_v39  ;;  %v6215_v38 = vshll.u32 %v17428_v7, %v6200_v44  ;;  %vm6074_vm8 = vcmp.lt.s32.totalorder %v15557_v25, 2 }
 0x555   : > { %v6205_v31 = vor.u32 %v6204_v36, %v6203_v33  ;;  %v9287_v45 = vadd.s32 4294967294, %v5945_v26  ;;  %v6202_v16 = vshrl.u32 %v17469_v17, %v6201_v39  ;;  %v6208_v59 = vor.u32 %v6207_v53, %v6206_v48 }
 0x556   : > { %v6216_v21 = vshrl.u32 %v17451_v42, %v6201_v39  ;;  %vm6072_vm11 = vweird.f32 %v15302_v11  ;;  %vm5879_vm13 = vcmp.lt.s32.totalorder %v15364_v5, 0  ;;  %v6211_v20 = vor.u32 %v6210_v0, %v6209_v10 }
 0x557   : > { %v6214_v63 = vor.u32 %v6213_v9, %v6212_v43  ;;  %vm6218_vm14 = vcmp.lt.s32.totalorder %v6199_v12, 1  ;;  %vm6219_vm15 = vcmp.lt.s32.totalorder %v6199_v12, 2  ;;  %vm9288_vm1 = vcmp.lt.s32.totalorder %v9287_v45, 0 }
 0x558   : > { %v6217_v58 = vor.u32 %v6216_v21, %v6215_v38  ;;  %vm6220_vm2 = vcmp.lt.s32.totalorder %v6199_v12, 3  ;;  %vm6221_vm3 = vcmp.lt.s32.totalorder %v6199_v12, 4  ;;  %v5948_v40 = vsel %vm9288_vm1, 0, %v9287_v45 }
 0x559   : > { %v6223_v55 = vsel %vm6221_vm3, %v6211_v20, 2102212464  ;;  %v6226_v8 = vsel %vm6218_vm14, %v6205_v31, %v6208_v59  ;;  %v6227_v18 = vsel %vm6221_vm3, %v6214_v63, 920167782  ;;  %v5949_v35 = vsub.s32 32, %v5948_v40 }
 0x55a   : > { %v5950_v62 = vshll.u32 %v15563_v46, %v5948_v40  ;;  %v5953_v54 = vsub.s32 4294967266, %v5948_v40  ;;  %v6222_v28 = vsel %vm6218_vm14, %v6202_v16, %v6205_v31  ;;  %v6224_v15 = vsel %vm6220_vm2, %v6208_v59, %v6223_v55 }
 0x55b   : > { %v6228_v1 = vsel %vm6220_vm2, %v6211_v20, %v6227_v18  ;;  %v6230_v44 = vsel %vm6218_vm14, %v6208_v59, %v6211_v20  ;;  %v6231_v41 = vsel %vm6221_vm3, %v6217_v58, 1326507024  ;;  %v5951_v61 = vshrl.u32 %v5933_v6, %v5949_v35 }
 0x55c   : > { %v10330_v27 = vpop.eup %10329  ;;  %v5954_v60 = vadd.s32 127, %v5953_v54  ;;  %v6229_v39 = vsel %vm6219_vm15, %v6226_v8, %v6228_v1  ;;  %v6232_v33 = vsel %vm6220_vm2, %v6214_v63, %v6231_v41  ;;  %v6225_v31 = vsel %vm6219_vm15, %v6222_v28, %v6224_v15 }
 0x55d   : > { %v10332_v57 = vpop.eup %10331  ;;  %v6079_v48 = vxor.u32 2147483648, %v10330_v27  ;;  %v6233_v46 = vsel %vm6219_vm15, %v6230_v44, %v6232_v33  ;;  %v15611_v36 = vmul.u32.u64.low %v15569_v34, %v6229_v39  ;;  %v15612_v26 = vmul.u32.u64.high %v15569_v34, %v6229_v39, %v15611_v36 }
 0x55e   : > { %v6076_v53 = vxor.u32 2147483648, %v10332_v57  ;;  %v5952_v10 = vor.u32 %v5951_v61, %v5950_v62  ;;  %v5955_v0 = vshll.u32 %v5954_v60, 23  ;;  %v6093_v38 = vadd.s32 1, %v9293_v13 }
 0x55f   : > { %v6080_v6 = vsel %vm6078_vm10, %v6079_v48, %v10332_v57  ;;  %v15619_v43 = vmul.u32.u64.low %v15569_v34, %v6233_v46  ;;  %v15620_v9 = vmul.u32.u64.high %v15569_v34, %v6233_v46, %v15619_v43  ;;  %v15629_v12 = vsel %vm5879_vm13, %v5963_v49, %v15552_v47 }
 0x560   : > { %v6077_v45 = vsel %vm6075_vm12, %v10330_v27, %v6076_v53  ;;  %v5956_v16 = vor.u32 4788187, %v5955_v0  ;;  %v5959_v59 = vcvt.s32.f32 %v5952_v10  ;;  %v6241_v20 = vmul.u32 %v15569_v34, %v6225_v31 }
 0x561   : > { %v6081_v21 = vsel %vm6074_vm8, %v6077_v45, %v6080_v6  ;;  %v6244_v63 = vadd.s32 1, %v15612_v26  ;;  %vm6094_vm4 = vcmp.gt.s32.totalorder %v6093_v38, 0  ;;  %vm7906_vm5 = vcmp.lt.f32.partialorder %v15299_v51, 5.0 }
 0x562   : > { %v6082_v13 = vsel %vm6072_vm11, nan, %v6081_v21  ;;  %v5957_v58 = vand.u32 2147483647, %v5956_v16  ;;  %v6095_v40 = vsel %vm6094_vm4, %v6093_v38, 0  ;;  %vm15640_vm6 = vcmp.le.f32.partialorder %v5877_v4, 0.7853982 }
 0x563   : > { %v7778_v55 = vadd.f32 1.0, %v6082_v13  ;;  %vm6243_vm7 = vc.u32 %v15620_v9, %v15611_v36  ;;  %v934_v25 = vmul.f32 -259.48502, %v15576_v32  ;;  %v5966_v11 = vsel %vm15640_vm6, 0, %v15629_v12 }
 0x564   : > { %v5960_v34 = vmul.f32 %v5959_v59, %v5957_v58  ;;  %v6245_v49 = vsel %vm6243_vm7, %v6244_v63, %v15612_v26  ;;  %v6097_v8 = vand.u32 31, %v6095_v40  ;;  %v15653_v4 = vshll.u32 %v6091_v3, 8 }
 0x565   : > { %v7842_v18 = vmul.f32 0.5, %v7778_v55  ;;  %v6246_v35 = vadd.s32 %v6245_v49, %v6241_v20  ;;  %v933_v62 = vmul.f32 -259.48502, %v15585_v24  ;;  %v6096_v28 = vshrl.u32 %v6095_v40, 5 }
 0x566   : > { %v5961_v54 = vxor.u32 2147483648, %v5960_v34  ;;  %v6098_v15 = vsub.s32 32, %v6097_v8  ;;  %v6100_v32 = vshll.u32 %v17469_v17, %v6097_v8  ;;  %v6103_v41 = vshll.u32 %v17470_v22, %v6097_v8 }
 0x567   : > { %v7970_v1 = vsel %vm7906_vm5, %v7842_v18, 0.0  ;;  %v6247_v44 = vadd.s32 536870912, %v6246_v35  ;;  %v6106_v27 = vshll.u32 %v17446_v29, %v6097_v8  ;;  %v6109_v61 = vshll.u32 %v17447_v56, %v6097_v8 }
 0x568   : > { %8806 = vperm.xlu1 %9916, %v7970_v1   ;;  %v5962_v23 = vsel %vm5879_vm13, %v5961_v54, %v5960_v34  ;;  %v6101_v3 = vshrl.u32 %v17470_v22, %v6098_v15  ;;  %v6104_v24 = vshrl.u32 %v17446_v29, %v6098_v15  ;;  %v6107_v39 = vshrl.u32 %v17447_v56, %v6098_v15 }
 0x569   : > { %v5965_v51 = vsel %vm15640_vm6, %v15364_v5, %v5962_v23  ;;  %v15669_v60 = vshrl.u32 %v6247_v44, 30  ;;  %v6110_v33 = vshrl.u32 %v17428_v7, %v6098_v15  ;;  %v6099_v57 = vshrl.u32 %v17469_v17, %v6098_v15 }
 0x56a   : > { %10333 = vcosq.f32 %v5965_v51  ;;  %v6102_v48 = vor.u32 %v6101_v3, %v6100_v32  ;;  %v6112_v46 = vshll.u32 %v17428_v7, %v6097_v8  ;;  %v6105_v53 = vor.u32 %v6104_v24, %v6103_v41  ;;  %v15695_v8 = vld [vmem:[%s10649_s28 + $0x198] sm:$0xff] }
 0x56b   : > { %10335 = vsinq.f32 %v5965_v51  ;;  %v6249_v26 = vshll.u32 %v15669_v60, 30  ;;  %v6108_v10 = vor.u32 %v6107_v39, %v6106_v27  ;;  %v6111_v0 = vor.u32 %v6110_v33, %v6109_v61 }
 0x56c   : > { %v6113_v31 = vshrl.u32 %v17451_v42, %v6098_v15  ;;  %vm6115_vm9 = vcmp.lt.s32.totalorder %v6096_v28, 1  ;;  %vm6118_vm10 = vcmp.lt.s32.totalorder %v6096_v28, 4  ;;  %vm6117_vm12 = vcmp.lt.s32.totalorder %v6096_v28, 3 }
 0x56d   : > { %v15677_v6 = vsub.s32 %v6246_v35, %v6249_v26  ;;  %v6120_v43 = vsel %vm6118_vm10, %v6108_v10, 2102212464  ;;  %v1049_v38 = vmul.f32 1.442695, %v934_v25  ;;  %v6119_v16 = vsel %vm6115_vm9, %v6099_v57, %v6102_v48 }
 0x56e   : > { %v6114_v45 = vor.u32 %v6113_v31, %v6112_v46  ;;  %v6121_v59 = vsel %vm6117_vm12, %v6105_v53, %v6120_v43  ;;  %v1047_v12 = vmul.f32 1.442695, %v933_v62  ;;  %vm5969_vm8 = vweird.f32 %v15364_v5 }
 0x56f   : > { %v6252_v21 = vsub.s32 0, %v15677_v6  ;;  %vm6116_vm11 = vcmp.lt.s32.totalorder %v6096_v28, 2  ;;  %v6123_v20 = vsel %vm6115_vm9, %v6102_v48, %v6105_v53  ;;  %v6124_v63 = vsel %vm6118_vm10, %v6111_v0, 920167782 }
 0x570   : > { %v5970_v13 = vand.u32 3, %v5966_v11  ;;  %v6125_v58 = vsel %vm6117_vm12, %v6108_v10, %v6124_v63  ;;  %v6127_v40 = vsel %vm6115_vm9, %v6105_v53, %v6108_v10  ;;  %v6128_v55 = vsel %vm6118_vm10, %v6114_v45, 1326507024 }
 0x571   : > { %vm6188_vm13 = vcmp.lt.s32.totalorder %v15512_v52, 0  ;;  %v9298_v47 = vmin.u32 %v6252_v21, %v15677_v6  ;;  %v6122_v25 = vsel %vm6116_vm11, %v6119_v16, %v6121_v59  ;;  %10337 = vpow2.f32 %v1049_v38  ;;  %v15737_v21 = vld [vmem:[%s10649_s28 + $0x190] sm:$0xff] }
 0x572   : > { %v6126_v34 = vsel %vm6116_vm11, %v6123_v20, %v6125_v58  ;;  %v6129_v49 = vsel %vm6117_vm12, %v6111_v0, %v6128_v55  ;;  %10339 = vpow2.f32 %v1047_v12  ;;  %v15698_v11 = vmul.f32 0.62831855, %v15695_v8 }
 0x573   : > { %v6254_v18 = vclz %v9298_v47  ;;  %v6130_v35 = vsel %vm6116_vm11, %v6127_v40, %v6129_v49  ;;  %v15702_v62 = vmul.u32.u64.low %v15653_v4, %v6126_v34  ;;  %v15703_v54 = vmul.u32.u64.high %v15653_v4, %v6126_v34, %v15702_v62 }
 0x574   : > { %v10334_v15 = vpop.eup %10333  ;;  %vm5971_vm14 = vcmp.lt.s32.totalorder %v5970_v13, 2  ;;  %vm5975_vm15 = vcmp.eq.s32.totalorder %v5970_v13, 2  ;;  %v15707_v32 = vmul.u32.u64.low %v15653_v4, %v6130_v35  ;;  %v15708_v1 = vmul.u32.u64.high %v15653_v4, %v6130_v35, %v15707_v32 }
 0x575   : > { %v10336_v44 = vpop.eup %10335  ;;  %vm5972_vm1 = vcmp.eq.s32.totalorder %v5970_v13, 0  ;;  %v5976_v41 = vxor.u32 2147483648, %v10334_v15  ;;  %vm15712_vm2 = vcmp.le.f32.partialorder %v6186_v14, 0.7853982  ;;  %v9299_v27 = vadd.s32 4294967294, %v6254_v18 }
 0x576   : > { %v6395_v23 = vand.u32 2139095040, %v15698_v11  ;;  %v5973_v3 = vxor.u32 2147483648, %v10336_v44  ;;  %v6242_v24 = vadd.s32 %v15611_v36, %v15620_v9  ;;  %v6272_v61 = vsub.s32 4, %v15669_v60 }
 0x577   : > { %v6138_v51 = vmul.u32 %v15653_v4, %v6122_v25  ;;  %v5977_v39 = vsel %vm5975_vm15, %v5976_v41, %v10336_v44  ;;  %vm9300_vm3 = vcmp.lt.s32.totalorder %v9299_v27, 0  ;;  %v6141_v33 = vadd.s32 1, %v15703_v54 }
 0x578   : > { %v6396_v57 = vshrl.u32 %v6395_v23, 23  ;;  %v5974_v14 = vsel %vm5972_vm1, %v10334_v15, %v5973_v3  ;;  %v6257_v48 = vsel %vm9300_vm3, 0, %v9299_v27  ;;  %vm6140_vm4 = vc.u32 %v15708_v1, %v15702_v62 }
 0x579   : > { %v6392_v46 = vand.u32 2147483647, %v15698_v11  ;;  %v5978_v26 = vsel %vm5971_vm14, %v5974_v14, %v5977_v39  ;;  %v6258_v53 = vsub.s32 32, %v6257_v48  ;;  %v6259_v36 = vshll.u32 %v15677_v6, %v6257_v48 }
 0x57a   : > { %v6262_v9 = vsub.s32 4294967266, %v6257_v48  ;;  %v5979_v4 = vsel %vm5969_vm8, nan, %v5978_v26  ;;  %v6273_v10 = vsel %vm6188_vm13, %v6272_v61, %v15669_v60  ;;  %v6142_v0 = vsel %vm6140_vm4, %v6141_v33, %v15703_v54 }
 0x57b   : > { %v9305_v31 = vadd.s32 4294967169, %v6396_v57  ;;  %v10338_v43 = vpop.eup %10337  ;;  %v7777_v38 = vadd.f32 1.0, %v5979_v4  ;;  %v6260_v45 = vshrl.u32 %v6242_v24, %v6258_v53  ;;  %v6143_v59 = vadd.s32 %v6142_v0, %v6138_v51 }
 0x57c   : > { %v6263_v16 = vadd.s32 127, %v6262_v9  ;;  %v10340_v12 = vpop.eup %10339  ;;  %vm7905_vm5 = vcmp.lt.f32.partialorder %v15361_v2, 5.0  ;;  %v6399_v6 = vand.u32 8388607, %v6392_v46  ;;  %v15740_v20 = vmul.f32 0.62831855, %v15737_v21 }
 0x57d   : > { %v6402_v5 = vadd.s32 1, %v9305_v31  ;;  %v7841_v60 = vmul.f32 0.5, %v7777_v38  ;;  %v6261_v63 = vor.u32 %v6260_v45, %v6259_v36  ;;  %v6144_v58 = vadd.s32 536870912, %v6143_v59  ;;  %9578 = vmatprep.mubr.msk.f32.mxu1 %vm7991_vm0, %v10340_v12 }
 0x57e   : > { %v6264_v13 = vshll.u32 %v6263_v16, 23  ;;  %v6275_v40 = vsel %vm15712_vm2, 0, %v6273_v10  ;;  %9579 = vmatmul.mubr.msk.f32.gmra.mrb[18].mxu1 %vm7991_vm0, %v10338_v43  ;;  %v6400_v34 = vor.u32 8388608, %v6399_v6  ;;  %v6292_v54 = vand.u32 2139095040, %v15740_v20 }
 0x57f   : > { %vm6403_vm6 = vcmp.gt.s32.totalorder %v6402_v5, 0  ;;  %v7969_v2 = vsel %vm7905_vm5, %v7841_v60, 0.0  ;;  %v6268_v47 = vcvt.s32.f32 %v6261_v63  ;;  %v15746_v25 = vshrl.u32 %v6144_v58, 30 }
 0x580   : > { %v6265_v55 = vor.u32 4788187, %v6264_v13  ;;  %8801 = vperm.xlu0 %9915, %v7969_v2   ;;  %v6404_v49 = vsel %vm6403_vm6, %v6402_v5, 0  ;;  %v15750_v15 = vand.u32 3, %v6275_v40  ;;  %v6289_v44 = vand.u32 2147483647, %v15740_v20 }
 0x581   : > { %v6146_v35 = vshll.u32 %v15746_v25, 30  ;;  %v6406_v32 = vand.u32 31, %v6404_v49  ;;  %v6139_v27 = vadd.s32 %v15702_v62, %v15708_v1  ;;  %v15757_v3 = vshrl.u32 %v6404_v49, 5 }
 0x582   : > { %v6266_v18 = vand.u32 2147483647, %v6265_v55  ;;  %v15761_v39 = vshll.u32 %v6400_v34, 8  ;;  %v6293_v48 = vshrl.u32 %v6292_v54, 23  ;;  %v15770_v53 = vand.u32 8388607, %v6289_v44 }
 0x583   : > { %v15755_v23 = vsub.s32 %v6143_v59, %v6146_v35  ;;  %v6407_v24 = vsub.s32 32, %v6406_v32  ;;  %v6409_v61 = vshll.u32 %v17469_v17, %v6406_v32  ;;  %v6412_v51 = vshll.u32 %v17470_v22, %v6406_v32 }
 0x584   : > { %v6269_v41 = vmul.f32 %v6268_v47, %v6266_v18  ;;  %v6415_v14 = vshll.u32 %v17446_v29, %v6406_v32  ;;  %vm6085_vm7 = vcmp.lt.s32.totalorder %v15539_v50, 0  ;;  %v6169_v4 = vsub.s32 4, %v15746_v25 }
 0x585   : > { %v6149_v57 = vsub.s32 0, %v15755_v23  ;;  %v6410_v26 = vshrl.u32 %v17470_v22, %v6407_v24  ;;  %v6413_v62 = vshrl.u32 %v17446_v29, %v6407_v24  ;;  %v6416_v1 = vshrl.u32 %v17447_v56, %v6407_v24 }
 0x586   : > { %v6270_v33 = vxor.u32 2147483648, %v6269_v41  ;;  %vm6424_vm9 = vcmp.lt.s32.totalorder %v15757_v3, 1  ;;  %v6408_v0 = vshrl.u32 %v17469_v17, %v6407_v24  ;;  %v6418_v16 = vshll.u32 %v17447_v56, %v6406_v32 }
 0x587   : > { %v9294_v9 = vmin.u32 %v6149_v57, %v15755_v23  ;;  %v6411_v31 = vor.u32 %v6410_v26, %v6409_v61  ;;  %v6414_v43 = vor.u32 %v6413_v62, %v6412_v51  ;;  %v6417_v45 = vor.u32 %v6416_v1, %v6415_v14 }
 0x588   : > { %v6271_v36 = vsel %vm6188_vm13, %v6270_v33, %v6269_v41  ;;  %v6419_v59 = vshrl.u32 %v17428_v7, %v6407_v24  ;;  %v6421_v12 = vshll.u32 %v17428_v7, %v6406_v32  ;;  %v6422_v6 = vshrl.u32 %v17451_v42, %v6407_v24 }
 0x589   : > { %v6274_v10 = vsel %vm15712_vm2, %v15512_v52, %v6271_v36  ;;  %v6151_v38 = vclz %v9294_v9  ;;  %vm15788_vm10 = vcmp.le.f32.partialorder %v6083_v19, 0.7853982  ;;  %vm6425_vm12 = vcmp.lt.s32.totalorder %v15757_v3, 2 }
 0x58a   : > { %10341 = vcosq.f32 %v6274_v10  ;;  %vm6427_vm8 = vcmp.lt.s32.totalorder %v15757_v3, 4  ;;  %v9301_v60 = vadd.s32 4294967169, %v6293_v48  ;;  %vm6281_vm11 = vcmp.eq.s32.totalorder %v15750_v15, 0 }
 0x58b   : > { %10343 = vsinq.f32 %v6274_v10  ;;  %v9295_v5 = vadd.s32 4294967294, %v6151_v38  ;;  %v6420_v63 = vor.u32 %v6419_v59, %v6418_v16  ;;  %v6423_v13 = vor.u32 %v6422_v6, %v6421_v12 }
 0x58c   : > { %vm6426_vm13 = vcmp.lt.s32.totalorder %v15757_v3, 3  ;;  %v6429_v58 = vsel %vm6427_vm8, %v6417_v45, 2102212464  ;;  %vm6280_vm14 = vcmp.lt.s32.totalorder %v15750_v15, 2  ;;  %v6428_v19 = vsel %vm6424_vm9, %v6408_v0, %v6411_v31 }
 0x58d   : > { %vm9296_vm15 = vcmp.lt.s32.totalorder %v9295_v5, 0  ;;  %v6430_v40 = vsel %vm6426_vm13, %v6414_v43, %v6429_v58  ;;  %v6432_v2 = vsel %vm6424_vm9, %v6411_v31, %v6414_v43  ;;  %vm6278_vm1 = vweird.f32 %v15512_v52 }
 0x58e   : > { %v6154_v55 = vsel %vm9296_vm15, 0, %v9295_v5  ;;  %v6433_v47 = vsel %vm6427_vm8, %v6420_v63, 920167782  ;;  %v6436_v34 = vsel %vm6424_vm9, %v6414_v43, %v6417_v45  ;;  %v6437_v49 = vsel %vm6427_vm8, %v6423_v13, 1326507024 }
 0x58f   : > { %v6155_v18 = vsub.s32 32, %v6154_v55  ;;  %v6156_v35 = vshll.u32 %v15755_v23, %v6154_v55  ;;  %v6159_v54 = vsub.s32 4294967266, %v6154_v55  ;;  %v6434_v32 = vsel %vm6426_vm13, %v6417_v45, %v6433_v47 }
 0x590   : > { %v6170_v41 = vsel %vm6085_vm7, %v6169_v4, %v15746_v25  ;;  %v6435_v24 = vsel %vm6425_vm12, %v6432_v2, %v6434_v32  ;;  %v6438_v61 = vsel %vm6426_vm13, %v6420_v63, %v6437_v49  ;;  %v6299_v51 = vadd.s32 1, %v9301_v60 }
 0x591   : > { %v6157_v33 = vshrl.u32 %v6139_v27, %v6155_v18  ;;  %v6160_v57 = vadd.s32 127, %v6159_v54  ;;  %v6431_v23 = vsel %vm6425_vm12, %v6428_v19, %v6430_v40  ;;  %v6439_v14 = vsel %vm6425_vm12, %v6436_v34, %v6438_v61 }
 0x592   : > { %v15827_v48 = vmul.u32.u64.low %v15761_v39, %v6439_v14  ;;  %v15828_v26 = vmul.u32.u64.high %v15761_v39, %v6439_v14, %v15827_v48  ;;  %v15831_v25 = vmul.u32.u64.low %v15761_v39, %v6435_v24  ;;  %v15832_v62 = vmul.u32.u64.high %v15761_v39, %v6435_v24, %v15831_v25 }
 0x593   : > { %vm6284_vm2 = vcmp.eq.s32.totalorder %v15750_v15, 2  ;;  %v6158_v27 = vor.u32 %v6157_v33, %v6156_v35  ;;  %v6161_v36 = vshll.u32 %v6160_v57, 23  ;;  %vm6300_vm3 = vcmp.gt.s32.totalorder %v6299_v51, 0 }
 0x594   : > { %v10342_v1 = vpop.eup %10341  ;;  %v6172_v3 = vsel %vm15788_vm10, 0, %v6170_v41  ;;  %v6297_v10 = vor.u32 8388608, %v15770_v53  ;;  %v6301_v0 = vsel %vm6300_vm3, %v6299_v51, 0  ;;  %v6447_v45 = vmul.u32 %v15761_v39, %v6431_v23 }
 0x595   : > { %v10344_v9 = vpop.eup %10343  ;;  %v6285_v4 = vxor.u32 2147483648, %v10342_v1  ;;  %v6162_v43 = vor.u32 4788187, %v6161_v36  ;;  %v6165_v38 = vcvt.s32.f32 %v6158_v27  ;;  %vm6449_vm4 = vc.u32 %v15828_v26, %v15831_v25 }
 0x596   : > { %v6282_v31 = vxor.u32 2147483648, %v10344_v9  ;;  %v6450_v59 = vadd.s32 1, %v15832_v62  ;;  %v15843_v12 = vshrl.u32 %v6301_v0, 5  ;;  %vm7908_vm5 = vcmp.lt.f32.partialorder %v15509_v30, 5.0 }
 0x597   : > { %v6286_v16 = vsel %vm6284_vm2, %v6285_v4, %v10344_v9  ;;  %v6163_v53 = vand.u32 2147483647, %v6162_v43  ;;  %v6303_v5 = vand.u32 31, %v6301_v0  ;;  %v15850_v63 = vand.u32 3, %v6172_v3  ;;  %v692_v9 = vpop.permute.xlu0 %691 }
 0x598   : > { %v6283_v6 = vsel %vm6281_vm11, %v10342_v1, %v6282_v31  ;;  %v6451_v39 = vsel %vm6449_vm4, %v6450_v59, %v15832_v62  ;;  %v15853_v13 = vshll.u32 %v6297_v10, 8  ;;  %vm6321_vm6 = vcmp.lt.s32.totalorder %v15843_v12, 1  ;;  %v697_v62 = vpop.permute.xlu1 %696  ;;  %v15888_v10 = vld [vmem:[%s17404_s1] ss:$0 sm:$0xff] }
 0x599   : > { %v6287_v60 = vsel %vm6280_vm14, %v6283_v6, %v6286_v16  ;;  %v6166_v19 = vmul.f32 %v6165_v38, %v6163_v53  ;;  %v6452_v40 = vadd.s32 %v6451_v39, %v6447_v45  ;;  %v6304_v2 = vsub.s32 32, %v6303_v5 }
 0x59a   : > { %v6288_v58 = vsel %vm6278_vm1, nan, %v6287_v60  ;;  %v6306_v47 = vshll.u32 %v17469_v17, %v6303_v5  ;;  %v6309_v34 = vshll.u32 %v17470_v22, %v6303_v5  ;;  %v6312_v35 = vshll.u32 %v17446_v29, %v6303_v5 }
 0x59b   : > { %v7780_v55 = vadd.f32 1.0, %v6288_v58  ;;  %v6167_v15 = vxor.u32 2147483648, %v6166_v19  ;;  %v6453_v49 = vadd.s32 536870912, %v6452_v40  ;;  %v6307_v18 = vshrl.u32 %v17470_v22, %v6304_v2 }
 0x59c   : > { %v6310_v52 = vshrl.u32 %v17446_v29, %v6304_v2  ;;  %v6313_v32 = vshrl.u32 %v17447_v56, %v6304_v2  ;;  %v6315_v41 = vshll.u32 %v17447_v56, %v6303_v5  ;;  %v6305_v51 = vshrl.u32 %v17469_v17, %v6304_v2 }
 0x59d   : > { %v7844_v54 = vmul.f32 0.5, %v7780_v55  ;;  %v6168_v24 = vsel %vm6085_vm7, %v6167_v15, %v6166_v19  ;;  %v15867_v61 = vshrl.u32 %v6453_v49, 30  ;;  %v6316_v33 = vshrl.u32 %v17428_v7, %v6304_v2  ;;  %v15915_v19 = vld [vmem:[%s10649_s28 + $0x1a8] sm:$0xff] }
 0x59e   : > { %v6171_v23 = vsel %vm15788_vm10, %v15539_v50, %v6168_v24  ;;  %v6308_v14 = vor.u32 %v6307_v18, %v6306_v47  ;;  %v6311_v48 = vor.u32 %v6310_v52, %v6309_v34  ;;  %v6314_v27 = vor.u32 %v6313_v32, %v6312_v35 }
 0x59f   : > { %v7972_v57 = vsel %vm7908_vm5, %v7844_v54, 0.0  ;;  %10345 = vcosq.f32 %v6171_v23  ;;  %v6455_v1 = vshll.u32 %v15867_v61, 30  ;;  %v6317_v36 = vor.u32 %v6316_v33, %v6315_v41 }
 0x5a0   : > { %8816 = vperm.xlu1 %9916, %v7972_v57   ;;  %10347 = vsinq.f32 %v6171_v23  ;;  %v6318_v4 = vshll.u32 %v17428_v7, %v6303_v5  ;;  %v6319_v30 = vshrl.u32 %v17451_v42, %v6304_v2  ;;  %vm6324_vm7 = vcmp.lt.s32.totalorder %v15843_v12, 4 }
 0x5a1   : > { %v15880_v3 = vsub.s32 %v6452_v40, %v6455_v1  ;;  %vm6323_vm9 = vcmp.lt.s32.totalorder %v15843_v12, 3  ;;  %v6326_v28 = vsel %vm6324_vm7, %v6314_v27, 2102212464  ;;  %v808_v0 = vsub.f32 %v697_v62, %v15888_v10 }
 0x5a2   : > { %v6320_v31 = vor.u32 %v6319_v30, %v6318_v4  ;;  %v6325_v43 = vsel %vm6321_vm6, %v6305_v51, %v6308_v14  ;;  %v6327_v38 = vsel %vm6323_vm9, %v6311_v48, %v6326_v28  ;;  %v807_v45 = vsub.f32 %v692_v9, %v15888_v10 }
 0x5a3   : > { %v6458_v16 = vsub.s32 0, %v15880_v3  ;;  %vm6322_vm10 = vcmp.lt.s32.totalorder %v15843_v12, 2  ;;  %v6329_v59 = vsel %vm6321_vm6, %v6308_v14, %v6311_v48  ;;  %v6330_v6 = vsel %vm6324_vm7, %v6317_v36, 920167782 }
 0x5a4   : > { %vm6175_vm12 = vweird.f32 %v15539_v50  ;;  %vm6177_vm8 = vcmp.lt.s32.totalorder %v15850_v63, 2  ;;  %v6331_v53 = vsel %vm6323_vm9, %v6314_v27, %v6330_v6  ;;  %v6333_v5 = vsel %vm6321_vm6, %v6311_v48, %v6314_v27 }
 0x5a5   : > { %v6334_v60 = vsel %vm6324_vm7, %v6320_v31, 1326507024  ;;  %vm6178_vm11 = vcmp.eq.s32.totalorder %v15850_v63, 0  ;;  %v9306_v39 = vmin.u32 %v6458_v16, %v15880_v3  ;;  %v6328_v58 = vsel %vm6322_vm10, %v6325_v43, %v6327_v38 }
 0x5a6   : > { %v15918_v40 = vmul.f32 0.62831855, %v15915_v19  ;;  %v6332_v2 = vsel %vm6322_vm10, %v6329_v59, %v6331_v53  ;;  %v6335_v55 = vsel %vm6323_vm9, %v6317_v36, %v6334_v60  ;;  %v872_v47 = vmul.f32 %v808_v0, %v808_v0 }
 0x5a7   : > { %v871_v34 = vmul.f32 %v807_v45, %v807_v45  ;;  %vm6394_vm13 = vcmp.lt.s32.totalorder %v15698_v11, 0  ;;  %v6460_v15 = vclz %v9306_v39  ;;  %v6336_v49 = vsel %vm6322_vm10, %v6333_v5, %v6335_v55 }
 0x5a8   : > { %v15928_v18 = vmul.u32.u64.low %v15853_v13, %v6332_v2  ;;  %v15929_v35 = vmul.u32.u64.high %v15853_v13, %v6332_v2, %v15928_v18  ;;  %v15933_v54 = vmul.u32.u64.low %v15853_v13, %v6336_v49  ;;  %v15934_v52 = vmul.u32.u64.high %v15853_v13, %v6336_v49, %v15933_v54 }
 0x5a9   : > { %v936_v32 = vmul.f32 -259.48502, %v872_v47  ;;  %v935_v41 = vmul.f32 -259.48502, %v871_v34  ;;  %v10346_v24 = vpop.eup %10345  ;;  %vm6181_vm14 = vcmp.eq.s32.totalorder %v15850_v63, 2  ;;  %vm7907_vm15 = vcmp.lt.f32.partialorder %v15536_v37, 5.0 }
 0x5aa   : > { %v6448_v12 = vadd.s32 %v15831_v25, %v15828_v26  ;;  %v9307_v51 = vadd.s32 4294967294, %v6460_v15  ;;  %v6478_v33 = vsub.s32 4, %v15867_v61  ;;  %v10348_v57 = vpop.eup %10347  ;;  %v6182_v23 = vxor.u32 2147483648, %v10346_v24 }
 0x5ab   : > { %v6344_v14 = vmul.u32 %v15853_v13, %v6328_v58  ;;  %v1053_v48 = vmul.f32 1.442695, %v936_v32  ;;  %v6601_v62 = vand.u32 2139095040, %v15918_v40  ;;  %v6179_v1 = vxor.u32 2147483648, %v10348_v57 }
 0x5ac   : > { %vm9308_vm1 = vcmp.lt.s32.totalorder %v9307_v51, 0  ;;  %v6347_v27 = vadd.s32 1, %v15929_v35  ;;  %v6598_v36 = vand.u32 2147483647, %v15918_v40  ;;  %v6183_v9 = vsel %vm6181_vm14, %v6182_v23, %v10348_v57 }
 0x5ad   : > { %v6463_v26 = vsel %vm9308_vm1, 0, %v9307_v51  ;;  %vm6346_vm2 = vc.u32 %v15934_v52, %v15928_v18  ;;  %v1051_v25 = vmul.f32 1.442695, %v935_v41  ;;  %v6180_v13 = vsel %vm6178_vm11, %v10346_v24, %v6179_v1  ;;  %v15980_v51 = vld [vmem:[%s10649_s28 + $0x1a0] sm:$0xff] }
 0x5ae   : > { %v6464_v4 = vsub.s32 32, %v6463_v26  ;;  %v6465_v30 = vshll.u32 %v15880_v3, %v6463_v26  ;;  %v6468_v28 = vsub.s32 4294967266, %v6463_v26  ;;  %v6184_v0 = vsel %vm6177_vm8, %v6180_v13, %v6183_v9 }
 0x5af   : > { %v6348_v31 = vsel %vm6346_vm2, %v6347_v27, %v15929_v35  ;;  %10349 = vpow2.f32 %v1053_v48  ;;  %v6602_v43 = vshrl.u32 %v6601_v62, 23  ;;  %v6185_v38 = vsel %vm6175_vm12, nan, %v6184_v0 }
 0x5b0   : > { %v6466_v45 = vshrl.u32 %v6448_v12, %v6464_v4  ;;  %v6469_v16 = vadd.s32 127, %v6468_v28  ;;  %v6349_v59 = vadd.s32 %v6348_v31, %v6344_v14  ;;  %v7779_v6 = vadd.f32 1.0, %v6185_v38 }
 0x5b1   : > { %v6479_v53 = vsel %vm6394_vm13, %v6478_v33, %v15867_v61  ;;  %10351 = vpow2.f32 %v1051_v25  ;;  %v9313_v3 = vadd.s32 4294967169, %v6602_v43  ;;  %v6605_v39 = vand.u32 8388607, %v6598_v36 }
 0x5b2   : > { %v6467_v5 = vor.u32 %v6466_v45, %v6465_v30  ;;  %v6470_v63 = vshll.u32 %v6469_v16, 23  ;;  %v6350_v60 = vadd.s32 536870912, %v6349_v59  ;;  %v7843_v58 = vmul.f32 0.5, %v7779_v6 }
 0x5b3   : > { %v6608_v2 = vadd.s32 1, %v9313_v3  ;;  %vm15964_vm3 = vcmp.le.f32.partialorder %v6392_v46, 0.7853982  ;;  %v6606_v46 = vor.u32 8388608, %v6605_v39  ;;  %v15983_v37 = vmul.f32 0.62831855, %v15980_v51 }
 0x5b4   : > { %v6471_v55 = vor.u32 4788187, %v6470_v63  ;;  %v6474_v47 = vcvt.s32.f32 %v6467_v5  ;;  %v15968_v61 = vshrl.u32 %v6350_v60, 30  ;;  %v7971_v34 = vsel %vm7907_vm15, %v7843_v58, 0.0 }
 0x5b5   : > { %v6481_v15 = vsel %vm15964_vm3, 0, %v6479_v53  ;;  %vm6609_vm4 = vcmp.gt.s32.totalorder %v6608_v2, 0  ;;  %8811 = vperm.xlu0 %9915, %v7971_v34   ;;  %v6345_v57 = vadd.s32 %v15928_v18, %v15934_v52  ;;  %v15991_v9 = vshll.u32 %v6606_v46, 8 }
 0x5b6   : > { %v6472_v49 = vand.u32 2147483647, %v6471_v55  ;;  %v6352_v35 = vshll.u32 %v15968_v61, 30  ;;  %v6610_v54 = vsel %vm6609_vm4, %v6608_v2, 0  ;;  %v15975_v24 = vand.u32 3, %v6481_v15 }
 0x5b7   : > { %v6612_v32 = vand.u32 31, %v6610_v54  ;;  %v6495_v18 = vand.u32 2147483647, %v15983_v37  ;;  %v6611_v28 = vshrl.u32 %v6610_v54, 5  ;;  %v6498_v0 = vand.u32 2139095040, %v15983_v37 }
 0x5b8   : > { %v6475_v41 = vmul.f32 %v6474_v47, %v6472_v49  ;;  %v15977_v12 = vsub.s32 %v6349_v59, %v6352_v35  ;;  %vm6291_vm5 = vcmp.lt.s32.totalorder %v15740_v20, 0  ;;  %vm6490_vm6 = vcmp.eq.s32.totalorder %v15975_v24, 2 }
 0x5b9   : > { %v10350_v33 = vpop.eup %10349  ;;  %v6613_v23 = vsub.s32 32, %v6612_v32  ;;  %v6615_v14 = vshll.u32 %v17469_v17, %v6612_v32  ;;  %v6618_v48 = vshll.u32 %v17470_v22, %v6612_v32  ;;  %v6621_v27 = vshll.u32 %v17446_v29, %v6612_v32 }
 0x5ba   : > { %v6476_v62 = vxor.u32 2147483648, %v6475_v41  ;;  %v6355_v1 = vsub.s32 0, %v15977_v12  ;;  %v6624_v6 = vshll.u32 %v17447_v56, %v6612_v32  ;;  %v6627_v3 = vshll.u32 %v17428_v7, %v6612_v32 }
 0x5bb   : > { %v10352_v26 = vpop.eup %10351  ;;  %v6616_v25 = vshrl.u32 %v17470_v22, %v6613_v23  ;;  %v6619_v13 = vshrl.u32 %v17446_v29, %v6613_v23  ;;  %v6622_v4 = vshrl.u32 %v17447_v56, %v6613_v23  ;;  %v6614_v43 = vshrl.u32 %v17469_v17, %v6613_v23 }
 0x5bc   : > { %v6477_v52 = vsel %vm6394_vm13, %v6476_v62, %v6475_v41  ;;  %v9302_v30 = vmin.u32 %v6355_v1, %v15977_v12  ;;  %9581 = vmatprep.mubr.msk.f32.mxu1 %vm7991_vm0, %v10352_v26  ;;  %v6625_v53 = vshrl.u32 %v17428_v7, %v6613_v23  ;;  %v6628_v5 = vshrl.u32 %v17451_v42, %v6613_v23  ;;  %v707_v26 = vpop.permute.xlu1 %706 }
 0x5bd   : > { %v6480_v31 = vsel %vm15964_vm3, %v15698_v11, %v6477_v52  ;;  %v6617_v38 = vor.u32 %v6616_v25, %v6615_v14  ;;  %v6620_v45 = vor.u32 %v6619_v13, %v6618_v48  ;;  %9582 = vmatmul.mubr.msk.f32.gmra.mrb[20].mxu1 %vm7991_vm0, %v10350_v33  ;;  %v6623_v59 = vor.u32 %v6622_v4, %v6621_v27 }
 0x5be   : > { %10353 = vcosq.f32 %v6480_v31  ;;  %v6357_v16 = vclz %v9302_v30  ;;  %vm6630_vm7 = vcmp.lt.s32.totalorder %v6611_v28, 1  ;;  %vm6631_vm9 = vcmp.lt.s32.totalorder %v6611_v28, 2 }
 0x5bf   : > { %10355 = vsinq.f32 %v6480_v31  ;;  %vm6632_vm10 = vcmp.lt.s32.totalorder %v6611_v28, 3  ;;  %v6626_v60 = vor.u32 %v6625_v53, %v6624_v6  ;;  %v6629_v39 = vor.u32 %v6628_v5, %v6627_v3  ;;  %v702_v53 = vpop.permute.xlu0 %701 }
 0x5c0   : > { %v9303_v63 = vadd.s32 4294967294, %v6357_v16  ;;  %vm6633_vm12 = vcmp.lt.s32.totalorder %v6611_v28, 4  ;;  %v6634_v58 = vsel %vm6630_vm7, %v6614_v43, %v6617_v38  ;;  %vm16015_vm8 = vcmp.le.f32.partialorder %v6289_v44, 0.7853982 }
 0x5c1   : > { %v6635_v50 = vsel %vm6633_vm12, %v6623_v59, 2102212464  ;;  %v6638_v55 = vsel %vm6630_vm7, %v6617_v38, %v6620_v45  ;;  %v6642_v47 = vsel %vm6630_vm7, %v6620_v45, %v6623_v59  ;;  %vm6484_vm13 = vweird.f32 %v15698_v11 }
 0x5c2   : > { %vm9304_vm11 = vcmp.lt.s32.totalorder %v9303_v63, 0  ;;  %v6636_v15 = vsel %vm6632_vm10, %v6620_v45, %v6635_v50  ;;  %v6639_v49 = vsel %vm6633_vm12, %v6626_v60, 920167782  ;;  %v6643_v35 = vsel %vm6633_vm12, %v6629_v39, 1326507024 }
 0x5c3   : > { %v6360_v34 = vsel %vm9304_vm11, 0, %v9303_v63  ;;  %v6375_v44 = vsub.s32 4, %v15968_v61  ;;  %v6637_v41 = vsel %vm6631_vm9, %v6634_v58, %v6636_v15  ;;  %v6640_v33 = vsel %vm6632_vm10, %v6623_v59, %v6639_v49 }
 0x5c4   : > { %v6361_v46 = vsub.s32 32, %v6360_v34  ;;  %v6362_v54 = vshll.u32 %v15977_v12, %v6360_v34  ;;  %v6365_v32 = vsub.s32 4294967266, %v6360_v34  ;;  %v6644_v23 = vsel %vm6632_vm10, %v6626_v60, %v6643_v35 }
 0x5c5   : > { %v6499_v14 = vshrl.u32 %v6498_v0, 23  ;;  %v6641_v1 = vsel %vm6631_vm9, %v6638_v55, %v6640_v33  ;;  %v6645_v27 = vsel %vm6631_vm9, %v6642_v47, %v6644_v23  ;;  %vm6486_vm14 = vcmp.lt.s32.totalorder %v15975_v24, 2 }
 0x5c6   : > { %v6363_v48 = vshrl.u32 %v6345_v57, %v6361_v46  ;;  %v6366_v62 = vadd.s32 127, %v6365_v32  ;;  %v16029_v25 = vmul.u32.u64.low %v15991_v9, %v6645_v27  ;;  %v16030_v12 = vmul.u32.u64.high %v15991_v9, %v6645_v27, %v16029_v25 }
 0x5c7   : > { %v16033_v13 = vmul.u32.u64.low %v15991_v9, %v6641_v1  ;;  %v16034_v4 = vmul.u32.u64.high %v15991_v9, %v6641_v1, %v16033_v13  ;;  %v6376_v57 = vsel %vm6291_vm5, %v6375_v44, %v15968_v61  ;;  %v9309_v0 = vadd.s32 4294967169, %v6499_v14 }
 0x5c8   : > { %v10354_v52 = vpop.eup %10353  ;;  %v6364_v30 = vor.u32 %v6363_v48, %v6362_v54  ;;  %v6367_v31 = vshll.u32 %v6366_v62, 23  ;;  %vm6487_vm15 = vcmp.eq.s32.totalorder %v15975_v24, 0  ;;  %v810_v38 = vsub.f32 %v707_v26, %v15888_v10 }
 0x5c9   : > { %v10356_v28 = vpop.eup %10355  ;;  %v6491_v43 = vxor.u32 2147483648, %v10354_v52  ;;  %v6653_v6 = vmul.u32 %v15991_v9, %v6637_v41  ;;  %v6378_v61 = vsel %vm16015_vm8, 0, %v6376_v57  ;;  %vm6655_vm1 = vc.u32 %v16030_v12, %v16033_v13 }
 0x5ca   : > { %v6488_v45 = vxor.u32 2147483648, %v10356_v28  ;;  %v6368_v16 = vor.u32 4788187, %v6367_v31  ;;  %v6371_v59 = vcvt.s32.f32 %v6364_v30  ;;  %v6656_v5 = vadd.s32 1, %v16034_v4 }
 0x5cb   : > { %v6492_v3 = vsel %vm6490_vm6, %v6491_v43, %v10356_v28  ;;  %v6502_v39 = vand.u32 8388607, %v6495_v18  ;;  %v6505_v58 = vadd.s32 1, %v9309_v0  ;;  %v874_v55 = vmul.f32 %v810_v38, %v810_v38 }
 0x5cc   : > { %v6489_v63 = vsel %vm6487_vm15, %v10354_v52, %v6488_v45  ;;  %v6369_v60 = vand.u32 2147483647, %v6368_v16  ;;  %v6657_v50 = vsel %vm6655_vm1, %v6656_v5, %v16034_v4  ;;  %v809_v47 = vsub.f32 %v702_v53, %v15888_v10 }
 0x5cd   : > { %v6493_v9 = vsel %vm6486_vm14, %v6489_v63, %v6492_v3  ;;  %v6658_v49 = vadd.s32 %v6657_v50, %v6653_v6  ;;  %vm6506_vm2 = vcmp.gt.s32.totalorder %v6505_v58, 0  ;;  %vm7910_vm3 = vcmp.lt.f32.partialorder %v15695_v8, 5.0 }
 0x5ce   : > { %v6494_v34 = vsel %vm6484_vm13, nan, %v6493_v9  ;;  %v6372_v15 = vmul.f32 %v6371_v59, %v6369_v60  ;;  %v6507_v46 = vsel %vm6506_vm2, %v6505_v58, 0  ;;  %v16060_v41 = vand.u32 3, %v6378_v61 }
 0x5cf   : > { %v7782_v35 = vadd.f32 1.0, %v6494_v34  ;;  %v6659_v32 = vadd.s32 536870912, %v6658_v49  ;;  %v6509_v44 = vand.u32 31, %v6507_v46  ;;  %v6503_v33 = vor.u32 8388608, %v6502_v39 }
 0x5d0   : > { %v6373_v54 = vxor.u32 2147483648, %v6372_v15  ;;  %v873_v23 = vmul.f32 %v809_v47, %v809_v47  ;;  %v938_v62 = vmul.f32 -259.48502, %v874_v55  ;;  %v6508_v4 = vshrl.u32 %v6507_v46, 5 }
 0x5d1   : > { %v7846_v24 = vmul.f32 0.5, %v7782_v35  ;;  %v16064_v11 = vshrl.u32 %v6659_v32, 30  ;;  %v6510_v48 = vsub.s32 32, %v6509_v44  ;;  %v6512_v27 = vshll.u32 %v17469_v17, %v6509_v44 }
 0x5d2   : > { %v6374_v14 = vsel %vm6291_vm5, %v6373_v54, %v6372_v15  ;;  %v6515_v26 = vshll.u32 %v17470_v22, %v6509_v44  ;;  %v6518_v52 = vshll.u32 %v17446_v29, %v6509_v44  ;;  %vm6387_vm4 = vcmp.eq.s32.totalorder %v16060_v41, 2 }
 0x5d3   : > { %v7974_v1 = vsel %vm7910_vm3, %v7846_v24, 0.0  ;;  %v6377_v8 = vsel %vm16015_vm8, %v15740_v20, %v6374_v14  ;;  %v6661_v25 = vshll.u32 %v16064_v11, 30  ;;  %v6513_v30 = vshrl.u32 %v17470_v22, %v6510_v48 }
 0x5d4   : > { %8826 = vperm.xlu1 %9916, %v7974_v1   ;;  %10357 = vcosq.f32 %v6377_v8  ;;  %v6516_v31 = vshrl.u32 %v17446_v29, %v6510_v48  ;;  %v6519_v57 = vshrl.u32 %v17447_v56, %v6510_v48  ;;  %v6521_v0 = vshll.u32 %v17447_v56, %v6509_v44 }
 0x5d5   : > { %10359 = vsinq.f32 %v6377_v8  ;;  %v16077_v2 = vsub.s32 %v6658_v49, %v6661_v25  ;;  %v6522_v28 = vshrl.u32 %v17428_v7, %v6510_v48  ;;  %v937_v43 = vmul.f32 -259.48502, %v873_v23 }
 0x5d6   : > { %vm6384_vm5 = vcmp.eq.s32.totalorder %v16060_v41, 0  ;;  %v6654_v38 = vadd.s32 %v16033_v13, %v16030_v12  ;;  %v6511_v45 = vshrl.u32 %v17469_v17, %v6510_v48  ;;  %v6514_v16 = vor.u32 %v6513_v30, %v6512_v27 }
 0x5d7   : > { %v6517_v59 = vor.u32 %v6516_v31, %v6515_v26  ;;  %vm6383_vm6 = vcmp.lt.s32.totalorder %v16060_v41, 2  ;;  %v6664_v6 = vsub.s32 0, %v16077_v2  ;;  %v6520_v53 = vor.u32 %v6519_v57, %v6518_v52 }
 0x5d8   : > { %v6523_v3 = vor.u32 %v6522_v28, %v6521_v0  ;;  %v6524_v61 = vshll.u32 %v17428_v7, %v6509_v44  ;;  %v6525_v5 = vshrl.u32 %v17451_v42, %v6510_v48  ;;  %vm6527_vm7 = vcmp.lt.s32.totalorder %v6508_v4, 1 }
 0x5d9   : > { %v6543_v63 = vshll.u32 %v6503_v33, 8  ;;  %v1057_v60 = vmul.f32 1.442695, %v938_v62  ;;  %v9314_v39 = vmin.u32 %v6664_v6, %v16077_v2  ;;  %vm6528_vm9 = vcmp.lt.s32.totalorder %v6508_v4, 2 }
 0x5da   : > { %vm6529_vm10 = vcmp.lt.s32.totalorder %v6508_v4, 3  ;;  %v1055_v12 = vmul.f32 1.442695, %v937_v43  ;;  %v6526_v13 = vor.u32 %v6525_v5, %v6524_v61  ;;  %vm6530_vm12 = vcmp.lt.s32.totalorder %v6508_v4, 4  ;;  %v16113_v43 = vld [vmem:[%s10649_s28 + $0x1b8] sm:$0xff] }
 0x5db   : > { %v6531_v58 = vsel %vm6527_vm7, %v6511_v45, %v6514_v16  ;;  %v6535_v9 = vsel %vm6527_vm7, %v6514_v16, %v6517_v59  ;;  %v6666_v50 = vclz %v9314_v39  ;;  %v6532_v55 = vsel %vm6530_vm12, %v6520_v53, 2102212464  ;;  %v16127_v39 = vld [vmem:[%s10649_s28 + $0x1b0] sm:$0xff] }
 0x5dc   : > { %v6536_v47 = vsel %vm6530_vm12, %v6523_v3, 920167782  ;;  %v6539_v34 = vsel %vm6527_vm7, %v6517_v59, %v6520_v53  ;;  %v6533_v15 = vsel %vm6529_vm10, %v6517_v59, %v6532_v55  ;;  %v6540_v35 = vsel %vm6530_vm12, %v6526_v13, 1326507024 }
 0x5dd   : > { %v6537_v49 = vsel %vm6529_vm10, %v6520_v53, %v6536_v47  ;;  %10361 = vpow2.f32 %v1057_v60  ;;  %v9315_v54 = vadd.s32 4294967294, %v6666_v50  ;;  %v6534_v32 = vsel %vm6528_vm9, %v6531_v58, %v6533_v15 }
 0x5de   : > { %v10358_v46 = vpop.eup %10357  ;;  %v6538_v44 = vsel %vm6528_vm9, %v6535_v9, %v6537_v49  ;;  %v6541_v24 = vsel %vm6529_vm10, %v6523_v3, %v6540_v35  ;;  %vm6381_vm11 = vweird.f32 %v15740_v20  ;;  %10363 = vpow2.f32 %v1055_v12 }
 0x5df   : > { %v10360_v33 = vpop.eup %10359  ;;  %v6388_v23 = vxor.u32 2147483648, %v10358_v46  ;;  %v6542_v14 = vsel %vm6528_vm9, %v6539_v34, %v6541_v24  ;;  %v16096_v48 = vmul.u32.u64.low %v6543_v63, %v6538_v44  ;;  %v16097_v62 = vmul.u32.u64.high %v6543_v63, %v6538_v44, %v16096_v48 }
 0x5e0   : > { %v6385_v1 = vxor.u32 2147483648, %v10360_v33  ;;  %vm9316_vm8 = vcmp.lt.s32.totalorder %v9315_v54, 0  ;;  %v16100_v8 = vmul.u32.u64.low %v6543_v63, %v6542_v14  ;;  %v16101_v27 = vmul.u32.u64.high %v6543_v63, %v6542_v14, %v16100_v8 }
 0x5e1   : > { %v6389_v26 = vsel %vm6387_vm4, %v6388_v23, %v10360_v33  ;;  %v6669_v25 = vsel %vm9316_vm8, 0, %v9315_v54  ;;  %v6550_v0 = vmul.u32 %v6543_v63, %v6534_v32  ;;  %v6553_v28 = vadd.s32 1, %v16097_v62 }
 0x5e2   : > { %v6386_v4 = vsel %vm6384_vm5, %v10358_v46, %v6385_v1  ;;  %v6670_v52 = vsub.s32 32, %v6669_v25  ;;  %v6671_v30 = vshll.u32 %v16077_v2, %v6669_v25  ;;  %v6674_v31 = vsub.s32 4294967266, %v6669_v25 }
 0x5e3   : > { %v6390_v57 = vsel %vm6383_vm6, %v6386_v4, %v6389_v26  ;;  %v16116_v20 = vmul.f32 0.62831855, %v16113_v43  ;;  %v6684_v6 = vsub.s32 4, %v16064_v11  ;;  %vm7909_vm13 = vcmp.lt.f32.partialorder %v15737_v21, 5.0 }
 0x5e4   : > { %v6391_v45 = vsel %vm6381_vm11, nan, %v6390_v57  ;;  %v6672_v16 = vshrl.u32 %v6654_v38, %v6670_v52  ;;  %v6675_v59 = vadd.s32 127, %v6674_v31  ;;  %vm6552_vm14 = vc.u32 %v16101_v27, %v16096_v48 }
 0x5e5   : > { %v7781_v53 = vadd.f32 1.0, %v6391_v45  ;;  %v6804_v41 = vand.u32 2147483647, %v16116_v20  ;;  %v6554_v61 = vsel %vm6552_vm14, %v6553_v28, %v16097_v62  ;;  %v6807_v5 = vand.u32 2139095040, %v16116_v20 }
 0x5e6   : > { %v6673_v2 = vor.u32 %v6672_v16, %v6671_v30  ;;  %v6676_v3 = vshll.u32 %v6675_v59, 23  ;;  %vm6600_vm15 = vcmp.lt.s32.totalorder %v15918_v40, 0  ;;  %v6555_v38 = vadd.s32 %v6554_v61, %v6550_v0 }
 0x5e7   : > { %v10362_v63 = vpop.eup %10361  ;;  %v7845_v60 = vmul.f32 0.5, %v7781_v53  ;;  %v16130_v12 = vmul.f32 0.62831855, %v16127_v39  ;;  %v6685_v9 = vsel %vm6600_vm15, %v6684_v6, %v16064_v11  ;;  %v6808_v50 = vshrl.u32 %v6807_v5, 23 }
 0x5e8   : > { %v6677_v13 = vor.u32 4788187, %v6676_v3  ;;  %v6680_v58 = vcvt.s32.f32 %v6673_v2  ;;  %v6556_v47 = vadd.s32 536870912, %v6555_v38  ;;  %v6811_v34 = vand.u32 8388607, %v6804_v41  ;;  %v10364_v46 = vpop.eup %10363 }
 0x5e9   : > { %v7973_v55 = vsel %vm7909_vm13, %v7845_v60, 0.0  ;;  %v6701_v15 = vand.u32 2147483647, %v16130_v12  ;;  %v9321_v35 = vadd.s32 4294967169, %v6808_v50  ;;  %vm16142_vm1 = vcmp.le.f32.partialorder %v6598_v36, 0.7853982  ;;  %9584 = vmatprep.mubr.msk.f32.mxu1 %vm7991_vm0, %v10364_v46 }
 0x5ea   : > { %8821 = vperm.xlu0 %9915, %v7973_v55   ;;  %v6678_v49 = vand.u32 2147483647, %v6677_v13  ;;  %v6557_v11 = vshrl.u32 %v6556_v47, 30  ;;  %v6704_v21 = vand.u32 2139095040, %v16130_v12  ;;  %v6687_v44 = vsel %vm16142_vm1, 0, %v6685_v9  ;;  %9585 = vmatmul.mubr.msk.f32.gmra.mrb[22].mxu1 %vm7991_vm0, %v10362_v63 }
 0x5eb   : > { %v6814_v24 = vadd.s32 1, %v9321_v35  ;;  %v6812_v23 = vor.u32 8388608, %v6811_v34  ;;  %v16152_v14 = vand.u32 8388607, %v6701_v15  ;;  %vm6497_vm2 = vcmp.lt.s32.totalorder %v15983_v37, 0 }
 0x5ec   : > { %v6681_v32 = vmul.f32 %v6680_v58, %v6678_v49  ;;  %v6558_v33 = vshll.u32 %v6557_v11, 30  ;;  %v16156_v62 = vand.u32 3, %v6687_v44  ;;  %v6705_v26 = vshrl.u32 %v6704_v21, 23 }
 0x5ed   : > { %vm6815_vm3 = vcmp.gt.s32.totalorder %v6814_v24, 0  ;;  %v6551_v4 = vadd.s32 %v16096_v48, %v16101_v27  ;;  %v6581_v52 = vsub.s32 4, %v6557_v11  ;;  %v16168_v0 = vshll.u32 %v6812_v23, 8 }
 0x5ee   : > { %v6682_v36 = vxor.u32 2147483648, %v6681_v32  ;;  %v16158_v1 = vsub.s32 %v6555_v38, %v6558_v33  ;;  %v6816_v8 = vsel %vm6815_vm3, %v6814_v24, 0  ;;  %v6709_v28 = vor.u32 8388608, %v16152_v14 }
 0x5ef   : > { %v6818_v30 = vand.u32 31, %v6816_v8  ;;  %v6817_v27 = vshrl.u32 %v6816_v8, 5  ;;  %v9317_v6 = vadd.s32 4294967169, %v6705_v26  ;;  %vm6696_vm4 = vcmp.eq.s32.totalorder %v16156_v62, 2 }
 0x5f0   : > { %v6683_v25 = vsel %vm6600_vm15, %v6682_v36, %v6681_v32  ;;  %v6561_v57 = vsub.s32 0, %v16158_v1  ;;  %v16177_v53 = vsel %vm6497_vm2, %v6581_v52, %v6557_v11  ;;  %vm6693_vm5 = vcmp.eq.s32.totalorder %v16156_v62, 0 }
 0x5f1   : > { %v6686_v31 = vsel %vm16142_vm1, %v15918_v40, %v6683_v25  ;;  %v6819_v45 = vsub.s32 32, %v6818_v30  ;;  %v6821_v16 = vshll.u32 %v17469_v17, %v6818_v30  ;;  %v6824_v59 = vshll.u32 %v17470_v22, %v6818_v30 }
 0x5f2   : > { %10365 = vcosq.f32 %v6686_v31  ;;  %v9310_v48 = vmin.u32 %v6561_v57, %v16158_v1  ;;  %v6827_v63 = vshll.u32 %v17446_v29, %v6818_v30  ;;  %v6830_v38 = vshll.u32 %v17447_v56, %v6818_v30 }
 0x5f3   : > { %10367 = vsinq.f32 %v6686_v31  ;;  %v6820_v2 = vshrl.u32 %v17469_v17, %v6819_v45  ;;  %v6822_v3 = vshrl.u32 %v17470_v22, %v6819_v45  ;;  %v6825_v61 = vshrl.u32 %v17446_v29, %v6819_v45 }
 0x5f4   : > { %v6563_v5 = vclz %v9310_v48  ;;  %v6828_v60 = vshrl.u32 %v17447_v56, %v6819_v45  ;;  %vm6692_vm6 = vcmp.lt.s32.totalorder %v16156_v62, 2  ;;  %v6831_v9 = vshrl.u32 %v17428_v7, %v6819_v45 }
 0x5f5   : > { %v6823_v13 = vor.u32 %v6822_v3, %v6821_v16  ;;  %v6826_v58 = vor.u32 %v6825_v61, %v6824_v59  ;;  %v6833_v50 = vshll.u32 %v17428_v7, %v6818_v30  ;;  %vm6690_vm7 = vweird.f32 %v15918_v40 }
 0x5f6   : > { %v9311_v55 = vadd.s32 4294967294, %v6563_v5  ;;  %v6829_v47 = vor.u32 %v6828_v60, %v6827_v63  ;;  %v6834_v34 = vshrl.u32 %v17451_v42, %v6819_v45  ;;  %vm6836_vm9 = vcmp.lt.s32.totalorder %v6817_v27, 1 }
 0x5f7   : > { %v6832_v49 = vor.u32 %v6831_v9, %v6830_v38  ;;  %vm6837_vm10 = vcmp.lt.s32.totalorder %v6817_v27, 2  ;;  %vm6838_vm12 = vcmp.lt.s32.totalorder %v6817_v27, 3  ;;  %vm6839_vm8 = vcmp.lt.s32.totalorder %v6817_v27, 4 }
 0x5f8   : > { %vm9312_vm11 = vcmp.lt.s32.totalorder %v9311_v55, 0  ;;  %v6835_v35 = vor.u32 %v6834_v34, %v6833_v50  ;;  %v6840_v46 = vsel %vm6836_vm9, %v6820_v2, %v6823_v13  ;;  %v6841_v54 = vsel %vm6839_vm8, %v6829_v47, 2102212464 }
 0x5f9   : > { %v6566_v11 = vsel %vm9312_vm11, 0, %v9311_v55  ;;  %v6842_v21 = vsel %vm6838_vm12, %v6826_v58, %v6841_v54  ;;  %v6844_v32 = vsel %vm6836_vm9, %v6823_v13, %v6826_v58  ;;  %v6845_v44 = vsel %vm6839_vm8, %v6832_v49, 920167782  ;;  %v717_v13 = vpop.permute.xlu1 %716 }
 0x5fa   : > { %vm16198_vm13 = vcmp.le.f32.partialorder %v6495_v18, 0.7853982  ;;  %v6567_v33 = vsub.s32 32, %v6566_v11  ;;  %v6568_v23 = vshll.u32 %v16158_v1, %v6566_v11  ;;  %v6571_v36 = vsub.s32 4294967266, %v6566_v11 }
 0x5fb   : > { %v6711_v8 = vadd.s32 1, %v9317_v6  ;;  %vm7912_vm14 = vcmp.lt.f32.partialorder %v15915_v19, 5.0  ;;  %v6843_v25 = vsel %vm6837_vm10, %v6840_v46, %v6842_v21  ;;  %v6846_v52 = vsel %vm6838_vm12, %v6829_v47, %v6845_v44 }
 0x5fc   : > { %v10366_v26 = vpop.eup %10365  ;;  %v6848_v30 = vsel %vm6836_vm9, %v6826_v58, %v6829_v47  ;;  %v6849_v31 = vsel %vm6839_vm8, %v6835_v35, 1326507024  ;;  %v6569_v45 = vshrl.u32 %v6551_v4, %v6567_v33  ;;  %v6572_v16 = vadd.s32 127, %v6571_v36 }
 0x5fd   : > { %v10368_v18 = vpop.eup %10367  ;;  %v6697_v57 = vxor.u32 2147483648, %v10366_v26  ;;  %v6847_v59 = vsel %vm6837_vm10, %v6844_v32, %v6846_v52  ;;  %v6850_v48 = vsel %vm6838_vm12, %v6832_v49, %v6849_v31  ;;  %vm6712_vm15 = vcmp.gt.s32.totalorder %v6711_v8, 0 }
 0x5fe   : > { %v6694_v1 = vxor.u32 2147483648, %v10368_v18  ;;  %v16211_v6 = vmul.u32.u64.low %v16168_v0, %v6847_v59  ;;  %v16212_v2 = vmul.u32.u64.high %v16168_v0, %v6847_v59, %v16211_v6  ;;  %v6570_v61 = vor.u32 %v6569_v45, %v6568_v23 }
 0x5ff   : > { %v6698_v3 = vsel %vm6696_vm4, %v6697_v57, %v10368_v18  ;;  %v6573_v5 = vshll.u32 %v6572_v16, 23  ;;  %v6851_v63 = vsel %vm6837_vm10, %v6848_v30, %v6850_v48  ;;  %v6713_v55 = vsel %vm6712_vm15, %v6711_v8, 0 }
 0x600   : > { %v6695_v4 = vsel %vm6693_vm5, %v10366_v26, %v6694_v1  ;;  %v16221_v60 = vmul.u32.u64.low %v16168_v0, %v6851_v63  ;;  %v16222_v38 = vmul.u32.u64.high %v16168_v0, %v6851_v63, %v16221_v60  ;;  %v6577_v50 = vcvt.s32.f32 %v6570_v61 }
 0x601   : > { %v6699_v58 = vsel %vm6692_vm6, %v6695_v4, %v6698_v3  ;;  %v6574_v9 = vor.u32 4788187, %v6573_v5  ;;  %v6859_v27 = vmul.u32 %v16168_v0, %v6843_v25  ;;  %v6862_v34 = vadd.s32 1, %v16212_v2  ;;  %v712_v5 = vpop.permute.xlu0 %711 }
 0x602   : > { %v6700_v47 = vsel %vm6690_vm7, nan, %v6699_v58  ;;  %v6715_v49 = vand.u32 31, %v6713_v55  ;;  %v16232_v54 = vshll.u32 %v6709_v28, 8  ;;  %v812_v62 = vsub.f32 %v717_v13, %v15888_v10 }
 0x603   : > { %v7784_v35 = vadd.f32 1.0, %v6700_v47  ;;  %v6575_v46 = vand.u32 2147483647, %v6574_v9  ;;  %v6584_v11 = vsel %vm16198_vm13, 0, %v16177_v53  ;;  %vm6861_vm1 = vc.u32 %v16222_v38, %v16211_v6 }
 0x604   : > { %v6716_v40 = vsub.s32 32, %v6715_v49  ;;  %v6718_v0 = vshll.u32 %v17469_v17, %v6715_v49  ;;  %v6863_v44 = vsel %vm6861_vm1, %v6862_v34, %v16212_v2  ;;  %v6721_v14 = vshll.u32 %v17470_v22, %v6715_v49 }
 0x605   : > { %v7848_v21 = vmul.f32 0.5, %v7784_v35  ;;  %v6578_v32 = vmul.f32 %v6577_v50, %v6575_v46  ;;  %v6864_v28 = vadd.s32 %v6863_v44, %v6859_v27  ;;  %v6714_v33 = vshrl.u32 %v6713_v55, 5 }
 0x606   : > { %v6719_v23 = vshrl.u32 %v17470_v22, %v6716_v40  ;;  %v6722_v36 = vshrl.u32 %v17446_v29, %v6716_v40  ;;  %v6724_v26 = vshll.u32 %v17446_v29, %v6715_v49  ;;  %v6725_v25 = vshrl.u32 %v17447_v56, %v6716_v40 }
 0x607   : > { %v7976_v53 = vsel %vm7912_vm14, %v7848_v21, 0.0  ;;  %v6579_v8 = vxor.u32 2147483648, %v6578_v32  ;;  %v16249_v52 = vand.u32 3, %v6584_v11  ;;  %v6865_v30 = vadd.s32 536870912, %v6864_v28 }
 0x608   : > { %8836 = vperm.xlu1 %9916, %v7976_v53   ;;  %v6720_v31 = vor.u32 %v6719_v23, %v6718_v0  ;;  %v6727_v18 = vshll.u32 %v17447_v56, %v6715_v49  ;;  %v6723_v45 = vor.u32 %v6722_v36, %v6721_v14  ;;  %v6728_v16 = vshrl.u32 %v17428_v7, %v6716_v40  ;;  %v16287_v14 = vld [vmem:[%s10649_s28 + $0x1c8] sm:$0xff] }
 0x609   : > { %v6580_v57 = vsel %vm6497_vm2, %v6579_v8, %v6578_v32  ;;  %v6730_v19 = vshll.u32 %v17428_v7, %v6715_v49  ;;  %v16259_v1 = vshrl.u32 %v6865_v30, 30  ;;  %v6731_v48 = vshrl.u32 %v17451_v42, %v6716_v40 }
 0x60a   : > { %v6583_v59 = vsel %vm16198_vm13, %v15983_v37, %v6580_v57  ;;  %vm6733_vm3 = vcmp.lt.s32.totalorder %v6714_v33, 1  ;;  %v6717_v2 = vshrl.u32 %v17469_v17, %v6716_v40  ;;  %v6726_v3 = vor.u32 %v6725_v25, %v6724_v26 }
 0x60b   : > { %10369 = vcosq.f32 %v6583_v59  ;;  %v6729_v61 = vor.u32 %v6728_v16, %v6727_v18  ;;  %v6867_v63 = vshll.u32 %v16259_v1, 30  ;;  %v6732_v4 = vor.u32 %v6731_v48, %v6730_v19 }
 0x60c   : > { %10371 = vsinq.f32 %v6583_v59  ;;  %vm6735_vm2 = vcmp.lt.s32.totalorder %v6714_v33, 3  ;;  %vm6734_vm4 = vcmp.lt.s32.totalorder %v6714_v33, 2  ;;  %vm6736_vm5 = vcmp.lt.s32.totalorder %v6714_v33, 4 }
 0x60d   : > { %v6741_v24 = vsel %vm6733_vm3, %v6720_v31, %v6723_v45  ;;  %v876_v60 = vmul.f32 %v812_v62, %v812_v62  ;;  %v16265_v13 = vsub.s32 %v6864_v28, %v6867_v63  ;;  %v6738_v58 = vsel %vm6736_vm5, %v6726_v3, 2102212464 }
 0x60e   : > { %v6742_v9 = vsel %vm6736_vm5, %v6729_v61, 920167782  ;;  %v811_v50 = vsub.f32 %v712_v5, %v15888_v10  ;;  %v6737_v55 = vsel %vm6733_vm3, %v6717_v2, %v6720_v31  ;;  %v6739_v47 = vsel %vm6735_vm2, %v6723_v45, %v6738_v58 }
 0x60f   : > { %v6743_v27 = vsel %vm6735_vm2, %v6726_v3, %v6742_v9  ;;  %v6746_v34 = vsel %vm6736_vm5, %v6732_v4, 1326507024  ;;  %v6870_v49 = vsub.s32 0, %v16265_v13  ;;  %v6745_v46 = vsel %vm6733_vm3, %v6723_v45, %v6726_v3 }
 0x610   : > { %v6744_v35 = vsel %vm6734_vm4, %v6741_v24, %v6743_v27  ;;  %vm6587_vm6 = vweird.f32 %v15983_v37  ;;  %v6747_v62 = vsel %vm6735_vm2, %v6729_v61, %v6746_v34  ;;  %vm6589_vm7 = vcmp.lt.s32.totalorder %v16249_v52, 2 }
 0x611   : > { %v16277_v10 = vmul.u32.u64.low %v16232_v54, %v6744_v35  ;;  %v16278_v11 = vmul.u32.u64.high %v16232_v54, %v6744_v35, %v16277_v10  ;;  %vm6590_vm9 = vcmp.eq.s32.totalorder %v16249_v52, 0  ;;  %v9322_v40 = vmin.u32 %v6870_v49, %v16265_v13 }
 0x612   : > { %v6740_v0 = vsel %vm6734_vm4, %v6737_v55, %v6739_v47  ;;  %v6748_v21 = vsel %vm6734_vm4, %v6745_v46, %v6747_v62  ;;  %v940_v32 = vmul.f32 -259.48502, %v876_v60  ;;  %v875_v44 = vmul.f32 %v811_v50, %v811_v50 }
 0x613   : > { %v16290_v28 = vmul.f32 0.62831855, %v16287_v14  ;;  %vm6593_vm10 = vcmp.eq.s32.totalorder %v16249_v52, 2  ;;  %v6872_v23 = vclz %v9322_v40  ;;  %v6860_v26 = vadd.s32 %v16211_v6, %v16222_v38 }
 0x614   : > { %v16294_v36 = vmul.u32.u64.low %v16232_v54, %v6748_v21  ;;  %v16295_v53 = vmul.u32.u64.high %v16232_v54, %v6748_v21, %v16294_v36  ;;  %v6759_v33 = vadd.s32 1, %v16278_v11  ;;  %v1061_v25 = vmul.f32 1.442695, %v940_v32 }
 0x615   : > { %v10370_v8 = vpop.eup %10369  ;;  %v939_v30 = vmul.f32 -259.48502, %v875_v44  ;;  %v9323_v57 = vadd.s32 4294967294, %v6872_v23  ;;  %v6890_v45 = vsub.s32 4, %v16259_v1  ;;  %v6756_v16 = vmul.u32 %v16232_v54, %v6740_v0  ;;  %v16335_v36 = vld [vmem:[%s10649_s28 + $0x1c0] sm:$0xff] }
 0x616   : > { %v10372_v31 = vpop.eup %10371  ;;  %v6594_v18 = vxor.u32 2147483648, %v10370_v8  ;;  %v7010_v48 = vand.u32 2147483647, %v16290_v28  ;;  %v7013_v2 = vand.u32 2139095040, %v16290_v28  ;;  %vm6758_vm8 = vc.u32 %v16295_v53, %v16277_v10 }
 0x617   : > { %v6591_v19 = vxor.u32 2147483648, %v10372_v31  ;;  %v1059_v59 = vmul.f32 1.442695, %v939_v30  ;;  %vm9324_vm12 = vcmp.lt.s32.totalorder %v9323_v57, 0  ;;  %10373 = vpow2.f32 %v1061_v25 }
 0x618   : > { %v6595_v6 = vsel %vm6593_vm10, %v6594_v18, %v10372_v31  ;;  %v6875_v3 = vsel %vm9324_vm12, 0, %v9323_v57  ;;  %v6760_v54 = vsel %vm6758_vm8, %v6759_v33, %v16278_v11  ;;  %v7014_v58 = vshrl.u32 %v7013_v2, 23 }
 0x619   : > { %v6592_v38 = vsel %vm6590_vm9, %v10370_v8, %v6591_v19  ;;  %10375 = vpow2.f32 %v1059_v59  ;;  %v6876_v5 = vsub.s32 32, %v6875_v3  ;;  %v6877_v63 = vshll.u32 %v16265_v13, %v6875_v3 }
 0x61a   : > { %v6596_v61 = vsel %vm6589_vm7, %v6592_v38, %v6595_v6  ;;  %v6880_v4 = vsub.s32 4294967266, %v6875_v3  ;;  %v6761_v60 = vadd.s32 %v6760_v54, %v6756_v16  ;;  %vm7911_vm11 = vcmp.lt.f32.partialorder %v15980_v51, 5.0 }
 0x61b   : > { %v6597_v24 = vsel %vm6587_vm6, nan, %v6596_v61  ;;  %v6878_v50 = vshrl.u32 %v6860_v26, %v6876_v5  ;;  %vm6806_vm13 = vcmp.lt.s32.totalorder %v16116_v20, 0  ;;  %v9329_v27 = vadd.s32 4294967169, %v7014_v58 }
 0x61c   : > { %v7783_v9 = vadd.f32 1.0, %v6597_v24  ;;  %v6881_v55 = vadd.s32 127, %v6880_v4  ;;  %v6762_v47 = vadd.s32 536870912, %v6761_v60  ;;  %v7017_v52 = vand.u32 8388607, %v7010_v48 }
 0x61d   : > { %v6879_v13 = vor.u32 %v6878_v50, %v6877_v63  ;;  %v6891_v37 = vsel %vm6806_vm13, %v6890_v45, %v16259_v1  ;;  %v7020_v51 = vadd.s32 1, %v9329_v27  ;;  %vm16327_vm14 = vcmp.le.f32.partialorder %v6804_v41, 0.7853982 }
 0x61e   : > { %v7847_v34 = vmul.f32 0.5, %v7783_v9  ;;  %v6882_v49 = vshll.u32 %v6881_v55, 23  ;;  %v16323_v35 = vshrl.u32 %v6762_v47, 30  ;;  %v6893_v0 = vsel %vm16327_vm14, 0, %v6891_v37 }
 0x61f   : > { %v6886_v40 = vcvt.s32.f32 %v6879_v13  ;;  %v7018_v32 = vor.u32 8388608, %v7017_v52  ;;  %vm7021_vm15 = vcmp.gt.s32.totalorder %v7020_v51, 0  ;;  %v16338_v41 = vmul.f32 0.62831855, %v16335_v36 }
 0x620   : > { %v7975_v46 = vsel %vm7911_vm11, %v7847_v34, 0.0  ;;  %v6883_v11 = vor.u32 4788187, %v6882_v49  ;;  %v6764_v21 = vshll.u32 %v16323_v35, 30  ;;  %v7022_v23 = vsel %vm7021_vm15, %v7020_v51, 0 }
 0x621   : > { %8831 = vperm.xlu0 %9915, %v7975_v46   ;;  %v10374_v1 = vpop.eup %10373  ;;  %v7024_v33 = vand.u32 31, %v7022_v23  ;;  %v16342_v30 = vand.u32 3, %v6893_v0  ;;  %v6757_v31 = vadd.s32 %v16277_v10, %v16295_v53  ;;  %v6907_v18 = vand.u32 2147483647, %v16338_v41 }
 0x622   : > { %v6884_v44 = vand.u32 2147483647, %v6883_v11  ;;  %v16340_v26 = vsub.s32 %v6761_v60, %v6764_v21  ;;  %v6787_v45 = vsub.s32 4, %v16323_v35  ;;  %v16350_v19 = vshll.u32 %v7018_v32, 8 }
 0x623   : > { %v10376_v8 = vpop.eup %10375  ;;  %v7025_v16 = vsub.s32 32, %v7024_v33  ;;  %v7027_v2 = vshll.u32 %v17469_v17, %v7024_v33  ;;  %v7030_v6 = vshll.u32 %v17470_v22, %v7024_v33  ;;  %v6910_v10 = vand.u32 2139095040, %v16338_v41 }
 0x624   : > { %v6887_v25 = vmul.f32 %v6886_v40, %v6884_v44  ;;  %9587 = vmatprep.mubr.msk.f32.mxu1 %vm7991_vm0, %v10376_v8  ;;  %v6767_v57 = vsub.s32 0, %v16340_v26  ;;  %v7023_v38 = vshrl.u32 %v7022_v23, 5  ;;  %v7033_v3 = vshll.u32 %v17446_v29, %v7024_v33 }
 0x625   : > { %9588 = vmatmul.mubr.msk.f32.gmra.mrb[24].mxu1 %vm7991_vm0, %v10374_v1  ;;  %v7036_v54 = vshll.u32 %v17447_v56, %v7024_v33  ;;  %v7026_v5 = vshrl.u32 %v17469_v17, %v7025_v16  ;;  %v7028_v63 = vshrl.u32 %v17470_v22, %v7025_v16  ;;  %v7031_v4 = vshrl.u32 %v17446_v29, %v7025_v16 }
 0x626   : > { %v6888_v59 = vxor.u32 2147483648, %v6887_v25  ;;  %v9318_v53 = vmin.u32 %v6767_v57, %v16340_v26  ;;  %v7034_v58 = vshrl.u32 %v17447_v56, %v7025_v16  ;;  %v7037_v9 = vshrl.u32 %v17428_v7, %v7025_v16 }
 0x627   : > { %v7029_v50 = vor.u32 %v7028_v63, %v7027_v2  ;;  %v7032_v55 = vor.u32 %v7031_v4, %v7030_v6  ;;  %v7039_v47 = vshll.u32 %v17428_v7, %v7024_v33  ;;  %vm6703_vm1 = vcmp.lt.s32.totalorder %v16130_v12, 0 }
 0x628   : > { %v6889_v61 = vsel %vm6806_vm13, %v6888_v59, %v6887_v25  ;;  %v6769_v60 = vclz %v9318_v53  ;;  %v7035_v52 = vor.u32 %v7034_v58, %v7033_v3  ;;  %v7038_v34 = vor.u32 %v7037_v9, %v7036_v54 }
 0x629   : > { %v6892_v24 = vsel %vm16327_vm14, %v16116_v20, %v6889_v61  ;;  %v7040_v13 = vshrl.u32 %v17451_v42, %v7025_v16  ;;  %vm7042_vm3 = vcmp.lt.s32.totalorder %v7023_v38, 1  ;;  %vm7043_vm2 = vcmp.lt.s32.totalorder %v7023_v38, 2 }
 0x62a   : > { %10377 = vcosq.f32 %v6892_v24  ;;  %v9319_v27 = vadd.s32 4294967294, %v6769_v60  ;;  %vm7044_vm4 = vcmp.lt.s32.totalorder %v7023_v38, 3  ;;  %vm7045_vm6 = vcmp.lt.s32.totalorder %v7023_v38, 4 }
 0x62b   : > { %10379 = vsinq.f32 %v6892_v24  ;;  %v7046_v49 = vsel %vm7042_vm3, %v7026_v5, %v7029_v50  ;;  %v7050_v37 = vsel %vm7042_vm3, %v7029_v50, %v7032_v55  ;;  %vm6898_vm7 = vcmp.lt.s32.totalorder %v16342_v30, 2 }
 0x62c   : > { %vm9320_vm5 = vcmp.lt.s32.totalorder %v9319_v27, 0  ;;  %v7041_v46 = vor.u32 %v7040_v13, %v7039_v47  ;;  %v7047_v62 = vsel %vm7045_vm6, %v7035_v52, 2102212464  ;;  %v7051_v11 = vsel %vm7045_vm6, %v7038_v34, 920167782 }
 0x62d   : > { %v6772_v51 = vsel %vm9320_vm5, 0, %v9319_v27  ;;  %vm6896_vm9 = vweird.f32 %v16116_v20  ;;  %v7048_v32 = vsel %vm7044_vm4, %v7032_v55, %v7047_v62  ;;  %v7052_v1 = vsel %vm7044_vm4, %v7035_v52, %v7051_v11 }
 0x62e   : > { %v6773_v40 = vsub.s32 32, %v6772_v51  ;;  %v6774_v0 = vshll.u32 %v16340_v26, %v6772_v51  ;;  %v6777_v21 = vsub.s32 4294967266, %v6772_v51  ;;  %v7054_v44 = vsel %vm7042_vm3, %v7032_v55, %v7035_v52 }
 0x62f   : > { %v7055_v23 = vsel %vm7045_vm6, %v7041_v46, 1326507024  ;;  %v6911_v8 = vshrl.u32 %v6910_v10, 23  ;;  %v7053_v57 = vsel %vm7043_vm2, %v7050_v37, %v7052_v1  ;;  %v7049_v59 = vsel %vm7043_vm2, %v7046_v49, %v7048_v32  ;;  %v727_v37 = vpop.permute.xlu1 %726 }
 0x630   : > { %v6775_v33 = vshrl.u32 %v6757_v31, %v6773_v40  ;;  %v6778_v25 = vadd.s32 127, %v6777_v21  ;;  %v7056_v16 = vsel %vm7044_vm4, %v7038_v34, %v7055_v23  ;;  %vm6899_vm10 = vcmp.eq.s32.totalorder %v16342_v30, 0 }
 0x631   : > { %v7057_v2 = vsel %vm7043_vm2, %v7054_v44, %v7056_v16  ;;  %v16385_v26 = vmul.u32.u64.low %v16350_v19, %v7053_v57  ;;  %v16386_v6 = vmul.u32.u64.high %v16350_v19, %v7053_v57, %v16385_v26  ;;  %vm6902_vm12 = vcmp.eq.s32.totalorder %v16342_v30, 2  ;;  %v16430_v44 = vld [vmem:[%s17404_s1] ss:$0 sm:$0xff]  ;;  %v722_v57 = vpop.permute.xlu0 %721 }
 0x632   : > { %v6776_v53 = vor.u32 %v6775_v33, %v6774_v0  ;;  %v6779_v3 = vshll.u32 %v6778_v25, 23  ;;  %v16390_v54 = vmul.u32.u64.low %v16350_v19, %v7057_v2  ;;  %v16391_v10 = vmul.u32.u64.high %v16350_v19, %v7057_v2, %v16390_v54 }
 0x633   : > { %v6788_v38 = vsel %vm6703_vm1, %v6787_v45, %v16323_v35  ;;  %v9325_v61 = vadd.s32 4294967169, %v6911_v8  ;;  %v7065_v60 = vmul.u32 %v16350_v19, %v7049_v59  ;;  %v7068_v9 = vadd.s32 1, %v16386_v6 }
 0x634   : > { %v10378_v31 = vpop.eup %10377  ;;  %v6780_v4 = vor.u32 4788187, %v6779_v3  ;;  %v6783_v24 = vcvt.s32.f32 %v6776_v53  ;;  %v6914_v50 = vand.u32 8388607, %v6907_v18  ;;  %vm16406_vm8 = vcmp.le.f32.partialorder %v6701_v15, 0.7853982 }
 0x635   : > { %v10380_v5 = vpop.eup %10379  ;;  %v6903_v63 = vxor.u32 2147483648, %v10378_v31  ;;  %v6917_v55 = vadd.s32 1, %v9325_v61  ;;  %vm7067_vm11 = vc.u32 %v16391_v10, %v16385_v26  ;;  %v6790_v19 = vsel %vm16406_vm8, 0, %v6788_v38 }
 0x636   : > { %v6900_v58 = vxor.u32 2147483648, %v10380_v5  ;;  %v6781_v35 = vand.u32 2147483647, %v6780_v4  ;;  %v7069_v52 = vsel %vm7067_vm11, %v7068_v9, %v16386_v6  ;;  %vm7914_vm14 = vcmp.lt.f32.partialorder %v16113_v43, 5.0 }
 0x637   : > { %v6904_v47 = vsel %vm6902_vm12, %v6903_v63, %v10380_v5  ;;  %vm6918_vm13 = vcmp.gt.s32.totalorder %v6917_v55, 0  ;;  %v7070_v13 = vadd.s32 %v7069_v52, %v7065_v60  ;;  %v6915_v46 = vor.u32 8388608, %v6914_v50 }
 0x638   : > { %v6901_v45 = vsel %vm6899_vm10, %v10378_v31, %v6900_v58  ;;  %v6784_v15 = vmul.f32 %v6783_v24, %v6781_v35  ;;  %v6919_v49 = vsel %vm6918_vm13, %v6917_v55, 0  ;;  %v16422_v0 = vand.u32 3, %v6790_v19 }
 0x639   : > { %v6905_v34 = vsel %vm6898_vm7, %v6901_v45, %v6904_v47  ;;  %v6921_v62 = vand.u32 31, %v6919_v49  ;;  %v7071_v21 = vadd.s32 536870912, %v7070_v13  ;;  %v16424_v32 = vshrl.u32 %v6919_v49, 5 }
 0x63a   : > { %v6906_v51 = vsel %vm6896_vm9, nan, %v6905_v34  ;;  %v6785_v40 = vxor.u32 2147483648, %v6784_v15  ;;  %v814_v20 = vsub.f32 %v727_v37, %v16430_v44  ;;  %v813_v61 = vsub.f32 %v722_v57, %v16430_v44 }
 0x63b   : > { %v7786_v11 = vadd.f32 1.0, %v6906_v51  ;;  %v6922_v30 = vsub.s32 32, %v6921_v62  ;;  %v6924_v1 = vshll.u32 %v17469_v17, %v6921_v62  ;;  %v16435_v33 = vshrl.u32 %v7071_v21, 30 }
 0x63c   : > { %v6786_v8 = vsel %vm6703_vm1, %v6785_v40, %v6784_v15  ;;  %v6927_v25 = vshll.u32 %v17470_v22, %v6921_v62  ;;  %v6930_v6 = vshll.u32 %v17446_v29, %v6921_v62  ;;  %v6933_v54 = vshll.u32 %v17447_v56, %v6921_v62 }
 0x63d   : > { %v7850_v23 = vmul.f32 0.5, %v7786_v11  ;;  %v6789_v16 = vsel %vm16406_vm8, %v16130_v12, %v6786_v8  ;;  %v6925_v59 = vshrl.u32 %v17470_v22, %v6922_v30  ;;  %v6928_v2 = vshrl.u32 %v17446_v29, %v6922_v30 }
 0x63e   : > { %10381 = vcosq.f32 %v6789_v16  ;;  %v7073_v3 = vshll.u32 %v16435_v33, 30  ;;  %v6931_v31 = vshrl.u32 %v17447_v56, %v6922_v30  ;;  %v878_v38 = vmul.f32 %v814_v20, %v814_v20 }
 0x63f   : > { %v7978_v53 = vsel %vm7914_vm14, %v7850_v23, 0.0  ;;  %10383 = vsinq.f32 %v6789_v16  ;;  %vm6799_vm15 = vcmp.eq.s32.totalorder %v16422_v0, 2  ;;  %v6923_v63 = vshrl.u32 %v17469_v17, %v6922_v30 }
 0x640   : > { %8846 = vperm.xlu1 %9916, %v7978_v53   ;;  %v16451_v5 = vsub.s32 %v7070_v13, %v7073_v3  ;;  %v6934_v43 = vshrl.u32 %v17428_v7, %v6922_v30  ;;  %v6936_v4 = vshll.u32 %v17428_v7, %v6921_v62  ;;  %vm6796_vm1 = vcmp.eq.s32.totalorder %v16422_v0, 0 }
 0x641   : > { %v6926_v24 = vor.u32 %v6925_v59, %v6924_v1  ;;  %v6929_v60 = vor.u32 %v6928_v2, %v6927_v25  ;;  %v6932_v58 = vor.u32 %v6931_v31, %v6930_v6  ;;  %v6937_v9 = vshrl.u32 %v17451_v42, %v6922_v30 }
 0x642   : > { %vm6795_vm3 = vcmp.lt.s32.totalorder %v16422_v0, 2  ;;  %v7076_v50 = vsub.s32 0, %v16451_v5  ;;  %v6935_v55 = vor.u32 %v6934_v43, %v6933_v54  ;;  %vm6939_vm2 = vcmp.lt.s32.totalorder %v16424_v32, 1 }
 0x643   : > { %v6955_v47 = vshll.u32 %v6915_v46, 8  ;;  %vm6793_vm4 = vweird.f32 %v16130_v12  ;;  %v6938_v27 = vor.u32 %v6937_v9, %v6936_v4  ;;  %vm6941_vm5 = vcmp.lt.s32.totalorder %v16424_v32, 3 }
 0x644   : > { %vm6942_vm6 = vcmp.lt.s32.totalorder %v16424_v32, 4  ;;  %v942_v35 = vmul.f32 -259.48502, %v878_v38  ;;  %v9330_v45 = vmin.u32 %v7076_v50, %v16451_v5  ;;  %vm6940_vm7 = vcmp.lt.s32.totalorder %v16424_v32, 2 }
 0x645   : > { %v6943_v19 = vsel %vm6939_vm2, %v6923_v63, %v6926_v24  ;;  %v877_v52 = vmul.f32 %v813_v61, %v813_v61  ;;  %v6944_v34 = vsel %vm6942_vm6, %v6932_v58, 2102212464  ;;  %v6947_v15 = vsel %vm6939_vm2, %v6926_v24, %v6929_v60  ;;  %v16500_v24 = vld [vmem:[%s10649_s28 + $0x1d8] sm:$0xff] }
 0x646   : > { %v6948_v13 = vsel %vm6942_vm6, %v6935_v55, 920167782  ;;  %v6951_v49 = vsel %vm6939_vm2, %v6929_v60, %v6932_v58  ;;  %v7078_v37 = vclz %v9330_v45  ;;  %v6945_v51 = vsel %vm6941_vm5, %v6929_v60, %v6944_v34 }
 0x647   : > { %v6949_v46 = vsel %vm6941_vm5, %v6932_v58, %v6948_v13  ;;  %v6952_v62 = vsel %vm6942_vm6, %v6938_v27, 1326507024  ;;  %v6946_v11 = vsel %vm6940_vm7, %v6943_v19, %v6945_v51  ;;  %v1065_v30 = vmul.f32 1.442695, %v942_v35  ;;  %v16510_v27 = vld [vmem:[%s10649_s28 + $0x1d0] sm:$0xff] }
 0x648   : > { %v6950_v40 = vsel %vm6940_vm7, %v6947_v15, %v6949_v46  ;;  %v6953_v21 = vsel %vm6941_vm5, %v6935_v55, %v6952_v62  ;;  %v10382_v1 = vpop.eup %10381  ;;  %vm7913_vm9 = vcmp.lt.f32.partialorder %v16127_v39, 5.0  ;;  %v9331_v20 = vadd.s32 4294967294, %v7078_v37 }
 0x649   : > { %v6954_v23 = vsel %vm6940_vm7, %v6951_v49, %v6953_v21  ;;  %v16479_v8 = vmul.u32.u64.low %v6955_v47, %v6950_v40  ;;  %v16480_v25 = vmul.u32.u64.high %v6955_v47, %v6950_v40, %v16479_v8  ;;  %v10384_v57 = vpop.eup %10383  ;;  %v6800_v16 = vxor.u32 2147483648, %v10382_v1 }
 0x64a   : > { %v7066_v59 = vadd.s32 %v16385_v26, %v16391_v10  ;;  %v16485_v2 = vmul.u32.u64.low %v6955_v47, %v6954_v23  ;;  %v16486_v6 = vmul.u32.u64.high %v6955_v47, %v6954_v23, %v16485_v2  ;;  %v6797_v53 = vxor.u32 2147483648, %v10384_v57 }
 0x64b   : > { %vm9332_vm10 = vcmp.lt.s32.totalorder %v9331_v20, 0  ;;  %v7096_v3 = vsub.s32 4, %v16435_v33  ;;  %v941_v54 = vmul.f32 -259.48502, %v877_v52  ;;  %v6801_v32 = vsel %vm6799_vm15, %v6800_v16, %v10384_v57 }
 0x64c   : > { %v7081_v31 = vsel %vm9332_vm10, 0, %v9331_v20  ;;  %v6962_v38 = vmul.u32 %v6955_v47, %v6946_v11  ;;  %10385 = vpow2.f32 %v1065_v30  ;;  %v6798_v61 = vsel %vm6796_vm1, %v10382_v1, %v6797_v53 }
 0x64d   : > { %v7082_v26 = vsub.s32 32, %v7081_v31  ;;  %v7083_v10 = vshll.u32 %v16451_v5, %v7081_v31  ;;  %v7086_v63 = vsub.s32 4294967266, %v7081_v31  ;;  %v6802_v43 = vsel %vm6795_vm3, %v6798_v61, %v6801_v32 }
 0x64e   : > { %vm6964_vm12 = vc.u32 %v16486_v6, %v16479_v8  ;;  %v6965_v4 = vadd.s32 1, %v16480_v25  ;;  %v16503_v60 = vmul.f32 0.62831855, %v16500_v24  ;;  %v6803_v58 = vsel %vm6793_vm4, nan, %v6802_v43 }
 0x64f   : > { %v7084_v9 = vshrl.u32 %v7066_v59, %v7082_v26  ;;  %v7087_v50 = vadd.s32 127, %v7086_v63  ;;  %v1063_v5 = vmul.f32 1.442695, %v941_v54  ;;  %v7785_v55 = vadd.f32 1.0, %v6803_v58 }
 0x650   : > { %v6966_v0 = vsel %vm6964_vm12, %v6965_v4, %v16480_v25  ;;  %v7216_v47 = vand.u32 2147483647, %v16503_v60  ;;  %v16513_v35 = vmul.f32 0.62831855, %v16510_v27  ;;  %vm7012_vm8 = vcmp.lt.s32.totalorder %v16290_v28, 0 }
 0x651   : > { %v7085_v45 = vor.u32 %v7084_v9, %v7083_v10  ;;  %v7088_v19 = vshll.u32 %v7087_v50, 23  ;;  %v6967_v52 = vadd.s32 %v6966_v0, %v6962_v38  ;;  %10387 = vpow2.f32 %v1063_v5 }
 0x652   : > { %v7849_v34 = vmul.f32 0.5, %v7785_v55  ;;  %v7219_v12 = vand.u32 2139095040, %v16503_v60  ;;  %v7097_v49 = vsel %vm7012_vm8, %v7096_v3, %v16435_v33  ;;  %v7223_v62 = vand.u32 8388607, %v7216_v47 }
 0x653   : > { %v7089_v15 = vor.u32 4788187, %v7088_v19  ;;  %v7092_v13 = vcvt.s32.f32 %v7085_v45  ;;  %v6968_v37 = vadd.s32 536870912, %v6967_v52  ;;  %v7113_v11 = vand.u32 2147483647, %v16513_v35 }
 0x654   : > { %v7977_v51 = vsel %vm7913_vm9, %v7849_v34, 0.0  ;;  %v7220_v46 = vshrl.u32 %v7219_v12, 23  ;;  %v7116_v30 = vand.u32 2139095040, %v16513_v35  ;;  %vm16528_vm11 = vcmp.le.f32.partialorder %v7010_v48, 0.7853982 }
 0x655   : > { %8841 = vperm.xlu0 %9915, %v7977_v51   ;;  %v7090_v40 = vand.u32 2147483647, %v7089_v15  ;;  %v6969_v21 = vshrl.u32 %v6968_v37, 30  ;;  %v7099_v23 = vsel %vm16528_vm11, 0, %v7097_v49  ;;  %v7224_v16 = vor.u32 8388608, %v7223_v62 }
 0x656   : > { %v10386_v1 = vpop.eup %10385  ;;  %v9337_v39 = vadd.s32 4294967169, %v7220_v46  ;;  %v16536_v2 = vand.u32 8388607, %v7113_v11  ;;  %vm6909_vm13 = vcmp.lt.s32.totalorder %v16338_v41, 0  ;;  %v7117_v3 = vshrl.u32 %v7116_v30, 23 }
 0x657   : > { %v7093_v20 = vmul.f32 %v7092_v13, %v7090_v40  ;;  %v6970_v25 = vshll.u32 %v6969_v21, 30  ;;  %v6993_v57 = vsub.s32 4, %v6969_v21  ;;  %v16541_v54 = vand.u32 3, %v7099_v23 }
 0x658   : > { %v7226_v59 = vadd.s32 1, %v9337_v39  ;;  %vm16545_vm14 = vcmp.le.f32.partialorder %v6907_v18, 0.7853982  ;;  %v6963_v26 = vadd.s32 %v16479_v8, %v16486_v6  ;;  %v16561_v4 = vshll.u32 %v7224_v16, 8 }
 0x659   : > { %v7094_v53 = vxor.u32 2147483648, %v7093_v20  ;;  %v16539_v48 = vsub.s32 %v6967_v52, %v6970_v25  ;;  %v16551_v31 = vsel %vm6909_vm13, %v6993_v57, %v6969_v21  ;;  %v7121_v58 = vor.u32 8388608, %v16536_v2 }
 0x65a   : > { %vm7227_vm15 = vcmp.gt.s32.totalorder %v7226_v59, 0  ;;  %v6996_v8 = vsel %vm16545_vm14, 0, %v16551_v31  ;;  %v9333_v6 = vadd.s32 4294967169, %v7117_v3  ;;  %vm7108_vm1 = vcmp.eq.s32.totalorder %v16541_v54, 2 }
 0x65b   : > { %v10388_v38 = vpop.eup %10387  ;;  %v7095_v61 = vsel %vm7012_vm8, %v7094_v53, %v7093_v20  ;;  %v6973_v10 = vsub.s32 0, %v16539_v48  ;;  %v7228_v63 = vsel %vm7227_vm15, %v7226_v59, 0  ;;  %vm7105_vm3 = vcmp.eq.s32.totalorder %v16541_v54, 0 }
 0x65c   : > { %v7098_v18 = vsel %vm16528_vm11, %v16290_v28, %v7095_v61  ;;  %v7230_v43 = vand.u32 31, %v7228_v63  ;;  %9590 = vmatprep.mubr.msk.f32.mxu1 %vm7991_vm0, %v10388_v38  ;;  %v7229_v50 = vshrl.u32 %v7228_v63, 5  ;;  %vm7104_vm2 = vcmp.lt.s32.totalorder %v16541_v54, 2 }
 0x65d   : > { %10389 = vcosq.f32 %v7098_v18  ;;  %v9326_v9 = vmin.u32 %v6973_v10, %v16539_v48  ;;  %9591 = vmatmul.mubr.msk.f32.gmra.mrb[26].mxu1 %vm7991_vm0, %v10386_v1  ;;  %vm7102_vm4 = vweird.f32 %v16290_v28  ;;  %v7123_v3 = vadd.s32 1, %v9333_v6 }
 0x65e   : > { %10391 = vsinq.f32 %v7098_v18  ;;  %v7231_v5 = vsub.s32 32, %v7230_v43  ;;  %v7233_v55 = vshll.u32 %v17469_v17, %v7230_v43  ;;  %v7236_v45 = vshll.u32 %v17470_v22, %v7230_v43 }
 0x65f   : > { %v6975_v0 = vclz %v9326_v9  ;;  %v7239_v19 = vshll.u32 %v17446_v29, %v7230_v43  ;;  %v7242_v52 = vshll.u32 %v17447_v56, %v7230_v43  ;;  %v7245_v51 = vshll.u32 %v17428_v7, %v7230_v43 }
 0x660   : > { %v7232_v34 = vshrl.u32 %v17469_v17, %v7231_v5  ;;  %v7234_v12 = vshrl.u32 %v17470_v22, %v7231_v5  ;;  %v7237_v15 = vshrl.u32 %v17446_v29, %v7231_v5  ;;  %v7240_v13 = vshrl.u32 %v17447_v56, %v7231_v5 }
 0x661   : > { %v9327_v49 = vadd.s32 4294967294, %v6975_v0  ;;  %v7243_v37 = vshrl.u32 %v17428_v7, %v7231_v5  ;;  %v7246_v46 = vshrl.u32 %v17451_v42, %v7231_v5  ;;  %vm7248_vm5 = vcmp.lt.s32.totalorder %v7229_v50, 1 }
 0x662   : > { %v7235_v62 = vor.u32 %v7234_v12, %v7233_v55  ;;  %v7238_v40 = vor.u32 %v7237_v15, %v7236_v45  ;;  %v7241_v21 = vor.u32 %v7240_v13, %v7239_v19  ;;  %vm7249_vm7 = vcmp.lt.s32.totalorder %v7229_v50, 2 }
 0x663   : > { %vm9328_vm6 = vcmp.lt.s32.totalorder %v9327_v49, 0  ;;  %v7244_v30 = vor.u32 %v7243_v37, %v7242_v52  ;;  %v7247_v1 = vor.u32 %v7246_v46, %v7245_v51  ;;  %vm7250_vm9 = vcmp.lt.s32.totalorder %v7229_v50, 3  ;;  %v737_v37 = vpop.permute.xlu1 %736 }
 0x664   : > { %v6978_v33 = vsel %vm9328_vm6, 0, %v9327_v49  ;;  %vm7251_vm10 = vcmp.lt.s32.totalorder %v7229_v50, 4  ;;  %v7252_v39 = vsel %vm7248_vm5, %v7232_v34, %v7235_v62  ;;  %v7256_v59 = vsel %vm7248_vm5, %v7235_v62, %v7238_v40 }
 0x665   : > { %v6979_v20 = vsub.s32 32, %v6978_v33  ;;  %v6980_v23 = vshll.u32 %v16539_v48, %v6978_v33  ;;  %v6983_v25 = vsub.s32 4294967266, %v6978_v33  ;;  %v7253_v57 = vsel %vm7251_vm10, %v7241_v21, 2102212464 }
 0x666   : > { %v7254_v16 = vsel %vm7250_vm9, %v7238_v40, %v7253_v57  ;;  %v7257_v53 = vsel %vm7251_vm10, %v7244_v30, 920167782  ;;  %vm7916_vm12 = vcmp.lt.f32.partialorder %v16287_v14, 5.0  ;;  %v7260_v18 = vsel %vm7248_vm5, %v7238_v40, %v7241_v21 }
 0x667   : > { %v10390_v38 = vpop.eup %10389  ;;  %v6981_v61 = vshrl.u32 %v6963_v26, %v6979_v20  ;;  %v6984_v10 = vadd.s32 127, %v6983_v25  ;;  %v7258_v63 = vsel %vm7250_vm9, %v7241_v21, %v7257_v53  ;;  %v7255_v9 = vsel %vm7249_vm7, %v7252_v39, %v7254_v16 }
 0x668   : > { %v10392_v48 = vpop.eup %10391  ;;  %v7109_v43 = vxor.u32 2147483648, %v10390_v38  ;;  %v7259_v5 = vsel %vm7249_vm7, %v7256_v59, %v7258_v63  ;;  %v7261_v55 = vsel %vm7251_vm10, %v7247_v1, 1326507024  ;;  %vm7124_vm8 = vcmp.gt.s32.totalorder %v7123_v3, 0 }
 0x669   : > { %v7106_v0 = vxor.u32 2147483648, %v10392_v48  ;;  %v6982_v45 = vor.u32 %v6981_v61, %v6980_v23  ;;  %v6985_v6 = vshll.u32 %v6984_v10, 23  ;;  %v7262_v19 = vsel %vm7250_vm9, %v7244_v30, %v7261_v55 }
 0x66a   : > { %v7110_v26 = vsel %vm7108_vm1, %v7109_v43, %v10392_v48  ;;  %v7263_v52 = vsel %vm7249_vm7, %v7260_v18, %v7262_v19  ;;  %v16602_v34 = vmul.u32.u64.low %v16561_v4, %v7259_v5  ;;  %v16603_v12 = vmul.u32.u64.high %v16561_v4, %v7259_v5, %v16602_v34 }
 0x66b   : > { %v7107_v15 = vsel %vm7105_vm3, %v10390_v38, %v7106_v0  ;;  %v6986_v13 = vor.u32 4788187, %v6985_v6  ;;  %v6989_v49 = vcvt.s32.f32 %v6982_v45  ;;  %v7125_v50 = vsel %vm7124_vm8, %v7123_v3, 0 }
 0x66c   : > { %v7111_v51 = vsel %vm7104_vm2, %v7107_v15, %v7110_v26  ;;  %v16611_v46 = vmul.u32.u64.low %v16561_v4, %v7263_v52  ;;  %v16612_v62 = vmul.u32.u64.high %v16561_v4, %v7263_v52, %v16611_v46  ;;  %v7127_v30 = vand.u32 31, %v7125_v50 }
 0x66d   : > { %v7112_v40 = vsel %vm7102_vm4, nan, %v7111_v51  ;;  %v6987_v21 = vand.u32 2147483647, %v6986_v13  ;;  %v16618_v1 = vshll.u32 %v7121_v58, 8  ;;  %v7271_v39 = vmul.u32 %v16561_v4, %v7255_v9  ;;  %v732_v51 = vpop.permute.xlu0 %731 }
 0x66e   : > { %v7788_v33 = vadd.f32 1.0, %v7112_v40  ;;  %v7274_v54 = vadd.s32 1, %v16603_v12  ;;  %v816_v20 = vsub.f32 %v737_v37, %v16430_v44  ;;  %v7126_v25 = vshrl.u32 %v7125_v50, 5 }
 0x66f   : > { %v6990_v23 = vmul.f32 %v6989_v49, %v6987_v21  ;;  %v7128_v57 = vsub.s32 32, %v7127_v30  ;;  %v7130_v16 = vshll.u32 %v17469_v17, %v7127_v30  ;;  %vm7273_vm11 = vc.u32 %v16612_v62, %v16602_v34 }
 0x670   : > { %v7852_v28 = vmul.f32 0.5, %v7788_v33  ;;  %v7133_v2 = vshll.u32 %v17470_v22, %v7127_v30  ;;  %v7136_v58 = vshll.u32 %v17446_v29, %v7127_v30  ;;  %v7275_v4 = vsel %vm7273_vm11, %v7274_v54, %v16603_v12 }
 0x671   : > { %v6991_v59 = vxor.u32 2147483648, %v6990_v23  ;;  %v7129_v53 = vshrl.u32 %v17469_v17, %v7128_v57  ;;  %v7131_v3 = vshrl.u32 %v17470_v22, %v7128_v57  ;;  %v7276_v61 = vadd.s32 %v7275_v4, %v7271_v39 }
 0x672   : > { %v7980_v38 = vsel %vm7916_vm12, %v7852_v28, 0.0  ;;  %v7134_v10 = vshrl.u32 %v17446_v29, %v7128_v57  ;;  %v7137_v63 = vshrl.u32 %v17447_v56, %v7128_v57  ;;  %v7139_v43 = vshll.u32 %v17447_v56, %v7127_v30 }
 0x673   : > { %8856 = vperm.xlu1 %9916, %v7980_v38   ;;  %v6992_v18 = vsel %vm6909_vm13, %v6991_v59, %v6990_v23  ;;  %v7132_v48 = vor.u32 %v7131_v3, %v7130_v16  ;;  %v7140_v9 = vshrl.u32 %v17428_v7, %v7128_v57  ;;  %v7277_v14 = vadd.s32 536870912, %v7276_v61 }
 0x674   : > { %v6995_v5 = vsel %vm16545_vm14, %v16338_v41, %v6992_v18  ;;  %v7135_v55 = vor.u32 %v7134_v10, %v7133_v2  ;;  %v7138_v0 = vor.u32 %v7137_v63, %v7136_v58  ;;  %v7142_v6 = vshll.u32 %v17428_v7, %v7127_v30 }
 0x675   : > { %10393 = vcosq.f32 %v6995_v5  ;;  %v7141_v45 = vor.u32 %v7140_v9, %v7139_v43  ;;  %v7143_v19 = vshrl.u32 %v17451_v42, %v7128_v57  ;;  %v16644_v26 = vshrl.u32 %v7277_v14, 30 }
 0x676   : > { %10395 = vsinq.f32 %v6995_v5  ;;  %vm7145_vm13 = vcmp.lt.s32.totalorder %v7126_v25, 1  ;;  %v880_v52 = vmul.f32 %v816_v20, %v816_v20  ;;  %vm7146_vm15 = vcmp.lt.s32.totalorder %v7126_v25, 2 }
 0x677   : > { %v7144_v12 = vor.u32 %v7143_v19, %v7142_v6  ;;  %vm7147_vm1 = vcmp.lt.s32.totalorder %v7126_v25, 3  ;;  %vm7148_vm3 = vcmp.lt.s32.totalorder %v7126_v25, 4  ;;  %v7279_v15 = vshll.u32 %v16644_v26, 30 }
 0x678   : > { %v7149_v13 = vsel %vm7145_vm13, %v7129_v53, %v7132_v48  ;;  %v7150_v49 = vsel %vm7148_vm3, %v7138_v0, 2102212464  ;;  %v7153_v37 = vsel %vm7145_vm13, %v7132_v48, %v7135_v55  ;;  %v7154_v50 = vsel %vm7148_vm3, %v7141_v45, 920167782  ;;  %v16675_v48 = vld [vmem:[%s10649_s28 + $0x1e8] sm:$0xff] }
 0x679   : > { %v7151_v46 = vsel %vm7147_vm1, %v7135_v55, %v7150_v49  ;;  %v7157_v40 = vsel %vm7145_vm13, %v7135_v55, %v7138_v0  ;;  %v7158_v21 = vsel %vm7148_vm3, %v7144_v12, 1326507024  ;;  %v16647_v30 = vsub.s32 %v7276_v61, %v7279_v15 }
 0x67a   : > { %v7155_v33 = vsel %vm7147_vm1, %v7138_v0, %v7154_v50  ;;  %v7000_v39 = vand.u32 3, %v6996_v8  ;;  %v7159_v20 = vsel %vm7147_vm1, %v7141_v45, %v7158_v21  ;;  %v815_v23 = vsub.f32 %v732_v51, %v16430_v44 }
 0x67b   : > { %v7156_v54 = vsel %vm7146_vm15, %v7153_v37, %v7155_v33  ;;  %v7282_v57 = vsub.s32 0, %v16647_v30  ;;  %v7152_v16 = vsel %vm7146_vm15, %v7149_v13, %v7151_v46  ;;  %v7160_v28 = vsel %vm7146_vm15, %v7157_v40, %v7159_v20  ;;  %v16693_v33 = vld [vmem:[%s10649_s28 + $0x1e0] sm:$0xff] }
 0x67c   : > { %v944_v2 = vmul.f32 -259.48502, %v880_v52  ;;  %v16659_v58 = vmul.u32.u64.low %v16618_v1, %v7160_v28  ;;  %v16660_v59 = vmul.u32.u64.high %v16618_v1, %v7160_v28, %v16659_v58  ;;  %vm6999_vm14 = vweird.f32 %v16338_v41 }
 0x67d   : > { %v16663_v32 = vmul.u32.u64.low %v16618_v1, %v7156_v54  ;;  %v16664_v31 = vmul.u32.u64.high %v16618_v1, %v7156_v54, %v16663_v32  ;;  %v9338_v8 = vmin.u32 %v7282_v57, %v16647_v30  ;;  %vm7001_vm2 = vcmp.lt.s32.totalorder %v7000_v39, 2 }
 0x67e   : > { %vm7005_vm4 = vcmp.eq.s32.totalorder %v7000_v39, 2  ;;  %vm7915_vm5 = vcmp.lt.f32.partialorder %v16335_v36, 5.0  ;;  %v1069_v25 = vmul.f32 1.442695, %v944_v2  ;;  %v879_v53 = vmul.f32 %v815_v23, %v815_v23 }
 0x67f   : > { %v10394_v4 = vpop.eup %10393  ;;  %vm7002_vm6 = vcmp.eq.s32.totalorder %v7000_v39, 0  ;;  %v7284_v61 = vclz %v9338_v8  ;;  %v7168_v10 = vmul.u32 %v16618_v1, %v7152_v16  ;;  %vm7170_vm7 = vc.u32 %v16660_v59, %v16663_v32 }
 0x680   : > { %v10396_v3 = vpop.eup %10395  ;;  %v7006_v38 = vxor.u32 2147483648, %v10394_v4  ;;  %v7171_v18 = vadd.s32 1, %v16664_v31  ;;  %v16678_v43 = vmul.f32 0.62831855, %v16675_v48  ;;  %v7272_v5 = vadd.s32 %v16602_v34, %v16612_v62 }
 0x681   : > { %v7003_v63 = vxor.u32 2147483648, %v10396_v3  ;;  %v9339_v14 = vadd.s32 4294967294, %v7284_v61  ;;  %v943_v55 = vmul.f32 -259.48502, %v879_v53  ;;  %v7302_v1 = vsub.s32 4, %v16644_v26 }
 0x682   : > { %v7007_v9 = vsel %vm7005_vm4, %v7006_v38, %v10396_v3  ;;  %v7172_v45 = vsel %vm7170_vm7, %v7171_v18, %v16664_v31  ;;  %10397 = vpow2.f32 %v1069_v25  ;;  %v7422_v34 = vand.u32 2147483647, %v16678_v43 }
 0x683   : > { %v7004_v0 = vsel %vm7002_vm6, %v10394_v4, %v7003_v63  ;;  %vm9340_vm9 = vcmp.lt.s32.totalorder %v9339_v14, 0  ;;  %v7173_v19 = vadd.s32 %v7172_v45, %v7168_v10  ;;  %v1067_v52 = vmul.f32 1.442695, %v943_v55 }
 0x684   : > { %v7008_v6 = vsel %vm7001_vm2, %v7004_v0, %v7007_v9  ;;  %v7287_v15 = vsel %vm9340_vm9, 0, %v9339_v14  ;;  %v7425_v62 = vand.u32 2139095040, %v16678_v43  ;;  %vm7218_vm10 = vcmp.lt.s32.totalorder %v16503_v60, 0 }
 0x685   : > { %v7009_v12 = vsel %vm6999_vm14, nan, %v7008_v6  ;;  %v7288_v49 = vsub.s32 32, %v7287_v15  ;;  %v7289_v37 = vshll.u32 %v16647_v30, %v7287_v15  ;;  %v7292_v51 = vsub.s32 4294967266, %v7287_v15 }
 0x686   : > { %v7787_v13 = vadd.f32 1.0, %v7009_v12  ;;  %v7174_v46 = vadd.s32 536870912, %v7173_v19  ;;  %10399 = vpow2.f32 %v1067_v52  ;;  %v7426_v50 = vshrl.u32 %v7425_v62, 23 }
 0x687   : > { %v7290_v21 = vshrl.u32 %v7272_v5, %v7288_v49  ;;  %v7293_v41 = vadd.s32 127, %v7292_v51  ;;  %v16696_v39 = vmul.f32 0.62831855, %v16693_v33  ;;  %v7303_v54 = vsel %vm7218_vm10, %v7302_v1, %v16644_v26 }
 0x688   : > { %v7851_v40 = vmul.f32 0.5, %v7787_v13  ;;  %v16701_v20 = vshrl.u32 %v7174_v46, 30  ;;  %v9345_v30 = vadd.s32 4294967169, %v7426_v50  ;;  %v7429_v23 = vand.u32 8388607, %v7422_v34 }
 0x689   : > { %v7291_v16 = vor.u32 %v7290_v21, %v7289_v37  ;;  %v7294_v28 = vshll.u32 %v7293_v41, 23  ;;  %vm16709_vm12 = vcmp.le.f32.partialorder %v7216_v47, 0.7853982  ;;  %v7322_v36 = vand.u32 2139095040, %v16696_v39 }
 0x68a   : > { %v7979_v57 = vsel %vm7915_vm5, %v7851_v40, 0.0  ;;  %v7176_v26 = vshll.u32 %v16701_v20, 30  ;;  %v7432_v58 = vadd.s32 1, %v9345_v30  ;;  %v7305_v4 = vsel %vm16709_vm12, 0, %v7303_v54 }
 0x68b   : > { %8851 = vperm.xlu0 %9915, %v7979_v57   ;;  %v7295_v31 = vor.u32 4788187, %v7294_v28  ;;  %v7298_v8 = vcvt.s32.f32 %v7291_v16  ;;  %v7430_v3 = vor.u32 8388608, %v7429_v23  ;;  %v7323_v61 = vshrl.u32 %v7322_v36, 23 }
 0x68c   : > { %v10398_v25 = vpop.eup %10397  ;;  %v16717_v53 = vsub.s32 %v7173_v19, %v7176_v26  ;;  %vm7433_vm8 = vcmp.gt.s32.totalorder %v7432_v58, 0  ;;  %v16719_v10 = vand.u32 3, %v7305_v4  ;;  %v7169_v5 = vadd.s32 %v16663_v32, %v16660_v59 }
 0x68d   : > { %v7296_v38 = vand.u32 2147483647, %v7295_v31  ;;  %v7434_v47 = vsel %vm7433_vm8, %v7432_v58, 0  ;;  %v7199_v14 = vsub.s32 4, %v16701_v20  ;;  %v17427_v55 = vand.u32 2147483647, %v16696_v39 }
 0x68e   : > { %v7179_v63 = vsub.s32 0, %v16717_v53  ;;  %v7436_v18 = vand.u32 31, %v7434_v47  ;;  %v16727_v45 = vshrl.u32 %v7434_v47, 5  ;;  %v16729_v6 = vshll.u32 %v7430_v3, 8 }
 0x68f   : > { %v7299_v9 = vmul.f32 %v7298_v8, %v7296_v38  ;;  %v9341_v19 = vadd.s32 4294967169, %v7323_v61  ;;  %vm7115_vm11 = vcmp.lt.s32.totalorder %v16513_v35, 0  ;;  %vm16752_vm13 = vcmp.le.f32.partialorder %v7113_v11, 0.7853982 }
 0x690   : > { %v10400_v0 = vpop.eup %10399  ;;  %v9334_v1 = vmin.u32 %v7179_v63, %v16717_v53  ;;  %v7437_v12 = vsub.s32 32, %v7436_v18  ;;  %v7439_v15 = vshll.u32 %v17469_v17, %v7436_v18  ;;  %v7442_v62 = vshll.u32 %v17470_v22, %v7436_v18 }
 0x691   : > { %v7300_v52 = vxor.u32 2147483648, %v7299_v9  ;;  %9593 = vmatprep.mubr.msk.f32.mxu1 %vm7991_vm0, %v10400_v0  ;;  %v7445_v32 = vshll.u32 %v17446_v29, %v7436_v18  ;;  %v7448_v13 = vshll.u32 %v17447_v56, %v7436_v18  ;;  %v7451_v49 = vshll.u32 %v17428_v7, %v7436_v18 }
 0x692   : > { %v7181_v59 = vclz %v9334_v1  ;;  %9594 = vmatmul.mubr.msk.f32.gmra.mrb[28].mxu1 %vm7991_vm0, %v10398_v25  ;;  %v7438_v51 = vshrl.u32 %v17469_v17, %v7437_v12  ;;  %v7440_v46 = vshrl.u32 %v17470_v22, %v7437_v12  ;;  %v7443_v50 = vshrl.u32 %v17446_v29, %v7437_v12 }
 0x693   : > { %v7301_v37 = vsel %vm7218_vm10, %v7300_v52, %v7299_v9  ;;  %v7446_v41 = vshrl.u32 %v17447_v56, %v7437_v12  ;;  %v7449_v54 = vshrl.u32 %v17428_v7, %v7437_v12  ;;  %v7452_v57 = vshrl.u32 %v17451_v42, %v7437_v12 }
 0x694   : > { %v7304_v40 = vsel %vm16709_vm12, %v16503_v60, %v7301_v37  ;;  %v9335_v21 = vadd.s32 4294967294, %v7181_v59  ;;  %v7441_v30 = vor.u32 %v7440_v46, %v7439_v15  ;;  %v7444_v23 = vor.u32 %v7443_v50, %v7442_v62 }
 0x695   : > { %10401 = vcosq.f32 %v7304_v40  ;;  %v7447_v28 = vor.u32 %v7446_v41, %v7445_v32  ;;  %v7450_v2 = vor.u32 %v7449_v54, %v7448_v13  ;;  %vm7314_vm1 = vcmp.eq.s32.totalorder %v16719_v10, 2 }
 0x696   : > { %10403 = vsinq.f32 %v7304_v40  ;;  %vm9336_vm15 = vcmp.lt.s32.totalorder %v9335_v21, 0  ;;  %v7453_v58 = vor.u32 %v7452_v57, %v7451_v49  ;;  %vm7454_vm3 = vcmp.lt.s32.totalorder %v16727_v45, 1 }
 0x697   : > { %v7184_v26 = vsel %vm9336_vm15, 0, %v9335_v21  ;;  %vm7455_vm14 = vcmp.lt.s32.totalorder %v16727_v45, 2  ;;  %vm7456_vm2 = vcmp.lt.s32.totalorder %v16727_v45, 3  ;;  %vm7310_vm4 = vcmp.lt.s32.totalorder %v16719_v10, 2 }
 0x698   : > { %v7185_v31 = vsub.s32 32, %v7184_v26  ;;  %v7186_v8 = vshll.u32 %v16717_v53, %v7184_v26  ;;  %v7189_v4 = vsub.s32 4294967266, %v7184_v26  ;;  %vm7457_vm5 = vcmp.lt.s32.totalorder %v16727_v45, 4 }
 0x699   : > { %v7458_v11 = vsel %vm7454_vm3, %v7438_v51, %v7441_v30  ;;  %v7462_v36 = vsel %vm7454_vm3, %v7441_v30, %v7444_v23  ;;  %v7466_v25 = vsel %vm7454_vm3, %v7444_v23, %v7447_v28  ;;  %vm7308_vm6 = vweird.f32 %v16503_v60 }
 0x69a   : > { %v7187_v3 = vshrl.u32 %v7169_v5, %v7185_v31  ;;  %v7190_v38 = vadd.s32 127, %v7189_v4  ;;  %v7459_v47 = vsel %vm7457_vm5, %v7447_v28, 2102212464  ;;  %v7463_v61 = vsel %vm7457_vm5, %v7450_v2, 920167782 }
 0x69b   : > { %v7460_v63 = vsel %vm7456_vm2, %v7444_v23, %v7459_v47  ;;  %v7464_v53 = vsel %vm7456_vm2, %v7447_v28, %v7463_v61  ;;  %v7467_v18 = vsel %vm7457_vm5, %v7453_v58, 1326507024  ;;  %v7329_v9 = vadd.s32 1, %v9341_v19  ;;  %v747_v47 = vpop.permute.xlu1 %746  ;;  %v742_v61 = vpop.permute.xlu0 %741 }
 0x69c   : > { %v7188_v0 = vor.u32 %v7187_v3, %v7186_v8  ;;  %v7191_v1 = vshll.u32 %v7190_v38, 23  ;;  %v7200_v52 = vsel %vm7115_vm11, %v7199_v14, %v16701_v20  ;;  %v7465_v5 = vsel %vm7455_vm14, %v7462_v36, %v7464_v53 }
 0x69d   : > { %v7461_v12 = vsel %vm7455_vm14, %v7458_v11, %v7460_v63  ;;  %v7468_v15 = vsel %vm7456_vm2, %v7450_v2, %v7467_v18  ;;  %v16778_v62 = vmul.u32.u64.low %v16729_v6, %v7465_v5  ;;  %v16779_v59 = vmul.u32.u64.high %v16729_v6, %v7465_v5, %v16778_v62 }
 0x69e   : > { %v7192_v19 = vor.u32 4788187, %v7191_v1  ;;  %v7195_v32 = vcvt.s32.f32 %v7188_v0  ;;  %v7469_v13 = vsel %vm7455_vm14, %v7466_v25, %v7468_v15  ;;  %vm7330_vm7 = vcmp.gt.s32.totalorder %v7329_v9, 0 }
 0x69f   : > { %v10402_v20 = vpop.eup %10401  ;;  %vm7918_vm9 = vcmp.lt.f32.partialorder %v16500_v24, 5.0  ;;  %v7202_v14 = vsel %vm16752_vm13, 0, %v7200_v52  ;;  %v16788_v49 = vmul.u32.u64.low %v16729_v6, %v7469_v13  ;;  %v16789_v37 = vmul.u32.u64.high %v16729_v6, %v7469_v13, %v16788_v49 }
 0x6a0   : > { %v7331_v51 = vsel %vm7330_vm7, %v7329_v9, 0  ;;  %v10404_v46 = vpop.eup %10403  ;;  %vm7311_vm10 = vcmp.eq.s32.totalorder %v16719_v10, 0  ;;  %v7315_v50 = vxor.u32 2147483648, %v10402_v20  ;;  %v7193_v40 = vand.u32 2147483647, %v7192_v19 }
 0x6a1   : > { %v7333_v21 = vand.u32 31, %v7331_v51  ;;  %v7312_v45 = vxor.u32 2147483648, %v10404_v46  ;;  %v7477_v41 = vmul.u32 %v16729_v6, %v7461_v12  ;;  %v7480_v54 = vadd.s32 1, %v16779_v59 }
 0x6a2   : > { %v7326_v30 = vand.u32 8388607, %v17427_v55  ;;  %v7316_v23 = vsel %vm7314_vm1, %v7315_v50, %v10404_v46  ;;  %v7196_v57 = vmul.f32 %v7195_v32, %v7193_v40  ;;  %v16798_v28 = vand.u32 3, %v7202_v14  ;;  %v16835_v46 = vpop.permute.xlu0 %8571  ;;  %v16841_v40 = vpop.f32.mrb[0].mxu0 }
 0x6a3   : > { %v7334_v2 = vsub.s32 32, %v7333_v21  ;;  %v7313_v26 = vsel %vm7311_vm10, %v10402_v20, %v7312_v45  ;;  %vm7479_vm12 = vc.u32 %v16789_v37, %v16778_v62  ;;  %v16802_v58 = vshrl.u32 %v7331_v51, 5  ;;  %v16833_v51 = vpop.permute.xlu1 %8576 }
 0x6a4   : > { %v7336_v6 = vshll.u32 %v17469_v17, %v7333_v21  ;;  %v7317_v31 = vsel %vm7310_vm4, %v7313_v26, %v7316_v23  ;;  %v7197_v8 = vxor.u32 2147483648, %v7196_v57  ;;  %v7481_v4 = vsel %vm7479_vm12, %v7480_v54, %v16779_v59  ;;  %v16849_v54 = vpop.f32.mrb[1].mxu0 }
 0x6a5   : > { %v7339_v11 = vshll.u32 %v17470_v22, %v7333_v21  ;;  %v7318_v36 = vsel %vm7308_vm6, nan, %v7317_v31  ;;  %v7482_v25 = vadd.s32 %v7481_v4, %v7477_v41  ;;  %v7337_v3 = vshrl.u32 %v17470_v22, %v7334_v2 }
 0x6a6   : > { %v7340_v38 = vshrl.u32 %v17446_v29, %v7334_v2  ;;  %v7790_v63 = vadd.f32 1.0, %v7318_v36  ;;  %v7198_v10 = vsel %vm7115_vm11, %v7197_v8, %v7196_v57  ;;  %v7342_v53 = vshll.u32 %v17446_v29, %v7333_v21  ;;  %v16866_v4 = vpop.permute.xlu0 %8581 }
 0x6a7   : > { %v7343_v18 = vshrl.u32 %v17447_v56, %v7334_v2  ;;  %v7201_v60 = vsel %vm16752_vm13, %v16513_v35, %v7198_v10  ;;  %v7483_v9 = vadd.s32 536870912, %v7482_v25  ;;  %v7327_v0 = vor.u32 8388608, %v7326_v30  ;;  %v16864_v8 = vpop.permute.xlu1 %8586 }
 0x6a8   : > { %v7338_v1 = vor.u32 %v7337_v3, %v7336_v6  ;;  %v7854_v52 = vmul.f32 0.5, %v7790_v63  ;;  %10405 = vcosq.f32 %v7201_v60  ;;  %v7341_v5 = vor.u32 %v7340_v38, %v7339_v11  ;;  %v16857_v6 = vpop.f32.mrb[2].mxu0 }
 0x6a9   : > { %v7345_v12 = vshll.u32 %v17447_v56, %v7333_v21  ;;  %10407 = vsinq.f32 %v7201_v60  ;;  %v16821_v15 = vshrl.u32 %v7483_v9, 30  ;;  %v7346_v59 = vshrl.u32 %v17428_v7, %v7334_v2  ;;  %v16877_v3 = vpop.f32.mrb[3].mxu0  ;;  %v16891_v9 = vld [vmem:[%s10649_s28 + $0x1f8] sm:$0xff] }
 0x6aa   : > { %v7348_v19 = vshll.u32 %v17428_v7, %v7333_v21  ;;  %v7982_v32 = vsel %vm7918_vm9, %v7854_v52, 0.0  ;;  %v7344_v16 = vor.u32 %v7343_v18, %v7342_v53  ;;  %v7349_v13 = vshrl.u32 %v17451_v42, %v7334_v2  ;;  %v16885_v63 = vpop.f32.mrb[4].mxu0 }
 0x6ab   : > { %vm7351_vm8 = vcmp.lt.s32.totalorder %v16802_v58, 1  ;;  %8866 = vperm.xlu1 %9916, %v7982_v32   ;;  %v7485_v20 = vshll.u32 %v16821_v15, 30  ;;  %v7347_v14 = vor.u32 %v7346_v59, %v7345_v12  ;;  %vm7353_vm11 = vcmp.lt.s32.totalorder %v16802_v58, 3  ;;  %v16896_v52 = vpop.f32.mrb[5].mxu0  ;;  %v16902_v32 = vpop.permute.xlu1 %8596 }
 0x6ac   : > { %v16831_v49 = vshll.u32 %v7327_v0, 8  ;;  %v7350_v50 = vor.u32 %v7349_v13, %v7348_v19  ;;  %vm7352_vm13 = vcmp.lt.s32.totalorder %v16802_v58, 2  ;;  %vm7354_vm15 = vcmp.lt.s32.totalorder %v16802_v58, 4 }
 0x6ad   : > { %v7359_v24 = vsel %vm7351_vm8, %v7338_v1, %v7341_v5  ;;  %vm7205_vm1 = vweird.f32 %v16513_v35  ;;  %v16844_v21 = vsub.s32 %v7482_v25, %v7485_v20  ;;  %v7335_v45 = vshrl.u32 %v17469_v17, %v7334_v2 }
 0x6ae   : > { %v7360_v41 = vsel %vm7354_vm15, %v7347_v14, 920167782  ;;  %v7356_v30 = vsel %vm7354_vm15, %v7344_v16, 2102212464  ;;  %v818_v57 = vsub.f32 %v747_v47, %v16430_v44  ;;  %v817_v26 = vsub.f32 %v742_v61, %v16430_v44 }
 0x6af   : > { %v7361_v23 = vsel %vm7353_vm11, %v7344_v16, %v7360_v41  ;;  %vm7207_vm3 = vcmp.lt.s32.totalorder %v16798_v28, 2  ;;  %vm7208_vm14 = vcmp.eq.s32.totalorder %v16798_v28, 0  ;;  %v7488_v2 = vsub.s32 0, %v16844_v21 }
 0x6b0   : > { %v7362_v31 = vsel %vm7352_vm13, %v7359_v24, %v7361_v23  ;;  %v7363_v11 = vsel %vm7351_vm8, %v7341_v5, %v7344_v16  ;;  %v7364_v44 = vsel %vm7354_vm15, %v7350_v50, 1326507024  ;;  %vm7211_vm2 = vcmp.eq.s32.totalorder %v16798_v28, 2  ;;  %v16904_v16 = vpop.permute.xlu0 %8591 }
 0x6b1   : > { %v16873_v36 = vmul.u32.u64.low %v16831_v49, %v7362_v31  ;;  %v16874_v25 = vmul.u32.u64.high %v16831_v49, %v7362_v31, %v16873_v36  ;;  %v9346_v38 = vmin.u32 %v7488_v2, %v16844_v21  ;;  %v7355_v47 = vsel %vm7351_vm8, %v7335_v45, %v7338_v1  ;;  %v16922_v31 = vpop.permute.xlu1 %8606 }
 0x6b2   : > { %v7357_v61 = vsel %vm7353_vm11, %v7341_v5, %v7356_v30  ;;  %v10406_v10 = vpop.eup %10405  ;;  %vm7917_vm4 = vcmp.lt.f32.partialorder %v16510_v27, 5.0  ;;  %v7365_v53 = vsel %vm7353_vm11, %v7347_v14, %v7364_v44  ;;  %v882_v18 = vmul.f32 %v818_v57, %v818_v57 }
 0x6b3   : > { %v881_v60 = vmul.f32 %v817_v26, %v817_v26  ;;  %v16894_v0 = vmul.f32 0.62831855, %v16891_v9  ;;  %v10408_v1 = vpop.eup %10407  ;;  %v7212_v12 = vxor.u32 2147483648, %v10406_v10  ;;  %v7478_v5 = vadd.s32 %v16778_v62, %v16789_v37 }
 0x6b4   : > { %v7490_v59 = vclz %v9346_v38  ;;  %v7366_v19 = vsel %vm7352_vm13, %v7363_v11, %v7365_v53  ;;  %v7209_v13 = vxor.u32 2147483648, %v10408_v1  ;;  %v7358_v20 = vsel %vm7352_vm13, %v7355_v47, %v7357_v61  ;;  %v16924_v11 = vpop.permute.xlu0 %8601 }
 0x6b5   : > { %v16909_v14 = vmul.u32.u64.low %v16831_v49, %v7366_v19  ;;  %v16910_v50 = vmul.u32.u64.high %v16831_v49, %v7366_v19, %v16909_v14  ;;  %v7213_v24 = vsel %vm7211_vm2, %v7212_v12, %v10408_v1  ;;  %v946_v37 = vmul.f32 -259.48502, %v882_v18  ;;  %v16934_v19 = vpop.permute.xlu1 %8616 }
 0x6b6   : > { %v9347_v62 = vadd.s32 4294967294, %v7490_v59  ;;  %v945_v45 = vmul.f32 -259.48502, %v881_v60  ;;  %v7210_v41 = vsel %vm7208_vm14, %v10406_v10, %v7209_v13  ;;  %v7508_v30 = vsub.s32 4, %v16821_v15 }
 0x6b7   : > { %v7377_v23 = vadd.s32 1, %v16874_v25  ;;  %v7631_v58 = vand.u32 2139095040, %v16894_v0  ;;  %v7214_v57 = vsel %vm7207_vm3, %v7210_v41, %v7213_v24  ;;  %v7374_v26 = vmul.u32 %v16831_v49, %v7358_v20 }
 0x6b8   : > { %vm9348_vm5 = vcmp.lt.s32.totalorder %v9347_v62, 0  ;;  %v1073_v2 = vmul.f32 1.442695, %v946_v37  ;;  %v7215_v44 = vsel %vm7205_vm1, nan, %v7214_v57  ;;  %vm7376_vm6 = vc.u32 %v16910_v50, %v16873_v36  ;;  %v16936_v13 = vpop.permute.xlu0 %8611 }
 0x6b9   : > { %v7493_v38 = vsel %vm9348_vm5, 0, %v9347_v62  ;;  %v1071_v47 = vmul.f32 1.442695, %v945_v45  ;;  %v7789_v28 = vadd.f32 1.0, %v7215_v44  ;;  %v7378_v53 = vsel %vm7376_vm6, %v7377_v23, %v16874_v25  ;;  %v16943_v62 = vpop.f32.mrb[6].mxu0  ;;  %v16952_v27 = vpop.permute.xlu1 %8626 }
 0x6ba   : > { %v7494_v61 = vsub.s32 32, %v7493_v38  ;;  %v7495_v10 = vshll.u32 %v16844_v21, %v7493_v38  ;;  %v7498_v49 = vsub.s32 4294967266, %v7493_v38  ;;  %10409 = vpow2.f32 %v1073_v2 }
 0x6bb   : > { %v17426_v18 = vand.u32 2147483647, %v16894_v0  ;;  %v7632_v60 = vshrl.u32 %v7631_v58, 23  ;;  %v7853_v35 = vmul.f32 0.5, %v7789_v28  ;;  %v7379_v59 = vadd.s32 %v7378_v53, %v7374_v26 }
 0x6bc   : > { %v7496_v1 = vshrl.u32 %v7478_v5, %v7494_v61  ;;  %v7499_v12 = vadd.s32 127, %v7498_v49  ;;  %vm7424_vm7 = vcmp.lt.s32.totalorder %v16678_v43, 0  ;;  %10411 = vpow2.f32 %v1071_v47  ;;  %v16954_v57 = vpop.permute.xlu0 %8621 }
 0x6bd   : > { %v9353_v21 = vadd.s32 4294967169, %v7632_v60  ;;  %v7981_v25 = vsel %vm7917_vm4, %v7853_v35, 0.0  ;;  %v7380_v24 = vadd.s32 536870912, %v7379_v59  ;;  %v7509_v5 = vsel %vm7424_vm7, %v7508_v30, %v16821_v15 }
 0x6be   : > { %v7497_v20 = vor.u32 %v7496_v1, %v7495_v10  ;;  %v7500_v14 = vshll.u32 %v7499_v12, 23  ;;  %8861 = vperm.xlu0 %9915, %v7981_v25   ;;  %v7635_v37 = vand.u32 8388607, %v17426_v18  ;;  %v8890_v26 = vmul.f32 %v16841_v40, %v16833_v51  ;;  %v16978_v10 = vpop.permute.xlu1 %8636 }
 0x6bf   : > { %v7638_v45 = vadd.s32 1, %v9353_v21  ;;  %v16950_v58 = vshrl.u32 %v7380_v24, 30  ;;  %vm16960_vm9 = vcmp.le.f32.partialorder %v7422_v34, 0.7853982  ;;  %v16973_v34 = vld [vmem:[%s10649_s28 + $0x1f0] sm:$0xff]  ;;  %vm7514_vm3 = vweird.f32 %v16678_v43  ;;  %s9426_s28 = sshll.u32 %s10618_s16, 13 }
 0x6c0   : > { %v7501_v41 = vor.u32 4788187, %v7500_v14  ;;  %v7504_v23 = vcvt.s32.f32 %v7497_v20  ;;  %v7511_v2 = vsel %vm16960_vm9, 0, %v7509_v5  ;;  %8954 = vst [vmem:[%s16967_s26 + $0x8] sm:$0xff] %v8890_v26  ;;  %v7636_v47 = vor.u32 8388608, %v7635_v37  ;;  %v16980_v49 = vpop.permute.xlu0 %8631  ;;  %s17355_s4 = scalar_lea.hbm %s17406_s3, %s9426_s28  ;;  %s10574_s16 = smov [#allocation2]  }
 0x6c1   : > { %vm7639_vm10 = vcmp.gt.s32.totalorder %v7638_v45, 0  ;;  %v7382_v44 = vshll.u32 %v16950_v58, 30  ;;  %v16976_v61 = vmul.f32 0.62831855, %v16973_v34  ;;  %v16982_v60 = vand.u32 3, %v7511_v2  ;;  %s10507_s7 = sshll.u32 %s10574_s16, 4  ;;  %s10508_s7 = int_to_ptr.vmem [resolvable:$false] %s10507_s7 }
 0x6c2   : > { %v7502_v30 = vand.u32 2147483647, %v7501_v41  ;;  %v7640_v38 = vsel %vm7639_vm10, %v7638_v45, 0  ;;  %v16993_v45 = vshll.u32 %v7636_v47, 8  ;;  %vm7321_vm14 = vcmp.lt.s32.totalorder %v16696_v39, 0  ;;  %s10509_s8 = scalar_lea.vmem %s10508_s7, 16384  ;;  %p10510_p0 = scmp.lt.s32.totalorder %s17357_s27, %s10508_s7 }
 0x6c3   : > { %v7642_v51 = vand.u32 31, %v7640_v38  ;;  %v16970_v28 = vsub.s32 %v7379_v59, %v7382_v44  ;;  %v7375_v59 = vadd.s32 %v16873_v36, %v16910_v50  ;;  %v7641_v26 = vshrl.u32 %v7640_v38, 5  ;;  %v17000_v50 = vpop.permute.xlu1 %8646  ;;  %p10511_p1 = scmp.lt.s32.totalorder %s10509_s8, %s10503_s6 }
 0x6c4   : > { %v7505_v40 = vmul.f32 %v7504_v23, %v7502_v30  ;;  %v10410_v53 = vpop.eup %10409  ;;  %v7528_v36 = vand.u32 2139095040, %v16976_v61  ;;  %v17002_v30 = vpop.permute.xlu0 %8641  ;;  %vm7516_vm15 = vcmp.lt.s32.totalorder %v16982_v60, 2  ;;  %vm7520_vm2 = vcmp.eq.s32.totalorder %v16982_v60, 2 }
 0x6c5   : > { %v7643_v35 = vsub.s32 32, %v7642_v51  ;;  %v7645_v1 = vshll.u32 %v17469_v17, %v7642_v51  ;;  %v7648_v12 = vshll.u32 %v17470_v22, %v7642_v51  ;;  %v7385_v25 = vsub.s32 0, %v16970_v28  ;;  %p10512_p2 = por %p10511_p1, %p10510_p0 }
 0x6c6   : > { %v7506_v21 = vxor.u32 2147483648, %v7505_v40  ;;  %v7651_v20 = vshll.u32 %v17446_v29, %v7642_v51  ;;  %v10412_v14 = vpop.eup %10411  ;;  %vm7660_vm12 = vcmp.lt.s32.totalorder %v7641_v26, 1  ;;  %vm7661_vm8 = vcmp.lt.s32.totalorder %v7641_v26, 2 }
 0x6c7   : > { %v7646_v24 = vshrl.u32 %v17470_v22, %v7643_v35  ;;  %v7649_v5 = vshrl.u32 %v17446_v29, %v7643_v35  ;;  %v7652_v37 = vshrl.u32 %v17447_v56, %v7643_v35  ;;  %v9342_v23 = vmin.u32 %v7385_v25, %v16970_v28  ;;  %9596 = vmatprep.mubr.msk.f32.mxu1 %vm7991_vm0, %v10412_v14  ;;  %p10513_p3 = pnand %p10512_p2, %p10506_p13 }
 0x6c8   : > { %v7507_v41 = vsel %vm7424_vm7, %v7506_v21, %v7505_v40  ;;  %v7644_v44 = vshrl.u32 %v17469_v17, %v7643_v35  ;;  %9597 = vmatmul.mubr.msk.f32.gmra.mrb[30].mxu1 %vm7991_vm0, %v10410_v53  ;;  %v7654_v21 = vshll.u32 %v17447_v56, %v7642_v51  ;;  %v7655_v25 = vshrl.u32 %v17428_v7, %v7643_v35 }
 0x6c9   : > { %v7510_v2 = vsel %vm16960_vm9, %v16678_v43, %v7507_v41  ;;  %v7647_v47 = vor.u32 %v7646_v24, %v7645_v1  ;;  %v7650_v18 = vor.u32 %v7649_v5, %v7648_v12  ;;  %v7387_v38 = vclz %v9342_v23  ;;  %v17013_v1 = vpop.permute.xlu1 %8656  ;;  %v17015_v12 = vpop.permute.xlu0 %8651 }
 0x6ca   : > { %10413 = vcosq.f32 %v7510_v2  ;;  %v7653_v40 = vor.u32 %v7652_v37, %v7651_v20  ;;  %v7657_v14 = vshll.u32 %v17428_v7, %v7642_v51  ;;  %v7658_v55 = vshrl.u32 %v17451_v42, %v7643_v35  ;;  %17585 = vst [vmem:[#allocation7_spill] sm:$0xff] %v17015_v12 }
 0x6cb   : > { %10415 = vsinq.f32 %v7510_v2  ;;  %v9343_v15 = vadd.s32 4294967294, %v7387_v38  ;;  %vm7662_vm11 = vcmp.lt.s32.totalorder %v7641_v26, 3  ;;  %vm7517_vm0 = vcmp.eq.s32.totalorder %v16982_v60, 0 }
 0x6cc   : > { %v7656_v53 = vor.u32 %v7655_v25, %v7654_v21  ;;  %v7659_v20 = vor.u32 %v7658_v55, %v7657_v14  ;;  %vm7663_vm13 = vcmp.lt.s32.totalorder %v7641_v26, 4  ;;  %v7664_v24 = vsel %vm7660_vm12, %v7644_v44, %v7647_v47 }
 0x6cd   : > { %vm9344_vm1 = vcmp.lt.s32.totalorder %v9343_v15, 0  ;;  %v7665_v51 = vsel %vm7663_vm13, %v7653_v40, 2102212464  ;;  %v7668_v5 = vsel %vm7660_vm12, %v7647_v47, %v7650_v18  ;;  %v7672_v35 = vsel %vm7660_vm12, %v7650_v18, %v7653_v40  ;;  %v17024_v21 = vpop.permute.xlu1 %8666  ;;  %v17026_v25 = vpop.permute.xlu0 %8661 }
 0x6ce   : > { %v7390_v37 = vsel %vm9344_vm1, 0, %v9343_v15  ;;  %v7666_v41 = vsel %vm7662_vm11, %v7650_v18, %v7665_v51  ;;  %v7669_v23 = vsel %vm7663_vm13, %v7656_v53, 920167782  ;;  %v7673_v2 = vsel %vm7663_vm13, %v7659_v20, 1326507024  ;;  %17586 = vst [vmem:[#allocation8_spill] sm:$0xff] %v17024_v21 }
 0x6cf   : > { %v7391_v55 = vsub.s32 32, %v7390_v37  ;;  %v7392_v44 = vshll.u32 %v16970_v28, %v7390_v37  ;;  %v7395_v38 = vsub.s32 4294967266, %v7390_v37  ;;  %17587 = vst [vmem:[#allocation9_spill] sm:$0xff] %v17026_v25  ;;  %v7667_v47 = vsel %vm7661_vm8, %v7664_v24, %v7666_v41 }
 0x6d0   : > { %v7670_v14 = vsel %vm7662_vm11, %v7653_v40, %v7669_v23  ;;  %v7674_v15 = vsel %vm7662_vm11, %v7656_v53, %v7673_v2  ;;  %v7529_v7 = vshrl.u32 %v7528_v36, 23  ;;  %vm7920_vm4 = vcmp.lt.f32.partialorder %v16675_v48, 5.0 }
 0x6d1   : > { %v7393_v18 = vshrl.u32 %v7375_v59, %v7391_v55  ;;  %v7396_v51 = vadd.s32 127, %v7395_v38  ;;  %v7671_v20 = vsel %vm7661_vm8, %v7668_v5, %v7670_v14  ;;  %v7675_v12 = vsel %vm7661_vm8, %v7672_v35, %v7674_v15  ;;  %v17044_v26 = vpop.permute.xlu1 %8676  ;;  %v17046_v5 = vpop.permute.xlu0 %8671 }
 0x6d2   : > { %v17034_v28 = vmul.u32.u64.low %v16993_v45, %v7675_v12  ;;  %v17035_v37 = vmul.u32.u64.high %v16993_v45, %v7675_v12, %v17034_v28  ;;  %v17038_v21 = vmul.u32.u64.low %v16993_v45, %v7671_v20  ;;  %v17039_v25 = vmul.u32.u64.high %v16993_v45, %v7671_v20, %v17038_v21 }
 0x6d3   : > { %v7394_v40 = vor.u32 %v7393_v18, %v7392_v44  ;;  %v7397_v36 = vshll.u32 %v7396_v51, 23  ;;  %v7405_v59 = vsub.s32 4, %v16950_v58  ;;  %v9349_v53 = vadd.s32 4294967169, %v7529_v7 }
 0x6d4   : > { %v10414_v24 = vpop.eup %10413  ;;  %v7683_v41 = vmul.u32 %v16993_v45, %v7667_v47  ;;  %v8889_v23 = vmul.f32 %v16835_v46, %v16849_v54  ;;  %v8892_v2 = vmul.f32 %v16857_v6, %v16864_v8  ;;  %vm7685_vm5 = vc.u32 %v17035_v37, %v17038_v21 }
 0x6d5   : > { %v10416_v12 = vpop.eup %10415  ;;  %v7521_v35 = vxor.u32 2147483648, %v10414_v24  ;;  %v7398_v44 = vor.u32 4788187, %v7397_v36  ;;  %v7401_v38 = vcvt.s32.f32 %v7394_v40  ;;  %v7535_v7 = vadd.s32 1, %v9349_v53  ;;  %v17066_v8 = vpop.permute.xlu1 %8686 }
 0x6d6   : > { %v7518_v55 = vxor.u32 2147483648, %v10416_v12  ;;  %v7686_v15 = vadd.s32 1, %v17039_v25  ;;  %v7525_v45 = vand.u32 2147483647, %v16976_v61  ;;  %8953 = vst [vmem:[%s16967_s26] sm:$0xff] %v8889_v23  ;;  %8956 = vst [vmem:[%s16967_s26 + $0x18] sm:$0xff] %v8892_v2  ;;  %v7406_v6 = vsel %vm7321_vm14, %v7405_v59, %v16950_v58  ;;  %v17068_v47 = vpop.permute.xlu0 %8681 }
 0x6d7   : > { %v7522_v14 = vsel %vm7520_vm2, %v7521_v35, %v10416_v12  ;;  %v7399_v54 = vand.u32 2147483647, %v7398_v44  ;;  %vm7536_vm6 = vcmp.gt.s32.totalorder %v7535_v7, 0  ;;  %v8891_v28 = vmul.f32 %v16866_v4, %v16877_v3 }
 0x6d8   : > { %v7519_v46 = vsel %vm7517_vm0, %v10414_v24, %v7518_v55  ;;  %v7687_v51 = vsel %vm7685_vm5, %v7686_v15, %v17039_v25  ;;  %v7537_v20 = vsel %vm7536_vm6, %v7535_v7, 0  ;;  %v17588_v40 = vand.u32 2147483647, %v16696_v39 }
 0x6d9   : > { %v7523_v18 = vsel %vm7516_vm15, %v7519_v46, %v7522_v14  ;;  %v7402_v36 = vmul.f32 %v7401_v38, %v7399_v54  ;;  %v7688_v59 = vadd.s32 %v7687_v51, %v7683_v41  ;;  %v7539_v53 = vand.u32 31, %v7537_v20  ;;  %8955 = vst [vmem:[%s16967_s26 + $0x10] sm:$0xff] %v8891_v28  ;;  %v17092_v41 = vpop.permute.xlu1 %8696  ;;  %v8280_v54 = vpop.f32.mrb[7].mxu0 }
 0x6da   : > { %v7524_v24 = vsel %vm7514_vm3, nan, %v7523_v18  ;;  %vm17079_vm7 = vcmp.le.f32.partialorder %v17588_v40, 0.7853982  ;;  %v8894_v25 = vmul.f32 %v16885_v63, %v16902_v32  ;;  %v8893_v43 = vmul.f32 %v16904_v16, %v16896_v52  ;;  %v17094_v23 = vpop.permute.xlu0 %8691 }
 0x6db   : > { %v7792_v60 = vadd.f32 1.0, %v7524_v24  ;;  %v7403_v4 = vxor.u32 2147483648, %v7402_v36  ;;  %v7408_v3 = vsel %vm17079_vm7, 0, %v7406_v6  ;;  %v7689_v12 = vadd.s32 536870912, %v7688_v59 }
 0x6dc   : > { %v7532_v35 = vand.u32 8388607, %v7525_v45  ;;  %v7538_v55 = vshrl.u32 %v7537_v20, 5  ;;  %v7540_v44 = vsub.s32 32, %v7539_v53  ;;  %v7542_v63 = vshll.u32 %v17469_v17, %v7539_v53  ;;  %8958 = vst [vmem:[%s16967_s26 + $0x28] sm:$0xff] %v8894_v25  ;;  %8957 = vst [vmem:[%s16967_s26 + $0x20] sm:$0xff] %v8893_v43 }
 0x6dd   : > { %v7856_v2 = vmul.f32 0.5, %v7792_v60  ;;  %v7404_v52 = vsel %vm7321_vm14, %v7403_v4, %v7402_v36  ;;  %v17101_v32 = vshrl.u32 %v7689_v12, 30  ;;  %v7545_v16 = vshll.u32 %v17470_v22, %v7539_v53  ;;  %v17114_v20 = vpop.permute.xlu1 %8706 }
 0x6de   : > { %v7548_v38 = vshll.u32 %v17446_v29, %v7539_v53  ;;  %v7407_v14 = vsel %vm17079_vm7, %v16696_v39, %v7404_v52  ;;  %v7543_v15 = vshrl.u32 %v17470_v22, %v7540_v44  ;;  %v7551_v46 = vshll.u32 %v17447_v56, %v7539_v53  ;;  %v17116_v48 = vpop.permute.xlu0 %8701 }
 0x6df   : > { %v7984_v7 = vsel %vm7920_vm4, %v7856_v2, 0.0  ;;  %10417 = vcosq.f32 %v7407_v14  ;;  %v7691_v6 = vshll.u32 %v17101_v32, 30  ;;  %v7533_v18 = vor.u32 8388608, %v7532_v35 }
 0x6e0   : > { %8876 = vperm.xlu1 %9916, %v7984_v7   ;;  %v7546_v51 = vshrl.u32 %v17446_v29, %v7540_v44  ;;  %10419 = vsinq.f32 %v7407_v14  ;;  %v7541_v28 = vshrl.u32 %v17469_v17, %v7540_v44  ;;  %v7549_v24 = vshrl.u32 %v17447_v56, %v7540_v44 }
 0x6e1   : > { %v17591_v22 = vmov 920167782   ;;  %v17121_v58 = vsub.s32 %v7688_v59, %v7691_v6  ;;  %v7544_v36 = vor.u32 %v7543_v15, %v7542_v63  ;;  %v7555_v29 = vshrl.u32 %v17451_v42, %v7540_v44  ;;  %v17126_v17 = vpop.permute.xlu1 %8716 }
 0x6e2   : > { %v7552_v40 = vshrl.u32 %v17591_v22, %v7540_v44  ;;  %v7547_v60 = vor.u32 %v7546_v51, %v7545_v16  ;;  %v7554_v25 = vshll.u32 %v17591_v22, %v7539_v53  ;;  %v7550_v43 = vor.u32 %v7549_v24, %v7548_v38  ;;  %v17128_v56 = vpop.permute.xlu0 %8711 }
 0x6e3   : > { %vm7557_vm9 = vcmp.lt.s32.totalorder %v7538_v55, 1  ;;  %v7412_v12 = vand.u32 3, %v7408_v3  ;;  %v7694_v35 = vsub.s32 0, %v17121_v58  ;;  %vm7560_vm10 = vcmp.lt.s32.totalorder %v7538_v55, 4 }
 0x6e4   : > { %v7553_v4 = vor.u32 %v7552_v40, %v7551_v46  ;;  %v7556_v2 = vor.u32 %v7555_v29, %v7554_v25  ;;  %vm7559_vm12 = vcmp.lt.s32.totalorder %v7538_v55, 3  ;;  %v7562_v59 = vsel %vm7560_vm10, %v7550_v43, 2102212464 }
 0x6e5   : > { %v7573_v63 = vshll.u32 %v7533_v18, 8  ;;  %v9354_v52 = vmin.u32 %v7694_v35, %v17121_v58  ;;  %vm7558_vm8 = vcmp.lt.s32.totalorder %v7538_v55, 2  ;;  %v7561_v53 = vsel %vm7557_vm9, %v7541_v28, %v7544_v36  ;;  %v17134_v46 = vpop.permute.xlu1 %8726 }
 0x6e6   : > { %v7565_v42 = vsel %vm7557_vm9, %v7544_v36, %v7547_v60  ;;  %v7563_v44 = vsel %vm7559_vm12, %v7547_v60, %v7562_v59  ;;  %v7566_v3 = vsel %vm7560_vm10, %v7553_v4, 920167782  ;;  %v7569_v16 = vsel %vm7557_vm9, %v7547_v60, %v7550_v43  ;;  %v17136_v6 = vpop.permute.xlu0 %8721 }
 0x6e7   : > { %v7570_v38 = vsel %vm7560_vm10, %v7556_v2, 1326507024  ;;  %vm7417_vm11 = vcmp.eq.s32.totalorder %v7412_v12, 2  ;;  %v7696_v7 = vclz %v9354_v52  ;;  %v7567_v14 = vsel %vm7559_vm12, %v7550_v43, %v7566_v3 }
 0x6e8   : > { %v7571_v15 = vsel %vm7559_vm12, %v7553_v4, %v7570_v38  ;;  %v7564_v18 = vsel %vm7558_vm8, %v7561_v53, %v7563_v44  ;;  %v7568_v51 = vsel %vm7558_vm8, %v7565_v42, %v7567_v14  ;;  %v8896_v28 = vmul.f32 %v16943_v62, %v16922_v31 }
 0x6e9   : > { %v7572_v24 = vsel %vm7558_vm8, %v7569_v16, %v7571_v15  ;;  %v10418_v22 = vpop.eup %10417  ;;  %v9355_v55 = vadd.s32 4294967294, %v7696_v7  ;;  %v8895_v60 = vmul.f32 %v16924_v11, %v8280_v54  ;;  %vm7414_vm0 = vcmp.eq.s32.totalorder %v7412_v12, 0  ;;  %v17151_v62 = vpop.permute.xlu1 %8736 }
 0x6ea   : > { %v17140_v40 = vmul.u32.u64.low %v7573_v63, %v7572_v24  ;;  %v17141_v36 = vmul.u32.u64.high %v7573_v63, %v7572_v24, %v17140_v40  ;;  %v10420_v25 = vpop.eup %10419  ;;  %v7418_v43 = vxor.u32 2147483648, %v10418_v22  ;;  %8960 = vst [vmem:[%s16967_s26 + $0x38] sm:$0xff] %v8896_v28  ;;  %vm7413_vm13 = vcmp.lt.s32.totalorder %v7412_v12, 2  ;;  %v17153_v2 = vpop.permute.xlu0 %8731 }
 0x6eb   : > { %v17144_v4 = vmul.u32.u64.low %v7573_v63, %v7568_v51  ;;  %v17145_v29 = vmul.u32.u64.high %v7573_v63, %v7568_v51, %v17144_v4  ;;  %v7415_v35 = vxor.u32 2147483648, %v10420_v25  ;;  %v7684_v31 = vadd.s32 %v17038_v21, %v17035_v37  ;;  %8959 = vst [vmem:[%s16967_s26 + $0x30] sm:$0xff] %v8895_v60  ;;  %v9517_v60 = vpop.f32.mrb[8].mxu0 }
 0x6ec   : > { %vm9356_vm15 = vcmp.lt.s32.totalorder %v9355_v55, 0  ;;  %vm7411_vm1 = vweird.f32 %v16696_v39  ;;  %v7419_v11 = vsel %vm7417_vm11, %v7418_v43, %v10420_v25  ;;  %v7580_v59 = vmul.u32 %v7573_v63, %v7564_v18 }
 0x6ed   : > { %v7699_v54 = vsel %vm9356_vm15, 0, %v9355_v55  ;;  %v7416_v52 = vsel %vm7414_vm0, %v10418_v22, %v7415_v35  ;;  %vm7582_vm3 = vc.u32 %v17141_v36, %v17144_v4  ;;  %v7583_v37 = vadd.s32 1, %v17145_v29  ;;  %v17164_v38 = vpop.permute.xlu1 %8746 }
 0x6ee   : > { %v7700_v53 = vsub.s32 32, %v7699_v54  ;;  %v7701_v42 = vshll.u32 %v17121_v58, %v7699_v54  ;;  %v7704_v44 = vsub.s32 4294967266, %v7699_v54  ;;  %v7420_v21 = vsel %vm7413_vm13, %v7416_v52, %v7419_v11  ;;  %v17166_v7 = vpop.permute.xlu0 %8741 }
 0x6ef   : > { %v7421_v3 = vsel %vm7411_vm1, nan, %v7420_v21  ;;  %v7584_v14 = vsel %vm7582_vm3, %v7583_v37, %v17145_v29  ;;  %vm7919_vm14 = vcmp.lt.f32.partialorder %v16693_v33, 5.0  ;;  %v8898_v33 = vmul.f32 %v9517_v60, %v16934_v19 }
 0x6f0   : > { %v7702_v16 = vshrl.u32 %v7684_v31, %v7700_v53  ;;  %v7705_v39 = vadd.s32 127, %v7704_v44  ;;  %v7791_v63 = vadd.f32 1.0, %v7421_v3  ;;  %v7585_v15 = vadd.s32 %v7584_v14, %v7580_v59 }
 0x6f1   : > { %v17170_v22 = vpop.permute.xlu1 %8756  ;;  %8962 = vst [vmem:[%s16967_s26 + $0x48] sm:$0xff] %v8898_v33  ;;  %vm7630_vm2 = vcmp.lt.s32.totalorder %v16894_v0, 0  ;;  %v17592_v31 = vand.u32 2147483647, %v16894_v0  ;;  %v7714_v59 = vsub.s32 4, %v17101_v32  ;;  %vm7720_vm10 = vweird.f32 %v16894_v0 }
 0x6f2   : > { %v7703_v58 = vor.u32 %v7702_v16, %v7701_v42  ;;  %v7706_v12 = vshll.u32 %v7705_v39, 23  ;;  %v7855_v18 = vmul.f32 0.5, %v7791_v63  ;;  %v7586_v28 = vadd.s32 536870912, %v7585_v15  ;;  %v17172_v40 = vpop.permute.xlu0 %8751 }
 0x6f3   : > { %vm17182_vm4 = vcmp.le.f32.partialorder %v17592_v31, 0.7853982  ;;  %v7715_v37 = vsel %vm7630_vm2, %v7714_v59, %v17101_v32  ;;  %vm7922_vm12 = vcmp.lt.f32.partialorder %v16891_v9, 5.0  ;;  %vm7527_vm8 = vcmp.lt.s32.totalorder %v16976_v61, 0  ;;  %v8290_v9 = vpop.f32.mrb[9].mxu0 }
 0x6f4   : > { %v7707_v51 = vor.u32 4788187, %v7706_v12  ;;  %v7710_v24 = vcvt.s32.f32 %v7703_v58  ;;  %v7983_v55 = vsel %vm7919_vm14, %v7855_v18, 0.0  ;;  %v17174_v43 = vshrl.u32 %v7586_v28, 30 }
 0x6f5   : > { %8871 = vperm.xlu0 %9915, %v7983_v55   ;;  %v17187_v53 = vpop.permute.xlu1 %8766  ;;  %v7717_v63 = vsel %vm17182_vm4, 0, %v7715_v37  ;;  %vm17216_vm11 = vcmp.le.f32.partialorder %v7525_v45, 0.7853982  ;;  %vm7617_vm1 = vweird.f32 %v16976_v61  ;;  %vm7921_vm3 = vcmp.lt.f32.partialorder %v16973_v34, 5.0 }
 0x6f6   : > { %v7708_v25 = vand.u32 2147483647, %v7707_v51  ;;  %v7588_v35 = vshll.u32 %v17174_v43, 30  ;;  %v17189_v42 = vpop.permute.xlu0 %8761  ;;  %v7721_v12 = vand.u32 3, %v7717_v63 }
 0x6f8   : > { %v7711_v29 = vmul.f32 %v7710_v24, %v7708_v25  ;;  %v7589_v52 = vsub.s32 %v7585_v15, %v7588_v35  ;;  %v7581_v15 = vadd.s32 %v17144_v4, %v17141_v36  ;;  %vm7726_vm6 = vcmp.eq.s32.totalorder %v7721_v12, 2 }
 0x6f9   : > { %v17195_v39 = vpop.permute.xlu1 %8776  ;;  %vm7723_vm7 = vcmp.eq.s32.totalorder %v7721_v12, 0  ;;  %vm7722_vm9 = vcmp.lt.s32.totalorder %v7721_v12, 2 }
 0x6fa   : > { %v7712_v54 = vxor.u32 2147483648, %v7711_v29  ;;  %v7591_v44 = vsub.s32 0, %v7589_v52  ;;  %v17199_v14 = vpop.permute.xlu0 %8771 }
 0x6fc   : > { %v7713_v19 = vsel %vm7630_vm2, %v7712_v54, %v7711_v29  ;;  %v9350_v3 = vmin.u32 %v7591_v44, %v7589_v52 }
 0x6fd   : > { %v7716_v21 = vsel %vm17182_vm4, %v16894_v0, %v7713_v19  ;;  %v17203_v28 = vpop.permute.xlu1 %8786 }
 0x6fe   : > { %10421 = vcosq.f32 %v7716_v21  ;;  %v7593_v16 = vclz %v9350_v3  ;;  %v17205_v55 = vpop.permute.xlu0 %8781 }
 0x6ff   : > { %10423 = vsinq.f32 %v7716_v21 }
 0x700   : > { %v9351_v58 = vadd.s32 4294967294, %v7593_v16 }
 0x701   : > { %v17208_v19 = vpop.permute.xlu1 %8796 }
 0x702   : > { %vm9352_vm5 = vcmp.lt.s32.totalorder %v9351_v58, 0  ;;  %v17210_v21 = vpop.permute.xlu0 %8791 }
 0x703   : > { %v7596_v18 = vsel %vm9352_vm5, 0, %v9351_v58 }
 0x704   : > { %v7597_v51 = vsub.s32 32, %v7596_v18  ;;  %v7598_v32 = vshll.u32 %v7589_v52, %v7596_v18  ;;  %v7601_v24 = vsub.s32 4294967266, %v7596_v18 }
 0x705   : > { %v17221_v18 = vpop.permute.xlu1 %8806 }
 0x706   : > { %v7599_v25 = vshrl.u32 %v7581_v15, %v7597_v51  ;;  %v7602_v33 = vadd.s32 127, %v7601_v24  ;;  %v7611_v15 = vsub.s32 4, %v17174_v43 }
 0x708   : > { %v10422_v60 = vpop.eup %10421  ;;  %v7600_v11 = vor.u32 %v7599_v25, %v7598_v32  ;;  %v7603_v36 = vshll.u32 %v7602_v33, 23  ;;  %v17223_v32 = vpop.permute.xlu0 %8801  ;;  %v7612_v25 = vsel %vm7527_vm8, %v7611_v15, %v17174_v43 }
 0x709   : > { %v10424_v29 = vpop.eup %10423  ;;  %v7727_v35 = vxor.u32 2147483648, %v10422_v60  ;;  %v17231_v33 = vpop.permute.xlu1 %8816 }
 0x70a   : > { %v7724_v31 = vxor.u32 2147483648, %v10424_v29  ;;  %v7604_v59 = vor.u32 4788187, %v7603_v36  ;;  %v7607_v52 = vcvt.s32.f32 %v7600_v11 }
 0x70b   : > { %v7728_v4 = vsel %vm7726_vm6, %v7727_v35, %v10424_v29  ;;  %v7614_v29 = vsel %vm17216_vm11, 0, %v7612_v25 }
 0x70c   : > { %v7725_v54 = vsel %vm7723_vm7, %v10422_v60, %v7724_v31  ;;  %v7605_v3 = vand.u32 2147483647, %v7604_v59  ;;  %v8897_v60 = vmul.f32 %v16936_v13, %v8290_v9  ;;  %v17235_v35 = vpop.permute.xlu0 %8811  ;;  %v7618_v31 = vand.u32 3, %v7614_v29 }
 0x70d   : > { %v7729_v44 = vsel %vm7722_vm9, %v7725_v54, %v7728_v4  ;;  %v17237_v11 = vpop.permute.xlu1 %8826 }
 0x70e   : > { %v7730_v37 = vsel %vm7720_vm10, nan, %v7729_v44  ;;  %v7608_v63 = vmul.f32 %v7607_v52, %v7605_v3  ;;  %8961 = vst [vmem:[%s16967_s26 + $0x40] sm:$0xff] %v8897_v60  ;;  %vm7623_vm0 = vcmp.eq.s32.totalorder %v7618_v31, 2  ;;  %vm7620_vm13 = vcmp.eq.s32.totalorder %v7618_v31, 0 }
 0x70f   : > { %v7794_v16 = vadd.f32 1.0, %v7730_v37  ;;  %vm7619_vm15 = vcmp.lt.s32.totalorder %v7618_v31, 2 }
 0x710   : > { %v7609_v12 = vxor.u32 2147483648, %v7608_v63  ;;  %v17239_v13 = vpop.permute.xlu0 %8821 }
 0x711   : > { %v7858_v58 = vmul.f32 0.5, %v7794_v16  ;;  %v17242_v44 = vpop.permute.xlu1 %8836 }
 0x712   : > { %v7610_v24 = vsel %vm7527_vm8, %v7609_v12, %v7608_v63 }
 0x713   : > { %v7986_v51 = vsel %vm7922_vm12, %v7858_v58, 0.0  ;;  %v7613_v45 = vsel %vm17216_vm11, %v16976_v61, %v7610_v24  ;;  %v9520_v61 = vpop.f32.mrb[10].mxu0  ;;  %v9553_v24 = vpop.f32.mrb[0].mxu1 }
 0x714   : > { %8886 = vperm.xlu1 %9916, %v7986_v51   ;;  %10425 = vcosq.f32 %v7613_v45  ;;  %v17244_v3 = vpop.permute.xlu0 %8831  ;;  %v8900_v51 = vmul.f32 %v9520_v61, %v16952_v27  ;;  %v8300_v9 = vpop.f32.mrb[11].mxu0  ;;  %v8922_v34 = vmul.f32 %v9553_v24, %v17151_v62 }
 0x715   : > { %10427 = vsinq.f32 %v7613_v45  ;;  %v17247_v0 = vpop.permute.xlu1 %8846  ;;  %v8899_v60 = vmul.f32 %v16954_v57, %v8300_v9  ;;  %v9523_v45 = vpop.f32.mrb[12].mxu0 }
 0x716   : > { %v8410_v25 = vpop.f32.mrb[1].mxu1  ;;  %8964 = vst [vmem:[%s16967_s26 + $0x58] sm:$0xff] %v8900_v51  ;;  %v8902_v29 = vmul.f32 %v9523_v45, %v16978_v10  ;;  %v8310_v31 = vpop.f32.mrb[13].mxu0  ;;  %8986 = vst [vmem:[%s16967_s26 + $0x108] sm:$0xff] %v8922_v34  ;;  %v17598_v51 = vld [vmem:[#allocation8_spill] sm:$0xff] }
 0x717   : > { %8963 = vst [vmem:[%s16967_s26 + $0x50] sm:$0xff] %v8899_v60  ;;  %v8901_v27 = vmul.f32 %v16980_v49, %v8310_v31  ;;  %v17599_v60 = vld [vmem:[#allocation9_spill] sm:$0xff] }
 0x718   : > { %v17249_v15 = vpop.permute.xlu0 %8841  ;;  %8966 = vst [vmem:[%s16967_s26 + $0x68] sm:$0xff] %v8902_v29 }
 0x719   : > { %8965 = vst [vmem:[%s16967_s26 + $0x60] sm:$0xff] %v8901_v27 }
 0x71e   : > { %v10426_v36 = vpop.eup %10425 }
 0x71f   : > { %v10428_v4 = vpop.eup %10427  ;;  %v7624_v43 = vxor.u32 2147483648, %v10426_v36 }
 0x720   : > { %v7621_v54 = vxor.u32 2147483648, %v10428_v4 }
 0x721   : > { %v7625_v59 = vsel %vm7623_vm0, %v7624_v43, %v10428_v4  ;;  %v9556_v4 = vpop.f32.mrb[2].mxu1  ;;  %v9526_v43 = vpop.f32.mrb[14].mxu0 }
 0x722   : > { %v7622_v52 = vsel %vm7620_vm13, %v10426_v36, %v7621_v54  ;;  %v8921_v36 = vmul.f32 %v17153_v2, %v8410_v25  ;;  %v8924_v57 = vmul.f32 %v9556_v4, %v17164_v38  ;;  %v8420_v62 = vpop.f32.mrb[3].mxu1  ;;  %v8904_v54 = vmul.f32 %v9526_v43, %v17000_v50  ;;  %v8320_v10 = vpop.f32.mrb[15].mxu0 }
 0x723   : > { %v7626_v37 = vsel %vm7619_vm15, %v7622_v52, %v7625_v59  ;;  %v8923_v2 = vmul.f32 %v17166_v7, %v8420_v62  ;;  %v9559_v59 = vpop.f32.mrb[4].mxu1  ;;  %v8903_v49 = vmul.f32 %v17002_v30, %v8320_v10  ;;  %v9529_v52 = vpop.f32.mrb[16].mxu0 }
 0x724   : > { %v7627_v16 = vsel %vm7617_vm1, nan, %v7626_v37  ;;  %8985 = vst [vmem:[%s16967_s26 + $0x100] sm:$0xff] %v8921_v36  ;;  %8988 = vst [vmem:[%s16967_s26 + $0x118] sm:$0xff] %v8924_v57  ;;  %v8926_v38 = vmul.f32 %v9559_v59, %v17170_v22  ;;  %v8430_v37 = vpop.f32.mrb[5].mxu1  ;;  %v8906_v50 = vmul.f32 %v9529_v52, %v17013_v1 }
 0x725   : > { %v7793_v63 = vadd.f32 1.0, %v7627_v16  ;;  %8968 = vst [vmem:[%s16967_s26 + $0x78] sm:$0xff] %v8904_v54  ;;  %v8330_v16 = vpop.f32.mrb[17].mxu0  ;;  %8987 = vst [vmem:[%s16967_s26 + $0x110] sm:$0xff] %v8923_v2  ;;  %v8925_v7 = vmul.f32 %v17172_v40, %v8430_v37 }
 0x726   : > { %8967 = vst [vmem:[%s16967_s26 + $0x70] sm:$0xff] %v8903_v49  ;;  %8990 = vst [vmem:[%s16967_s26 + $0x128] sm:$0xff] %v8926_v38 }
 0x727   : > { %v7857_v58 = vmul.f32 0.5, %v7793_v63  ;;  %v9562_v63 = vpop.f32.mrb[6].mxu1  ;;  %8970 = vst [vmem:[%s16967_s26 + $0x88] sm:$0xff] %v8906_v50  ;;  %8989 = vst [vmem:[%s16967_s26 + $0x120] sm:$0xff] %v8925_v7 }
 0x728   : > { %v8928_v22 = vmul.f32 %v9562_v63, %v17187_v53  ;;  %v8440_v61 = vpop.f32.mrb[7].mxu1 }
 0x729   : > { %v7985_v12 = vsel %vm7921_vm3, %v7857_v58, 0.0  ;;  %v17597_v58 = vld [vmem:[#allocation7_spill] sm:$0xff]  ;;  %v8927_v40 = vmul.f32 %v17189_v42, %v8440_v61  ;;  %v9565_v24 = vpop.f32.mrb[8].mxu1 }
 0x72a   : > { %8881 = vperm.xlu0 %9915, %v7985_v12   ;;  %v8905_v30 = vmul.f32 %v17597_v58, %v8330_v16  ;;  %v9532_v12 = vpop.f32.mrb[18].mxu0  ;;  %8992 = vst [vmem:[%s16967_s26 + $0x138] sm:$0xff] %v8928_v22  ;;  %v8930_v53 = vmul.f32 %v9565_v24, %v17195_v39  ;;  %v8450_v25 = vpop.f32.mrb[9].mxu1 }
 0x72b   : > { %v8908_v1 = vmul.f32 %v9532_v12, %v17598_v51  ;;  %v8340_v9 = vpop.f32.mrb[19].mxu0  ;;  %8991 = vst [vmem:[%s16967_s26 + $0x130] sm:$0xff] %v8927_v40  ;;  %v8929_v42 = vmul.f32 %v17199_v14, %v8450_v25  ;;  %v9568_v36 = vpop.f32.mrb[10].mxu1 }
 0x72c   : > { %8969 = vst [vmem:[%s16967_s26 + $0x80] sm:$0xff] %v8905_v30  ;;  %v8907_v45 = vmul.f32 %v17599_v60, %v8340_v9  ;;  %v9535_v34 = vpop.f32.mrb[20].mxu0  ;;  %8994 = vst [vmem:[%s16967_s26 + $0x148] sm:$0xff] %v8930_v53  ;;  %v8932_v39 = vmul.f32 %v9568_v36, %v17203_v28  ;;  %v8460_v43 = vpop.f32.mrb[11].mxu1 }
 0x72d   : > { %8972 = vst [vmem:[%s16967_s26 + $0x98] sm:$0xff] %v8908_v1  ;;  %v8910_v29 = vmul.f32 %v9535_v34, %v17044_v26  ;;  %v8350_v31 = vpop.f32.mrb[21].mxu0  ;;  %8993 = vst [vmem:[%s16967_s26 + $0x140] sm:$0xff] %v8929_v42  ;;  %v8931_v14 = vmul.f32 %v17205_v55, %v8460_v43  ;;  %v9571_v62 = vpop.f32.mrb[12].mxu1 }
 0x72e   : > { %8971 = vst [vmem:[%s16967_s26 + $0x90] sm:$0xff] %v8907_v45  ;;  %v8909_v4 = vmul.f32 %v17046_v5, %v8350_v31  ;;  %v9538_v27 = vpop.f32.mrb[22].mxu0  ;;  %8996 = vst [vmem:[%s16967_s26 + $0x158] sm:$0xff] %v8932_v39  ;;  %v8934_v28 = vmul.f32 %v9571_v62, %v17208_v19  ;;  %v8470_v10 = vpop.f32.mrb[13].mxu1 }
 0x72f   : > { %8974 = vst [vmem:[%s16967_s26 + $0xa8] sm:$0xff] %v8910_v29  ;;  %v8912_v26 = vmul.f32 %v9538_v27, %v17066_v8  ;;  %v8360_v57 = vpop.f32.mrb[23].mxu0  ;;  %8995 = vst [vmem:[%s16967_s26 + $0x150] sm:$0xff] %v8931_v14  ;;  %v8933_v55 = vmul.f32 %v17210_v21, %v8470_v10  ;;  %v9574_v59 = vpop.f32.mrb[14].mxu1 }
 0x730   : > { %8973 = vst [vmem:[%s16967_s26 + $0xa0] sm:$0xff] %v8909_v4  ;;  %v8911_v5 = vmul.f32 %v17068_v47, %v8360_v57  ;;  %v9541_v54 = vpop.f32.mrb[24].mxu0  ;;  %8998 = vst [vmem:[%s16967_s26 + $0x168] sm:$0xff] %v8934_v28  ;;  %v8936_v19 = vmul.f32 %v9574_v59, %v17221_v18  ;;  %v8480_v52 = vpop.f32.mrb[15].mxu1 }
 0x731   : > { %8976 = vst [vmem:[%s16967_s26 + $0xb8] sm:$0xff] %v8912_v26  ;;  %v8914_v8 = vmul.f32 %v9541_v54, %v17092_v41  ;;  %v8370_v2 = vpop.f32.mrb[25].mxu0  ;;  %8997 = vst [vmem:[%s16967_s26 + $0x160] sm:$0xff] %v8933_v55  ;;  %v8935_v21 = vmul.f32 %v17223_v32, %v8480_v52  ;;  %v9577_v37 = vpop.f32.mrb[16].mxu1 }
 0x732   : > { %8975 = vst [vmem:[%s16967_s26 + $0xb0] sm:$0xff] %v8911_v5  ;;  %v8913_v47 = vmul.f32 %v17094_v23, %v8370_v2  ;;  %v9544_v49 = vpop.f32.mrb[26].mxu0  ;;  %9000 = vst [vmem:[%s16967_s26 + $0x178] sm:$0xff] %v8936_v19  ;;  %v8938_v18 = vmul.f32 %v9577_v37, %v17231_v33  ;;  %v8490_v16 = vpop.f32.mrb[17].mxu1 }
 0x733   : > { %8978 = vst [vmem:[%s16967_s26 + $0xc8] sm:$0xff] %v8914_v8  ;;  %v8916_v41 = vmul.f32 %v9544_v49, %v17114_v20  ;;  %v8380_v38 = vpop.f32.mrb[27].mxu0  ;;  %8999 = vst [vmem:[%s16967_s26 + $0x170] sm:$0xff] %v8935_v21  ;;  %v8937_v32 = vmul.f32 %v17235_v35, %v8490_v16  ;;  %v8857_v35 = vpop.permute.xlu1 %8856 }
 0x734   : > { %8977 = vst [vmem:[%s16967_s26 + $0xc0] sm:$0xff] %v8913_v47  ;;  %v8915_v23 = vmul.f32 %v17116_v48, %v8380_v38  ;;  %v9547_v50 = vpop.f32.mrb[28].mxu0  ;;  %9002 = vst [vmem:[%s16967_s26 + $0x188] sm:$0xff] %v8938_v18  ;;  %v9580_v48 = vpop.f32.mrb[18].mxu1 }
 0x735   : > { %8980 = vst [vmem:[%s16967_s26 + $0xd8] sm:$0xff] %v8916_v41  ;;  %v8918_v20 = vmul.f32 %v9547_v50, %v17126_v17  ;;  %v8390_v7 = vpop.f32.mrb[29].mxu0  ;;  %9001 = vst [vmem:[%s16967_s26 + $0x180] sm:$0xff] %v8937_v32  ;;  %v8940_v17 = vmul.f32 %v9580_v48, %v17237_v11  ;;  %v8500_v12 = vpop.f32.mrb[19].mxu1 }
 0x736   : > { %8979 = vst [vmem:[%s16967_s26 + $0xd0] sm:$0xff] %v8915_v23  ;;  %v8917_v63 = vmul.f32 %v17128_v56, %v8390_v7  ;;  %v9550_v58 = vpop.f32.mrb[30].mxu0  ;;  %v8939_v22 = vmul.f32 %v17239_v13, %v8500_v12  ;;  %v9583_v61 = vpop.f32.mrb[20].mxu1 }
 0x737   : > { %8982 = vst [vmem:[%s16967_s26 + $0xe8] sm:$0xff] %v8918_v20  ;;  %v8920_v33 = vmul.f32 %v9550_v58, %v17134_v46  ;;  %v8400_v30 = vpop.f32.mrb[31].mxu0  ;;  %v8852_v51 = vpop.permute.xlu0 %8851  ;;  %9004 = vst [vmem:[%s16967_s26 + $0x198] sm:$0xff] %v8940_v17  ;;  %v8942_v46 = vmul.f32 %v9583_v61, %v17242_v44 }
 0x738   : > { %8981 = vst [vmem:[%s16967_s26 + $0xe0] sm:$0xff] %v8917_v63  ;;  %v8919_v56 = vmul.f32 %v17136_v6, %v8400_v30  ;;  %v8510_v1 = vpop.f32.mrb[21].mxu1  ;;  %9003 = vst [vmem:[%s16967_s26 + $0x190] sm:$0xff] %v8939_v22  ;;  %v8867_v45 = vpop.permute.xlu1 %8866 }
 0x739   : > { %8984 = vst [vmem:[%s16967_s26 + $0xf8] sm:$0xff] %v8920_v33  ;;  %v8941_v11 = vmul.f32 %v17244_v3, %v8510_v1  ;;  %v9586_v9 = vpop.f32.mrb[22].mxu1  ;;  %9006 = vst [vmem:[%s16967_s26 + $0x1a8] sm:$0xff] %v8942_v46 }
 0x73a   : > { %8983 = vst [vmem:[%s16967_s26 + $0xf0] sm:$0xff] %v8919_v56  ;;  %v8944_v6 = vmul.f32 %v9586_v9, %v17247_v0  ;;  %v8520_v13 = vpop.f32.mrb[23].mxu1 }
 0x73b   : > { %9005 = vst [vmem:[%s16967_s26 + $0x1a0] sm:$0xff] %v8941_v11  ;;  %v8943_v40 = vmul.f32 %v17249_v15, %v8520_v13  ;;  %v9589_v24 = vpop.f32.mrb[24].mxu1 }
 0x73c   : > { %9008 = vst [vmem:[%s16967_s26 + $0x1b8] sm:$0xff] %v8944_v6  ;;  %v8946_v44 = vmul.f32 %v9589_v24, %v8857_v35  ;;  %v8530_v60 = vpop.f32.mrb[25].mxu1 }
 0x73d   : > { %9007 = vst [vmem:[%s16967_s26 + $0x1b0] sm:$0xff] %v8943_v40  ;;  %v8945_v3 = vmul.f32 %v8852_v51, %v8530_v60  ;;  %v9592_v34 = vpop.f32.mrb[26].mxu1  ;;  %v8862_v53 = vpop.permute.xlu0 %8861 }
 0x73e   : > { %9010 = vst [vmem:[%s16967_s26 + $0x1c8] sm:$0xff] %v8946_v44  ;;  %v8948_v0 = vmul.f32 %v9592_v34, %v8867_v45  ;;  %v8540_v25 = vpop.f32.mrb[27].mxu1 }
 0x73f   : > { %9009 = vst [vmem:[%s16967_s26 + $0x1c0] sm:$0xff] %v8945_v3  ;;  %v8947_v29 = vmul.f32 %v8862_v53, %v8540_v25 }
 0x740   : > { %9012 = vst [vmem:[%s16967_s26 + $0x1d8] sm:$0xff] %v8948_v0 }
 0x741   : > { %9011 = vst [vmem:[%s16967_s26 + $0x1d0] sm:$0xff] %v8947_v29 }
 0x75f   : > { %v8877_v15 = vpop.permute.xlu1 %8876 }
 0x765   : > { %v9595_v31 = vpop.f32.mrb[28].mxu1 }
 0x766   : > { %v8950_v42 = vmul.f32 %v9595_v31, %v8877_v15  ;;  %v8550_v36 = vpop.f32.mrb[29].mxu1 }
 0x768   : > { %9014 = vst [vmem:[%s16967_s26 + $0x1e8] sm:$0xff] %v8950_v42 }
 0x774   : > { %v8872_v4 = vpop.permute.xlu0 %8871 }
 0x775   : > { %v8949_v27 = vmul.f32 %v8872_v4, %v8550_v36 }
 0x777   : > { %9013 = vst [vmem:[%s16967_s26 + $0x1e0] sm:$0xff] %v8949_v27 }
 0x793   : > { %v8887_v39 = vpop.permute.xlu1 %8886 }
 0x79b   : > { %v9598_v43 = vpop.f32.mrb[30].mxu1 }
 0x79c   : > { %v8952_v26 = vmul.f32 %v9598_v43, %v8887_v39  ;;  %v8560_v57 = vpop.f32.mrb[31].mxu1 }
 0x79e   : > { %9016 = vst [vmem:[%s16967_s26 + $0x1f8] sm:$0xff] %v8952_v26 }
 0x7a9   : > { %v8882_v14 = vpop.permute.xlu0 %8881 }
 0x7aa   : > { %v8951_v62 = vmul.f32 %v8882_v14, %v8560_v57 }
 0x7ac   : > { %9015 = vst [vmem:[%s16967_s26 + $0x1f0] sm:$0xff] %v8951_v62 }
 0x7ad   : > { %10516 = shalt.err (!%p10513_p3)
}
 0x7ae   : > { %s10517_s9 = scalar_lea.hbm %s17355_s4, 8192  ;;  %s10521_s17 = scalar_lea.hbm %s17406_s3, 16384 }
 0x7af   : > { %p10518_p4 = scmp.ne.s32.totalorder %s17355_s4, %s10517_s9  ;;  %p10522_p9 = scmp.lt.u32.totalorder %s17355_s4, %s17406_s3 }
 0x7b0   : > { %p10523_p10 = scmp.lt.u32.totalorder %s10521_s17, %s10517_s9  ;;  %p10525_p12 = scmp.lt.u32.totalorder %s10517_s9, %s17355_s4 }
 0x7b1   : > { %p10519_p7 = pnand %p10518_p4, %p10635_p5 }
 0x7b2   : > { %p10524_p11 = por %p10523_p10, %p10522_p9 }
 0x7b3   : > { %p10520_p8 = pneg %p10519_p7 }
 0x7b4   : > { %p10526_p13 = por %p10525_p12, %p10524_p11 }
 0x7b6   : > { %p10527_p0 = pnand %p10526_p13, %p10520_p8 }
 0x7b8   : > { %10530 = shalt.err (!%p10527_p0)
}
 0x7b9   : > { %s10575_s24 = smov 128   ;;  %s10576_s25 = smov 8  }
 0x7ba   : > { %9867 = dma.vmem_to_hbm [thread:$0]  (%p10635_p5), %s17357_s27, 8192, %s17355_s4, %s17362_s5, %s10575_s24, %s10575_s24, %s10576_s25  }
 0x7bb PF: > { %p9873_p1 = scmp.ge.s32.totalorder %s10565_s15, 2  ;;  %s9046_s26 = sand.u32 1, %s10553_s12  }
 0x7bc   : > { %s9047_s28 = scalar_lea.sflag [#allocation3], %s9046_s26 }
 0x7bd   : > { %p9870_p2 = pnand %p9873_p1, %p10639_p6 }
 0x7bf   : > { %10548 = dma.done.wait (!%p9870_p2), %s9047_s28, 8192  }
 0x7c0   : > { %10550 = vsyncadd (!%p9870_p2), %s9047_s28, 4294959104  ;;  %p13_p3 = scmp.ge.s32.totalorder %s10622_s18, 4   ;;  %s17600_s12 = smov %s10557_s13 }
 0x7c1   : > { %s17601_s13 = smov %s10561_s14  ;;  %s17602_s14 = smov %s10633_s21 }
 0x7c2   : > { %s17603_s15 = smov %s10622_s18  ;;  %15 = sbr.rel (!%p13_p3) target bundleno = 3 (0x3), region = 67 }
 0x7c9   :  { %9052 = vsyncpa [#allocation3], 1 }
 0x7ca   :  { %9054 = vsyncpa [#allocation3 + $0x1], 1 }

</bundles_post_ra>
